<compile_context>
chip_gen: v6e
topology: v6e:2x2x1
jax: 0.10.0
libtpu: 0.0.40
codegen_flags: <defaults>
</compile_context>

<pallas_src>
import jax
import jax.numpy as jnp
from jax.experimental import pallas as pl
from jax.experimental.pallas import tpu as pltpu


# ---------------------------------------------------------------------------
# Kernel
# ---------------------------------------------------------------------------
def _make_kernel(L1, L2, L3, L4, L5, BB):
    """L1/L3/L5: conv output lengths; L2/L4: pooled lengths; BB: batch block."""

    def conv_relu(p, w_ref, b_ref, l_out):
        # p: (L_in, BB, Cin) value.  w_ref: (3, Cin, Cout).  Three per-tap 2-D
        # MXU matmuls accumulated in f32 (K = Cin = 16 / 32); the (Lout, BB)
        # collapse is a layout-free sublane merge because BB % 8 == 0.
        c_in = p.shape[-1]
        c_out = w_ref.shape[-1]
        acc = None
        for k in range(3):
            tap = p[k:k + l_out].reshape(l_out * BB, c_in).astype(w_ref.dtype)
            d = jnp.dot(tap, w_ref[k], preferred_element_type=jnp.float32)
            acc = d if acc is None else acc + d
        h = acc.reshape(l_out, BB, c_out) + b_ref[...]
        return jnp.maximum(h, 0.0)

    def pool_pairs(h, l_out):
        # MaxPool1d(2): one pairwise max over the leading length axis
        # (leading-dim-only reshape, drops the trailing odd element like torch).
        pairs = h[:2 * l_out].reshape(l_out, 2, BB, h.shape[-1])
        return jnp.maximum(pairs[:, 0], pairs[:, 1])

    def kernel(xc_ref, w1, b1, w2, b2, w3, b3, fw1, fb1, fw2, fb2, out_ref):
        # conv1 (+ReLU): taps pre-packed on the lane axis by the wrapper
        # -> one (L1*BB, KP) x (KP, 16) MXU matmul.
        kp = xc_ref.shape[-1]
        xc = xc_ref[...].reshape(L1 * BB, kp).astype(w1.dtype)
        h1 = jnp.dot(xc, w1[...], preferred_element_type=jnp.float32)
        h1 = jnp.maximum(h1.reshape(L1, BB, 16) + b1[...], 0.0)

        p1 = pool_pairs(h1, L2)                      # pool1            (L2, BB, 16)
        h2 = conv_relu(p1, w2, b2, L3)               # conv2 + relu     (L3, BB, 32)
        p2 = pool_pairs(h2, L4)                      # pool2            (L4, BB, 32)
        h3 = conv_relu(p2, w3, b3, L5)               # conv3 + relu     (L5, BB, 64)

        # AdaptiveMaxPool1d(1): reduce over the leading length axis.
        g = jnp.max(h3, axis=0).astype(fw1.dtype)    # (BB, 64)

        # Batched FC head; fc2 weights/bias are padded to 128 output lanes so
        # the store is lane-dense.
        z1 = jnp.maximum(
            jnp.dot(g, fw1[...], preferred_element_type=jnp.float32) + fb1[...],
            0.0)
        z2 = jnp.dot(z1.astype(fw2.dtype), fw2[...],
                     preferred_element_type=jnp.float32) + fb2[...]
        out_ref[...] = z2.astype(out_ref.dtype)      # (BB, 128)

    return kernel


# ---------------------------------------------------------------------------
# Wrapper
# ---------------------------------------------------------------------------
def conv1dnet_forward(x, params, block_batch=128, compute_dtype=jnp.float32):
    """x: (B, L, 1) float32 (== PyTorch (B, 1, L) transposed). Returns (B, NC)."""
    B, L, c_in = x.shape
    assert c_in == 1
    L1 = L - 2          # conv1 (k=3, 'valid')
    L2 = L1 // 2        # pool1
    L3 = L2 - 2         # conv2
    L4 = L3 // 2        # pool2
    L5 = L4 - 2         # conv3
    assert L5 >= 1, "input length too short for Conv1DNet"
    NC = params["fw2"].shape[1]
    NC_PAD = 128        # lane-dense output block width
    KP = 8              # conv1 taps (3) padded to 8 lanes -> 32-byte DMA rows

    # --- batch blocking ----------------------------------------------------
    # BB multiple of 8, minimal padding; keep >=2 grid steps when B allows so
    # the "parallel" batch axis can shard across both v7x TensorCores.
    if B <= 8:
        BB, nsteps = 8, 1
    else:
        nsteps = max(2, pl.cdiv(B, block_batch))
        BB = 8 * pl.cdiv(pl.cdiv(B, nsteps), 8)
        nsteps = pl.cdiv(B, BB)
    B_pad = nsteps * BB

    # --- layout plumbing (outside the kernel) -------------------------------
    # Pre-pack the 3 conv1 input taps along the lane axis (gather only, no
    # arithmetic) and put batch on the sublane axis with length leading.
    x2 = jnp.pad(x[:, :, 0], ((0, B_pad - B), (0, 0)))               # (B_pad, L)
    taps = jnp.stack([x2[:, k:k + L1] for k in range(3)], axis=-1)   # (B_pad, L1, 3)
    taps = jnp.pad(taps, ((0, 0), (0, 0), (0, KP - 3)))              # (B_pad, L1, KP)
    x_col = jnp.transpose(taps, (1, 0, 2))                           # (L1, B_pad, KP)

    w1p = jnp.zeros((KP, 16), jnp.float32).at[:3].set(params["w1"].reshape(3, 16))
    fw2p = jnp.zeros((64, NC_PAD), jnp.float32).at[:, :NC].set(params["fw2"])
    fb2p = jnp.zeros((1, NC_PAD), jnp.float32).at[:, :NC].set(params["fb2"])

    mm = compute_dtype  # matmul-operand dtype only; accumulation stays f32
    weights = [w1p.astype(mm), params["b1"],
               params["w2"].astype(mm), params["b2"],
               params["w3"].astype(mm), params["b3"],
               params["fw1"].astype(mm), params["fb1"],
               fw2p.astype(mm), fb2p]

    def const_spec(arr):                              # grid-invariant full block
        n = arr.ndim
        return pl.BlockSpec(arr.shape, lambda i, _n=n: (0,) * _n)

    out = pl.pallas_call(
        _make_kernel(L1, L2, L3, L4, L5, BB),
        out_shape=jax.ShapeDtypeStruct((B_pad, NC_PAD), jnp.float32),
        grid=(nsteps,),
        in_specs=[pl.BlockSpec((L1, BB, KP), lambda i: (0, i, 0))]
                 + [const_spec(w) for w in weights],
        out_specs=pl.BlockSpec((BB, NC_PAD), lambda i: (i, 0)),
        compiler_params=pltpu.CompilerParams(
            dimension_semantics=("parallel",),        # batch axis -> 2 TCs on v7x
            vmem_limit_bytes=48 * 1024 * 1024),
    )(x_col, *weights)
    return out[:B, :NC]


# ---------------------------------------------------------------------------
# Deterministic parameter init (shapes from Conv1DNet.__init__)
# ---------------------------------------------------------------------------
def init_params(key, num_classes):
    ks = jax.random.split(key, 10)

    def w(k, shape, fan_in):
        return jax.random.normal(k, shape, jnp.float32) / jnp.sqrt(float(fan_in))

    return {
        "w1": w(ks[0], (3, 1, 16), 3 * 1),      # Conv1d(1, 16, 3)
        "b1": w(ks[1], (1, 16), 3 * 1),
        "w2": w(ks[2], (3, 16, 32), 3 * 16),    # Conv1d(16, 32, 3)
        "b2": w(ks[3], (1, 32), 3 * 16),
        "w3": w(ks[4], (3, 32, 64), 3 * 32),    # Conv1d(32, 64, 3)
        "b3": w(ks[5], (1, 64), 3 * 32),
        "fw1": w(ks[6], (64, 64), 64),          # Linear(64, 64)
        "fb1": w(ks[7], (1, 64), 64),
        "fw2": w(ks[8], (64, num_classes), 64), # Linear(64, num_classes)
        "fb2": w(ks[9], (1, num_classes), 64),
    }


# ---------------------------------------------------------------------------
# Pure-JAX reference (same semantics as the PyTorch forward) for validation
# ---------------------------------------------------------------------------
def reference_forward(x, p):
    def conv_relu(h, w, b):
        l_out = h.shape[1] - w.shape[0] + 1
        acc = jnp.zeros((h.shape[0], l_out, w.shape[2]), jnp.float32)
        for k in range(w.shape[0]):
            acc = acc + jnp.einsum("blc,cd->bld", h[:, k:k + l_out, :], w[k])
        return jnp.maximum(acc + b, 0.0)

    def pool(h):
        l_out = h.shape[1] // 2
        return jnp.maximum(h[:, 0:2 * l_out:2, :], h[:, 1:2 * l_out:2, :])

    h = pool(conv_relu(x, p["w1"], p["b1"]))
    h = pool(conv_relu(h, p["w2"], p["b2"]))
    h = conv_relu(h, p["w3"], p["b3"])
    g = jnp.max(h, axis=1)                       # AdaptiveMaxPool1d(1) + flatten
    z = jnp.maximum(g @ p["fw1"] + p["fb1"], 0.0)
    return z @ p["fw2"] + p["fb2"]


if __name__ == "__main__":
    key = jax.random.PRNGKey(0)
    kx, kp = jax.random.split(key)

    B, L, NUM_CLASSES = 40, 64, 10
    # PyTorch input would be (B, 1, L); kernel wrapper takes (B, L, 1).
    x = jax.random.normal(kx, (B, L, 1), jnp.float32)
    params = init_params(kp, NUM_CLASSES)

    out = jax.block_until_ready(conv1dnet_forward(x, params))
    ref = reference_forward(x, params)

    assert out.shape == (B, NUM_CLASSES)
    if not jnp.allclose(out, ref, rtol=1e-2, atol=1e-2):
        raise AssertionError("Pallas output does not match JAX reference")
    print("KERNEL_OK")
</pallas_src>

<mosaic_0001>
module attributes {stable_mosaic.version = 11 : i64} {
  func.func @kernel(%arg0: i32, %arg1: memref<62x24x8xf32, #tpu.memory_space<vmem>>, %arg2: memref<8x16xf32, #tpu.memory_space<vmem>>, %arg3: memref<1x16xf32, #tpu.memory_space<vmem>>, %arg4: memref<3x16x32xf32, #tpu.memory_space<vmem>>, %arg5: memref<1x32xf32, #tpu.memory_space<vmem>>, %arg6: memref<3x32x64xf32, #tpu.memory_space<vmem>>, %arg7: memref<1x64xf32, #tpu.memory_space<vmem>>, %arg8: memref<64x64xf32, #tpu.memory_space<vmem>>, %arg9: memref<1x64xf32, #tpu.memory_space<vmem>>, %arg10: memref<64x128xf32, #tpu.memory_space<vmem>>, %arg11: memref<1x128xf32, #tpu.memory_space<vmem>>, %arg12: memref<24x128xf32, #tpu.memory_space<vmem>>) attributes {dimension_semantics = [#tpu.dimension_semantics<parallel>], iteration_bounds = array<i64: 2>, scalar_prefetch = 0 : i64, scratch_operands = 0 : i64, tpu.core_type = #tpu.core_type<tc>, window_params = [{transform_indices = @transform_0, window_bounds = array<i64: 62, 24, 8>}, {pipeline_mode = #tpu.pipeline_mode<synchronous>, transform_indices = @transform_1, window_bounds = array<i64: 8, 16>}, {pipeline_mode = #tpu.pipeline_mode<synchronous>, transform_indices = @transform_2, window_bounds = array<i64: 1, 16>}, {pipeline_mode = #tpu.pipeline_mode<synchronous>, transform_indices = @transform_3, window_bounds = array<i64: 3, 16, 32>}, {pipeline_mode = #tpu.pipeline_mode<synchronous>, transform_indices = @transform_4, window_bounds = array<i64: 1, 32>}, {pipeline_mode = #tpu.pipeline_mode<synchronous>, transform_indices = @transform_5, window_bounds = array<i64: 3, 32, 64>}, {pipeline_mode = #tpu.pipeline_mode<synchronous>, transform_indices = @transform_6, window_bounds = array<i64: 1, 64>}, {pipeline_mode = #tpu.pipeline_mode<synchronous>, transform_indices = @transform_7, window_bounds = array<i64: 64, 64>}, {pipeline_mode = #tpu.pipeline_mode<synchronous>, transform_indices = @transform_8, window_bounds = array<i64: 1, 64>}, {pipeline_mode = #tpu.pipeline_mode<synchronous>, transform_indices = @transform_9, window_bounds = array<i64: 64, 128>}, {pipeline_mode = #tpu.pipeline_mode<synchronous>, transform_indices = @transform_10, window_bounds = array<i64: 1, 128>}, {transform_indices = @transform_11, window_bounds = array<i64: 24, 128>}]} {
    %c0 = arith.constant 0 : index
    %c0_0 = arith.constant 0 : index
    %c0_1 = arith.constant 0 : index
    %0 = vector.load %arg1[%c0, %c0_0, %c0_1] : memref<62x24x8xf32, #tpu.memory_space<vmem>>, vector<62x24x8xf32>
    %1 = vector.shape_cast %0 : vector<62x24x8xf32> to vector<1488x8xf32>
    %c0_2 = arith.constant 0 : index
    %c0_3 = arith.constant 0 : index
    %2 = vector.load %arg2[%c0_2, %c0_3] : memref<8x16xf32, #tpu.memory_space<vmem>>, vector<8x16xf32>
    %cst = arith.constant dense<0.000000e+00> : vector<1488x16xf32>
    %3 = tpu.matmul %1, %2, %cst {dimension_numbers = #tpu.dot_dimension_numbers<[1], [0], [0], [1], [0, 0, 1, 1], [], []>} : vector<1488x8xf32>, vector<8x16xf32>, vector<1488x16xf32> -> vector<1488x16xf32>
    %4 = vector.shape_cast %3 : vector<1488x16xf32> to vector<62x24x16xf32>
    %c0_4 = arith.constant 0 : index
    %c0_5 = arith.constant 0 : index
    %5 = vector.load %arg3[%c0_4, %c0_5] : memref<1x16xf32, #tpu.memory_space<vmem>>, vector<1x16xf32>
    %6 = vector.shape_cast %5 : vector<1x16xf32> to vector<1x1x16xf32>
    %7 = vector.broadcast %6 : vector<1x1x16xf32> to vector<62x24x16xf32>
    %8 = arith.addf %4, %7 : vector<62x24x16xf32>
    %cst_6 = arith.constant 0.000000e+00 : f32
    %9 = vector.broadcast %cst_6 : f32 to vector<62x24x16xf32>
    %10 = arith.maximumf %8, %9 : vector<62x24x16xf32>
    %11 = vector.shape_cast %10 : vector<62x24x16xf32> to vector<31x2x24x16xf32>
    %12 = vector.extract_strided_slice %11 {offsets = [0, 0, 0, 0], sizes = [31, 1, 24, 16], strides = [1, 1, 1, 1]} : vector<31x2x24x16xf32> to vector<31x1x24x16xf32>
    %13 = vector.shape_cast %12 : vector<31x1x24x16xf32> to vector<31x24x16xf32>
    %14 = vector.extract_strided_slice %11 {offsets = [0, 1, 0, 0], sizes = [31, 1, 24, 16], strides = [1, 1, 1, 1]} : vector<31x2x24x16xf32> to vector<31x1x24x16xf32>
    %15 = vector.shape_cast %14 : vector<31x1x24x16xf32> to vector<31x24x16xf32>
    %16 = arith.maximumf %13, %15 : vector<31x24x16xf32>
    %17 = vector.extract_strided_slice %16 {offsets = [0, 0, 0], sizes = [29, 24, 16], strides = [1, 1, 1]} : vector<31x24x16xf32> to vector<29x24x16xf32>
    %18 = vector.shape_cast %17 : vector<29x24x16xf32> to vector<696x16xf32>
    %c0_7 = arith.constant 0 : index
    %c0_8 = arith.constant 0 : index
    %c0_9 = arith.constant 0 : index
    %19 = vector.load %arg4[%c0_7, %c0_8, %c0_9] : memref<3x16x32xf32, #tpu.memory_space<vmem>>, vector<1x16x32xf32>
    %20 = vector.shape_cast %19 : vector<1x16x32xf32> to vector<16x32xf32>
    %cst_10 = arith.constant dense<0.000000e+00> : vector<696x32xf32>
    %21 = tpu.matmul %18, %20, %cst_10 {dimension_numbers = #tpu.dot_dimension_numbers<[1], [0], [0], [1], [0, 0, 1, 1], [], []>} : vector<696x16xf32>, vector<16x32xf32>, vector<696x32xf32> -> vector<696x32xf32>
    %22 = vector.extract_strided_slice %16 {offsets = [1, 0, 0], sizes = [29, 24, 16], strides = [1, 1, 1]} : vector<31x24x16xf32> to vector<29x24x16xf32>
    %23 = vector.shape_cast %22 : vector<29x24x16xf32> to vector<696x16xf32>
    %c1 = arith.constant 1 : index
    %c0_11 = arith.constant 0 : index
    %c0_12 = arith.constant 0 : index
    %24 = vector.load %arg4[%c1, %c0_11, %c0_12] : memref<3x16x32xf32, #tpu.memory_space<vmem>>, vector<1x16x32xf32>
    %25 = vector.shape_cast %24 : vector<1x16x32xf32> to vector<16x32xf32>
    %cst_13 = arith.constant dense<0.000000e+00> : vector<696x32xf32>
    %26 = tpu.matmul %23, %25, %cst_13 {dimension_numbers = #tpu.dot_dimension_numbers<[1], [0], [0], [1], [0, 0, 1, 1], [], []>} : vector<696x16xf32>, vector<16x32xf32>, vector<696x32xf32> -> vector<696x32xf32>
    %27 = arith.addf %21, %26 : vector<696x32xf32>
    %28 = vector.extract_strided_slice %16 {offsets = [2, 0, 0], sizes = [29, 24, 16], strides = [1, 1, 1]} : vector<31x24x16xf32> to vector<29x24x16xf32>
    %29 = vector.shape_cast %28 : vector<29x24x16xf32> to vector<696x16xf32>
    %c2 = arith.constant 2 : index
    %c0_14 = arith.constant 0 : index
    %c0_15 = arith.constant 0 : index
    %30 = vector.load %arg4[%c2, %c0_14, %c0_15] : memref<3x16x32xf32, #tpu.memory_space<vmem>>, vector<1x16x32xf32>
    %31 = vector.shape_cast %30 : vector<1x16x32xf32> to vector<16x32xf32>
    %cst_16 = arith.constant dense<0.000000e+00> : vector<696x32xf32>
    %32 = tpu.matmul %29, %31, %cst_16 {dimension_numbers = #tpu.dot_dimension_numbers<[1], [0], [0], [1], [0, 0, 1, 1], [], []>} : vector<696x16xf32>, vector<16x32xf32>, vector<696x32xf32> -> vector<696x32xf32>
    %33 = arith.addf %27, %32 : vector<696x32xf32>
    %34 = vector.shape_cast %33 : vector<696x32xf32> to vector<29x24x32xf32>
    %c0_17 = arith.constant 0 : index
    %c0_18 = arith.constant 0 : index
    %35 = vector.load %arg5[%c0_17, %c0_18] : memref<1x32xf32, #tpu.memory_space<vmem>>, vector<1x32xf32>
    %36 = vector.shape_cast %35 : vector<1x32xf32> to vector<1x1x32xf32>
    %37 = vector.broadcast %36 : vector<1x1x32xf32> to vector<29x24x32xf32>
    %38 = arith.addf %34, %37 : vector<29x24x32xf32>
    %cst_19 = arith.constant 0.000000e+00 : f32
    %39 = vector.broadcast %cst_19 : f32 to vector<29x24x32xf32>
    %40 = arith.maximumf %38, %39 : vector<29x24x32xf32>
    %41 = vector.extract_strided_slice %40 {offsets = [0, 0, 0], sizes = [28, 24, 32], strides = [1, 1, 1]} : vector<29x24x32xf32> to vector<28x24x32xf32>
    %42 = vector.shape_cast %41 : vector<28x24x32xf32> to vector<14x2x24x32xf32>
    %43 = vector.extract_strided_slice %42 {offsets = [0, 0, 0, 0], sizes = [14, 1, 24, 32], strides = [1, 1, 1, 1]} : vector<14x2x24x32xf32> to vector<14x1x24x32xf32>
    %44 = vector.shape_cast %43 : vector<14x1x24x32xf32> to vector<14x24x32xf32>
    %45 = vector.extract_strided_slice %42 {offsets = [0, 1, 0, 0], sizes = [14, 1, 24, 32], strides = [1, 1, 1, 1]} : vector<14x2x24x32xf32> to vector<14x1x24x32xf32>
    %46 = vector.shape_cast %45 : vector<14x1x24x32xf32> to vector<14x24x32xf32>
    %47 = arith.maximumf %44, %46 : vector<14x24x32xf32>
    %48 = vector.extract_strided_slice %47 {offsets = [0, 0, 0], sizes = [12, 24, 32], strides = [1, 1, 1]} : vector<14x24x32xf32> to vector<12x24x32xf32>
    %49 = vector.shape_cast %48 : vector<12x24x32xf32> to vector<288x32xf32>
    %c0_20 = arith.constant 0 : index
    %c0_21 = arith.constant 0 : index
    %c0_22 = arith.constant 0 : index
    %50 = vector.load %arg6[%c0_20, %c0_21, %c0_22] : memref<3x32x64xf32, #tpu.memory_space<vmem>>, vector<1x32x64xf32>
    %51 = vector.shape_cast %50 : vector<1x32x64xf32> to vector<32x64xf32>
    %cst_23 = arith.constant dense<0.000000e+00> : vector<288x64xf32>
    %52 = tpu.matmul %49, %51, %cst_23 {dimension_numbers = #tpu.dot_dimension_numbers<[1], [0], [0], [1], [0, 0, 1, 1], [], []>} : vector<288x32xf32>, vector<32x64xf32>, vector<288x64xf32> -> vector<288x64xf32>
    %53 = vector.extract_strided_slice %47 {offsets = [1, 0, 0], sizes = [12, 24, 32], strides = [1, 1, 1]} : vector<14x24x32xf32> to vector<12x24x32xf32>
    %54 = vector.shape_cast %53 : vector<12x24x32xf32> to vector<288x32xf32>
    %c1_24 = arith.constant 1 : index
    %c0_25 = arith.constant 0 : index
    %c0_26 = arith.constant 0 : index
    %55 = vector.load %arg6[%c1_24, %c0_25, %c0_26] : memref<3x32x64xf32, #tpu.memory_space<vmem>>, vector<1x32x64xf32>
    %56 = vector.shape_cast %55 : vector<1x32x64xf32> to vector<32x64xf32>
    %cst_27 = arith.constant dense<0.000000e+00> : vector<288x64xf32>
    %57 = tpu.matmul %54, %56, %cst_27 {dimension_numbers = #tpu.dot_dimension_numbers<[1], [0], [0], [1], [0, 0, 1, 1], [], []>} : vector<288x32xf32>, vector<32x64xf32>, vector<288x64xf32> -> vector<288x64xf32>
    %58 = arith.addf %52, %57 : vector<288x64xf32>
    %59 = vector.extract_strided_slice %47 {offsets = [2, 0, 0], sizes = [12, 24, 32], strides = [1, 1, 1]} : vector<14x24x32xf32> to vector<12x24x32xf32>
    %60 = vector.shape_cast %59 : vector<12x24x32xf32> to vector<288x32xf32>
    %c2_28 = arith.constant 2 : index
    %c0_29 = arith.constant 0 : index
    %c0_30 = arith.constant 0 : index
    %61 = vector.load %arg6[%c2_28, %c0_29, %c0_30] : memref<3x32x64xf32, #tpu.memory_space<vmem>>, vector<1x32x64xf32>
    %62 = vector.shape_cast %61 : vector<1x32x64xf32> to vector<32x64xf32>
    %cst_31 = arith.constant dense<0.000000e+00> : vector<288x64xf32>
    %63 = tpu.matmul %60, %62, %cst_31 {dimension_numbers = #tpu.dot_dimension_numbers<[1], [0], [0], [1], [0, 0, 1, 1], [], []>} : vector<288x32xf32>, vector<32x64xf32>, vector<288x64xf32> -> vector<288x64xf32>
    %64 = arith.addf %58, %63 : vector<288x64xf32>
    %65 = vector.shape_cast %64 : vector<288x64xf32> to vector<12x24x64xf32>
    %c0_32 = arith.constant 0 : index
    %c0_33 = arith.constant 0 : index
    %66 = vector.load %arg7[%c0_32, %c0_33] : memref<1x64xf32, #tpu.memory_space<vmem>>, vector<1x64xf32>
    %67 = vector.shape_cast %66 : vector<1x64xf32> to vector<1x1x64xf32>
    %68 = vector.broadcast %67 : vector<1x1x64xf32> to vector<12x24x64xf32>
    %69 = arith.addf %65, %68 : vector<12x24x64xf32>
    %cst_34 = arith.constant 0.000000e+00 : f32
    %70 = vector.broadcast %cst_34 : f32 to vector<12x24x64xf32>
    %71 = arith.maximumf %69, %70 : vector<12x24x64xf32>
    %cst_35 = arith.constant dense<0xFF800000> : vector<24x64xf32>
    %72 = vector.multi_reduction <maximumf>, %71, %cst_35 [0] : vector<12x24x64xf32> to vector<24x64xf32>
    %c0_36 = arith.constant 0 : index
    %c0_37 = arith.constant 0 : index
    %73 = vector.load %arg8[%c0_36, %c0_37] : memref<64x64xf32, #tpu.memory_space<vmem>>, vector<64x64xf32>
    %cst_38 = arith.constant dense<0.000000e+00> : vector<24x64xf32>
    %74 = tpu.matmul %72, %73, %cst_38 {dimension_numbers = #tpu.dot_dimension_numbers<[1], [0], [0], [1], [0, 0, 1, 1], [], []>} : vector<24x64xf32>, vector<64x64xf32>, vector<24x64xf32> -> vector<24x64xf32>
    %c0_39 = arith.constant 0 : index
    %c0_40 = arith.constant 0 : index
    %75 = vector.load %arg9[%c0_39, %c0_40] : memref<1x64xf32, #tpu.memory_space<vmem>>, vector<1x64xf32>
    %76 = vector.broadcast %75 : vector<1x64xf32> to vector<24x64xf32>
    %77 = arith.addf %74, %76 : vector<24x64xf32>
    %cst_41 = arith.constant 0.000000e+00 : f32
    %78 = vector.broadcast %cst_41 : f32 to vector<24x64xf32>
    %79 = arith.maximumf %77, %78 : vector<24x64xf32>
    %c0_42 = arith.constant 0 : index
    %c0_43 = arith.constant 0 : index
    %80 = vector.load %arg10[%c0_42, %c0_43] : memref<64x128xf32, #tpu.memory_space<vmem>>, vector<64x128xf32>
    %cst_44 = arith.constant dense<0.000000e+00> : vector<24x128xf32>
    %81 = tpu.matmul %79, %80, %cst_44 {dimension_numbers = #tpu.dot_dimension_numbers<[1], [0], [0], [1], [0, 0, 1, 1], [], []>} : vector<24x64xf32>, vector<64x128xf32>, vector<24x128xf32> -> vector<24x128xf32>
    %c0_45 = arith.constant 0 : index
    %c0_46 = arith.constant 0 : index
    %82 = vector.load %arg11[%c0_45, %c0_46] : memref<1x128xf32, #tpu.memory_space<vmem>>, vector<1x128xf32>
    %83 = vector.broadcast %82 : vector<1x128xf32> to vector<24x128xf32>
    %84 = arith.addf %81, %83 : vector<24x128xf32>
    %c0_47 = arith.constant 0 : index
    %c0_48 = arith.constant 0 : index
    %85 = vector.load %arg12[%c0_47, %c0_48] : memref<24x128xf32, #tpu.memory_space<vmem>>, vector<24x128xf32>
    tpu.vector_store %arg12[%c0_47, %c0_48], %84 {strides = array<i32>} : memref<24x128xf32, #tpu.memory_space<vmem>>, vector<24x128xf32>,
    return
  }
  func.func @transform_0(%arg0: i32) -> (i32, i32, i32) {
    %c0_i32 = arith.constant 0 : i32
    %c0_i32_0 = arith.constant 0 : i32
    %c0_i32_1 = arith.constant 0 : i32
    return %c0_i32, %arg0, %c0_i32_0 : i32, i32, i32
  }
  func.func @transform_1(%arg0: i32) -> (i32, i32) {
    %c0_i32 = arith.constant 0 : i32
    %c0_i32_0 = arith.constant 0 : i32
    %c0_i32_1 = arith.constant 0 : i32
    return %c0_i32, %c0_i32_0 : i32, i32
  }
  func.func @transform_2(%arg0: i32) -> (i32, i32) {
    %c0_i32 = arith.constant 0 : i32
    %c0_i32_0 = arith.constant 0 : i32
    %c0_i32_1 = arith.constant 0 : i32
    return %c0_i32, %c0_i32_0 : i32, i32
  }
  func.func @transform_3(%arg0: i32) -> (i32, i32, i32) {
    %c0_i32 = arith.constant 0 : i32
    %c0_i32_0 = arith.constant 0 : i32
    %c0_i32_1 = arith.constant 0 : i32
    %c0_i32_2 = arith.constant 0 : i32
    return %c0_i32, %c0_i32_0, %c0_i32_1 : i32, i32, i32
  }
  func.func @transform_4(%arg0: i32) -> (i32, i32) {
    %c0_i32 = arith.constant 0 : i32
    %c0_i32_0 = arith.constant 0 : i32
    %c0_i32_1 = arith.constant 0 : i32
    return %c0_i32, %c0_i32_0 : i32, i32
  }
  func.func @transform_5(%arg0: i32) -> (i32, i32, i32) {
    %c0_i32 = arith.constant 0 : i32
    %c0_i32_0 = arith.constant 0 : i32
    %c0_i32_1 = arith.constant 0 : i32
    %c0_i32_2 = arith.constant 0 : i32
    return %c0_i32, %c0_i32_0, %c0_i32_1 : i32, i32, i32
  }
  func.func @transform_6(%arg0: i32) -> (i32, i32) {
    %c0_i32 = arith.constant 0 : i32
    %c0_i32_0 = arith.constant 0 : i32
    %c0_i32_1 = arith.constant 0 : i32
    return %c0_i32, %c0_i32_0 : i32, i32
  }
  func.func @transform_7(%arg0: i32) -> (i32, i32) {
    %c0_i32 = arith.constant 0 : i32
    %c0_i32_0 = arith.constant 0 : i32
    %c0_i32_1 = arith.constant 0 : i32
    return %c0_i32, %c0_i32_0 : i32, i32
  }
  func.func @transform_8(%arg0: i32) -> (i32, i32) {
    %c0_i32 = arith.constant 0 : i32
    %c0_i32_0 = arith.constant 0 : i32
    %c0_i32_1 = arith.constant 0 : i32
    return %c0_i32, %c0_i32_0 : i32, i32
  }
  func.func @transform_9(%arg0: i32) -> (i32, i32) {
    %c0_i32 = arith.constant 0 : i32
    %c0_i32_0 = arith.constant 0 : i32
    %c0_i32_1 = arith.constant 0 : i32
    return %c0_i32, %c0_i32_0 : i32, i32
  }
  func.func @transform_10(%arg0: i32) -> (i32, i32) {
    %c0_i32 = arith.constant 0 : i32
    %c0_i32_0 = arith.constant 0 : i32
    %c0_i32_1 = arith.constant 0 : i32
    return %c0_i32, %c0_i32_0 : i32, i32
  }
  func.func @transform_11(%arg0: i32) -> (i32, i32) {
    %c0_i32 = arith.constant 0 : i32
    %c0_i32_0 = arith.constant 0 : i32
    return %arg0, %c0_i32 : i32, i32
  }
}

</mosaic_0001>

<bundles_post_ra>
// kernel: tpu_custom_call.1
= control target key start
LH: loop header
LB: loop body
LE: loop exit
PB: predicated region body
PF: predicated region fallthrough
CT: control target
= control target key end

     0   :  { %s13061_s0 = inlined_call_operand.vmem [shape: f32[62,48,8], index: 0, kind: input, shape index: {}]   ;;  %s13062_s1 = inlined_call_operand.vmem [shape: f32[8,16], index: 1, kind: input, shape index: {}]   ;;  %s13063_s2 = inlined_call_operand.vmem [shape: f32[1,16], index: 2, kind: input, shape index: {}]   ;;  %s13064_s3 = inlined_call_operand.vmem [shape: f32[3,16,32], index: 3, kind: input, shape index: {}]   ;;  %s13065_s4 = inlined_call_operand.vmem [shape: f32[1,32], index: 4, kind: input, shape index: {}]   ;;  %s13066_s5 = inlined_call_operand.vmem [shape: f32[3,32,64], index: 5, kind: input, shape index: {}]   ;;  %s13067_s6 = inlined_call_operand.vmem [shape: f32[1,64], index: 6, kind: input, shape index: {}]   ;;  %s13068_s7 = inlined_call_operand.vmem [shape: f32[64,64], index: 7, kind: input, shape index: {}]   ;;  %s13069_s8 = inlined_call_operand.vmem [shape: f32[1,64], index: 8, kind: input, shape index: {}]   ;;  %s13070_s9 = inlined_call_operand.vmem [shape: f32[64,128], index: 9, kind: input, shape index: {}]   ;;  %s13071_s10 = inlined_call_operand.vmem [shape: f32[1,128], index: 10, kind: input, shape index: {}]   ;;  %s13072_s11 = inlined_call_operand.hbm [shape: f32[48,128], index: 11, kind: output, shape index: {}]  }
   0x1   :  { %13143 = sst [smem:[#allocation126_spill]] %s13061_s0 }
   0x2   :  { %16 = vsyncpa [#allocation4], 0 }
   0x3   :  { %18 = vsyncpa [#allocation4 + $0x1], 0  ;;  %s9489_s17 = smov 0   ;;  %s9491_s18 = smov 0  }
   0x4   :  { %s9493_s19 = smov 0   ;;  %s9495_s20 = smov 0  }
   0x5 LB: > { %s6812_s21 = sadd.s32 4294967295, %s9422_s20   ;;  %s6813_s22 = sadd.s32 4294967294, %s9422_s20   ;;  %s9422_s20 = sphi %s9495_s20, %s13508_s20   ;;  %s9418_s19 = sphi %s9493_s19, %s13507_s19   ;;  %s9414_s18 = sphi %s9491_s18, %s13506_s18   ;;  %s9410_s17 = sphi %s9489_s17, %s13505_s17  }
   0x6   : > { %s9512_s23 = sadd.s32 1, %s9422_s20   ;;  %s31_s24 = sadd.s32 1, %s9418_s19 }
   0x7   : > { %s28_s25 = ssub.s32 %s9422_s20, %s9512_s23  ;;  %p38_p0 = scmp.ne.s32.totalorder %s9418_s19, %s9414_s18 }
   0x8   : > { %p29_p1 = scmp.eq.s32.totalorder %s28_s25, 0  ;;  %p39_p2 = scmp.eq.s32.totalorder %s9422_s20, 0 }
   0x9   : > { %p278_p3 = scmp.eq.s32.totalorder %s6812_s21, 1  ;;  %p283_p4 = scmp.ne.s32.totalorder %s9414_s18, %s9410_s17 }
   0xa   : > { %s9525_s26 = scalar_select %p29_p1, %s9418_s19, %s31_s24  }
   0xb   : > { %p40_p5 = por %p39_p2, %p38_p0  ;;  %p9527_p6 = por %p278_p3, %p38_p0 }
   0xc   : > { %p284_p7 = scmp.eq.s32.totalorder %s6813_s22, 1  ;;  %p6815_p9 = scmp.ge.s32.totalorder %s9422_s20, 2 }
   0xe   : > { %p9531_p8 = por %p284_p7, %p283_p4  ;;  %330 = sbr.rel (%p6815_p9) target bundleno = 121 (0x79), region = 56 }
  0x13   : > { %333 = sbr.rel (!%p40_p5) target bundleno = 121 (0x79), region = 60  ;;  %s335_s29 = sand.u32 (%p40_p5), 1, %s9418_s19  }
  0x14   : > { %s7399_s30 = smul.u32 (%p40_p5), 24, %s9422_s20  ;;  %s13146_s0 = sld [smem:[#allocation126_spill]] (%p40_p5) }
  0x15   : > { %s9313_s12 = smul.u32 (%p40_p5), 1488, %s335_s29 }
  0x17   : > { %s9548_s16 = scalar_lea.vmem (%p40_p5), [#allocation2], %s9313_s12 }
  0x1a   : > { %s9543_s15 = scalar_lea.vmem %s13146_s0, %s7399_s30 }
  0x1b   : > { %v739_v0 = vld [vmem:[%s9543_s15] sm:$0xff]  ;;  %v741_v1 = vld [vmem:[%s9543_s15 + $0x8] sm:$0xff]  ;;  %v743_v2 = vld [vmem:[%s9543_s15 + $0x10] sm:$0xff] }
  0x1c   : > { %740 = vst [vmem:[%s9548_s16] sm:$0xff] %v739_v0  ;;  %742 = vst [vmem:[%s9548_s16 + $0x8] sm:$0xff] %v741_v1  ;;  %v745_v3 = vld [vmem:[%s9543_s15 + $0x30] sm:$0xff]  ;;  %v747_v4 = vld [vmem:[%s9543_s15 + $0x38] sm:$0xff] }
  0x1d   : > { %744 = vst [vmem:[%s9548_s16 + $0x10] sm:$0xff] %v743_v2  ;;  %v749_v5 = vld [vmem:[%s9543_s15 + $0x40] sm:$0xff]  ;;  %746 = vst [vmem:[%s9548_s16 + $0x18] sm:$0xff] %v745_v3  ;;  %v753_v7 = vld [vmem:[%s9543_s15 + $0x68] sm:$0xff] }
  0x1e   : > { %748 = vst [vmem:[%s9548_s16 + $0x20] sm:$0xff] %v747_v4  ;;  %750 = vst [vmem:[%s9548_s16 + $0x28] sm:$0xff] %v749_v5  ;;  %v751_v6 = vld [vmem:[%s9543_s15 + $0x60] sm:$0xff]  ;;  %v755_v8 = vld [vmem:[%s9543_s15 + $0x70] sm:$0xff] }
  0x1f   : > { %752 = vst [vmem:[%s9548_s16 + $0x30] sm:$0xff] %v751_v6  ;;  %754 = vst [vmem:[%s9548_s16 + $0x38] sm:$0xff] %v753_v7  ;;  %v757_v9 = vld [vmem:[%s9543_s15 + $0x90] sm:$0xff]  ;;  %v759_v10 = vld [vmem:[%s9543_s15 + $0x98] sm:$0xff] }
  0x20   : > { %756 = vst [vmem:[%s9548_s16 + $0x40] sm:$0xff] %v755_v8  ;;  %v761_v11 = vld [vmem:[%s9543_s15 + $0xa0] sm:$0xff]  ;;  %758 = vst [vmem:[%s9548_s16 + $0x48] sm:$0xff] %v757_v9  ;;  %v765_v13 = vld [vmem:[%s9543_s15 + $0xc8] sm:$0xff] }
  0x21   : > { %760 = vst [vmem:[%s9548_s16 + $0x50] sm:$0xff] %v759_v10  ;;  %762 = vst [vmem:[%s9548_s16 + $0x58] sm:$0xff] %v761_v11  ;;  %v763_v12 = vld [vmem:[%s9543_s15 + $0xc0] sm:$0xff]  ;;  %v767_v14 = vld [vmem:[%s9543_s15 + $0xd0] sm:$0xff] }
  0x22   : > { %764 = vst [vmem:[%s9548_s16 + $0x60] sm:$0xff] %v763_v12  ;;  %766 = vst [vmem:[%s9548_s16 + $0x68] sm:$0xff] %v765_v13  ;;  %v769_v15 = vld [vmem:[%s9543_s15 + $0xf0] sm:$0xff]  ;;  %v771_v16 = vld [vmem:[%s9543_s15 + $0xf8] sm:$0xff] }
  0x23   : > { %768 = vst [vmem:[%s9548_s16 + $0x70] sm:$0xff] %v767_v14  ;;  %v773_v17 = vld [vmem:[%s9543_s15 + $0x100] sm:$0xff]  ;;  %770 = vst [vmem:[%s9548_s16 + $0x78] sm:$0xff] %v769_v15  ;;  %v777_v19 = vld [vmem:[%s9543_s15 + $0x128] sm:$0xff] }
  0x24   : > { %772 = vst [vmem:[%s9548_s16 + $0x80] sm:$0xff] %v771_v16  ;;  %774 = vst [vmem:[%s9548_s16 + $0x88] sm:$0xff] %v773_v17  ;;  %v775_v18 = vld [vmem:[%s9543_s15 + $0x120] sm:$0xff]  ;;  %v779_v20 = vld [vmem:[%s9543_s15 + $0x130] sm:$0xff] }
  0x25   : > { %776 = vst [vmem:[%s9548_s16 + $0x90] sm:$0xff] %v775_v18  ;;  %778 = vst [vmem:[%s9548_s16 + $0x98] sm:$0xff] %v777_v19  ;;  %v781_v21 = vld [vmem:[%s9543_s15 + $0x150] sm:$0xff]  ;;  %v783_v22 = vld [vmem:[%s9543_s15 + $0x158] sm:$0xff] }
  0x26   : > { %780 = vst [vmem:[%s9548_s16 + $0xa0] sm:$0xff] %v779_v20  ;;  %v785_v23 = vld [vmem:[%s9543_s15 + $0x160] sm:$0xff]  ;;  %782 = vst [vmem:[%s9548_s16 + $0xa8] sm:$0xff] %v781_v21  ;;  %v789_v25 = vld [vmem:[%s9543_s15 + $0x188] sm:$0xff] }
  0x27   : > { %784 = vst [vmem:[%s9548_s16 + $0xb0] sm:$0xff] %v783_v22  ;;  %786 = vst [vmem:[%s9548_s16 + $0xb8] sm:$0xff] %v785_v23  ;;  %v787_v24 = vld [vmem:[%s9543_s15 + $0x180] sm:$0xff]  ;;  %v791_v26 = vld [vmem:[%s9543_s15 + $0x190] sm:$0xff] }
  0x28   : > { %788 = vst [vmem:[%s9548_s16 + $0xc0] sm:$0xff] %v787_v24  ;;  %790 = vst [vmem:[%s9548_s16 + $0xc8] sm:$0xff] %v789_v25  ;;  %v793_v27 = vld [vmem:[%s9543_s15 + $0x1b0] sm:$0xff]  ;;  %v795_v28 = vld [vmem:[%s9543_s15 + $0x1b8] sm:$0xff] }
  0x29   : > { %792 = vst [vmem:[%s9548_s16 + $0xd0] sm:$0xff] %v791_v26  ;;  %v797_v29 = vld [vmem:[%s9543_s15 + $0x1c0] sm:$0xff]  ;;  %794 = vst [vmem:[%s9548_s16 + $0xd8] sm:$0xff] %v793_v27  ;;  %v801_v31 = vld [vmem:[%s9543_s15 + $0x1e8] sm:$0xff] }
  0x2a   : > { %796 = vst [vmem:[%s9548_s16 + $0xe0] sm:$0xff] %v795_v28  ;;  %798 = vst [vmem:[%s9548_s16 + $0xe8] sm:$0xff] %v797_v29  ;;  %v799_v30 = vld [vmem:[%s9543_s15 + $0x1e0] sm:$0xff]  ;;  %v803_v32 = vld [vmem:[%s9543_s15 + $0x1f0] sm:$0xff] }
  0x2b   : > { %800 = vst [vmem:[%s9548_s16 + $0xf0] sm:$0xff] %v799_v30  ;;  %802 = vst [vmem:[%s9548_s16 + $0xf8] sm:$0xff] %v801_v31  ;;  %v805_v33 = vld [vmem:[%s9543_s15 + $0x210] sm:$0xff]  ;;  %v807_v34 = vld [vmem:[%s9543_s15 + $0x218] sm:$0xff] }
  0x2c   : > { %804 = vst [vmem:[%s9548_s16 + $0x100] sm:$0xff] %v803_v32  ;;  %v809_v35 = vld [vmem:[%s9543_s15 + $0x220] sm:$0xff]  ;;  %806 = vst [vmem:[%s9548_s16 + $0x108] sm:$0xff] %v805_v33  ;;  %v813_v37 = vld [vmem:[%s9543_s15 + $0x248] sm:$0xff] }
  0x2d   : > { %808 = vst [vmem:[%s9548_s16 + $0x110] sm:$0xff] %v807_v34  ;;  %810 = vst [vmem:[%s9548_s16 + $0x118] sm:$0xff] %v809_v35  ;;  %v811_v36 = vld [vmem:[%s9543_s15 + $0x240] sm:$0xff]  ;;  %v815_v38 = vld [vmem:[%s9543_s15 + $0x250] sm:$0xff] }
  0x2e   : > { %812 = vst [vmem:[%s9548_s16 + $0x120] sm:$0xff] %v811_v36  ;;  %814 = vst [vmem:[%s9548_s16 + $0x128] sm:$0xff] %v813_v37  ;;  %v817_v39 = vld [vmem:[%s9543_s15 + $0x270] sm:$0xff]  ;;  %v819_v40 = vld [vmem:[%s9543_s15 + $0x278] sm:$0xff] }
  0x2f   : > { %816 = vst [vmem:[%s9548_s16 + $0x130] sm:$0xff] %v815_v38  ;;  %v821_v41 = vld [vmem:[%s9543_s15 + $0x280] sm:$0xff]  ;;  %818 = vst [vmem:[%s9548_s16 + $0x138] sm:$0xff] %v817_v39  ;;  %v825_v43 = vld [vmem:[%s9543_s15 + $0x2a8] sm:$0xff] }
  0x30   : > { %820 = vst [vmem:[%s9548_s16 + $0x140] sm:$0xff] %v819_v40  ;;  %822 = vst [vmem:[%s9548_s16 + $0x148] sm:$0xff] %v821_v41  ;;  %v823_v42 = vld [vmem:[%s9543_s15 + $0x2a0] sm:$0xff]  ;;  %v827_v44 = vld [vmem:[%s9543_s15 + $0x2b0] sm:$0xff] }
  0x31   : > { %824 = vst [vmem:[%s9548_s16 + $0x150] sm:$0xff] %v823_v42  ;;  %826 = vst [vmem:[%s9548_s16 + $0x158] sm:$0xff] %v825_v43  ;;  %v829_v45 = vld [vmem:[%s9543_s15 + $0x2d0] sm:$0xff]  ;;  %v831_v46 = vld [vmem:[%s9543_s15 + $0x2d8] sm:$0xff] }
  0x32   : > { %828 = vst [vmem:[%s9548_s16 + $0x160] sm:$0xff] %v827_v44  ;;  %v833_v47 = vld [vmem:[%s9543_s15 + $0x2e0] sm:$0xff]  ;;  %830 = vst [vmem:[%s9548_s16 + $0x168] sm:$0xff] %v829_v45  ;;  %v837_v49 = vld [vmem:[%s9543_s15 + $0x308] sm:$0xff] }
  0x33   : > { %832 = vst [vmem:[%s9548_s16 + $0x170] sm:$0xff] %v831_v46  ;;  %834 = vst [vmem:[%s9548_s16 + $0x178] sm:$0xff] %v833_v47  ;;  %v835_v48 = vld [vmem:[%s9543_s15 + $0x300] sm:$0xff]  ;;  %v839_v50 = vld [vmem:[%s9543_s15 + $0x310] sm:$0xff] }
  0x34   : > { %836 = vst [vmem:[%s9548_s16 + $0x180] sm:$0xff] %v835_v48  ;;  %838 = vst [vmem:[%s9548_s16 + $0x188] sm:$0xff] %v837_v49  ;;  %v841_v51 = vld [vmem:[%s9543_s15 + $0x330] sm:$0xff]  ;;  %v843_v52 = vld [vmem:[%s9543_s15 + $0x338] sm:$0xff] }
  0x35   : > { %840 = vst [vmem:[%s9548_s16 + $0x190] sm:$0xff] %v839_v50  ;;  %v845_v53 = vld [vmem:[%s9543_s15 + $0x340] sm:$0xff]  ;;  %842 = vst [vmem:[%s9548_s16 + $0x198] sm:$0xff] %v841_v51  ;;  %v849_v55 = vld [vmem:[%s9543_s15 + $0x368] sm:$0xff] }
  0x36   : > { %844 = vst [vmem:[%s9548_s16 + $0x1a0] sm:$0xff] %v843_v52  ;;  %846 = vst [vmem:[%s9548_s16 + $0x1a8] sm:$0xff] %v845_v53  ;;  %v847_v54 = vld [vmem:[%s9543_s15 + $0x360] sm:$0xff]  ;;  %v851_v56 = vld [vmem:[%s9543_s15 + $0x370] sm:$0xff] }
  0x37   : > { %848 = vst [vmem:[%s9548_s16 + $0x1b0] sm:$0xff] %v847_v54  ;;  %850 = vst [vmem:[%s9548_s16 + $0x1b8] sm:$0xff] %v849_v55  ;;  %v853_v57 = vld [vmem:[%s9543_s15 + $0x390] sm:$0xff]  ;;  %v855_v58 = vld [vmem:[%s9543_s15 + $0x398] sm:$0xff] }
  0x38   : > { %852 = vst [vmem:[%s9548_s16 + $0x1c0] sm:$0xff] %v851_v56  ;;  %v857_v59 = vld [vmem:[%s9543_s15 + $0x3a0] sm:$0xff]  ;;  %854 = vst [vmem:[%s9548_s16 + $0x1c8] sm:$0xff] %v853_v57  ;;  %v861_v61 = vld [vmem:[%s9543_s15 + $0x3c8] sm:$0xff] }
  0x39   : > { %856 = vst [vmem:[%s9548_s16 + $0x1d0] sm:$0xff] %v855_v58  ;;  %858 = vst [vmem:[%s9548_s16 + $0x1d8] sm:$0xff] %v857_v59  ;;  %v859_v60 = vld [vmem:[%s9543_s15 + $0x3c0] sm:$0xff]  ;;  %v863_v62 = vld [vmem:[%s9543_s15 + $0x3d0] sm:$0xff] }
  0x3a   : > { %860 = vst [vmem:[%s9548_s16 + $0x1e0] sm:$0xff] %v859_v60  ;;  %862 = vst [vmem:[%s9548_s16 + $0x1e8] sm:$0xff] %v861_v61  ;;  %v865_v63 = vld [vmem:[%s9543_s15 + $0x3f0] sm:$0xff]  ;;  %v867_v0 = vld [vmem:[%s9543_s15 + $0x3f8] sm:$0xff] }
  0x3b   : > { %864 = vst [vmem:[%s9548_s16 + $0x1f0] sm:$0xff] %v863_v62  ;;  %v869_v1 = vld [vmem:[%s9543_s15 + $0x400] sm:$0xff]  ;;  %866 = vst [vmem:[%s9548_s16 + $0x1f8] sm:$0xff] %v865_v63  ;;  %v873_v3 = vld [vmem:[%s9543_s15 + $0x428] sm:$0xff] }
  0x3c   : > { %868 = vst [vmem:[%s9548_s16 + $0x200] sm:$0xff] %v867_v0  ;;  %870 = vst [vmem:[%s9548_s16 + $0x208] sm:$0xff] %v869_v1  ;;  %v871_v2 = vld [vmem:[%s9543_s15 + $0x420] sm:$0xff]  ;;  %v875_v4 = vld [vmem:[%s9543_s15 + $0x430] sm:$0xff] }
  0x3d   : > { %872 = vst [vmem:[%s9548_s16 + $0x210] sm:$0xff] %v871_v2  ;;  %874 = vst [vmem:[%s9548_s16 + $0x218] sm:$0xff] %v873_v3  ;;  %v877_v5 = vld [vmem:[%s9543_s15 + $0x450] sm:$0xff]  ;;  %v879_v6 = vld [vmem:[%s9543_s15 + $0x458] sm:$0xff] }
  0x3e   : > { %876 = vst [vmem:[%s9548_s16 + $0x220] sm:$0xff] %v875_v4  ;;  %v881_v7 = vld [vmem:[%s9543_s15 + $0x460] sm:$0xff]  ;;  %878 = vst [vmem:[%s9548_s16 + $0x228] sm:$0xff] %v877_v5  ;;  %v885_v9 = vld [vmem:[%s9543_s15 + $0x488] sm:$0xff] }
  0x3f   : > { %880 = vst [vmem:[%s9548_s16 + $0x230] sm:$0xff] %v879_v6  ;;  %882 = vst [vmem:[%s9548_s16 + $0x238] sm:$0xff] %v881_v7  ;;  %v883_v8 = vld [vmem:[%s9543_s15 + $0x480] sm:$0xff]  ;;  %v887_v10 = vld [vmem:[%s9543_s15 + $0x490] sm:$0xff] }
  0x40   : > { %884 = vst [vmem:[%s9548_s16 + $0x240] sm:$0xff] %v883_v8  ;;  %886 = vst [vmem:[%s9548_s16 + $0x248] sm:$0xff] %v885_v9  ;;  %v889_v11 = vld [vmem:[%s9543_s15 + $0x4b0] sm:$0xff]  ;;  %v891_v12 = vld [vmem:[%s9543_s15 + $0x4b8] sm:$0xff] }
  0x41   : > { %888 = vst [vmem:[%s9548_s16 + $0x250] sm:$0xff] %v887_v10  ;;  %v893_v13 = vld [vmem:[%s9543_s15 + $0x4c0] sm:$0xff]  ;;  %890 = vst [vmem:[%s9548_s16 + $0x258] sm:$0xff] %v889_v11  ;;  %v897_v15 = vld [vmem:[%s9543_s15 + $0x4e8] sm:$0xff] }
  0x42   : > { %892 = vst [vmem:[%s9548_s16 + $0x260] sm:$0xff] %v891_v12  ;;  %894 = vst [vmem:[%s9548_s16 + $0x268] sm:$0xff] %v893_v13  ;;  %v895_v14 = vld [vmem:[%s9543_s15 + $0x4e0] sm:$0xff]  ;;  %v899_v16 = vld [vmem:[%s9543_s15 + $0x4f0] sm:$0xff] }
  0x43   : > { %896 = vst [vmem:[%s9548_s16 + $0x270] sm:$0xff] %v895_v14  ;;  %898 = vst [vmem:[%s9548_s16 + $0x278] sm:$0xff] %v897_v15  ;;  %v901_v17 = vld [vmem:[%s9543_s15 + $0x510] sm:$0xff]  ;;  %v903_v18 = vld [vmem:[%s9543_s15 + $0x518] sm:$0xff] }
  0x44   : > { %900 = vst [vmem:[%s9548_s16 + $0x280] sm:$0xff] %v899_v16  ;;  %v905_v19 = vld [vmem:[%s9543_s15 + $0x520] sm:$0xff]  ;;  %902 = vst [vmem:[%s9548_s16 + $0x288] sm:$0xff] %v901_v17  ;;  %v909_v21 = vld [vmem:[%s9543_s15 + $0x548] sm:$0xff] }
  0x45   : > { %904 = vst [vmem:[%s9548_s16 + $0x290] sm:$0xff] %v903_v18  ;;  %906 = vst [vmem:[%s9548_s16 + $0x298] sm:$0xff] %v905_v19  ;;  %v907_v20 = vld [vmem:[%s9543_s15 + $0x540] sm:$0xff]  ;;  %v911_v22 = vld [vmem:[%s9543_s15 + $0x550] sm:$0xff] }
  0x46   : > { %908 = vst [vmem:[%s9548_s16 + $0x2a0] sm:$0xff] %v907_v20  ;;  %910 = vst [vmem:[%s9548_s16 + $0x2a8] sm:$0xff] %v909_v21  ;;  %v913_v23 = vld [vmem:[%s9543_s15 + $0x570] sm:$0xff]  ;;  %v915_v24 = vld [vmem:[%s9543_s15 + $0x578] sm:$0xff] }
  0x47   : > { %912 = vst [vmem:[%s9548_s16 + $0x2b0] sm:$0xff] %v911_v22  ;;  %v917_v25 = vld [vmem:[%s9543_s15 + $0x580] sm:$0xff]  ;;  %914 = vst [vmem:[%s9548_s16 + $0x2b8] sm:$0xff] %v913_v23  ;;  %v921_v27 = vld [vmem:[%s9543_s15 + $0x5a8] sm:$0xff] }
  0x48   : > { %916 = vst [vmem:[%s9548_s16 + $0x2c0] sm:$0xff] %v915_v24  ;;  %918 = vst [vmem:[%s9548_s16 + $0x2c8] sm:$0xff] %v917_v25  ;;  %v919_v26 = vld [vmem:[%s9543_s15 + $0x5a0] sm:$0xff]  ;;  %v923_v28 = vld [vmem:[%s9543_s15 + $0x5b0] sm:$0xff] }
  0x49   : > { %920 = vst [vmem:[%s9548_s16 + $0x2d0] sm:$0xff] %v919_v26  ;;  %922 = vst [vmem:[%s9548_s16 + $0x2d8] sm:$0xff] %v921_v27  ;;  %v925_v29 = vld [vmem:[%s9543_s15 + $0x5d0] sm:$0xff]  ;;  %v927_v30 = vld [vmem:[%s9543_s15 + $0x5d8] sm:$0xff] }
  0x4a   : > { %924 = vst [vmem:[%s9548_s16 + $0x2e0] sm:$0xff] %v923_v28  ;;  %v929_v31 = vld [vmem:[%s9543_s15 + $0x5e0] sm:$0xff]  ;;  %926 = vst [vmem:[%s9548_s16 + $0x2e8] sm:$0xff] %v925_v29  ;;  %v933_v33 = vld [vmem:[%s9543_s15 + $0x608] sm:$0xff] }
  0x4b   : > { %928 = vst [vmem:[%s9548_s16 + $0x2f0] sm:$0xff] %v927_v30  ;;  %930 = vst [vmem:[%s9548_s16 + $0x2f8] sm:$0xff] %v929_v31  ;;  %v931_v32 = vld [vmem:[%s9543_s15 + $0x600] sm:$0xff]  ;;  %v935_v34 = vld [vmem:[%s9543_s15 + $0x610] sm:$0xff] }
  0x4c   : > { %932 = vst [vmem:[%s9548_s16 + $0x300] sm:$0xff] %v931_v32  ;;  %934 = vst [vmem:[%s9548_s16 + $0x308] sm:$0xff] %v933_v33  ;;  %v937_v35 = vld [vmem:[%s9543_s15 + $0x630] sm:$0xff]  ;;  %v939_v36 = vld [vmem:[%s9543_s15 + $0x638] sm:$0xff] }
  0x4d   : > { %936 = vst [vmem:[%s9548_s16 + $0x310] sm:$0xff] %v935_v34  ;;  %v941_v37 = vld [vmem:[%s9543_s15 + $0x640] sm:$0xff]  ;;  %938 = vst [vmem:[%s9548_s16 + $0x318] sm:$0xff] %v937_v35  ;;  %v945_v39 = vld [vmem:[%s9543_s15 + $0x668] sm:$0xff] }
  0x4e   : > { %940 = vst [vmem:[%s9548_s16 + $0x320] sm:$0xff] %v939_v36  ;;  %942 = vst [vmem:[%s9548_s16 + $0x328] sm:$0xff] %v941_v37  ;;  %v943_v38 = vld [vmem:[%s9543_s15 + $0x660] sm:$0xff]  ;;  %v947_v40 = vld [vmem:[%s9543_s15 + $0x670] sm:$0xff] }
  0x4f   : > { %944 = vst [vmem:[%s9548_s16 + $0x330] sm:$0xff] %v943_v38  ;;  %946 = vst [vmem:[%s9548_s16 + $0x338] sm:$0xff] %v945_v39  ;;  %v949_v41 = vld [vmem:[%s9543_s15 + $0x690] sm:$0xff]  ;;  %v951_v42 = vld [vmem:[%s9543_s15 + $0x698] sm:$0xff] }
  0x50   : > { %948 = vst [vmem:[%s9548_s16 + $0x340] sm:$0xff] %v947_v40  ;;  %v953_v43 = vld [vmem:[%s9543_s15 + $0x6a0] sm:$0xff]  ;;  %950 = vst [vmem:[%s9548_s16 + $0x348] sm:$0xff] %v949_v41  ;;  %v957_v45 = vld [vmem:[%s9543_s15 + $0x6c8] sm:$0xff] }
  0x51   : > { %952 = vst [vmem:[%s9548_s16 + $0x350] sm:$0xff] %v951_v42  ;;  %954 = vst [vmem:[%s9548_s16 + $0x358] sm:$0xff] %v953_v43  ;;  %v955_v44 = vld [vmem:[%s9543_s15 + $0x6c0] sm:$0xff]  ;;  %v959_v46 = vld [vmem:[%s9543_s15 + $0x6d0] sm:$0xff] }
  0x52   : > { %956 = vst [vmem:[%s9548_s16 + $0x360] sm:$0xff] %v955_v44  ;;  %958 = vst [vmem:[%s9548_s16 + $0x368] sm:$0xff] %v957_v45  ;;  %v961_v47 = vld [vmem:[%s9543_s15 + $0x6f0] sm:$0xff]  ;;  %v963_v48 = vld [vmem:[%s9543_s15 + $0x6f8] sm:$0xff] }
  0x53   : > { %960 = vst [vmem:[%s9548_s16 + $0x370] sm:$0xff] %v959_v46  ;;  %v965_v49 = vld [vmem:[%s9543_s15 + $0x700] sm:$0xff]  ;;  %962 = vst [vmem:[%s9548_s16 + $0x378] sm:$0xff] %v961_v47  ;;  %v969_v51 = vld [vmem:[%s9543_s15 + $0x728] sm:$0xff] }
  0x54   : > { %964 = vst [vmem:[%s9548_s16 + $0x380] sm:$0xff] %v963_v48  ;;  %966 = vst [vmem:[%s9548_s16 + $0x388] sm:$0xff] %v965_v49  ;;  %v967_v50 = vld [vmem:[%s9543_s15 + $0x720] sm:$0xff]  ;;  %v971_v52 = vld [vmem:[%s9543_s15 + $0x730] sm:$0xff] }
  0x55   : > { %968 = vst [vmem:[%s9548_s16 + $0x390] sm:$0xff] %v967_v50  ;;  %970 = vst [vmem:[%s9548_s16 + $0x398] sm:$0xff] %v969_v51  ;;  %v973_v53 = vld [vmem:[%s9543_s15 + $0x750] sm:$0xff]  ;;  %v975_v54 = vld [vmem:[%s9543_s15 + $0x758] sm:$0xff] }
  0x56   : > { %972 = vst [vmem:[%s9548_s16 + $0x3a0] sm:$0xff] %v971_v52  ;;  %v977_v55 = vld [vmem:[%s9543_s15 + $0x760] sm:$0xff]  ;;  %974 = vst [vmem:[%s9548_s16 + $0x3a8] sm:$0xff] %v973_v53  ;;  %v981_v57 = vld [vmem:[%s9543_s15 + $0x788] sm:$0xff] }
  0x57   : > { %976 = vst [vmem:[%s9548_s16 + $0x3b0] sm:$0xff] %v975_v54  ;;  %978 = vst [vmem:[%s9548_s16 + $0x3b8] sm:$0xff] %v977_v55  ;;  %v979_v56 = vld [vmem:[%s9543_s15 + $0x780] sm:$0xff]  ;;  %v983_v58 = vld [vmem:[%s9543_s15 + $0x790] sm:$0xff] }
  0x58   : > { %980 = vst [vmem:[%s9548_s16 + $0x3c0] sm:$0xff] %v979_v56  ;;  %982 = vst [vmem:[%s9548_s16 + $0x3c8] sm:$0xff] %v981_v57  ;;  %v985_v59 = vld [vmem:[%s9543_s15 + $0x7b0] sm:$0xff]  ;;  %v987_v60 = vld [vmem:[%s9543_s15 + $0x7b8] sm:$0xff] }
  0x59   : > { %984 = vst [vmem:[%s9548_s16 + $0x3d0] sm:$0xff] %v983_v58  ;;  %v989_v61 = vld [vmem:[%s9543_s15 + $0x7c0] sm:$0xff]  ;;  %986 = vst [vmem:[%s9548_s16 + $0x3d8] sm:$0xff] %v985_v59  ;;  %v993_v63 = vld [vmem:[%s9543_s15 + $0x7e8] sm:$0xff] }
  0x5a   : > { %988 = vst [vmem:[%s9548_s16 + $0x3e0] sm:$0xff] %v987_v60  ;;  %990 = vst [vmem:[%s9548_s16 + $0x3e8] sm:$0xff] %v989_v61  ;;  %v991_v62 = vld [vmem:[%s9543_s15 + $0x7e0] sm:$0xff]  ;;  %v995_v0 = vld [vmem:[%s9543_s15 + $0x7f0] sm:$0xff] }
  0x5b   : > { %992 = vst [vmem:[%s9548_s16 + $0x3f0] sm:$0xff] %v991_v62  ;;  %994 = vst [vmem:[%s9548_s16 + $0x3f8] sm:$0xff] %v993_v63  ;;  %v997_v1 = vld [vmem:[%s9543_s15 + $0x810] sm:$0xff]  ;;  %v999_v2 = vld [vmem:[%s9543_s15 + $0x818] sm:$0xff] }
  0x5c   : > { %996 = vst [vmem:[%s9548_s16 + $0x400] sm:$0xff] %v995_v0  ;;  %v1001_v3 = vld [vmem:[%s9543_s15 + $0x820] sm:$0xff]  ;;  %998 = vst [vmem:[%s9548_s16 + $0x408] sm:$0xff] %v997_v1  ;;  %v1005_v5 = vld [vmem:[%s9543_s15 + $0x848] sm:$0xff] }
  0x5d   : > { %1000 = vst [vmem:[%s9548_s16 + $0x410] sm:$0xff] %v999_v2  ;;  %1002 = vst [vmem:[%s9548_s16 + $0x418] sm:$0xff] %v1001_v3  ;;  %v1003_v4 = vld [vmem:[%s9543_s15 + $0x840] sm:$0xff]  ;;  %v1007_v6 = vld [vmem:[%s9543_s15 + $0x850] sm:$0xff] }
  0x5e   : > { %1004 = vst [vmem:[%s9548_s16 + $0x420] sm:$0xff] %v1003_v4  ;;  %1006 = vst [vmem:[%s9548_s16 + $0x428] sm:$0xff] %v1005_v5  ;;  %v1009_v7 = vld [vmem:[%s9543_s15 + $0x870] sm:$0xff]  ;;  %v1011_v8 = vld [vmem:[%s9543_s15 + $0x878] sm:$0xff] }
  0x5f   : > { %1008 = vst [vmem:[%s9548_s16 + $0x430] sm:$0xff] %v1007_v6  ;;  %v1013_v9 = vld [vmem:[%s9543_s15 + $0x880] sm:$0xff]  ;;  %1010 = vst [vmem:[%s9548_s16 + $0x438] sm:$0xff] %v1009_v7  ;;  %v1017_v11 = vld [vmem:[%s9543_s15 + $0x8a8] sm:$0xff] }
  0x60   : > { %1012 = vst [vmem:[%s9548_s16 + $0x440] sm:$0xff] %v1011_v8  ;;  %1014 = vst [vmem:[%s9548_s16 + $0x448] sm:$0xff] %v1013_v9  ;;  %v1015_v10 = vld [vmem:[%s9543_s15 + $0x8a0] sm:$0xff]  ;;  %v1019_v12 = vld [vmem:[%s9543_s15 + $0x8b0] sm:$0xff] }
  0x61   : > { %1016 = vst [vmem:[%s9548_s16 + $0x450] sm:$0xff] %v1015_v10  ;;  %1018 = vst [vmem:[%s9548_s16 + $0x458] sm:$0xff] %v1017_v11  ;;  %v1021_v13 = vld [vmem:[%s9543_s15 + $0x8d0] sm:$0xff]  ;;  %v1023_v14 = vld [vmem:[%s9543_s15 + $0x8d8] sm:$0xff] }
  0x62   : > { %1020 = vst [vmem:[%s9548_s16 + $0x460] sm:$0xff] %v1019_v12  ;;  %v1025_v15 = vld [vmem:[%s9543_s15 + $0x8e0] sm:$0xff]  ;;  %1022 = vst [vmem:[%s9548_s16 + $0x468] sm:$0xff] %v1021_v13  ;;  %v1029_v17 = vld [vmem:[%s9543_s15 + $0x908] sm:$0xff] }
  0x63   : > { %1024 = vst [vmem:[%s9548_s16 + $0x470] sm:$0xff] %v1023_v14  ;;  %1026 = vst [vmem:[%s9548_s16 + $0x478] sm:$0xff] %v1025_v15  ;;  %v1027_v16 = vld [vmem:[%s9543_s15 + $0x900] sm:$0xff]  ;;  %v1031_v18 = vld [vmem:[%s9543_s15 + $0x910] sm:$0xff] }
  0x64   : > { %1028 = vst [vmem:[%s9548_s16 + $0x480] sm:$0xff] %v1027_v16  ;;  %1030 = vst [vmem:[%s9548_s16 + $0x488] sm:$0xff] %v1029_v17  ;;  %v1033_v19 = vld [vmem:[%s9543_s15 + $0x930] sm:$0xff]  ;;  %v1035_v20 = vld [vmem:[%s9543_s15 + $0x938] sm:$0xff] }
  0x65   : > { %1032 = vst [vmem:[%s9548_s16 + $0x490] sm:$0xff] %v1031_v18  ;;  %v1037_v21 = vld [vmem:[%s9543_s15 + $0x940] sm:$0xff]  ;;  %1034 = vst [vmem:[%s9548_s16 + $0x498] sm:$0xff] %v1033_v19  ;;  %v1041_v23 = vld [vmem:[%s9543_s15 + $0x968] sm:$0xff] }
  0x66   : > { %1036 = vst [vmem:[%s9548_s16 + $0x4a0] sm:$0xff] %v1035_v20  ;;  %1038 = vst [vmem:[%s9548_s16 + $0x4a8] sm:$0xff] %v1037_v21  ;;  %v1039_v22 = vld [vmem:[%s9543_s15 + $0x960] sm:$0xff]  ;;  %v1043_v24 = vld [vmem:[%s9543_s15 + $0x970] sm:$0xff] }
  0x67   : > { %1040 = vst [vmem:[%s9548_s16 + $0x4b0] sm:$0xff] %v1039_v22  ;;  %1042 = vst [vmem:[%s9548_s16 + $0x4b8] sm:$0xff] %v1041_v23  ;;  %v1045_v25 = vld [vmem:[%s9543_s15 + $0x990] sm:$0xff]  ;;  %v1047_v26 = vld [vmem:[%s9543_s15 + $0x998] sm:$0xff] }
  0x68   : > { %1044 = vst [vmem:[%s9548_s16 + $0x4c0] sm:$0xff] %v1043_v24  ;;  %v1049_v27 = vld [vmem:[%s9543_s15 + $0x9a0] sm:$0xff]  ;;  %1046 = vst [vmem:[%s9548_s16 + $0x4c8] sm:$0xff] %v1045_v25  ;;  %v1053_v29 = vld [vmem:[%s9543_s15 + $0x9c8] sm:$0xff] }
  0x69   : > { %1048 = vst [vmem:[%s9548_s16 + $0x4d0] sm:$0xff] %v1047_v26  ;;  %1050 = vst [vmem:[%s9548_s16 + $0x4d8] sm:$0xff] %v1049_v27  ;;  %v1051_v28 = vld [vmem:[%s9543_s15 + $0x9c0] sm:$0xff]  ;;  %v1055_v30 = vld [vmem:[%s9543_s15 + $0x9d0] sm:$0xff] }
  0x6a   : > { %1052 = vst [vmem:[%s9548_s16 + $0x4e0] sm:$0xff] %v1051_v28  ;;  %1054 = vst [vmem:[%s9548_s16 + $0x4e8] sm:$0xff] %v1053_v29  ;;  %v1057_v31 = vld [vmem:[%s9543_s15 + $0x9f0] sm:$0xff]  ;;  %v1059_v32 = vld [vmem:[%s9543_s15 + $0x9f8] sm:$0xff] }
  0x6b   : > { %1056 = vst [vmem:[%s9548_s16 + $0x4f0] sm:$0xff] %v1055_v30  ;;  %v1061_v33 = vld [vmem:[%s9543_s15 + $0xa00] sm:$0xff]  ;;  %1058 = vst [vmem:[%s9548_s16 + $0x4f8] sm:$0xff] %v1057_v31  ;;  %v1065_v35 = vld [vmem:[%s9543_s15 + $0xa28] sm:$0xff] }
  0x6c   : > { %1060 = vst [vmem:[%s9548_s16 + $0x500] sm:$0xff] %v1059_v32  ;;  %1062 = vst [vmem:[%s9548_s16 + $0x508] sm:$0xff] %v1061_v33  ;;  %v1063_v34 = vld [vmem:[%s9543_s15 + $0xa20] sm:$0xff]  ;;  %v1067_v36 = vld [vmem:[%s9543_s15 + $0xa30] sm:$0xff] }
  0x6d   : > { %1064 = vst [vmem:[%s9548_s16 + $0x510] sm:$0xff] %v1063_v34  ;;  %1066 = vst [vmem:[%s9548_s16 + $0x518] sm:$0xff] %v1065_v35  ;;  %v1069_v37 = vld [vmem:[%s9543_s15 + $0xa50] sm:$0xff]  ;;  %v1071_v38 = vld [vmem:[%s9543_s15 + $0xa58] sm:$0xff] }
  0x6e   : > { %1068 = vst [vmem:[%s9548_s16 + $0x520] sm:$0xff] %v1067_v36  ;;  %v1073_v39 = vld [vmem:[%s9543_s15 + $0xa60] sm:$0xff]  ;;  %1070 = vst [vmem:[%s9548_s16 + $0x528] sm:$0xff] %v1069_v37  ;;  %v1077_v41 = vld [vmem:[%s9543_s15 + $0xa88] sm:$0xff] }
  0x6f   : > { %1072 = vst [vmem:[%s9548_s16 + $0x530] sm:$0xff] %v1071_v38  ;;  %1074 = vst [vmem:[%s9548_s16 + $0x538] sm:$0xff] %v1073_v39  ;;  %v1075_v40 = vld [vmem:[%s9543_s15 + $0xa80] sm:$0xff]  ;;  %v1079_v42 = vld [vmem:[%s9543_s15 + $0xa90] sm:$0xff] }
  0x70   : > { %1076 = vst [vmem:[%s9548_s16 + $0x540] sm:$0xff] %v1075_v40  ;;  %1078 = vst [vmem:[%s9548_s16 + $0x548] sm:$0xff] %v1077_v41  ;;  %v1081_v43 = vld [vmem:[%s9543_s15 + $0xab0] sm:$0xff]  ;;  %v1083_v44 = vld [vmem:[%s9543_s15 + $0xab8] sm:$0xff] }
  0x71   : > { %1080 = vst [vmem:[%s9548_s16 + $0x550] sm:$0xff] %v1079_v42  ;;  %v1085_v45 = vld [vmem:[%s9543_s15 + $0xac0] sm:$0xff]  ;;  %1082 = vst [vmem:[%s9548_s16 + $0x558] sm:$0xff] %v1081_v43  ;;  %v1089_v47 = vld [vmem:[%s9543_s15 + $0xae8] sm:$0xff] }
  0x72   : > { %1084 = vst [vmem:[%s9548_s16 + $0x560] sm:$0xff] %v1083_v44  ;;  %1086 = vst [vmem:[%s9548_s16 + $0x568] sm:$0xff] %v1085_v45  ;;  %v1087_v46 = vld [vmem:[%s9543_s15 + $0xae0] sm:$0xff]  ;;  %v1091_v48 = vld [vmem:[%s9543_s15 + $0xaf0] sm:$0xff] }
  0x73   : > { %1088 = vst [vmem:[%s9548_s16 + $0x570] sm:$0xff] %v1087_v46  ;;  %1090 = vst [vmem:[%s9548_s16 + $0x578] sm:$0xff] %v1089_v47  ;;  %v1093_v49 = vld [vmem:[%s9543_s15 + $0xb10] sm:$0xff]  ;;  %v1095_v50 = vld [vmem:[%s9543_s15 + $0xb18] sm:$0xff] }
  0x74   : > { %1092 = vst [vmem:[%s9548_s16 + $0x580] sm:$0xff] %v1091_v48  ;;  %v1097_v51 = vld [vmem:[%s9543_s15 + $0xb20] sm:$0xff]  ;;  %1094 = vst [vmem:[%s9548_s16 + $0x588] sm:$0xff] %v1093_v49  ;;  %v1101_v53 = vld [vmem:[%s9543_s15 + $0xb48] sm:$0xff] }
  0x75   : > { %1096 = vst [vmem:[%s9548_s16 + $0x590] sm:$0xff] %v1095_v50  ;;  %1098 = vst [vmem:[%s9548_s16 + $0x598] sm:$0xff] %v1097_v51  ;;  %v1099_v52 = vld [vmem:[%s9543_s15 + $0xb40] sm:$0xff]  ;;  %v1103_v54 = vld [vmem:[%s9543_s15 + $0xb50] sm:$0xff] }
  0x76   : > { %1100 = vst [vmem:[%s9548_s16 + $0x5a0] sm:$0xff] %v1099_v52  ;;  %1102 = vst [vmem:[%s9548_s16 + $0x5a8] sm:$0xff] %v1101_v53  ;;  %v1105_v55 = vld [vmem:[%s9543_s15 + $0xb70] sm:$0xff]  ;;  %v1107_v56 = vld [vmem:[%s9543_s15 + $0xb78] sm:$0xff] }
  0x77   : > { %1104 = vst [vmem:[%s9548_s16 + $0x5b0] sm:$0xff] %v1103_v54  ;;  %v1109_v57 = vld [vmem:[%s9543_s15 + $0xb80] sm:$0xff]  ;;  %1106 = vst [vmem:[%s9548_s16 + $0x5b8] sm:$0xff] %v1105_v55 }
  0x78   : > { %1108 = vst [vmem:[%s9548_s16 + $0x5c0] sm:$0xff] %v1107_v56  ;;  %1110 = vst [vmem:[%s9548_s16 + $0x5c8] sm:$0xff] %v1109_v57 }
  0x79 PF: > { %p6817_p10 = scmp.ge.s32.totalorder %s9422_s20, 1  ;;  %p1115_p11 = scmp.lt.s32.totalorder %s9422_s20, 3 }
  0x7b   : > { %p1116_p12 = pnand %p6817_p10, %p1115_p11 }
  0x7d   : > { %1119 = sbr.rel (%p1116_p12) target bundleno = 1901 (0x76d), region = 98 }
  0x82   : > { %v1349_v58 = vld [vmem:[%s13062_s1] sm:$0xff]  ;;  %s9925_s25 = sand.u32 1, %s9414_s18   ;;  %vm1350_vm0 = vcmask 64512   ;;  %v13107_v27 = vmov 0.0   ;;  %v7006_v28 = vld [vmem:[%s13064_s3 + $0x18] sm:$0xff]  ;;  %v7005_v45 = vld [vmem:[%s13064_s3 + $0x10] sm:$0xff] }
  0x83   : > { %7997 = vmatprep.subr.mxu0 %v1349_v58  ;;  %s9314_s29 = smul.u32 1488, %s9925_s25  ;;  %9309 = vmatprep.subr.mxu1 %v13107_v27  ;;  %vm9425_vm1 = vmmov 0   ;;  %vm3381_vm2 = vcmask 130048   ;;  %vm5465_vm3 = vcmask 261120   ;;  %vm6447_vm4 = vcmask 523264  }
  0x84   : > { %7998 = vmatpush3.msra.mxu0 %v1349_v58  ;;  %9311 = vmatpush3.msra.mxu1 %v7006_v28  ;;  %s9315_s14 = smul.u32 24, %s9925_s25 }
  0x85   : > { %s9928_s30 = scalar_lea.vmem [#allocation2], %s9314_s29  ;;  %8278 = vmatprep.subr.mxu0 %v13107_v27  ;;  %9310 = vmatprep.subr.mxu1 %v13107_v27  ;;  %s7400_s24 = smul.u32 384, %s6812_s21 }
  0x86   : > { %v1163_v59 = vld [vmem:[%s9928_s30] sm:$0xff]  ;;  %v1164_v60 = vld [vmem:[%s9928_s30 + $0x8] sm:$0xff]  ;;  %v1165_v61 = vld [vmem:[%s9928_s30 + $0x10] sm:$0xff]  ;;  %9312 = vmatpush3.msra.mxu1 %v7005_v45  ;;  %8288 = vmatprep.mubr.msk.f32.mxu1 %vm9425_vm1, %v13107_v27  ;;  %s1160_s16 = scalar_lea.vmem [#allocation3], %s9315_s14  ;;  %s9426_s21 = smov [#allocation3]  }
  0x87   : > { %7999 = vmatprep.mubr.msk.f32.mxu0 %vm1350_vm0, %v1163_v59  ;;  %v1166_v62 = vld [vmem:[%s9928_s30 + $0x18] sm:$0xff]  ;;  %v1167_v63 = vld [vmem:[%s9928_s30 + $0x20] sm:$0xff]  ;;  %v1168_v0 = vld [vmem:[%s9928_s30 + $0x28] sm:$0xff]  ;;  %8543 = vmatprep.subr.mxu1 %v13107_v27  ;;  %s6745_s22 = sshll.u32 %s1160_s16, 4  ;;  %s13018_s13 = scalar_lea.hbm %s13072_s11, %s7400_s24  ;;  %s13013_s22 = int_to_ptr.vmem [resolvable:$true] %s6745_s22 }
  0x88   : > { %8000 = vmatmul.mubr.msk.f32.vlgmr.msra.gmra.mxu0 %vm1350_vm0, %v1164_v60  ;;  %v1169_v1 = vld [vmem:[%s9928_s30 + $0x30] sm:$0xff]  ;;  %v1170_v2 = vld [vmem:[%s9928_s30 + $0x38] sm:$0xff]  ;;  %v1171_v3 = vld [vmem:[%s9928_s30 + $0x40] sm:$0xff]  ;;  %s9362_s15 = scalar_lea.vmem %s13013_s22, 384 }
  0x89   : > { %8002 = vmatprep.mubr.msk.f32.mxu0 %vm1350_vm0, %v1165_v61  ;;  %v1172_v4 = vld [vmem:[%s9928_s30 + $0x48] sm:$0xff]  ;;  %v1173_v5 = vld [vmem:[%s9928_s30 + $0x50] sm:$0xff]  ;;  %v1174_v6 = vld [vmem:[%s9928_s30 + $0x58] sm:$0xff]  ;;  %8279 = vmatpush3.msra.mxu0 %v7006_v28  ;;  %p9363_p13 = scmp.ne.s32.totalorder %s13013_s22, %s9362_s15 }
  0x8a   : > { %v1175_v7 = vld [vmem:[%s9928_s30 + $0x60] sm:$0xff]  ;;  %v1176_v8 = vld [vmem:[%s9928_s30 + $0x68] sm:$0xff]  ;;  %v1177_v9 = vld [vmem:[%s9928_s30 + $0x70] sm:$0xff]  ;;  %8280 = vmatprep.subr.mxu0 %v13107_v27 }
  0x8b   : > { %v1178_v10 = vld [vmem:[%s9928_s30 + $0x78] sm:$0xff]  ;;  %v1179_v11 = vld [vmem:[%s9928_s30 + $0x80] sm:$0xff]  ;;  %v1180_v12 = vld [vmem:[%s9928_s30 + $0x88] sm:$0xff]  ;;  %8281 = vmatpush3.msra.mxu0 %v7005_v45  ;;  %p9364_p0 = pnand %p9363_p13, %p9527_p6 }
  0x8c   : > { %8003 = vmatmul.mubr.msk.f32.gmra.mxu0 %vm1350_vm0, %v1166_v62  ;;  %v1181_v13 = vld [vmem:[%s9928_s30 + $0x90] sm:$0xff]  ;;  %v1182_v14 = vld [vmem:[%s9928_s30 + $0x98] sm:$0xff]  ;;  %v1183_v15 = vld [vmem:[%s9928_s30 + $0xa0] sm:$0xff]  ;;  %8808 = vmatprep.subr.mxu0 %v13107_v27 }
  0x8d   : > { %8005 = vmatprep.mubr.msk.f32.mxu0 %vm1350_vm0, %v1167_v63  ;;  %v1184_v16 = vld [vmem:[%s9928_s30 + $0xa8] sm:$0xff]  ;;  %v1185_v17 = vld [vmem:[%s9928_s30 + $0xb0] sm:$0xff]  ;;  %v1186_v18 = vld [vmem:[%s9928_s30 + $0xb8] sm:$0xff]  ;;  %p9365_p1 = pneg %p9364_p0 }
  0x8e   : > { %v1187_v19 = vld [vmem:[%s9928_s30 + $0xc0] sm:$0xff]  ;;  %v1188_v20 = vld [vmem:[%s9928_s30 + $0xc8] sm:$0xff]  ;;  %v1189_v21 = vld [vmem:[%s9928_s30 + $0xd0] sm:$0xff] }
  0x8f   : > { %v1190_v22 = vld [vmem:[%s9928_s30 + $0xd8] sm:$0xff]  ;;  %v1191_v23 = vld [vmem:[%s9928_s30 + $0xe0] sm:$0xff]  ;;  %v1192_v24 = vld [vmem:[%s9928_s30 + $0xe8] sm:$0xff] }
  0x90   : > { %8006 = vmatmul.mubr.msk.f32.gmra.mxu0 %vm1350_vm0, %v1168_v0  ;;  %v1193_v25 = vld [vmem:[%s9928_s30 + $0xf0] sm:$0xff]  ;;  %v1194_v26 = vld [vmem:[%s9928_s30 + $0xf8] sm:$0xff]  ;;  %v1195_v29 = vld [vmem:[%s9928_s30 + $0x100] sm:$0xff] }
  0x91   : > { %8008 = vmatprep.mubr.msk.f32.mxu0 %vm1350_vm0, %v1169_v1  ;;  %v1196_v30 = vld [vmem:[%s9928_s30 + $0x108] sm:$0xff]  ;;  %v1197_v31 = vld [vmem:[%s9928_s30 + $0x110] sm:$0xff]  ;;  %v1198_v32 = vld [vmem:[%s9928_s30 + $0x118] sm:$0xff] }
  0x92   : > { %v1199_v33 = vld [vmem:[%s9928_s30 + $0x120] sm:$0xff]  ;;  %v1200_v34 = vld [vmem:[%s9928_s30 + $0x128] sm:$0xff]  ;;  %v1201_v35 = vld [vmem:[%s9928_s30 + $0x130] sm:$0xff] }
  0x93   : > { %v1202_v36 = vld [vmem:[%s9928_s30 + $0x138] sm:$0xff]  ;;  %v1203_v37 = vld [vmem:[%s9928_s30 + $0x140] sm:$0xff]  ;;  %v1204_v38 = vld [vmem:[%s9928_s30 + $0x148] sm:$0xff] }
  0x94   : > { %8009 = vmatmul.mubr.msk.f32.gmra.mxu0 %vm1350_vm0, %v1170_v2  ;;  %v1205_v39 = vld [vmem:[%s9928_s30 + $0x150] sm:$0xff]  ;;  %v1206_v40 = vld [vmem:[%s9928_s30 + $0x158] sm:$0xff]  ;;  %v1207_v41 = vld [vmem:[%s9928_s30 + $0x160] sm:$0xff] }
  0x95   : > { %8011 = vmatprep.mubr.msk.f32.mxu0 %vm1350_vm0, %v1171_v3  ;;  %v1208_v42 = vld [vmem:[%s9928_s30 + $0x168] sm:$0xff]  ;;  %v1209_v43 = vld [vmem:[%s9928_s30 + $0x170] sm:$0xff]  ;;  %v1210_v44 = vld [vmem:[%s9928_s30 + $0x178] sm:$0xff] }
  0x96   : > { %v1211_v46 = vld [vmem:[%s9928_s30 + $0x180] sm:$0xff]  ;;  %v1212_v47 = vld [vmem:[%s9928_s30 + $0x188] sm:$0xff]  ;;  %v1213_v48 = vld [vmem:[%s9928_s30 + $0x190] sm:$0xff] }
  0x97   : > { %v1214_v49 = vld [vmem:[%s9928_s30 + $0x198] sm:$0xff]  ;;  %v1215_v50 = vld [vmem:[%s9928_s30 + $0x1a0] sm:$0xff]  ;;  %v1216_v51 = vld [vmem:[%s9928_s30 + $0x1a8] sm:$0xff] }
  0x98   : > { %8012 = vmatmul.mubr.msk.f32.gmra.mxu0 %vm1350_vm0, %v1172_v4  ;;  %v1217_v52 = vld [vmem:[%s9928_s30 + $0x1b0] sm:$0xff]  ;;  %v1218_v53 = vld [vmem:[%s9928_s30 + $0x1b8] sm:$0xff]  ;;  %v1219_v54 = vld [vmem:[%s9928_s30 + $0x1c0] sm:$0xff] }
  0x99   : > { %8014 = vmatprep.mubr.msk.f32.mxu0 %vm1350_vm0, %v1173_v5  ;;  %v1220_v55 = vld [vmem:[%s9928_s30 + $0x1c8] sm:$0xff]  ;;  %v1221_v56 = vld [vmem:[%s9928_s30 + $0x1d0] sm:$0xff]  ;;  %v1222_v57 = vld [vmem:[%s9928_s30 + $0x1d8] sm:$0xff] }
  0x9a   : > { %v1223_v58 = vld [vmem:[%s9928_s30 + $0x1e0] sm:$0xff]  ;;  %v1224_v59 = vld [vmem:[%s9928_s30 + $0x1e8] sm:$0xff]  ;;  %v1225_v60 = vld [vmem:[%s9928_s30 + $0x1f0] sm:$0xff] }
  0x9b   : > { %v1226_v61 = vld [vmem:[%s9928_s30 + $0x1f8] sm:$0xff]  ;;  %v1227_v62 = vld [vmem:[%s9928_s30 + $0x200] sm:$0xff]  ;;  %v1228_v63 = vld [vmem:[%s9928_s30 + $0x208] sm:$0xff] }
  0x9c   : > { %8015 = vmatmul.mubr.msk.f32.gmra.mxu0 %vm1350_vm0, %v1174_v6  ;;  %v1229_v0 = vld [vmem:[%s9928_s30 + $0x210] sm:$0xff]  ;;  %v1230_v1 = vld [vmem:[%s9928_s30 + $0x218] sm:$0xff]  ;;  %v1231_v2 = vld [vmem:[%s9928_s30 + $0x220] sm:$0xff] }
  0x9d   : > { %8017 = vmatprep.mubr.msk.f32.mxu0 %vm1350_vm0, %v1175_v7  ;;  %v1232_v3 = vld [vmem:[%s9928_s30 + $0x228] sm:$0xff]  ;;  %v1233_v4 = vld [vmem:[%s9928_s30 + $0x230] sm:$0xff]  ;;  %v1234_v5 = vld [vmem:[%s9928_s30 + $0x238] sm:$0xff] }
  0x9e   : > { %v1235_v6 = vld [vmem:[%s9928_s30 + $0x240] sm:$0xff]  ;;  %v1236_v7 = vld [vmem:[%s9928_s30 + $0x248] sm:$0xff] }
  0x9f   : > { %v1256_v28 = vld [vmem:[%s9928_s30 + $0x2e8] sm:$0xff] }
  0xa0   : > { %8018 = vmatmul.mubr.msk.f32.gmra.mxu0 %vm1350_vm0, %v1176_v8  ;;  %v1237_v8 = vld [vmem:[%s9928_s30 + $0x250] sm:$0xff] }
  0xa1   : > { %8020 = vmatprep.mubr.msk.f32.mxu0 %vm1350_vm0, %v1177_v9  ;;  %v1238_v9 = vld [vmem:[%s9928_s30 + $0x258] sm:$0xff] }
  0xa4   : > { %8021 = vmatmul.mubr.msk.f32.gmra.mxu0 %vm1350_vm0, %v1178_v10  ;;  %v1239_v10 = vld [vmem:[%s9928_s30 + $0x260] sm:$0xff] }
  0xa5   : > { %8023 = vmatprep.mubr.msk.f32.mxu0 %vm1350_vm0, %v1179_v11  ;;  %v1240_v11 = vld [vmem:[%s9928_s30 + $0x268] sm:$0xff] }
  0xa8   : > { %8024 = vmatmul.mubr.msk.f32.gmra.mxu0 %vm1350_vm0, %v1180_v12  ;;  %v1241_v12 = vld [vmem:[%s9928_s30 + $0x270] sm:$0xff] }
  0xa9   : > { %8026 = vmatprep.mubr.msk.f32.mxu0 %vm1350_vm0, %v1181_v13  ;;  %v1242_v13 = vld [vmem:[%s9928_s30 + $0x278] sm:$0xff] }
  0xac   : > { %8027 = vmatmul.mubr.msk.f32.gmra.mxu0 %vm1350_vm0, %v1182_v14  ;;  %v1243_v14 = vld [vmem:[%s9928_s30 + $0x280] sm:$0xff] }
  0xad   : > { %8029 = vmatprep.mubr.msk.f32.mxu0 %vm1350_vm0, %v1183_v15  ;;  %v1244_v15 = vld [vmem:[%s9928_s30 + $0x288] sm:$0xff] }
  0xb0   : > { %8030 = vmatmul.mubr.msk.f32.gmra.mxu0 %vm1350_vm0, %v1184_v16  ;;  %v1245_v16 = vld [vmem:[%s9928_s30 + $0x290] sm:$0xff] }
  0xb1   : > { %8032 = vmatprep.mubr.msk.f32.mxu0 %vm1350_vm0, %v1185_v17  ;;  %v1246_v17 = vld [vmem:[%s9928_s30 + $0x298] sm:$0xff] }
  0xb4   : > { %8033 = vmatmul.mubr.msk.f32.gmra.mxu0 %vm1350_vm0, %v1186_v18  ;;  %v1247_v18 = vld [vmem:[%s9928_s30 + $0x2a0] sm:$0xff] }
  0xb5   : > { %8035 = vmatprep.mubr.msk.f32.mxu0 %vm1350_vm0, %v1187_v19  ;;  %v1248_v19 = vld [vmem:[%s9928_s30 + $0x2a8] sm:$0xff] }
  0xb8   : > { %8036 = vmatmul.mubr.msk.f32.gmra.mxu0 %vm1350_vm0, %v1188_v20  ;;  %v1249_v20 = vld [vmem:[%s9928_s30 + $0x2b0] sm:$0xff] }
  0xb9   : > { %8038 = vmatprep.mubr.msk.f32.mxu0 %vm1350_vm0, %v1189_v21  ;;  %v1250_v21 = vld [vmem:[%s9928_s30 + $0x2b8] sm:$0xff] }
  0xbc   : > { %8039 = vmatmul.mubr.msk.f32.gmra.mxu0 %vm1350_vm0, %v1190_v22  ;;  %v1251_v22 = vld [vmem:[%s9928_s30 + $0x2c0] sm:$0xff] }
  0xbd   : > { %8041 = vmatprep.mubr.msk.f32.mxu0 %vm1350_vm0, %v1191_v23  ;;  %v1252_v23 = vld [vmem:[%s9928_s30 + $0x2c8] sm:$0xff] }
  0xc0   : > { %8042 = vmatmul.mubr.msk.f32.gmra.mxu0 %vm1350_vm0, %v1192_v24  ;;  %v1253_v24 = vld [vmem:[%s9928_s30 + $0x2d0] sm:$0xff] }
  0xc1   : > { %8044 = vmatprep.mubr.msk.f32.mxu0 %vm1350_vm0, %v1193_v25  ;;  %v1254_v25 = vld [vmem:[%s9928_s30 + $0x2d8] sm:$0xff] }
  0xc4   : > { %8045 = vmatmul.mubr.msk.f32.gmra.mxu0 %vm1350_vm0, %v1194_v26  ;;  %v1255_v26 = vld [vmem:[%s9928_s30 + $0x2e0] sm:$0xff] }
  0xc5   : > { %8047 = vmatprep.mubr.msk.f32.mxu0 %vm1350_vm0, %v1195_v29  ;;  %v1257_v29 = vld [vmem:[%s9928_s30 + $0x2f0] sm:$0xff] }
  0xc8   : > { %8048 = vmatmul.mubr.msk.f32.gmra.mxu0 %vm1350_vm0, %v1196_v30  ;;  %v1258_v30 = vld [vmem:[%s9928_s30 + $0x2f8] sm:$0xff] }
  0xc9   : > { %8050 = vmatprep.mubr.msk.f32.mxu0 %vm1350_vm0, %v1197_v31  ;;  %v1259_v31 = vld [vmem:[%s9928_s30 + $0x300] sm:$0xff] }
  0xcc   : > { %8051 = vmatmul.mubr.msk.f32.gmra.mxu0 %vm1350_vm0, %v1198_v32  ;;  %v1260_v32 = vld [vmem:[%s9928_s30 + $0x308] sm:$0xff] }
  0xcd   : > { %8053 = vmatprep.mubr.msk.f32.mxu0 %vm1350_vm0, %v1199_v33  ;;  %v1261_v33 = vld [vmem:[%s9928_s30 + $0x310] sm:$0xff] }
  0xd0   : > { %8054 = vmatmul.mubr.msk.f32.gmra.mxu0 %vm1350_vm0, %v1200_v34 }
  0xd1   : > { %8056 = vmatprep.mubr.msk.f32.mxu0 %vm1350_vm0, %v1201_v35  ;;  %v1262_v35 = vld [vmem:[%s9928_s30 + $0x318] sm:$0xff] }
  0xd4   : > { %8057 = vmatmul.mubr.msk.f32.gmra.mxu0 %vm1350_vm0, %v1202_v36  ;;  %v10146_v36 = vld [vmem:[%s13063_s2] ss:$0 sm:$0xff] }
  0xd5   : > { %8059 = vmatprep.mubr.msk.f32.mxu0 %vm1350_vm0, %v1203_v37 }
  0xd8   : > { %8060 = vmatmul.mubr.msk.f32.gmra.mxu0 %vm1350_vm0, %v1204_v38  ;;  %v1263_v38 = vld [vmem:[%s9928_s30 + $0x320] sm:$0xff] }
  0xd9   : > { %8062 = vmatprep.mubr.msk.f32.mxu0 %vm1350_vm0, %v1205_v39 }
  0xdc   : > { %8063 = vmatmul.mubr.msk.f32.gmra.mxu0 %vm1350_vm0, %v1206_v40 }
  0xdd   : > { %8065 = vmatprep.mubr.msk.f32.mxu0 %vm1350_vm0, %v1207_v41 }
  0xe0   : > { %8066 = vmatmul.mubr.msk.f32.gmra.mxu0 %vm1350_vm0, %v1208_v42  ;;  %v1264_v42 = vld [vmem:[%s9928_s30 + $0x328] sm:$0xff] }
  0xe1   : > { %8068 = vmatprep.mubr.msk.f32.mxu0 %vm1350_vm0, %v1209_v43 }
  0xe4   : > { %8069 = vmatmul.mubr.msk.f32.gmra.mxu0 %vm1350_vm0, %v1210_v44  ;;  %v1265_v44 = vld [vmem:[%s9928_s30 + $0x330] sm:$0xff] }
  0xe5   : > { %8071 = vmatprep.mubr.msk.f32.mxu0 %vm1350_vm0, %v1211_v46 }
  0xe8   : > { %8072 = vmatmul.mubr.msk.f32.gmra.mxu0 %vm1350_vm0, %v1212_v47 }
  0xe9   : > { %8074 = vmatprep.mubr.msk.f32.mxu0 %vm1350_vm0, %v1213_v48 }
  0xec   : > { %8075 = vmatmul.mubr.msk.f32.gmra.mxu0 %vm1350_vm0, %v1214_v49 }
  0xed   : > { %8077 = vmatprep.mubr.msk.f32.mxu0 %vm1350_vm0, %v1215_v50 }
  0xf0   : > { %8078 = vmatmul.mubr.msk.f32.gmra.mxu0 %vm1350_vm0, %v1216_v51 }
  0xf1   : > { %8080 = vmatprep.mubr.msk.f32.mxu0 %vm1350_vm0, %v1217_v52  ;;  %v1266_v52 = vld [vmem:[%s9928_s30 + $0x338] sm:$0xff] }
  0xf4   : > { %8081 = vmatmul.mubr.msk.f32.gmra.mxu0 %vm1350_vm0, %v1218_v53 }
  0xf5   : > { %8083 = vmatprep.mubr.msk.f32.mxu0 %vm1350_vm0, %v1219_v54  ;;  %v1267_v54 = vld [vmem:[%s9928_s30 + $0x340] sm:$0xff] }
  0xf8   : > { %8084 = vmatmul.mubr.msk.f32.gmra.mxu0 %vm1350_vm0, %v1220_v55 }
  0xf9   : > { %8086 = vmatprep.mubr.msk.f32.mxu0 %vm1350_vm0, %v1221_v56 }
  0xfc   : > { %8087 = vmatmul.mubr.msk.f32.gmra.mxu0 %vm1350_vm0, %v1222_v57 }
  0xfd   : > { %8089 = vmatprep.mubr.msk.f32.mxu0 %vm1350_vm0, %v1223_v58 }
 0x100   : > { %8090 = vmatmul.mubr.msk.f32.gmra.mxu0 %vm1350_vm0, %v1224_v59 }
 0x101   : > { %8092 = vmatprep.mubr.msk.f32.mxu0 %vm1350_vm0, %v1225_v60 }
 0x104   : > { %8093 = vmatmul.mubr.msk.f32.gmra.mxu0 %vm1350_vm0, %v1226_v61 }
 0x105   : > { %8095 = vmatprep.mubr.msk.f32.mxu0 %vm1350_vm0, %v1227_v62  ;;  %v1268_v62 = vld [vmem:[%s9928_s30 + $0x348] sm:$0xff] }
 0x108   : > { %8096 = vmatmul.mubr.msk.f32.gmra.mxu0 %vm1350_vm0, %v1228_v63 }
 0x109   : > { %8098 = vmatprep.mubr.msk.f32.mxu0 %vm1350_vm0, %v1229_v0  ;;  %v1269_v0 = vld [vmem:[%s9928_s30 + $0x350] sm:$0xff] }
 0x10c   : > { %8099 = vmatmul.mubr.msk.f32.gmra.mxu0 %vm1350_vm0, %v1230_v1 }
 0x10d   : > { %8101 = vmatprep.mubr.msk.f32.mxu0 %vm1350_vm0, %v1231_v2 }
 0x110   : > { %8102 = vmatmul.mubr.msk.f32.gmra.mxu0 %vm1350_vm0, %v1232_v3 }
 0x111   : > { %8104 = vmatprep.mubr.msk.f32.mxu0 %vm1350_vm0, %v1233_v4 }
 0x114   : > { %8105 = vmatmul.mubr.msk.f32.gmra.mxu0 %vm1350_vm0, %v1234_v5  ;;  %v1270_v5 = vld [vmem:[%s9928_s30 + $0x358] sm:$0xff] }
 0x115   : > { %8107 = vmatprep.mubr.msk.f32.mxu0 %vm1350_vm0, %v1235_v6 }
 0x118   : > { %8108 = vmatmul.mubr.msk.f32.gmra.mxu0 %vm1350_vm0, %v1236_v7  ;;  %v1271_v7 = vld [vmem:[%s9928_s30 + $0x360] sm:$0xff] }
 0x119   : > { %8110 = vmatprep.mubr.msk.f32.mxu0 %vm1350_vm0, %v1237_v8 }
 0x11c   : > { %8111 = vmatmul.mubr.msk.f32.gmra.mxu0 %vm1350_vm0, %v1238_v9 }
 0x11d   : > { %8113 = vmatprep.mubr.msk.f32.mxu0 %vm1350_vm0, %v1239_v10 }
 0x120   : > { %8114 = vmatmul.mubr.msk.f32.gmra.mxu0 %vm1350_vm0, %v1240_v11 }
 0x121   : > { %8116 = vmatprep.mubr.msk.f32.mxu0 %vm1350_vm0, %v1241_v12 }
 0x124   : > { %8117 = vmatmul.mubr.msk.f32.gmra.mxu0 %vm1350_vm0, %v1242_v13 }
 0x125   : > { %8119 = vmatprep.mubr.msk.f32.mxu0 %vm1350_vm0, %v1243_v14 }
 0x128   : > { %8120 = vmatmul.mubr.msk.f32.gmra.mxu0 %vm1350_vm0, %v1244_v15  ;;  %v1272_v15 = vld [vmem:[%s9928_s30 + $0x368] sm:$0xff] }
 0x129   : > { %8122 = vmatprep.mubr.msk.f32.mxu0 %vm1350_vm0, %v1245_v16 }
 0x12c   : > { %8123 = vmatmul.mubr.msk.f32.gmra.mxu0 %vm1350_vm0, %v1246_v17  ;;  %v1273_v17 = vld [vmem:[%s9928_s30 + $0x370] sm:$0xff] }
 0x12d   : > { %8125 = vmatprep.mubr.msk.f32.mxu0 %vm1350_vm0, %v1247_v18 }
 0x130   : > { %8126 = vmatmul.mubr.msk.f32.gmra.mxu0 %vm1350_vm0, %v1248_v19 }
 0x131   : > { %8128 = vmatprep.mubr.msk.f32.mxu0 %vm1350_vm0, %v1249_v20 }
 0x134   : > { %8129 = vmatmul.mubr.msk.f32.gmra.mxu0 %vm1350_vm0, %v1250_v21 }
 0x135   : > { %8131 = vmatprep.mubr.msk.f32.mxu0 %vm1350_vm0, %v1251_v22 }
 0x138   : > { %8132 = vmatmul.mubr.msk.f32.gmra.mxu0 %vm1350_vm0, %v1252_v23 }
 0x139   : > { %8134 = vmatprep.mubr.msk.f32.mxu0 %vm1350_vm0, %v1253_v24 }
 0x13c   : > { %8135 = vmatmul.mubr.msk.f32.gmra.mxu0 %vm1350_vm0, %v1254_v25  ;;  %v1274_v25 = vld [vmem:[%s9928_s30 + $0x378] sm:$0xff] }
 0x13d   : > { %8137 = vmatprep.mubr.msk.f32.mxu0 %vm1350_vm0, %v1255_v26  ;;  %v3377_v26 = vld [vmem:[%s13064_s3 + $0x8] sm:$0xff] }
 0x140   : > { %8138 = vmatmul.mubr.msk.f32.gmra.mxu0 %vm1350_vm0, %v1256_v28 }
 0x141   : > { %8140 = vmatprep.mubr.msk.f32.mxu0 %vm1350_vm0, %v1257_v29  ;;  %v1275_v29 = vld [vmem:[%s9928_s30 + $0x380] sm:$0xff] }
 0x144   : > { %8141 = vmatmul.mubr.msk.f32.gmra.mxu0 %vm1350_vm0, %v1258_v30 }
 0x145   : > { %8143 = vmatprep.mubr.msk.f32.mxu0 %vm1350_vm0, %v1259_v31 }
 0x148   : > { %v8001_v34 = vpop.f32.mrf.mxu0  ;;  %8144 = vmatmul.mubr.msk.f32.gmra.mxu0 %vm1350_vm0, %v1260_v32 }
 0x149   : > { %8146 = vmatprep.mubr.msk.f32.mxu0 %vm1350_vm0, %v1261_v33  ;;  %v2912_v49 = vadd.f32 %v8001_v34, %v10146_v36  ;;  %v1276_v34 = vld [vmem:[%s9928_s30 + $0x388] sm:$0xff] }
 0x14a   : > { %v1975_v37 = vpop.f32.mrf.mxu0 }
 0x14b   : > { %v2911_v39 = vadd.f32 %v10146_v36, %v1975_v37  ;;  %v3098_v59 = vmax.f32 %v2912_v49, 0.0  ;;  %v1277_v37 = vld [vmem:[%s9928_s30 + $0x390] sm:$0xff] }
 0x14c   : > { %v8004_v40 = vpop.f32.mrf.mxu0  ;;  %8147 = vmatmul.mubr.msk.f32.gmra.mxu0 %vm1350_vm0, %v1262_v35 }
 0x14d   : > { %v2914_v41 = vadd.f32 %v8004_v40, %v10146_v36  ;;  %8149 = vmatprep.mubr.msk.f32.mxu0 %vm1350_vm0, %v1263_v38  ;;  %v3097_v45 = vmax.f32 %v2911_v39, 0.0 }
 0x14e   : > { %v1985_v43 = vpop.f32.mrf.mxu0 }
 0x14f   : > { %v3100_v46 = vmax.f32 %v2914_v41, 0.0  ;;  %v2913_v47 = vadd.f32 %v10146_v36, %v1985_v43  ;;  %v1278_v43 = vld [vmem:[%s9928_s30 + $0x398] sm:$0xff] }
 0x150   : > { %v8007_v48 = vpop.f32.mrf.mxu0  ;;  %8150 = vmatmul.mubr.msk.f32.gmra.mxu0 %vm1350_vm0, %v1264_v42 }
 0x151   : > { %v10158_v50 = vmax.f32 %v3097_v45, %v3100_v46  ;;  %v2916_v51 = vadd.f32 %v8007_v48, %v10146_v36  ;;  %8152 = vmatprep.mubr.msk.f32.mxu0 %vm1350_vm0, %v1265_v44  ;;  %v3099_v55 = vmax.f32 %v2913_v47, 0.0  ;;  %v1279_v45 = vld [vmem:[%s9928_s30 + $0x3a0] sm:$0xff] }
 0x152   : > { %v1995_v53 = vpop.f32.mrf.mxu0 }
 0x153   : > { %v3102_v56 = vmax.f32 %v2916_v51, 0.0  ;;  %v2915_v57 = vadd.f32 %v10146_v36, %v1995_v53  ;;  %v1280_v53 = vld [vmem:[%s9928_s30 + $0x3a8] sm:$0xff] }
 0x154   : > { %v8010_v58 = vpop.f32.mrf.mxu0  ;;  %8153 = vmatmul.mubr.msk.f32.gmra.mxu0 %vm1350_vm0, %v1266_v52 }
 0x155   : > { %v10166_v60 = vmax.f32 %v3099_v55, %v3102_v56  ;;  %v3101_v61 = vmax.f32 %v2915_v57, 0.0  ;;  %8155 = vmatprep.mubr.msk.f32.mxu0 %vm1350_vm0, %v1267_v54  ;;  %v2918_v12 = vadd.f32 %v8010_v58, %v10146_v36  ;;  %v1281_v55 = vld [vmem:[%s9928_s30 + $0x3b0] sm:$0xff] }
 0x156   : > { %v2005_v63 = vpop.f32.mrf.mxu0 }
 0x157   : > { %v10171_v1 = vmax.f32 %v3098_v59, %v3101_v61  ;;  %v2917_v2 = vadd.f32 %v10146_v36, %v2005_v63  ;;  %v3104_v22 = vmax.f32 %v2918_v12, 0.0  ;;  %v1282_v63 = vld [vmem:[%s9928_s30 + $0x3b8] sm:$0xff] }
 0x158   : > { %v8013_v3 = vpop.f32.mrf.mxu0  ;;  %8156 = vmatmul.mubr.msk.f32.gmra.mxu0 %vm1350_vm0, %v1268_v62 }
 0x159   : > { %v2920_v4 = vadd.f32 %v8013_v3, %v10146_v36  ;;  %8158 = vmatprep.mubr.msk.f32.mxu0 %vm1350_vm0, %v1269_v0  ;;  %v3103_v8 = vmax.f32 %v2917_v2, 0.0  ;;  %v1283_v2 = vld [vmem:[%s9928_s30 + $0x3c0] sm:$0xff] }
 0x15a   : > { %v2015_v6 = vpop.f32.mrf.mxu0 }
 0x15b   : > { %v3106_v9 = vmax.f32 %v2920_v4, 0.0  ;;  %v2919_v10 = vadd.f32 %v10146_v36, %v2015_v6 }
 0x15c   : > { %v8016_v11 = vpop.f32.mrf.mxu0  ;;  %8159 = vmatmul.mubr.msk.f32.gmra.mxu0 %vm1350_vm0, %v1270_v5 }
 0x15d   : > { %v10182_v13 = vmax.f32 %v3103_v8, %v3106_v9  ;;  %v2922_v14 = vadd.f32 %v8016_v11, %v10146_v36  ;;  %8161 = vmatprep.mubr.msk.f32.mxu0 %vm1350_vm0, %v1271_v7  ;;  %v3105_v18 = vmax.f32 %v2919_v10, 0.0  ;;  %v1284_v8 = vld [vmem:[%s9928_s30 + $0x3c8] sm:$0xff]  ;;  %v1285_v10 = vld [vmem:[%s9928_s30 + $0x3d0] sm:$0xff] }
 0x15e   : > { %v2025_v16 = vpop.f32.mrf.mxu0 }
 0x15f   : > { %v3108_v19 = vmax.f32 %v2922_v14, 0.0  ;;  %v2921_v20 = vadd.f32 %v10146_v36, %v2025_v16 }
 0x160   : > { %v8019_v21 = vpop.f32.mrf.mxu0  ;;  %8162 = vmatmul.mubr.msk.f32.gmra.mxu0 %vm1350_vm0, %v1272_v15 }
 0x161   : > { %v10190_v23 = vmax.f32 %v3105_v18, %v3108_v19  ;;  %v3107_v24 = vmax.f32 %v2921_v20, 0.0  ;;  %8164 = vmatprep.mubr.msk.f32.mxu0 %vm1350_vm0, %v1273_v17  ;;  %v2924_v41 = vadd.f32 %v8019_v21, %v10146_v36  ;;  %v1286_v19 = vld [vmem:[%s9928_s30 + $0x3d8] sm:$0xff]  ;;  %v1287_v21 = vld [vmem:[%s9928_s30 + $0x3e0] sm:$0xff] }
 0x162   : > { %v2035_v28 = vpop.f32.mrf.mxu0 }
 0x163   : > { %v10198_v30 = vmax.f32 %v3104_v22, %v3107_v24  ;;  %v2923_v31 = vadd.f32 %v10146_v36, %v2035_v28  ;;  %8289 = vmatmul.mubr.msk.f32.vlgmr.msra.gmra.mxu1 %vm3381_vm2, %v10190_v23  ;;  %v3110_v49 = vmax.f32 %v2924_v41, 0.0 }
 0x164   : > { %v8022_v32 = vpop.f32.mrf.mxu0  ;;  %8165 = vmatmul.mubr.msk.f32.gmra.mxu0 %vm1350_vm0, %v1274_v25  ;;  %8544 = vmatpush3.msra.mxu1 %v3377_v26 }
 0x165   : > { %v2926_v33 = vadd.f32 %v8022_v32, %v10146_v36  ;;  %8167 = vmatprep.mubr.msk.f32.mxu0 %vm1350_vm0, %v1275_v29  ;;  %8291 = vmatprep.mubr.msk.f32.mxu1 %vm9425_vm1, %v13107_v27  ;;  %v3109_v38 = vmax.f32 %v2923_v31, 0.0  ;;  %v1288_v31 = vld [vmem:[%s9928_s30 + $0x3e8] sm:$0xff] }
 0x166   : > { %v2045_v35 = vpop.f32.mrf.mxu0  ;;  %8545 = vmatprep.subr.mxu1 %v13107_v27 }
 0x167   : > { %v3112_v39 = vmax.f32 %v2926_v33, 0.0  ;;  %v2925_v51 = vadd.f32 %v10146_v36, %v2045_v35  ;;  %v1289_v33 = vld [vmem:[%s9928_s30 + $0x3f0] sm:$0xff] }
 0x168   : > { %v8025_v40 = vpop.f32.mrf.mxu0  ;;  %8168 = vmatmul.mubr.msk.f32.gmra.mxu0 %vm1350_vm0, %v1276_v34 }
 0x169   : > { %v10213_v42 = vmax.f32 %v3109_v38, %v3112_v39  ;;  %8170 = vmatprep.mubr.msk.f32.mxu0 %vm1350_vm0, %v1277_v37  ;;  %v2928_v46 = vadd.f32 %v8025_v40, %v10146_v36  ;;  %v3111_v59 = vmax.f32 %v2925_v51, 0.0  ;;  %v1290_v40 = vld [vmem:[%s9928_s30 + $0x3f8] sm:$0xff] }
 0x16a   : > { %v2055_v44 = vpop.f32.mrf.mxu0 }
 0x16b   : > { %v2927_v47 = vadd.f32 %v10146_v36, %v2055_v44  ;;  %8292 = vmatmul.mubr.msk.f32.gmra.mxu1 %vm3381_vm2, %v10213_v42  ;;  %v3114_v56 = vmax.f32 %v2928_v46, 0.0 }
 0x16c   : > { %v8028_v48 = vpop.f32.mrf.mxu0  ;;  %8171 = vmatmul.mubr.msk.f32.gmra.mxu0 %vm1350_vm0, %v1278_v43  ;;  %8294 = vmatprep.mubr.msk.f32.mxu1 %vm9425_vm1, %v13107_v27  ;;  %v1291_v43 = vld [vmem:[%s9928_s30 + $0x400] sm:$0xff] }
 0x16d   : > { %v3113_v52 = vmax.f32 %v2927_v47, 0.0  ;;  %8173 = vmatprep.mubr.msk.f32.mxu0 %vm1350_vm0, %v1279_v45  ;;  %v10241_v3 = vmax.f32 %v3111_v59, %v3114_v56  ;;  %v2930_v6 = vadd.f32 %v8028_v48, %v10146_v36 }
 0x16e   : > { %v2065_v54 = vpop.f32.mrf.mxu0 }
 0x16f   : > { %v10229_v57 = vmax.f32 %v3110_v49, %v3113_v52  ;;  %v2929_v61 = vadd.f32 %v10146_v36, %v2065_v54  ;;  %v3116_v16 = vmax.f32 %v2930_v6, 0.0  ;;  %v1292_v52 = vld [vmem:[%s9928_s30 + $0x408] sm:$0xff]  ;;  %v1293_v54 = vld [vmem:[%s9928_s30 + $0x410] sm:$0xff] }
 0x170   : > { %v8031_v58 = vpop.f32.mrf.mxu0  ;;  %8174 = vmatmul.mubr.msk.f32.gmra.mxu0 %vm1350_vm0, %v1280_v53 }
 0x171   : > { %v2932_v62 = vadd.f32 %v8031_v58, %v10146_v36  ;;  %8295 = vmatmul.mubr.msk.f32.gmra.mxu1 %vm3381_vm2, %v10229_v57  ;;  %8176 = vmatprep.mubr.msk.f32.mxu0 %vm1350_vm0, %v1281_v55  ;;  %v3115_v7 = vmax.f32 %v2929_v61, 0.0 }
 0x172   : > { %v2075_v0 = vpop.f32.mrf.mxu0  ;;  %8297 = vmatprep.mubr.msk.f32.mxu1 %vm9425_vm1, %v13107_v27 }
 0x173   : > { %v3118_v4 = vmax.f32 %v2932_v62, 0.0  ;;  %v2931_v17 = vadd.f32 %v10146_v36, %v2075_v0 }
 0x174   : > { %v8034_v5 = vpop.f32.mrf.mxu0  ;;  %8177 = vmatmul.mubr.msk.f32.gmra.mxu0 %vm1350_vm0, %v1282_v63  ;;  %v1294_v63 = vld [vmem:[%s9928_s30 + $0x418] sm:$0xff] }
 0x175   : > { %8298 = vmatmul.mubr.msk.f32.gmra.mxu1 %vm3381_vm2, %v10241_v3  ;;  %8179 = vmatprep.mubr.msk.f32.mxu0 %vm1350_vm0, %v1283_v2  ;;  %v10252_v11 = vmax.f32 %v3115_v7, %v3118_v4  ;;  %v2934_v12 = vadd.f32 %v8034_v5, %v10146_v36  ;;  %v3117_v26 = vmax.f32 %v2931_v17, 0.0  ;;  %v1295_v2 = vld [vmem:[%s9928_s30 + $0x420] sm:$0xff] }
 0x176   : > { %v2085_v9 = vpop.f32.mrf.mxu0  ;;  %8300 = vmatprep.mubr.msk.f32.mxu1 %vm9425_vm1, %v13107_v27 }
 0x177   : > { %13147 = vst [vmem:[#allocation6_spill] sm:$0xff] %v10252_v11  ;;  %v2933_v14 = vadd.f32 %v10146_v36, %v2085_v9  ;;  %v3120_v22 = vmax.f32 %v2934_v12, 0.0  ;;  %v1296_v9 = vld [vmem:[%s9928_s30 + $0x428] sm:$0xff]  ;;  %v1297_v12 = vld [vmem:[%s9928_s30 + $0x430] sm:$0xff] }
 0x178   : > { %v8037_v15 = vpop.f32.mrf.mxu0  ;;  %8180 = vmatmul.mubr.msk.f32.gmra.mxu0 %vm1350_vm0, %v1284_v8 }
 0x179   : > { %v3119_v18 = vmax.f32 %v2933_v14, 0.0  ;;  %8301 = vmatmul.mubr.msk.f32.gmra.mxu1 %vm3381_vm2, %v10252_v11  ;;  %8182 = vmatprep.mubr.msk.f32.mxu0 %vm1350_vm0, %v1285_v10  ;;  %v10277_v34 = vmax.f32 %v3117_v26, %v3120_v22  ;;  %v2936_v38 = vadd.f32 %v8037_v15, %v10146_v36 }
 0x17a   : > { %v2095_v20 = vpop.f32.mrf.mxu0  ;;  %8303 = vmatprep.mubr.msk.f32.mxu1 %vm9425_vm1, %v13107_v27 }
 0x17b   : > { %v10265_v24 = vmax.f32 %v3116_v16, %v3119_v18  ;;  %v2935_v28 = vadd.f32 %v10146_v36, %v2095_v20  ;;  %13149 = vst [vmem:[#allocation8_spill] sm:$0xff] %v10277_v34  ;;  %v3122_v48 = vmax.f32 %v2936_v38, 0.0  ;;  %v1301_v38 = vld [vmem:[%s9928_s30 + $0x450] sm:$0xff] }
 0x17c   : > { %v8040_v25 = vpop.f32.mrf.mxu0  ;;  %8183 = vmatmul.mubr.msk.f32.gmra.mxu0 %vm1350_vm0, %v1286_v19 }
 0x17d   : > { %13148 = vst [vmem:[#allocation7_spill] sm:$0xff] %v10265_v24  ;;  %v2938_v29 = vadd.f32 %v8040_v25, %v10146_v36  ;;  %8304 = vmatmul.mubr.msk.f32.gmra.mxu1 %vm3381_vm2, %v10265_v24  ;;  %8185 = vmatprep.mubr.msk.f32.mxu0 %vm1350_vm0, %v1287_v21  ;;  %v3121_v39 = vmax.f32 %v2935_v28, 0.0  ;;  %v1298_v21 = vld [vmem:[%s9928_s30 + $0x438] sm:$0xff]  ;;  %v1299_v25 = vld [vmem:[%s9928_s30 + $0x440] sm:$0xff] }
 0x17e   : > { %v2105_v32 = vpop.f32.mrf.mxu0  ;;  %8306 = vmatprep.mubr.msk.f32.mxu1 %vm9425_vm1, %v13107_v27 }
 0x17f   : > { %v3124_v35 = vmax.f32 %v2938_v29, 0.0  ;;  %v2937_v49 = vadd.f32 %v10146_v36, %v2105_v32 }
 0x180   : > { %v8043_v37 = vpop.f32.mrf.mxu0  ;;  %8186 = vmatmul.mubr.msk.f32.gmra.mxu0 %vm1350_vm0, %v1288_v31 }
 0x181   : > { %8307 = vmatmul.mubr.msk.f32.gmra.mxu1 %vm3381_vm2, %v10277_v34  ;;  %8188 = vmatprep.mubr.msk.f32.mxu0 %vm1350_vm0, %v1289_v33  ;;  %v10288_v44 = vmax.f32 %v3121_v39, %v3124_v35  ;;  %v2940_v45 = vadd.f32 %v8043_v37, %v10146_v36  ;;  %v3123_v59 = vmax.f32 %v2937_v49, 0.0  ;;  %v1300_v35 = vld [vmem:[%s9928_s30 + $0x448] sm:$0xff]  ;;  %v1303_v49 = vld [vmem:[%s9928_s30 + $0x460] sm:$0xff] }
 0x182   : > { %v2115_v41 = vpop.f32.mrf.mxu0  ;;  %8309 = vmatprep.mubr.msk.f32.mxu1 %vm9425_vm1, %v13107_v27 }
 0x183   : > { %13150 = vst [vmem:[#allocation9_spill] sm:$0xff] %v10288_v44  ;;  %v2939_v46 = vadd.f32 %v10146_v36, %v2115_v41  ;;  %v3126_v55 = vmax.f32 %v2940_v45, 0.0  ;;  %v3376_v41 = vld [vmem:[%s13064_s3] sm:$0xff] }
 0x184   : > { %v8046_v47 = vpop.f32.mrf.mxu0  ;;  %8189 = vmatmul.mubr.msk.f32.gmra.mxu0 %vm1350_vm0, %v1290_v40  ;;  %8546 = vmatpush3.msra.mxu1 %v3376_v41 }
 0x185   : > { %v3125_v51 = vmax.f32 %v2939_v46, 0.0  ;;  %8310 = vmatmul.mubr.msk.f32.gmra.mxu1 %vm3381_vm2, %v10288_v44  ;;  %8191 = vmatprep.mubr.msk.f32.mxu0 %vm1350_vm0, %v1291_v43  ;;  %v10313_v4 = vmax.f32 %v3123_v59, %v3126_v55  ;;  %v2942_v7 = vadd.f32 %v8046_v47, %v10146_v36  ;;  %v1302_v47 = vld [vmem:[%s9928_s30 + $0x458] sm:$0xff] }
 0x186   : > { %v2125_v53 = vpop.f32.mrf.mxu0  ;;  %8312 = vmatprep.mubr.msk.f32.mxu1 %vm9425_vm1, %v13107_v27 }
 0x187   : > { %v10301_v56 = vmax.f32 %v3122_v48, %v3125_v51  ;;  %v2941_v61 = vadd.f32 %v10146_v36, %v2125_v53  ;;  %13152 = vst [vmem:[#allocation11_spill] sm:$0xff] %v10313_v4  ;;  %v3128_v18 = vmax.f32 %v2942_v7, 0.0 }
 0x188   : > { %v8049_v58 = vpop.f32.mrf.mxu0  ;;  %8192 = vmatmul.mubr.msk.f32.gmra.mxu0 %vm1350_vm0, %v1292_v52 }
 0x189   : > { %13151 = vst [vmem:[#allocation10_spill] sm:$0xff] %v10301_v56  ;;  %v2944_v62 = vadd.f32 %v8049_v58, %v10146_v36  ;;  %8313 = vmatmul.mubr.msk.f32.gmra.mxu1 %vm3381_vm2, %v10301_v56  ;;  %8194 = vmatprep.mubr.msk.f32.mxu0 %vm1350_vm0, %v1293_v54  ;;  %v3127_v8 = vmax.f32 %v2941_v61, 0.0  ;;  %v1304_v61 = vld [vmem:[%s9928_s30 + $0x468] sm:$0xff] }
 0x18a   : > { %v2135_v0 = vpop.f32.mrf.mxu0  ;;  %8315 = vmatprep.mubr.msk.f32.mxu1 %vm9425_vm1, %v13107_v27 }
 0x18b   : > { %v3130_v5 = vmax.f32 %v2944_v62, 0.0  ;;  %v2943_v19 = vadd.f32 %v10146_v36, %v2135_v0 }
 0x18c   : > { %v8052_v6 = vpop.f32.mrf.mxu0  ;;  %8195 = vmatmul.mubr.msk.f32.gmra.mxu0 %vm1350_vm0, %v1294_v63  ;;  %v1305_v63 = vld [vmem:[%s9928_s30 + $0x470] sm:$0xff] }
 0x18d   : > { %8316 = vmatmul.mubr.msk.f32.gmra.mxu1 %vm3381_vm2, %v10313_v4  ;;  %8197 = vmatprep.mubr.msk.f32.mxu0 %vm1350_vm0, %v1295_v2  ;;  %v10324_v14 = vmax.f32 %v3127_v8, %v3130_v5  ;;  %v2946_v15 = vadd.f32 %v8052_v6, %v10146_v36  ;;  %v3129_v31 = vmax.f32 %v2943_v19, 0.0 }
 0x18e   : > { %v2145_v10 = vpop.f32.mrf.mxu0  ;;  %8318 = vmatprep.mubr.msk.f32.mxu1 %vm9425_vm1, %v13107_v27 }
 0x18f   : > { %13153 = vst [vmem:[#allocation12_spill] sm:$0xff] %v10324_v14  ;;  %v2945_v16 = vadd.f32 %v10146_v36, %v2145_v10  ;;  %v3132_v26 = vmax.f32 %v2946_v15, 0.0 }
 0x190   : > { %v8055_v17 = vpop.f32.mrf.mxu0  ;;  %8198 = vmatmul.mubr.msk.f32.gmra.mxu0 %vm1350_vm0, %v1296_v9  ;;  %v1306_v9 = vld [vmem:[%s9928_s30 + $0x478] sm:$0xff] }
 0x191   : > { %v3131_v20 = vmax.f32 %v2945_v16, 0.0  ;;  %8319 = vmatmul.mubr.msk.f32.gmra.mxu1 %vm3381_vm2, %v10324_v14  ;;  %8200 = vmatprep.mubr.msk.f32.mxu0 %vm1350_vm0, %v1297_v12  ;;  %v10349_v39 = vmax.f32 %v3129_v31, %v3132_v26  ;;  %v2948_v45 = vadd.f32 %v8055_v17, %v10146_v36  ;;  %v1307_v12 = vld [vmem:[%s9928_s30 + $0x480] sm:$0xff] }
 0x192   : > { %v2155_v22 = vpop.f32.mrf.mxu0  ;;  %8321 = vmatprep.mubr.msk.f32.mxu1 %vm9425_vm1, %v13107_v27 }
 0x193   : > { %v10337_v28 = vmax.f32 %v3128_v18, %v3131_v20  ;;  %v2947_v32 = vadd.f32 %v10146_v36, %v2155_v22  ;;  %13155 = vst [vmem:[#allocation14_spill] sm:$0xff] %v10349_v39  ;;  %v3134_v55 = vmax.f32 %v2948_v45, 0.0  ;;  %v1308_v20 = vld [vmem:[%s9928_s30 + $0x488] sm:$0xff]  ;;  %v1309_v22 = vld [vmem:[%s9928_s30 + $0x490] sm:$0xff] }
 0x194   : > { %v8058_v29 = vpop.f32.mrf.mxu0  ;;  %8201 = vmatmul.mubr.msk.f32.gmra.mxu0 %vm1350_vm0, %v1298_v21 }
 0x195   : > { %13154 = vst [vmem:[#allocation13_spill] sm:$0xff] %v10337_v28  ;;  %v2950_v33 = vadd.f32 %v8058_v29, %v10146_v36  ;;  %8322 = vmatmul.mubr.msk.f32.gmra.mxu1 %vm3381_vm2, %v10337_v28  ;;  %8203 = vmatprep.mubr.msk.f32.mxu0 %vm1350_vm0, %v1299_v25  ;;  %v3133_v46 = vmax.f32 %v2947_v32, 0.0 }
 0x196   : > { %v2165_v37 = vpop.f32.mrf.mxu0  ;;  %8324 = vmatprep.mubr.msk.f32.mxu1 %vm9425_vm1, %v13107_v27 }
 0x197   : > { %v3136_v40 = vmax.f32 %v2950_v33, 0.0  ;;  %v2949_v58 = vadd.f32 %v10146_v36, %v2165_v37  ;;  %v1310_v37 = vld [vmem:[%s9928_s30 + $0x498] sm:$0xff] }
 0x198   : > { %v8061_v43 = vpop.f32.mrf.mxu0  ;;  %8204 = vmatmul.mubr.msk.f32.gmra.mxu0 %vm1350_vm0, %v1300_v35 }
 0x199   : > { %8325 = vmatmul.mubr.msk.f32.gmra.mxu1 %vm3381_vm2, %v10349_v39  ;;  %8206 = vmatprep.mubr.msk.f32.mxu0 %vm1350_vm0, %v1301_v38  ;;  %v10363_v51 = vmax.f32 %v3133_v46, %v3136_v40  ;;  %v2952_v52 = vadd.f32 %v8061_v43, %v10146_v36  ;;  %v3135_v6 = vmax.f32 %v2949_v58, 0.0  ;;  %v1311_v40 = vld [vmem:[%s9928_s30 + $0x4a0] sm:$0xff] }
 0x19a   : > { %v2175_v48 = vpop.f32.mrf.mxu0  ;;  %8327 = vmatprep.mubr.msk.f32.mxu1 %vm9425_vm1, %v13107_v27 }
 0x19b   : > { %13156 = vst [vmem:[#allocation15_spill] sm:$0xff] %v10363_v51  ;;  %v2951_v53 = vadd.f32 %v10146_v36, %v2175_v48  ;;  %v3138_v0 = vmax.f32 %v2952_v52, 0.0 }
 0x19c   : > { %v8064_v54 = vpop.f32.mrf.mxu0  ;;  %8207 = vmatmul.mubr.msk.f32.gmra.mxu0 %vm1350_vm0, %v1302_v47 }
 0x19d   : > { %v3137_v59 = vmax.f32 %v2951_v53, 0.0  ;;  %8328 = vmatmul.mubr.msk.f32.gmra.mxu1 %vm3381_vm2, %v10363_v51  ;;  %8209 = vmatprep.mubr.msk.f32.mxu0 %vm1350_vm0, %v1303_v49  ;;  %v10388_v15 = vmax.f32 %v3135_v6, %v3138_v0  ;;  %v2954_v18 = vadd.f32 %v8064_v54, %v10146_v36  ;;  %v1312_v49 = vld [vmem:[%s9928_s30 + $0x4a8] sm:$0xff]  ;;  %v1313_v53 = vld [vmem:[%s9928_s30 + $0x4b0] sm:$0xff]  ;;  %v1315_v0 = vld [vmem:[%s9928_s30 + $0x4c0] sm:$0xff] }
 0x19e   : > { %v2185_v62 = vpop.f32.mrf.mxu0  ;;  %8330 = vmatprep.mubr.msk.f32.mxu1 %vm9425_vm1, %v13107_v27 }
 0x19f   : > { %v10376_v2 = vmax.f32 %v3134_v55, %v3137_v59  ;;  %v2953_v7 = vadd.f32 %v10146_v36, %v2185_v62  ;;  %13158 = vst [vmem:[#allocation17_spill] sm:$0xff] %v10388_v15  ;;  %v3140_v32 = vmax.f32 %v2954_v18, 0.0  ;;  %v1314_v62 = vld [vmem:[%s9928_s30 + $0x4b8] sm:$0xff]  ;;  %v1317_v18 = vld [vmem:[%s9928_s30 + $0x4d0] sm:$0xff] }
 0x1a0   : > { %v8067_v5 = vpop.f32.mrf.mxu0  ;;  %8210 = vmatmul.mubr.msk.f32.gmra.mxu0 %vm1350_vm0, %v1304_v61 }
 0x1a1   : > { %13157 = vst [vmem:[#allocation16_spill] sm:$0xff] %v10376_v2  ;;  %v2956_v8 = vadd.f32 %v8067_v5, %v10146_v36  ;;  %8331 = vmatmul.mubr.msk.f32.gmra.mxu1 %vm3381_vm2, %v10376_v2  ;;  %8212 = vmatprep.mubr.msk.f32.mxu0 %vm1350_vm0, %v1305_v63  ;;  %v3139_v19 = vmax.f32 %v2953_v7, 0.0 }
 0x1a2   : > { %v2195_v10 = vpop.f32.mrf.mxu0  ;;  %8333 = vmatprep.mubr.msk.f32.mxu1 %vm9425_vm1, %v13107_v27 }
 0x1a3   : > { %v3142_v16 = vmax.f32 %v2956_v8, 0.0  ;;  %v2955_v33 = vadd.f32 %v10146_v36, %v2195_v10 }
 0x1a4   : > { %v8070_v17 = vpop.f32.mrf.mxu0  ;;  %8213 = vmatmul.mubr.msk.f32.gmra.mxu0 %vm1350_vm0, %v1306_v9 }
 0x1a5   : > { %8334 = vmatmul.mubr.msk.f32.gmra.mxu1 %vm3381_vm2, %v10388_v15  ;;  %8215 = vmatprep.mubr.msk.f32.mxu0 %vm1350_vm0, %v1307_v12  ;;  %v10399_v25 = vmax.f32 %v3139_v19, %v3142_v16  ;;  %v2958_v26 = vadd.f32 %v8070_v17, %v10146_v36  ;;  %v3141_v46 = vmax.f32 %v2955_v33, 0.0  ;;  %v1316_v16 = vld [vmem:[%s9928_s30 + $0x4c8] sm:$0xff]  ;;  %v1319_v33 = vld [vmem:[%s9928_s30 + $0x4e0] sm:$0xff] }
 0x1a6   : > { %v2205_v21 = vpop.f32.mrf.mxu0  ;;  %8336 = vmatprep.mubr.msk.f32.mxu1 %vm9425_vm1, %v13107_v27 }
 0x1a7   : > { %13159 = vst [vmem:[#allocation18_spill] sm:$0xff] %v10399_v25  ;;  %v2957_v29 = vadd.f32 %v10146_v36, %v2205_v21  ;;  %v3144_v41 = vmax.f32 %v2958_v26, 0.0 }
 0x1a8   : > { %v8073_v31 = vpop.f32.mrf.mxu0  ;;  %8216 = vmatmul.mubr.msk.f32.gmra.mxu0 %vm1350_vm0, %v1308_v20 }
 0x1a9   : > { %v3143_v35 = vmax.f32 %v2957_v29, 0.0  ;;  %8337 = vmatmul.mubr.msk.f32.gmra.mxu1 %vm3381_vm2, %v10399_v25  ;;  %8218 = vmatprep.mubr.msk.f32.mxu0 %vm1350_vm0, %v1309_v22  ;;  %v10424_v54 = vmax.f32 %v3141_v46, %v3144_v41  ;;  %v2960_v59 = vadd.f32 %v8073_v31, %v10146_v36  ;;  %v1318_v31 = vld [vmem:[%s9928_s30 + $0x4d8] sm:$0xff] }
 0x1aa   : > { %v2215_v38 = vpop.f32.mrf.mxu0  ;;  %8339 = vmatprep.mubr.msk.f32.mxu1 %vm9425_vm1, %v13107_v27 }
 0x1ab   : > { %v10412_v43 = vmax.f32 %v3140_v32, %v3143_v35  ;;  %v2959_v47 = vadd.f32 %v10146_v36, %v2215_v38  ;;  %13161 = vst [vmem:[#allocation20_spill] sm:$0xff] %v10424_v54  ;;  %v3146_v9 = vmax.f32 %v2960_v59, 0.0 }
 0x1ac   : > { %v8076_v45 = vpop.f32.mrf.mxu0  ;;  %8219 = vmatmul.mubr.msk.f32.gmra.mxu0 %vm1350_vm0, %v1310_v37 }
 0x1ad   : > { %13160 = vst [vmem:[#allocation19_spill] sm:$0xff] %v10412_v43  ;;  %v2962_v48 = vadd.f32 %v8076_v45, %v10146_v36  ;;  %8340 = vmatmul.mubr.msk.f32.gmra.mxu1 %vm3381_vm2, %v10412_v43  ;;  %8221 = vmatprep.mubr.msk.f32.mxu0 %vm1350_vm0, %v1311_v40  ;;  %v3145_v61 = vmax.f32 %v2959_v47, 0.0  ;;  %v1320_v45 = vld [vmem:[%s9928_s30 + $0x4e8] sm:$0xff]  ;;  %v1321_v47 = vld [vmem:[%s9928_s30 + $0x4f0] sm:$0xff] }
 0x1ae   : > { %v2225_v52 = vpop.f32.mrf.mxu0  ;;  %8342 = vmatprep.mubr.msk.f32.mxu1 %vm9425_vm1, %v13107_v27 }
 0x1af   : > { %v3148_v55 = vmax.f32 %v2962_v48, 0.0  ;;  %v2961_v10 = vadd.f32 %v10146_v36, %v2225_v52 }
 0x1b0   : > { %v8079_v58 = vpop.f32.mrf.mxu0  ;;  %8222 = vmatmul.mubr.msk.f32.gmra.mxu0 %vm1350_vm0, %v1312_v49 }
 0x1b1   : > { %8343 = vmatmul.mubr.msk.f32.gmra.mxu1 %vm3381_vm2, %v10424_v54  ;;  %8224 = vmatprep.mubr.msk.f32.mxu0 %vm1350_vm0, %v1313_v53  ;;  %v10435_v5 = vmax.f32 %v3145_v61, %v3148_v55  ;;  %v2964_v6 = vadd.f32 %v8079_v58, %v10146_v36  ;;  %v3147_v22 = vmax.f32 %v2961_v10, 0.0  ;;  %v1322_v61 = vld [vmem:[%s9928_s30 + $0x4f8] sm:$0xff] }
 0x1b2   : > { %v2235_v63 = vpop.f32.mrf.mxu0  ;;  %8345 = vmatprep.mubr.msk.f32.mxu1 %vm9425_vm1, %v13107_v27 }
 0x1b3   : > { %13162 = vst [vmem:[#allocation21_spill] sm:$0xff] %v10435_v5  ;;  %v2963_v7 = vadd.f32 %v10146_v36, %v2235_v63  ;;  %v3150_v19 = vmax.f32 %v2964_v6, 0.0  ;;  %v1323_v63 = vld [vmem:[%s9928_s30 + $0x500] sm:$0xff] }
 0x1b4   : > { %v8082_v8 = vpop.f32.mrf.mxu0  ;;  %8225 = vmatmul.mubr.msk.f32.gmra.mxu0 %vm1350_vm0, %v1314_v62 }
 0x1b5   : > { %v3149_v12 = vmax.f32 %v2963_v7, 0.0  ;;  %8346 = vmatmul.mubr.msk.f32.gmra.mxu1 %vm3381_vm2, %v10435_v5  ;;  %8227 = vmatprep.mubr.msk.f32.mxu0 %vm1350_vm0, %v1315_v0  ;;  %v10460_v35 = vmax.f32 %v3147_v22, %v3150_v19  ;;  %v2966_v40 = vadd.f32 %v8082_v8, %v10146_v36 }
 0x1b6   : > { %v2245_v17 = vpop.f32.mrf.mxu0  ;;  %8348 = vmatprep.mubr.msk.f32.mxu1 %vm9425_vm1, %v13107_v27 }
 0x1b7   : > { %v10448_v20 = vmax.f32 %v3146_v9, %v3149_v12  ;;  %v2965_v26 = vadd.f32 %v10146_v36, %v2245_v17  ;;  %13164 = vst [vmem:[#allocation23_spill] sm:$0xff] %v10460_v35  ;;  %v3152_v55 = vmax.f32 %v2966_v40, 0.0  ;;  %v1324_v12 = vld [vmem:[%s9928_s30 + $0x508] sm:$0xff]  ;;  %v1325_v17 = vld [vmem:[%s9928_s30 + $0x510] sm:$0xff] }
 0x1b8   : > { %v8085_v21 = vpop.f32.mrf.mxu0  ;;  %8228 = vmatmul.mubr.msk.f32.gmra.mxu0 %vm1350_vm0, %v1316_v16 }
 0x1b9   : > { %13163 = vst [vmem:[#allocation22_spill] sm:$0xff] %v10448_v20  ;;  %v2968_v29 = vadd.f32 %v8085_v21, %v10146_v36  ;;  %8349 = vmatmul.mubr.msk.f32.gmra.mxu1 %vm3381_vm2, %v10448_v20  ;;  %8230 = vmatprep.mubr.msk.f32.mxu0 %vm1350_vm0, %v1317_v18  ;;  %v3151_v41 = vmax.f32 %v2965_v26, 0.0 }
 0x1ba   : > { %v2255_v32 = vpop.f32.mrf.mxu0  ;;  %8351 = vmatprep.mubr.msk.f32.mxu1 %vm9425_vm1, %v13107_v27 }
 0x1bb   : > { %v3154_v37 = vmax.f32 %v2968_v29, 0.0  ;;  %v2967_v58 = vadd.f32 %v10146_v36, %v2255_v32  ;;  %v1326_v29 = vld [vmem:[%s9928_s30 + $0x518] sm:$0xff]  ;;  %v1327_v32 = vld [vmem:[%s9928_s30 + $0x520] sm:$0xff] }
 0x1bc   : > { %v8088_v38 = vpop.f32.mrf.mxu0  ;;  %8231 = vmatmul.mubr.msk.f32.gmra.mxu0 %vm1350_vm0, %v1318_v31 }
 0x1bd   : > { %8352 = vmatmul.mubr.msk.f32.gmra.mxu1 %vm3381_vm2, %v10460_v35  ;;  %8233 = vmatprep.mubr.msk.f32.mxu0 %vm1350_vm0, %v1319_v33  ;;  %v10471_v48 = vmax.f32 %v3151_v41, %v3154_v37  ;;  %v2970_v49 = vadd.f32 %v8088_v38, %v10146_v36  ;;  %v3153_v8 = vmax.f32 %v2967_v58, 0.0 }
 0x1be   : > { %v2265_v46 = vpop.f32.mrf.mxu0  ;;  %8354 = vmatprep.mubr.msk.f32.mxu1 %vm9425_vm1, %v13107_v27 }
 0x1bf   : > { %13165 = vst [vmem:[#allocation24_spill] sm:$0xff] %v10471_v48  ;;  %v2969_v52 = vadd.f32 %v10146_v36, %v2265_v46  ;;  %v3156_v0 = vmax.f32 %v2970_v49, 0.0 }
 0x1c0   : > { %v8091_v53 = vpop.f32.mrf.mxu0  ;;  %8234 = vmatmul.mubr.msk.f32.gmra.mxu0 %vm1350_vm0, %v1320_v45 }
 0x1c1   : > { %v3155_v59 = vmax.f32 %v2969_v52, 0.0  ;;  %8355 = vmatmul.mubr.msk.f32.gmra.mxu1 %vm3381_vm2, %v10471_v48  ;;  %8236 = vmatprep.mubr.msk.f32.mxu0 %vm1350_vm0, %v1321_v47  ;;  %v10496_v18 = vmax.f32 %v3153_v8, %v3156_v0  ;;  %v2972_v22 = vadd.f32 %v8091_v53, %v10146_v36  ;;  %v1328_v47 = vld [vmem:[%s9928_s30 + $0x528] sm:$0xff]  ;;  %v1329_v52 = vld [vmem:[%s9928_s30 + $0x530] sm:$0xff] }
 0x1c2   : > { %v2275_v62 = vpop.f32.mrf.mxu0  ;;  %8357 = vmatprep.mubr.msk.f32.mxu1 %vm9425_vm1, %v13107_v27 }
 0x1c3   : > { %v10484_v6 = vmax.f32 %v3152_v55, %v3155_v59  ;;  %v2971_v9 = vadd.f32 %v10146_v36, %v2275_v62  ;;  %13167 = vst [vmem:[#allocation26_spill] sm:$0xff] %v10496_v18  ;;  %v3158_v41 = vmax.f32 %v2972_v22, 0.0 }
 0x1c4   : > { %v8094_v7 = vpop.f32.mrf.mxu0  ;;  %8237 = vmatmul.mubr.msk.f32.gmra.mxu0 %vm1350_vm0, %v1322_v61 }
 0x1c5   : > { %13166 = vst [vmem:[#allocation25_spill] sm:$0xff] %v10484_v6  ;;  %v2974_v10 = vadd.f32 %v8094_v7, %v10146_v36  ;;  %8358 = vmatmul.mubr.msk.f32.gmra.mxu1 %vm3381_vm2, %v10484_v6  ;;  %8239 = vmatprep.mubr.msk.f32.mxu0 %vm1350_vm0, %v1323_v63  ;;  %v3157_v26 = vmax.f32 %v2971_v9, 0.0  ;;  %v1330_v63 = vld [vmem:[%s9928_s30 + $0x538] sm:$0xff]  ;;  %v1331_v7 = vld [vmem:[%s9928_s30 + $0x540] sm:$0xff] }
 0x1c6   : > { %v2285_v16 = vpop.f32.mrf.mxu0  ;;  %8360 = vmatprep.mubr.msk.f32.mxu1 %vm9425_vm1, %v13107_v27 }
 0x1c7   : > { %v3160_v19 = vmax.f32 %v2974_v10, 0.0  ;;  %v2973_v45 = vadd.f32 %v10146_v36, %v2285_v16 }
 0x1c8   : > { %v8097_v21 = vpop.f32.mrf.mxu0  ;;  %8240 = vmatmul.mubr.msk.f32.gmra.mxu0 %vm1350_vm0, %v1324_v12 }
 0x1c9   : > { %8361 = vmatmul.mubr.msk.f32.gmra.mxu1 %vm3381_vm2, %v10496_v18  ;;  %8242 = vmatprep.mubr.msk.f32.mxu0 %vm1350_vm0, %v1325_v17  ;;  %v10507_v33 = vmax.f32 %v3157_v26, %v3160_v19  ;;  %v2976_v37 = vadd.f32 %v8097_v21, %v10146_v36  ;;  %v3159_v59 = vmax.f32 %v2973_v45, 0.0  ;;  %v1332_v17 = vld [vmem:[%s9928_s30 + $0x548] sm:$0xff]  ;;  %v1333_v21 = vld [vmem:[%s9928_s30 + $0x550] sm:$0xff]  ;;  %v1335_v45 = vld [vmem:[%s9928_s30 + $0x560] sm:$0xff] }
 0x1ca   : > { %v2295_v31 = vpop.f32.mrf.mxu0  ;;  %8363 = vmatprep.mubr.msk.f32.mxu1 %vm9425_vm1, %v13107_v27 }
 0x1cb   : > { %13168 = vst [vmem:[#allocation27_spill] sm:$0xff] %v10507_v33  ;;  %v2975_v38 = vadd.f32 %v10146_v36, %v2295_v31  ;;  %v3162_v53 = vmax.f32 %v2976_v37, 0.0 }
 0x1cc   : > { %v8100_v40 = vpop.f32.mrf.mxu0  ;;  %8243 = vmatmul.mubr.msk.f32.gmra.mxu0 %vm1350_vm0, %v1326_v29 }
 0x1cd   : > { %v3161_v46 = vmax.f32 %v2975_v38, 0.0  ;;  %8364 = vmatmul.mubr.msk.f32.gmra.mxu1 %vm3381_vm2, %v10507_v33  ;;  %8245 = vmatprep.mubr.msk.f32.mxu0 %vm1350_vm0, %v1327_v32  ;;  %v10532_v8 = vmax.f32 %v3159_v59, %v3162_v53  ;;  %v2978_v12 = vadd.f32 %v8100_v40, %v10146_v36  ;;  %v1334_v40 = vld [vmem:[%s9928_s30 + $0x558] sm:$0xff]  ;;  %v1336_v59 = vld [vmem:[%s9928_s30 + $0x568] sm:$0xff] }
 0x1ce   : > { %v2305_v49 = vpop.f32.mrf.mxu0  ;;  %8366 = vmatprep.mubr.msk.f32.mxu1 %vm9425_vm1, %v13107_v27 }
 0x1cf   : > { %v10520_v55 = vmax.f32 %v3158_v41, %v3161_v46  ;;  %v2977_v61 = vadd.f32 %v10146_v36, %v2305_v49  ;;  %13170 = vst [vmem:[#allocation29_spill] sm:$0xff] %v10532_v8  ;;  %v3164_v32 = vmax.f32 %v2978_v12, 0.0  ;;  %v1338_v12 = vld [vmem:[%s9928_s30 + $0x578] sm:$0xff] }
 0x1d0   : > { %v8103_v58 = vpop.f32.mrf.mxu0  ;;  %8246 = vmatmul.mubr.msk.f32.gmra.mxu0 %vm1350_vm0, %v1328_v47 }
 0x1d1   : > { %13169 = vst [vmem:[#allocation28_spill] sm:$0xff] %v10520_v55  ;;  %v2980_v62 = vadd.f32 %v8103_v58, %v10146_v36  ;;  %8367 = vmatmul.mubr.msk.f32.gmra.mxu1 %vm3381_vm2, %v10520_v55  ;;  %8248 = vmatprep.mubr.msk.f32.mxu0 %vm1350_vm0, %v1329_v52  ;;  %v3163_v16 = vmax.f32 %v2977_v61, 0.0 }
 0x1d2   : > { %v2315_v0 = vpop.f32.mrf.mxu0  ;;  %8369 = vmatprep.mubr.msk.f32.mxu1 %vm9425_vm1, %v13107_v27 }
 0x1d3   : > { %v3166_v9 = vmax.f32 %v2980_v62, 0.0  ;;  %v2979_v37 = vadd.f32 %v10146_v36, %v2315_v0  ;;  %v1337_v62 = vld [vmem:[%s9928_s30 + $0x570] sm:$0xff] }
 0x1d4   : > { %v8106_v10 = vpop.f32.mrf.mxu0  ;;  %8249 = vmatmul.mubr.msk.f32.gmra.mxu0 %vm1350_vm0, %v1330_v63 }
 0x1d5   : > { %8370 = vmatmul.mubr.msk.f32.gmra.mxu1 %vm3381_vm2, %v10532_v8  ;;  %8251 = vmatprep.mubr.msk.f32.mxu0 %vm1350_vm0, %v1331_v7  ;;  %v10543_v22 = vmax.f32 %v3163_v16, %v3166_v9  ;;  %v2982_v26 = vadd.f32 %v8106_v10, %v10146_v36  ;;  %v3165_v52 = vmax.f32 %v2979_v37, 0.0 }
 0x1d6   : > { %v2325_v19 = vpop.f32.mrf.mxu0  ;;  %8372 = vmatprep.mubr.msk.f32.mxu1 %vm9425_vm1, %v13107_v27 }
 0x1d7   : > { %13171 = vst [vmem:[#allocation30_spill] sm:$0xff] %v10543_v22  ;;  %v2981_v29 = vadd.f32 %v10146_v36, %v2325_v19  ;;  %v3168_v46 = vmax.f32 %v2982_v26, 0.0 }
 0x1d8   : > { %v8109_v31 = vpop.f32.mrf.mxu0  ;;  %8252 = vmatmul.mubr.msk.f32.gmra.mxu0 %vm1350_vm0, %v1332_v17  ;;  %v1339_v17 = vld [vmem:[%s9928_s30 + $0x580] sm:$0xff] }
 0x1d9   : > { %v3167_v38 = vmax.f32 %v2981_v29, 0.0  ;;  %8373 = vmatmul.mubr.msk.f32.gmra.mxu1 %vm3381_vm2, %v10543_v22  ;;  %8254 = vmatprep.mubr.msk.f32.mxu0 %vm1350_vm0, %v1333_v21  ;;  %v10568_v63 = vmax.f32 %v3165_v52, %v3168_v46  ;;  %v2984_v9 = vadd.f32 %v8109_v31, %v10146_v36 }
 0x1da   : > { %v2335_v41 = vpop.f32.mrf.mxu0  ;;  %8375 = vmatprep.mubr.msk.f32.mxu1 %vm9425_vm1, %v13107_v27 }
 0x1db   : > { %v10556_v47 = vmax.f32 %v3164_v32, %v3167_v38  ;;  %v2983_v53 = vadd.f32 %v10146_v36, %v2335_v41  ;;  %13173 = vst [vmem:[#allocation32_spill] sm:$0xff] %v10568_v63  ;;  %v3170_v31 = vmax.f32 %v2984_v9, 0.0  ;;  %v1340_v38 = vld [vmem:[%s9928_s30 + $0x588] sm:$0xff]  ;;  %v1341_v41 = vld [vmem:[%s9928_s30 + $0x590] sm:$0xff] }
 0x1dc   : > { %v8112_v49 = vpop.f32.mrf.mxu0  ;;  %8255 = vmatmul.mubr.msk.f32.gmra.mxu0 %vm1350_vm0, %v1334_v40 }
 0x1dd   : > { %13172 = vst [vmem:[#allocation31_spill] sm:$0xff] %v10556_v47  ;;  %v2986_v58 = vadd.f32 %v8112_v49, %v10146_v36  ;;  %8376 = vmatmul.mubr.msk.f32.gmra.mxu1 %vm3381_vm2, %v10556_v47  ;;  %8257 = vmatprep.mubr.msk.f32.mxu0 %vm1350_vm0, %v1335_v45  ;;  %v3169_v10 = vmax.f32 %v2983_v53, 0.0 }
 0x1de   : > { %v2345_v61 = vpop.f32.mrf.mxu0  ;;  %8378 = vmatprep.mubr.msk.f32.mxu1 %vm9425_vm1, %v13107_v27 }
 0x1df   : > { %v3172_v0 = vmax.f32 %v2986_v58, 0.0  ;;  %v2985_v32 = vadd.f32 %v10146_v36, %v2345_v61 }
 0x1e0   : > { %v8115_v7 = vpop.f32.mrf.mxu0  ;;  %8258 = vmatmul.mubr.msk.f32.gmra.mxu0 %vm1350_vm0, %v1336_v59  ;;  %v1342_v59 = vld [vmem:[%s9928_s30 + $0x598] sm:$0xff] }
 0x1e1   : > { %8379 = vmatmul.mubr.msk.f32.gmra.mxu1 %vm3381_vm2, %v10568_v63  ;;  %8260 = vmatprep.mubr.msk.f32.mxu0 %vm1350_vm0, %v1337_v62  ;;  %v10579_v19 = vmax.f32 %v3169_v10, %v3172_v0  ;;  %v2988_v21 = vadd.f32 %v8115_v7, %v10146_v36  ;;  %v3171_v52 = vmax.f32 %v2985_v32, 0.0  ;;  %v1343_v62 = vld [vmem:[%s9928_s30 + $0x5a0] sm:$0xff] }
 0x1e2   : > { %v2355_v16 = vpop.f32.mrf.mxu0  ;;  %8381 = vmatprep.mubr.msk.f32.mxu1 %vm9425_vm1, %v13107_v27 }
 0x1e3   : > { %13174 = vst [vmem:[#allocation33_spill] sm:$0xff] %v10579_v19  ;;  %v2987_v26 = vadd.f32 %v10146_v36, %v2355_v16  ;;  %v3174_v45 = vmax.f32 %v2988_v21, 0.0  ;;  %v1344_v16 = vld [vmem:[%s9928_s30 + $0x5a8] sm:$0xff]  ;;  %v1345_v21 = vld [vmem:[%s9928_s30 + $0x5b0] sm:$0xff] }
 0x1e4   : > { %v8118_v29 = vpop.f32.mrf.mxu0  ;;  %8261 = vmatmul.mubr.msk.f32.gmra.mxu0 %vm1350_vm0, %v1338_v12 }
 0x1e5   : > { %v3173_v37 = vmax.f32 %v2987_v26, 0.0  ;;  %8382 = vmatmul.mubr.msk.f32.gmra.mxu1 %vm3381_vm2, %v10579_v19  ;;  %8263 = vmatprep.mubr.msk.f32.mxu0 %vm1350_vm0, %v1339_v17  ;;  %v10604_v0 = vmax.f32 %v3171_v52, %v3174_v45 }
 0x1e6   : > { %v2365_v40 = vpop.f32.mrf.mxu0  ;;  %8384 = vmatprep.mubr.msk.f32.mxu1 %vm9425_vm1, %v13107_v27 }
 0x1e7   : > { %v10592_v46 = vmax.f32 %v3170_v31, %v3173_v37  ;;  %v2989_v53 = vadd.f32 %v10146_v36, %v2365_v40  ;;  %13176 = vst [vmem:[#allocation35_spill] sm:$0xff] %v10604_v0 }
 0x1e8   : > { %v8121_v49 = vpop.f32.mrf.mxu0  ;;  %8264 = vmatmul.mubr.msk.f32.gmra.mxu0 %vm1350_vm0, %v1340_v38 }
 0x1e9   : > { %13175 = vst [vmem:[#allocation34_spill] sm:$0xff] %v10592_v46  ;;  %v2992_v58 = vadd.f32 %v8121_v49, %v10146_v36  ;;  %8385 = vmatmul.mubr.msk.f32.gmra.mxu1 %vm3381_vm2, %v10592_v46  ;;  %8266 = vmatprep.mubr.msk.f32.mxu0 %vm1350_vm0, %v1341_v41  ;;  %v10610_v36 = vld [vmem:[%s13063_s2] ss:$0 sm:$0xff]  ;;  %v3175_v12 = vmax.f32 %v2989_v53, 0.0  ;;  %v1346_v41 = vld [vmem:[%s9928_s30 + $0x5b8] sm:$0xff] }
 0x1ea   : > { %v2375_v61 = vpop.f32.mrf.mxu0  ;;  %8387 = vmatprep.mubr.msk.f32.mxu1 %vm9425_vm1, %v13107_v27  ;;  %v2990_v10 = vadd.f32 %v10610_v36, %v8118_v29  ;;  %v1347_v49 = vld [vmem:[%s9928_s30 + $0x5c0] sm:$0xff] }
 0x1eb   : > { %v3178_v7 = vmax.f32 %v2992_v58, 0.0  ;;  %v2991_v38 = vadd.f32 %v10610_v36, %v2375_v61 }
 0x1ec   : > { %v8124_v9 = vpop.f32.mrf.mxu0  ;;  %8267 = vmatmul.mubr.msk.f32.gmra.mxu0 %vm1350_vm0, %v1342_v59  ;;  %v3176_v37 = vmax.f32 %v2990_v10, 0.0 }
 0x1ed   : > { %8388 = vmatmul.mubr.msk.f32.gmra.mxu1 %vm3381_vm2, %v10604_v0  ;;  %8269 = vmatprep.mubr.msk.f32.mxu0 %vm1350_vm0, %v1343_v62  ;;  %v10620_v26 = vmax.f32 %v3175_v12, %v3178_v7  ;;  %v2994_v31 = vadd.f32 %v10610_v36, %v8124_v9  ;;  %v3177_v59 = vmax.f32 %v2991_v38, 0.0  ;;  %v1348_v7 = vld [vmem:[%s9928_s30 + $0x5c8] sm:$0xff]  ;;  %s9366_s30 = sshll.u32 %s9426_s21, 4  ;;  %s9367_s30 = int_to_ptr.vmem [resolvable:$false] %s9366_s30 }
 0x1ee   : > { %v2385_v17 = vpop.f32.mrf.mxu0  ;;  %8390 = vmatprep.mubr.msk.f32.mxu1 %vm9425_vm1, %v13107_v27  ;;  %s9368_s0 = scalar_lea.vmem %s9367_s30, 768  ;;  %p9369_p2 = scmp.lt.s32.totalorder %s13013_s22, %s9367_s30 }
 0x1ef   : > { %13177 = vst [vmem:[#allocation36_spill] sm:$0xff] %v10620_v26  ;;  %v2993_v29 = vadd.f32 %v10610_v36, %v2385_v17  ;;  %v3180_v52 = vmax.f32 %v2994_v31, 0.0  ;;  %p9370_p3 = scmp.lt.s32.totalorder %s9368_s0, %s9362_s15 }
 0x1f0   : > { %v8127_v32 = vpop.f32.mrf.mxu0  ;;  %8270 = vmatmul.mubr.msk.f32.gmra.mxu0 %vm1350_vm0, %v1344_v16 }
 0x1f1   : > { %v3179_v40 = vmax.f32 %v2993_v29, 0.0  ;;  %8391 = vmatmul.mubr.msk.f32.gmra.mxu1 %vm3381_vm2, %v10620_v26  ;;  %8272 = vmatprep.mubr.msk.f32.mxu0 %vm1350_vm0, %v1345_v21  ;;  %v10644_v10 = vmax.f32 %v3177_v59, %v3180_v52  ;;  %v2996_v17 = vadd.f32 %v10610_v36, %v8127_v32  ;;  %v7182_v32 = vld [vmem:[%s13064_s3 + $0x28] sm:$0xff]  ;;  %p9371_p4 = por %p9370_p3, %p9369_p2 }
 0x1f2   : > { %v2395_v45 = vpop.f32.mrf.mxu0  ;;  %8393 = vmatprep.mubr.msk.f32.mxu1 %vm9425_vm1, %v13107_v27 }
 0x1f3   : > { %v10633_v53 = vmax.f32 %v3176_v37, %v3179_v40  ;;  %v2995_v61 = vadd.f32 %v10610_v36, %v2395_v45  ;;  %13179 = vst [vmem:[#allocation38_spill] sm:$0xff] %v10644_v10  ;;  %p9372_p5 = pnand %p9371_p4, %p9365_p1 }
 0x1f4   : > { %v8130_v58 = vpop.f32.mrf.mxu0  ;;  %8273 = vmatmul.mubr.msk.f32.gmra.mxu0 %vm1350_vm0, %v1346_v41  ;;  %v3182_v41 = vmax.f32 %v2996_v17, 0.0 }
 0x1f5   : > { %13178 = vst [vmem:[#allocation37_spill] sm:$0xff] %v10633_v53  ;;  %v2998_v62 = vadd.f32 %v10610_v36, %v8130_v58  ;;  %8394 = vmatmul.mubr.msk.f32.gmra.mxu1 %vm3381_vm2, %v10633_v53  ;;  %8275 = vmatprep.mubr.msk.f32.mxu0 %vm1350_vm0, %v1347_v49  ;;  %v3181_v21 = vmax.f32 %v2995_v61, 0.0  ;;  %v7181_v58 = vld [vmem:[%s13064_s3 + $0x20] sm:$0xff] }
 0x1f6   : > { %v2405_v9 = vpop.f32.mrf.mxu0  ;;  %8396 = vmatprep.mubr.msk.f32.mxu1 %vm9425_vm1, %v13107_v27 }
 0x1f7   : > { %v3184_v12 = vmax.f32 %v2998_v62, 0.0  ;;  %v2997_v45 = vadd.f32 %v10610_v36, %v2405_v9 }
 0x1f8   : > { %v8133_v16 = vpop.f32.mrf.mxu0  ;;  %8276 = vmatmul.mubr.msk.f32.gmra.mxu0 %vm1350_vm0, %v1348_v7 }
 0x1f9   : > { %8397 = vmatmul.mubr.msk.f32.gmra.mxu1 %vm3381_vm2, %v10644_v10  ;;  %8282 = vmatprep.mubr.msk.f32.mxu0 %vm9425_vm1, %v13107_v27  ;;  %v10654_v29 = vmax.f32 %v3181_v21, %v3184_v12  ;;  %v3000_v37 = vadd.f32 %v10610_v36, %v8133_v16  ;;  %v3183_v7 = vmax.f32 %v2997_v45, 0.0 }
 0x1fa   : > { %v2415_v31 = vpop.f32.mrf.mxu0  ;;  %8399 = vmatprep.mubr.msk.f32.mxu1 %vm9425_vm1, %v13107_v27 }
 0x1fb   : > { %13180 = vst [vmem:[#allocation39_spill] sm:$0xff] %v10654_v29  ;;  %v2999_v38 = vadd.f32 %v10610_v36, %v2415_v31  ;;  %v3186_v59 = vmax.f32 %v3000_v37, 0.0 }
 0x1fc   : > { %v8136_v40 = vpop.f32.mrf.mxu0  ;;  %8283 = vmatmul.mubr.msk.f32.vlgmr.msra.gmra.mxu0 %vm3381_vm2, %v10182_v13 }
 0x1fd   : > { %v3185_v49 = vmax.f32 %v2999_v38, 0.0  ;;  %8400 = vmatmul.mubr.msk.f32.gmra.mxu1 %vm3381_vm2, %v10654_v29  ;;  %8285 = vmatprep.mubr.msk.f32.mxu0 %vm9425_vm1, %v13107_v27  ;;  %v10686_v17 = vmax.f32 %v3183_v7, %v3186_v59  ;;  %v3002_v37 = vadd.f32 %v10610_v36, %v8136_v40 }
 0x1fe   : > { %v2425_v52 = vpop.f32.mrf.mxu0  ;;  %8402 = vmatprep.mubr.msk.f32.mxu1 %vm9425_vm1, %v13107_v27  ;;  %8809 = vmatpush3.msra.mxu0 %v7182_v32 }
 0x1ff   : > { %v10673_v61 = vmax.f32 %v3182_v41, %v3185_v49  ;;  %8810 = vmatprep.subr.mxu0 %v13107_v27  ;;  %v3001_v9 = vadd.f32 %v10610_v36, %v2425_v52  ;;  %13182 = vst [vmem:[#allocation41_spill] sm:$0xff] %v10686_v17  ;;  %v3188_v40 = vmax.f32 %v3002_v37, 0.0 }
 0x200   : > { %v8139_v62 = vpop.f32.mrf.mxu0  ;;  %8286 = vmatmul.mubr.msk.f32.gmra.mxu0 %vm3381_vm2, %v10198_v30 }
 0x201   : > { %13181 = vst [vmem:[#allocation40_spill] sm:$0xff] %v10673_v61  ;;  %v3004_v12 = vadd.f32 %v10610_v36, %v8139_v62  ;;  %8403 = vmatmul.mubr.msk.f32.gmra.mxu1 %vm3381_vm2, %v10673_v61  ;;  %8811 = vmatpush3.msra.mxu0 %v7181_v58  ;;  %v3187_v38 = vmax.f32 %v3001_v9, 0.0 }
 0x202   : > { %v2435_v16 = vpop.f32.mrf.mxu0  ;;  %8812 = vmatprep.mubr.msk.f32.mxu0 %vm9425_vm1, %v13107_v27  ;;  %8405 = vmatprep.mubr.msk.f32.mxu1 %vm9425_vm1, %v13107_v27 }
 0x203   : > { %v3190_v21 = vmax.f32 %v3004_v12, 0.0  ;;  %v3003_v58 = vadd.f32 %v10610_v36, %v2435_v16 }
 0x204   : > { %v8142_v31 = vpop.f32.mrf.mxu0  ;;  %8813 = vmatmul.mubr.msk.f32.vlgmr.msra.gmra.mxu0 %vm3381_vm2, %v10213_v42 }
 0x205   : > { %8406 = vmatmul.mubr.msk.f32.gmra.mxu1 %vm3381_vm2, %v10686_v17  ;;  %8815 = vmatprep.mubr.msk.f32.mxu0 %vm9425_vm1, %v13107_v27  ;;  %v10697_v41 = vmax.f32 %v3187_v38, %v3190_v21  ;;  %v3006_v45 = vadd.f32 %v10610_v36, %v8142_v31  ;;  %v3189_v21 = vmax.f32 %v3003_v58, 0.0 }
 0x206   : > { %v2445_v32 = vpop.f32.mrf.mxu0  ;;  %8408 = vmatprep.mubr.msk.f32.mxu1 %vm9425_vm1, %v13107_v27 }
 0x207   : > { %13183 = vst [vmem:[#allocation42_spill] sm:$0xff] %v10697_v41  ;;  %v3005_v49 = vadd.f32 %v10610_v36, %v2445_v32  ;;  %v3192_v7 = vmax.f32 %v3006_v45, 0.0 }
 0x208   : > { %v8145_v52 = vpop.f32.mrf.mxu0  ;;  %8816 = vmatmul.mubr.msk.f32.gmra.mxu0 %vm3381_vm2, %v10229_v57 }
 0x209   : > { %v3191_v59 = vmax.f32 %v3005_v49, 0.0  ;;  %8409 = vmatmul.mubr.msk.f32.gmra.mxu1 %vm3381_vm2, %v10697_v41  ;;  %8818 = vmatprep.mubr.msk.f32.mxu0 %vm9425_vm1, %v13107_v27  ;;  %v10722_v38 = vmax.f32 %v3189_v21, %v3192_v7  ;;  %v3008_v49 = vadd.f32 %v10610_v36, %v8145_v52 }
 0x20a   : > { %v2455_v62 = vpop.f32.mrf.mxu0  ;;  %8411 = vmatprep.mubr.msk.f32.mxu1 %vm9425_vm1, %v13107_v27 }
 0x20b   : > { %v10710_v9 = vmax.f32 %v3188_v40, %v3191_v59  ;;  %v3007_v16 = vadd.f32 %v10610_v36, %v2455_v62  ;;  %13185 = vst [vmem:[#allocation44_spill] sm:$0xff] %v10722_v38  ;;  %v3194_v52 = vmax.f32 %v3008_v49, 0.0 }
 0x20c   : > { %v8148_v12 = vpop.f32.mrf.mxu0  ;;  %8819 = vmatmul.mubr.msk.f32.gmra.mxu0 %vm3381_vm2, %v10241_v3 }
 0x20d   : > { %13184 = vst [vmem:[#allocation43_spill] sm:$0xff] %v10710_v9  ;;  %v3010_v31 = vadd.f32 %v10610_v36, %v8148_v12  ;;  %8412 = vmatmul.mubr.msk.f32.gmra.mxu1 %vm3381_vm2, %v10710_v9  ;;  %8821 = vmatprep.mubr.msk.f32.mxu0 %vm9425_vm1, %v13107_v27  ;;  %v3193_v40 = vmax.f32 %v3007_v16, 0.0 }
 0x20e   : > { %v2465_v37 = vpop.f32.mrf.mxu0  ;;  %8414 = vmatprep.mubr.msk.f32.mxu1 %vm9425_vm1, %v13107_v27 }
 0x20f   : > { %v3196_v32 = vmax.f32 %v3010_v31, 0.0  ;;  %v3009_v21 = vadd.f32 %v10610_v36, %v2465_v37 }
 0x210   : > { %v8151_v45 = vpop.f32.mrf.mxu0  ;;  %8822 = vmatmul.mubr.msk.f32.gmra.mxu0 %vm3381_vm2, %v10252_v11 }
 0x211   : > { %8415 = vmatmul.mubr.msk.f32.gmra.mxu1 %vm3381_vm2, %v10722_v38  ;;  %8824 = vmatprep.mubr.msk.f32.mxu0 %vm9425_vm1, %v13107_v27  ;;  %v10733_v59 = vmax.f32 %v3193_v40, %v3196_v32  ;;  %v3012_v62 = vadd.f32 %v10610_v36, %v8151_v45  ;;  %v3195_v49 = vmax.f32 %v3009_v21, 0.0 }
 0x212   : > { %v2475_v58 = vpop.f32.mrf.mxu0  ;;  %8417 = vmatprep.mubr.msk.f32.mxu1 %vm9425_vm1, %v13107_v27 }
 0x213   : > { %13186 = vst [vmem:[#allocation45_spill] sm:$0xff] %v10733_v59  ;;  %v3011_v7 = vadd.f32 %v10610_v36, %v2475_v58  ;;  %v3198_v32 = vmax.f32 %v3012_v62, 0.0 }
 0x214   : > { %v8154_v12 = vpop.f32.mrf.mxu0  ;;  %8825 = vmatmul.mubr.msk.f32.gmra.mxu0 %vm3381_vm2, %v10265_v24 }
 0x215   : > { %v3197_v16 = vmax.f32 %v3011_v7, 0.0  ;;  %8418 = vmatmul.mubr.msk.f32.gmra.mxu1 %vm3381_vm2, %v10733_v59  ;;  %8827 = vmatprep.mubr.msk.f32.mxu0 %vm9425_vm1, %v13107_v27  ;;  %v10758_v62 = vmax.f32 %v3195_v49, %v3198_v32  ;;  %v3014_v21 = vadd.f32 %v10610_v36, %v8154_v12 }
 0x216   : > { %v2485_v31 = vpop.f32.mrf.mxu0  ;;  %8420 = vmatprep.mubr.msk.f32.mxu1 %vm9425_vm1, %v13107_v27 }
 0x217   : > { %v10746_v45 = vmax.f32 %v3194_v52, %v3197_v16  ;;  %v3013_v37 = vadd.f32 %v10610_v36, %v2485_v31  ;;  %13188 = vst [vmem:[#allocation47_spill] sm:$0xff] %v10758_v62  ;;  %v3200_v12 = vmax.f32 %v3014_v21, 0.0 }
 0x218   : > { %v8157_v40 = vpop.f32.mrf.mxu0  ;;  %8828 = vmatmul.mubr.msk.f32.gmra.mxu0 %vm3381_vm2, %v10277_v34 }
 0x219   : > { %13187 = vst [vmem:[#allocation46_spill] sm:$0xff] %v10746_v45  ;;  %v3016_v58 = vadd.f32 %v10610_v36, %v8157_v40  ;;  %8421 = vmatmul.mubr.msk.f32.gmra.mxu1 %vm3381_vm2, %v10746_v45  ;;  %8830 = vmatprep.mubr.msk.f32.mxu0 %vm9425_vm1, %v13107_v27  ;;  %v3199_v31 = vmax.f32 %v3013_v37, 0.0 }
 0x21a   : > { %v2495_v7 = vpop.f32.mrf.mxu0  ;;  %8423 = vmatprep.mubr.msk.f32.mxu1 %vm9425_vm1, %v13107_v27 }
 0x21b   : > { %v3202_v52 = vmax.f32 %v3016_v58, 0.0  ;;  %v3015_v37 = vadd.f32 %v10610_v36, %v2495_v7 }
 0x21c   : > { %v8160_v16 = vpop.f32.mrf.mxu0  ;;  %8831 = vmatmul.mubr.msk.f32.gmra.mxu0 %vm3381_vm2, %v10288_v44 }
 0x21d   : > { %8424 = vmatmul.mubr.msk.f32.gmra.mxu1 %vm3381_vm2, %v10758_v62  ;;  %8833 = vmatprep.mubr.msk.f32.mxu0 %vm9425_vm1, %v13107_v27  ;;  %v10769_v32 = vmax.f32 %v3199_v31, %v3202_v52  ;;  %v3018_v49 = vadd.f32 %v10610_v36, %v8160_v16  ;;  %v3201_v7 = vmax.f32 %v3015_v37, 0.0 }
 0x21e   : > { %v2505_v40 = vpop.f32.mrf.mxu0  ;;  %8426 = vmatprep.mubr.msk.f32.mxu1 %vm9425_vm1, %v13107_v27 }
 0x21f   : > { %v3017_v58 = vadd.f32 %v10610_v36, %v2505_v40  ;;  %v3204_v16 = vmax.f32 %v3018_v49, 0.0 }
 0x220   : > { %v8163_v44 = vpop.f32.mrf.mxu0  ;;  %8834 = vmatmul.mubr.msk.f32.gmra.mxu0 %vm3381_vm2, %v10301_v56 }
 0x221   : > { %v3203_v34 = vmax.f32 %v3017_v58, 0.0  ;;  %8427 = vmatmul.mubr.msk.f32.gmra.mxu1 %vm3381_vm2, %v10769_v32  ;;  %8836 = vmatprep.mubr.msk.f32.mxu0 %vm9425_vm1, %v13107_v27  ;;  %v10796_v49 = vmax.f32 %v3201_v7, %v3204_v16 }
 0x222   : > { %v2515_v52 = vpop.f32.mrf.mxu0  ;;  %8429 = vmatprep.mubr.msk.f32.mxu1 %vm9425_vm1, %v13107_v27 }
 0x223   : > { %v10782_v31 = vmax.f32 %v3200_v12, %v3203_v34  ;;  %v10784_v40 = vpop.f32.mrf.mxu1  ;;  %v3019_v21 = vadd.f32 %v10610_v36, %v2515_v52 }
 0x224   : > { %13189 = vst [vmem:[#allocation48_spill] sm:$0xff] %v10784_v40  ;;  %v8166_v56 = vpop.f32.mrf.mxu0  ;;  %8837 = vmatmul.mubr.msk.f32.gmra.mxu0 %vm3381_vm2, %v10313_v4 }
 0x225   : > { %v3022_v58 = vadd.f32 %v10610_v36, %v8166_v56  ;;  %v8290_v24 = vpop.f32.mrf.mxu1  ;;  %8430 = vmatmul.mubr.msk.f32.gmra.mxu1 %vm3381_vm2, %v10782_v31  ;;  %8839 = vmatprep.mubr.msk.f32.mxu0 %vm9425_vm1, %v13107_v27  ;;  %v3020_v56 = vadd.f32 %v10610_v36, %v8163_v44 }
 0x226   : > { %v2525_v34 = vpop.f32.mrf.mxu0  ;;  %8432 = vmatprep.mubr.msk.f32.mxu1 %vm9425_vm1, %v13107_v27  ;;  %v3205_v24 = vmax.f32 %v3019_v21, 0.0 }
 0x227   : > { %v3208_v12 = vmax.f32 %v3022_v58, 0.0  ;;  %v3206_v21 = vmax.f32 %v3020_v56, 0.0 }
 0x228   : > { %v8169_v40 = vpop.f32.mrf.mxu0  ;;  %8840 = vmatmul.mubr.msk.f32.gmra.mxu0 %vm3381_vm2, %v10324_v14  ;;  %v3021_v14 = vadd.f32 %v10610_v36, %v2525_v34 }
 0x229   : > { %8433 = vmatmul.mubr.msk.f32.gmra.mxu1 %vm3381_vm2, %v10796_v49  ;;  %8842 = vmatprep.mubr.msk.f32.mxu0 %vm9425_vm1, %v13107_v27  ;;  %v10807_v52 = vmax.f32 %v3205_v24, %v3208_v12  ;;  %v3024_v16 = vadd.f32 %v10610_v36, %v8169_v40 }
 0x22a   : > { %v2535_v37 = vpop.f32.mrf.mxu0  ;;  %8435 = vmatprep.mubr.msk.f32.mxu1 %vm9425_vm1, %v13107_v27  ;;  %v3207_v34 = vmax.f32 %v3021_v14, 0.0 }
 0x22b   : > { %v3023_v7 = vadd.f32 %v10610_v36, %v2535_v37  ;;  %v10811_v58 = vpop.f32.mrf.mxu1  ;;  %v3210_v12 = vmax.f32 %v3024_v16, 0.0 }
 0x22c   : > { %13190 = vst [vmem:[#allocation49_spill] sm:$0xff] %v10811_v58  ;;  %v8172_v44 = vpop.f32.mrf.mxu0  ;;  %8843 = vmatmul.mubr.msk.f32.gmra.mxu0 %vm3381_vm2, %v10337_v28 }
 0x22d   : > { %v3209_v4 = vmax.f32 %v3023_v7, 0.0  ;;  %v8293_v11 = vpop.f32.mrf.mxu1  ;;  %8436 = vmatmul.mubr.msk.f32.gmra.mxu1 %vm3381_vm2, %v10807_v52  ;;  %8845 = vmatprep.mubr.msk.f32.mxu0 %vm9425_vm1, %v13107_v27 }
 0x22e   : > { %v2545_v40 = vpop.f32.mrf.mxu0  ;;  %8438 = vmatprep.mubr.msk.f32.mxu1 %vm9425_vm1, %v13107_v27 }
 0x22f   : > { %v10822_v24 = vmax.f32 %v3206_v21, %v3209_v4  ;;  %v3025_v11 = vadd.f32 %v10610_v36, %v2545_v40  ;;  %v10836_v4 = vmax.f32 %v3207_v34, %v3210_v12  ;;  %v3026_v40 = vadd.f32 %v10610_v36, %v8172_v44 }
 0x230   : > { %v8175_v37 = vpop.f32.mrf.mxu0  ;;  %8846 = vmatmul.mubr.msk.f32.gmra.mxu0 %vm3381_vm2, %v10349_v39 }
 0x231   : > { %v3028_v56 = vadd.f32 %v10610_v36, %v8175_v37  ;;  %v10828_v7 = vpop.f32.mrf.mxu1  ;;  %8439 = vmatmul.mubr.msk.f32.gmra.mxu1 %vm3381_vm2, %v10822_v24  ;;  %8848 = vmatprep.mubr.msk.f32.mxu0 %vm9425_vm1, %v13107_v27  ;;  %v3211_v37 = vmax.f32 %v3025_v11, 0.0 }
 0x232   : > { %13191 = vst [vmem:[#allocation50_spill] sm:$0xff] %v10828_v7  ;;  %v2555_v16 = vpop.f32.mrf.mxu0  ;;  %8441 = vmatprep.mubr.msk.f32.mxu1 %vm9425_vm1, %v13107_v27 }
 0x233   : > { %v3214_v21 = vmax.f32 %v3028_v56, 0.0  ;;  %v8296_v14 = vpop.f32.mrf.mxu1 }
 0x234   : > { %v8178_v58 = vpop.f32.mrf.mxu0  ;;  %8849 = vmatmul.mubr.msk.f32.gmra.mxu0 %vm3381_vm2, %v10363_v51  ;;  %v3212_v14 = vmax.f32 %v3026_v40, 0.0 }
 0x235   : > { %v10841_v7 = vpop.f32.mrf.mxu1  ;;  %8442 = vmatmul.mubr.msk.f32.gmra.mxu1 %vm3381_vm2, %v10836_v4  ;;  %8851 = vmatprep.mubr.msk.f32.mxu0 %vm9425_vm1, %v13107_v27  ;;  %v10849_v12 = vmax.f32 %v3211_v37, %v3214_v21  ;;  %v3030_v34 = vadd.f32 %v10610_v36, %v8178_v58 }
 0x236   : > { %13192 = vst [vmem:[#allocation51_spill] sm:$0xff] %v10841_v7  ;;  %v2565_v39 = vpop.f32.mrf.mxu0  ;;  %8444 = vmatprep.mubr.msk.f32.mxu1 %vm9425_vm1, %v13107_v27  ;;  %v3027_v7 = vadd.f32 %v10610_v36, %v2555_v16 }
 0x237   : > { %v3029_v56 = vadd.f32 %v10610_v36, %v2565_v39  ;;  %v8299_v44 = vpop.f32.mrf.mxu1  ;;  %v3216_v39 = vmax.f32 %v3030_v34, 0.0 }
 0x238   : > { %v8181_v11 = vpop.f32.mrf.mxu0  ;;  %8852 = vmatmul.mubr.msk.f32.gmra.mxu0 %vm3381_vm2, %v10376_v2  ;;  %v3213_v16 = vmax.f32 %v3027_v7, 0.0 }
 0x239   : > { %v3215_v51 = vmax.f32 %v3029_v56, 0.0  ;;  %v10856_v28 = vpop.f32.mrf.mxu1  ;;  %8445 = vmatmul.mubr.msk.f32.gmra.mxu1 %vm3381_vm2, %v10849_v12  ;;  %8854 = vmatprep.mubr.msk.f32.mxu0 %vm9425_vm1, %v13107_v27 }
 0x23a   : > { %13193 = vst [vmem:[#allocation52_spill] sm:$0xff] %v10856_v28  ;;  %v2575_v58 = vpop.f32.mrf.mxu0  ;;  %8447 = vmatprep.mubr.msk.f32.mxu1 %vm9425_vm1, %v13107_v27  ;;  %v10878_v34 = vmax.f32 %v3213_v16, %v3216_v39 }
 0x23b   : > { %v10864_v21 = vmax.f32 %v3212_v14, %v3215_v51  ;;  %v8302_v37 = vpop.f32.mrf.mxu1  ;;  %v3031_v56 = vadd.f32 %v10610_v36, %v2575_v58  ;;  %v3032_v58 = vadd.f32 %v10610_v36, %v8181_v11 }
 0x23c   : > { %v8184_v40 = vpop.f32.mrf.mxu0  ;;  %8855 = vmatmul.mubr.msk.f32.gmra.mxu0 %vm3381_vm2, %v10388_v15 }
 0x23d   : > { %v3034_v44 = vadd.f32 %v10610_v36, %v8184_v40  ;;  %v10870_v28 = vpop.f32.mrf.mxu1  ;;  %8448 = vmatmul.mubr.msk.f32.gmra.mxu1 %vm3381_vm2, %v10864_v21  ;;  %8857 = vmatprep.mubr.msk.f32.mxu0 %vm9425_vm1, %v13107_v27  ;;  %v3217_v40 = vmax.f32 %v3031_v56, 0.0 }
 0x23e   : > { %13194 = vst [vmem:[#allocation53_spill] sm:$0xff] %v10870_v28  ;;  %v2585_v51 = vpop.f32.mrf.mxu0  ;;  %8450 = vmatprep.mubr.msk.f32.mxu1 %vm9425_vm1, %v13107_v27 }
 0x23f   : > { %v3220_v14 = vmax.f32 %v3034_v44, 0.0  ;;  %v8305_v7 = vpop.f32.mrf.mxu1 }
 0x240   : > { %v8187_v37 = vpop.f32.mrf.mxu0  ;;  %8858 = vmatmul.mubr.msk.f32.gmra.mxu0 %vm3381_vm2, %v10399_v25  ;;  %v3218_v7 = vmax.f32 %v3032_v58, 0.0 }
 0x241   : > { %v10883_v28 = vpop.f32.mrf.mxu1  ;;  %8451 = vmatmul.mubr.msk.f32.gmra.mxu1 %vm3381_vm2, %v10878_v34  ;;  %8860 = vmatprep.mubr.msk.f32.mxu0 %vm9425_vm1, %v13107_v27  ;;  %v10891_v39 = vmax.f32 %v3217_v40, %v3220_v14  ;;  %v3036_v16 = vadd.f32 %v10610_v36, %v8187_v37 }
 0x242   : > { %13195 = vst [vmem:[#allocation54_spill] sm:$0xff] %v10883_v28  ;;  %v2595_v15 = vpop.f32.mrf.mxu0  ;;  %8453 = vmatprep.mubr.msk.f32.mxu1 %vm9425_vm1, %v13107_v27  ;;  %v3033_v28 = vadd.f32 %v10610_v36, %v2585_v51 }
 0x243   : > { %v3035_v44 = vadd.f32 %v10610_v36, %v2595_v15  ;;  %v8308_v11 = vpop.f32.mrf.mxu1  ;;  %v3222_v15 = vmax.f32 %v3036_v16, 0.0 }
 0x244   : > { %v8190_v56 = vpop.f32.mrf.mxu0  ;;  %8861 = vmatmul.mubr.msk.f32.gmra.mxu0 %vm3381_vm2, %v10412_v43  ;;  %v3219_v51 = vmax.f32 %v3033_v28, 0.0 }
 0x245   : > { %v3221_v25 = vmax.f32 %v3035_v44, 0.0  ;;  %v10898_v2 = vpop.f32.mrf.mxu1  ;;  %8454 = vmatmul.mubr.msk.f32.gmra.mxu1 %vm3381_vm2, %v10891_v39  ;;  %8863 = vmatprep.mubr.msk.f32.mxu0 %vm9425_vm1, %v13107_v27 }
 0x246   : > { %13196 = vst [vmem:[#allocation55_spill] sm:$0xff] %v10898_v2  ;;  %v2605_v14 = vpop.f32.mrf.mxu0  ;;  %8456 = vmatprep.mubr.msk.f32.mxu1 %vm9425_vm1, %v13107_v27  ;;  %v10920_v16 = vmax.f32 %v3219_v51, %v3222_v15 }
 0x247   : > { %v10906_v37 = vmax.f32 %v3218_v7, %v3221_v25  ;;  %v8311_v40 = vpop.f32.mrf.mxu1  ;;  %v3037_v44 = vadd.f32 %v10610_v36, %v2605_v14  ;;  %v3038_v14 = vadd.f32 %v10610_v36, %v8190_v56 }
 0x248   : > { %v8193_v58 = vpop.f32.mrf.mxu0  ;;  %8864 = vmatmul.mubr.msk.f32.gmra.mxu0 %vm3381_vm2, %v10424_v54 }
 0x249   : > { %v3040_v11 = vadd.f32 %v10610_v36, %v8193_v58  ;;  %v10912_v2 = vpop.f32.mrf.mxu1  ;;  %8457 = vmatmul.mubr.msk.f32.gmra.mxu1 %vm3381_vm2, %v10906_v37  ;;  %8866 = vmatprep.mubr.msk.f32.mxu0 %vm9425_vm1, %v13107_v27  ;;  %v3223_v58 = vmax.f32 %v3037_v44, 0.0 }
 0x24a   : > { %13197 = vst [vmem:[#allocation56_spill] sm:$0xff] %v10912_v2  ;;  %v2615_v25 = vpop.f32.mrf.mxu0  ;;  %8459 = vmatprep.mubr.msk.f32.mxu1 %vm9425_vm1, %v13107_v27 }
 0x24b   : > { %v3226_v7 = vmax.f32 %v3040_v11, 0.0  ;;  %v8314_v28 = vpop.f32.mrf.mxu1 }
 0x24c   : > { %v8196_v40 = vpop.f32.mrf.mxu0  ;;  %8867 = vmatmul.mubr.msk.f32.gmra.mxu0 %vm3381_vm2, %v10435_v5  ;;  %v3224_v28 = vmax.f32 %v3038_v14, 0.0 }
 0x24d   : > { %v10925_v2 = vpop.f32.mrf.mxu1  ;;  %8460 = vmatmul.mubr.msk.f32.gmra.mxu1 %vm3381_vm2, %v10920_v16  ;;  %8869 = vmatprep.mubr.msk.f32.mxu0 %vm9425_vm1, %v13107_v27  ;;  %v10933_v15 = vmax.f32 %v3223_v58, %v3226_v7  ;;  %v3042_v51 = vadd.f32 %v10610_v36, %v8196_v40 }
 0x24e   : > { %13198 = vst [vmem:[#allocation57_spill] sm:$0xff] %v10925_v2  ;;  %v2625_v54 = vpop.f32.mrf.mxu0  ;;  %8462 = vmatprep.mubr.msk.f32.mxu1 %vm9425_vm1, %v13107_v27  ;;  %v3039_v2 = vadd.f32 %v10610_v36, %v2615_v25 }
 0x24f   : > { %v3041_v11 = vadd.f32 %v10610_v36, %v2625_v54  ;;  %v8317_v56 = vpop.f32.mrf.mxu1  ;;  %v3228_v54 = vmax.f32 %v3042_v51, 0.0 }
 0x250   : > { %v8199_v44 = vpop.f32.mrf.mxu0  ;;  %8870 = vmatmul.mubr.msk.f32.gmra.mxu0 %vm3381_vm2, %v10448_v20  ;;  %v3225_v25 = vmax.f32 %v3039_v2, 0.0 }
 0x251   : > { %v3227_v5 = vmax.f32 %v3041_v11, 0.0  ;;  %v10940_v43 = vpop.f32.mrf.mxu1  ;;  %8463 = vmatmul.mubr.msk.f32.gmra.mxu1 %vm3381_vm2, %v10933_v15  ;;  %8872 = vmatprep.mubr.msk.f32.mxu0 %vm9425_vm1, %v13107_v27 }
 0x252   : > { %13199 = vst [vmem:[#allocation58_spill] sm:$0xff] %v10940_v43  ;;  %v2635_v7 = vpop.f32.mrf.mxu0  ;;  %8465 = vmatprep.mubr.msk.f32.mxu1 %vm9425_vm1, %v13107_v27  ;;  %v10962_v51 = vmax.f32 %v3225_v25, %v3228_v54 }
 0x253   : > { %v10948_v40 = vmax.f32 %v3224_v28, %v3227_v5  ;;  %v8320_v58 = vpop.f32.mrf.mxu1  ;;  %v3043_v11 = vadd.f32 %v10610_v36, %v2635_v7  ;;  %v3044_v7 = vadd.f32 %v10610_v36, %v8199_v44 }
 0x254   : > { %v8202_v14 = vpop.f32.mrf.mxu0  ;;  %8873 = vmatmul.mubr.msk.f32.gmra.mxu0 %vm3381_vm2, %v10460_v35 }
 0x255   : > { %v3046_v56 = vadd.f32 %v10610_v36, %v8202_v14  ;;  %v10954_v43 = vpop.f32.mrf.mxu1  ;;  %8466 = vmatmul.mubr.msk.f32.gmra.mxu1 %vm3381_vm2, %v10948_v40  ;;  %8875 = vmatprep.mubr.msk.f32.mxu0 %vm9425_vm1, %v13107_v27  ;;  %v3229_v14 = vmax.f32 %v3043_v11, 0.0 }
 0x256   : > { %13200 = vst [vmem:[#allocation59_spill] sm:$0xff] %v10954_v43  ;;  %v2645_v5 = vpop.f32.mrf.mxu0  ;;  %8468 = vmatprep.mubr.msk.f32.mxu1 %vm9425_vm1, %v13107_v27 }
 0x257   : > { %v3232_v28 = vmax.f32 %v3046_v56, 0.0  ;;  %v8323_v2 = vpop.f32.mrf.mxu1 }
 0x258   : > { %v8205_v58 = vpop.f32.mrf.mxu0  ;;  %8876 = vmatmul.mubr.msk.f32.gmra.mxu0 %vm3381_vm2, %v10471_v48  ;;  %v3230_v2 = vmax.f32 %v3044_v7, 0.0 }
 0x259   : > { %v10967_v43 = vpop.f32.mrf.mxu1  ;;  %8469 = vmatmul.mubr.msk.f32.gmra.mxu1 %vm3381_vm2, %v10962_v51  ;;  %8878 = vmatprep.mubr.msk.f32.mxu0 %vm9425_vm1, %v13107_v27  ;;  %v10975_v54 = vmax.f32 %v3229_v14, %v3232_v28  ;;  %v3048_v25 = vadd.f32 %v10610_v36, %v8205_v58 }
 0x25a   : > { %13201 = vst [vmem:[#allocation60_spill] sm:$0xff] %v10967_v43  ;;  %v2655_v35 = vpop.f32.mrf.mxu0  ;;  %8471 = vmatprep.mubr.msk.f32.mxu1 %vm9425_vm1, %v13107_v27  ;;  %v3045_v43 = vadd.f32 %v10610_v36, %v2645_v5 }
 0x25b   : > { %v3047_v56 = vadd.f32 %v10610_v36, %v2655_v35  ;;  %v8326_v44 = vpop.f32.mrf.mxu1  ;;  %v3234_v35 = vmax.f32 %v3048_v25, 0.0 }
 0x25c   : > { %v8208_v11 = vpop.f32.mrf.mxu0  ;;  %8879 = vmatmul.mubr.msk.f32.gmra.mxu0 %vm3381_vm2, %v10484_v6  ;;  %v3231_v5 = vmax.f32 %v3045_v43, 0.0 }
 0x25d   : > { %v3233_v48 = vmax.f32 %v3047_v56, 0.0  ;;  %v10982_v20 = vpop.f32.mrf.mxu1  ;;  %8472 = vmatmul.mubr.msk.f32.gmra.mxu1 %vm3381_vm2, %v10975_v54  ;;  %8881 = vmatprep.mubr.msk.f32.mxu0 %vm9425_vm1, %v13107_v27 }
 0x25e   : > { %13202 = vst [vmem:[#allocation61_spill] sm:$0xff] %v10982_v20  ;;  %v2665_v28 = vpop.f32.mrf.mxu0  ;;  %8474 = vmatprep.mubr.msk.f32.mxu1 %vm9425_vm1, %v13107_v27  ;;  %v11004_v25 = vmax.f32 %v3231_v5, %v3234_v35 }
 0x25f   : > { %v10990_v58 = vmax.f32 %v3230_v2, %v3233_v48  ;;  %v8329_v14 = vpop.f32.mrf.mxu1  ;;  %v3049_v56 = vadd.f32 %v10610_v36, %v2665_v28  ;;  %v3050_v28 = vadd.f32 %v10610_v36, %v8208_v11 }
 0x260   : > { %v8211_v7 = vpop.f32.mrf.mxu0  ;;  %8882 = vmatmul.mubr.msk.f32.gmra.mxu0 %vm3381_vm2, %v10496_v18  ;;  %13204 = vst [vmem:[#allocation63_spill] sm:$0xff] %v11004_v25 }
 0x261   : > { %v3052_v44 = vadd.f32 %v10610_v36, %v8211_v7  ;;  %v10996_v20 = vpop.f32.mrf.mxu1  ;;  %8475 = vmatmul.mubr.msk.f32.gmra.mxu1 %vm3381_vm2, %v10990_v58  ;;  %8884 = vmatprep.mubr.msk.f32.mxu0 %vm9425_vm1, %v13107_v27  ;;  %v3235_v7 = vmax.f32 %v3049_v56, 0.0 }
 0x262   : > { %13203 = vst [vmem:[#allocation62_spill] sm:$0xff] %v10996_v20  ;;  %v2675_v48 = vpop.f32.mrf.mxu0  ;;  %8477 = vmatprep.mubr.msk.f32.mxu1 %vm9425_vm1, %v13107_v27 }
 0x263   : > { %v3238_v2 = vmax.f32 %v3052_v44, 0.0  ;;  %v8332_v43 = vpop.f32.mrf.mxu1 }
 0x264   : > { %v8214_v14 = vpop.f32.mrf.mxu0  ;;  %8885 = vmatmul.mubr.msk.f32.gmra.mxu0 %vm3381_vm2, %v10507_v33  ;;  %v3236_v43 = vmax.f32 %v3050_v28, 0.0 }
 0x265   : > { %v11009_v20 = vpop.f32.mrf.mxu1  ;;  %8478 = vmatmul.mubr.msk.f32.gmra.mxu1 %vm3381_vm2, %v11004_v25  ;;  %8887 = vmatprep.mubr.msk.f32.mxu0 %vm9425_vm1, %v13107_v27  ;;  %v11017_v35 = vmax.f32 %v3235_v7, %v3238_v2  ;;  %v3054_v5 = vadd.f32 %v10610_v36, %v8214_v14 }
 0x266   : > { %13205 = vst [vmem:[#allocation64_spill] sm:$0xff] %v11009_v20  ;;  %v2685_v18 = vpop.f32.mrf.mxu0  ;;  %8480 = vmatprep.mubr.msk.f32.mxu1 %vm9425_vm1, %v13107_v27  ;;  %v3051_v20 = vadd.f32 %v10610_v36, %v2675_v48 }
 0x267   : > { %13206 = vst [vmem:[#allocation65_spill] sm:$0xff] %v11017_v35  ;;  %v3053_v44 = vadd.f32 %v10610_v36, %v2685_v18  ;;  %v8335_v11 = vpop.f32.mrf.mxu1  ;;  %v3240_v18 = vmax.f32 %v3054_v5, 0.0 }
 0x268   : > { %v8217_v56 = vpop.f32.mrf.mxu0  ;;  %8888 = vmatmul.mubr.msk.f32.gmra.mxu0 %vm3381_vm2, %v10520_v55  ;;  %v3237_v48 = vmax.f32 %v3051_v20, 0.0 }
 0x269   : > { %v3239_v33 = vmax.f32 %v3053_v44, 0.0  ;;  %v11024_v6 = vpop.f32.mrf.mxu1  ;;  %8481 = vmatmul.mubr.msk.f32.gmra.mxu1 %vm3381_vm2, %v11017_v35  ;;  %8890 = vmatprep.mubr.msk.f32.mxu0 %vm9425_vm1, %v13107_v27 }
 0x26a   : > { %13207 = vst [vmem:[#allocation66_spill] sm:$0xff] %v11024_v6  ;;  %v2695_v2 = vpop.f32.mrf.mxu0  ;;  %8483 = vmatprep.mubr.msk.f32.mxu1 %vm9425_vm1, %v13107_v27  ;;  %v11046_v5 = vmax.f32 %v3237_v48, %v3240_v18 }
 0x26b   : > { %v11032_v14 = vmax.f32 %v3236_v43, %v3239_v33  ;;  %v8338_v7 = vpop.f32.mrf.mxu1  ;;  %v3055_v44 = vadd.f32 %v10610_v36, %v2695_v2  ;;  %v3056_v2 = vadd.f32 %v10610_v36, %v8217_v56 }
 0x26c   : > { %v8220_v28 = vpop.f32.mrf.mxu0  ;;  %8891 = vmatmul.mubr.msk.f32.gmra.mxu0 %vm3381_vm2, %v10532_v8  ;;  %13210 = vst [vmem:[#allocation69_spill] sm:$0xff] %v11046_v5 }
 0x26d   : > { %13208 = vst [vmem:[#allocation67_spill] sm:$0xff] %v11032_v14  ;;  %v3058_v11 = vadd.f32 %v10610_v36, %v8220_v28  ;;  %v11038_v6 = vpop.f32.mrf.mxu1  ;;  %8484 = vmatmul.mubr.msk.f32.gmra.mxu1 %vm3381_vm2, %v11032_v14  ;;  %8893 = vmatprep.mubr.msk.f32.mxu0 %vm9425_vm1, %v13107_v27  ;;  %v3241_v28 = vmax.f32 %v3055_v44, 0.0 }
 0x26e   : > { %13209 = vst [vmem:[#allocation68_spill] sm:$0xff] %v11038_v6  ;;  %v2705_v33 = vpop.f32.mrf.mxu0  ;;  %8486 = vmatprep.mubr.msk.f32.mxu1 %vm9425_vm1, %v13107_v27 }
 0x26f   : > { %v3244_v43 = vmax.f32 %v3058_v11, 0.0  ;;  %v8341_v20 = vpop.f32.mrf.mxu1 }
 0x270   : > { %v8223_v7 = vpop.f32.mrf.mxu0  ;;  %8894 = vmatmul.mubr.msk.f32.gmra.mxu0 %vm3381_vm2, %v10543_v22  ;;  %v3242_v20 = vmax.f32 %v3056_v2, 0.0 }
 0x271   : > { %v11051_v6 = vpop.f32.mrf.mxu1  ;;  %8487 = vmatmul.mubr.msk.f32.gmra.mxu1 %vm3381_vm2, %v11046_v5  ;;  %8896 = vmatprep.mubr.msk.f32.mxu0 %vm9425_vm1, %v13107_v27  ;;  %v11059_v18 = vmax.f32 %v3241_v28, %v3244_v43  ;;  %v3060_v48 = vadd.f32 %v10610_v36, %v8223_v7 }
 0x272   : > { %13211 = vst [vmem:[#allocation70_spill] sm:$0xff] %v11051_v6  ;;  %v2715_v8 = vpop.f32.mrf.mxu0  ;;  %8489 = vmatprep.mubr.msk.f32.mxu1 %vm9425_vm1, %v13107_v27  ;;  %v3057_v6 = vadd.f32 %v10610_v36, %v2705_v33 }
 0x273   : > { %13212 = vst [vmem:[#allocation71_spill] sm:$0xff] %v11059_v18  ;;  %v3059_v11 = vadd.f32 %v10610_v36, %v2715_v8  ;;  %v8344_v56 = vpop.f32.mrf.mxu1  ;;  %v3246_v8 = vmax.f32 %v3060_v48, 0.0 }
 0x274   : > { %v8226_v44 = vpop.f32.mrf.mxu0  ;;  %8897 = vmatmul.mubr.msk.f32.gmra.mxu0 %vm3381_vm2, %v10556_v47  ;;  %v3243_v33 = vmax.f32 %v3057_v6, 0.0 }
 0x275   : > { %v3245_v22 = vmax.f32 %v3059_v11, 0.0  ;;  %v11066_v55 = vpop.f32.mrf.mxu1  ;;  %8490 = vmatmul.mubr.msk.f32.gmra.mxu1 %vm3381_vm2, %v11059_v18  ;;  %8899 = vmatprep.mubr.msk.f32.mxu0 %vm9425_vm1, %v13107_v27 }
 0x276   : > { %13213 = vst [vmem:[#allocation72_spill] sm:$0xff] %v11066_v55  ;;  %v2725_v43 = vpop.f32.mrf.mxu0  ;;  %8492 = vmatprep.mubr.msk.f32.mxu1 %vm9425_vm1, %v13107_v27  ;;  %v11088_v48 = vmax.f32 %v3243_v33, %v3246_v8 }
 0x277   : > { %v11074_v7 = vmax.f32 %v3242_v20, %v3245_v22  ;;  %v8347_v28 = vpop.f32.mrf.mxu1  ;;  %v3061_v11 = vadd.f32 %v10610_v36, %v2725_v43  ;;  %v3062_v43 = vadd.f32 %v10610_v36, %v8226_v44 }
 0x278   : > { %v8229_v2 = vpop.f32.mrf.mxu0  ;;  %8900 = vmatmul.mubr.msk.f32.gmra.mxu0 %vm3381_vm2, %v10568_v63  ;;  %13216 = vst [vmem:[#allocation75_spill] sm:$0xff] %v11088_v48 }
 0x279   : > { %13214 = vst [vmem:[#allocation73_spill] sm:$0xff] %v11074_v7  ;;  %v3064_v56 = vadd.f32 %v10610_v36, %v8229_v2  ;;  %v11080_v55 = vpop.f32.mrf.mxu1  ;;  %8493 = vmatmul.mubr.msk.f32.gmra.mxu1 %vm3381_vm2, %v11074_v7  ;;  %8902 = vmatprep.mubr.msk.f32.mxu0 %vm9425_vm1, %v13107_v27  ;;  %v3247_v2 = vmax.f32 %v3061_v11, 0.0 }
 0x27a   : > { %13215 = vst [vmem:[#allocation74_spill] sm:$0xff] %v11080_v55  ;;  %v2735_v22 = vpop.f32.mrf.mxu0  ;;  %8495 = vmatprep.mubr.msk.f32.mxu1 %vm9425_vm1, %v13107_v27 }
 0x27b   : > { %v3250_v20 = vmax.f32 %v3064_v56, 0.0  ;;  %v8350_v6 = vpop.f32.mrf.mxu1 }
 0x27c   : > { %v8232_v28 = vpop.f32.mrf.mxu0  ;;  %8903 = vmatmul.mubr.msk.f32.gmra.mxu0 %vm3381_vm2, %v10579_v19  ;;  %v3248_v6 = vmax.f32 %v3062_v43, 0.0 }
 0x27d   : > { %v11093_v55 = vpop.f32.mrf.mxu1  ;;  %8496 = vmatmul.mubr.msk.f32.gmra.mxu1 %vm3381_vm2, %v11088_v48  ;;  %8905 = vmatprep.mubr.msk.f32.mxu0 %vm9425_vm1, %v13107_v27  ;;  %v11101_v8 = vmax.f32 %v3247_v2, %v3250_v20  ;;  %v3066_v33 = vadd.f32 %v10610_v36, %v8232_v28 }
 0x27e   : > { %13217 = vst [vmem:[#allocation76_spill] sm:$0xff] %v11093_v55  ;;  %v2745_v63 = vpop.f32.mrf.mxu0  ;;  %8498 = vmatprep.mubr.msk.f32.mxu1 %vm9425_vm1, %v13107_v27  ;;  %v3063_v55 = vadd.f32 %v10610_v36, %v2735_v22 }
 0x27f   : > { %13218 = vst [vmem:[#allocation77_spill] sm:$0xff] %v11101_v8  ;;  %v3065_v56 = vadd.f32 %v10610_v36, %v2745_v63  ;;  %v8353_v44 = vpop.f32.mrf.mxu1  ;;  %v3252_v63 = vmax.f32 %v3066_v33, 0.0 }
 0x280   : > { %v8235_v11 = vpop.f32.mrf.mxu0  ;;  %8906 = vmatmul.mubr.msk.f32.gmra.mxu0 %vm3381_vm2, %v10592_v46  ;;  %v3249_v22 = vmax.f32 %v3063_v55, 0.0 }
 0x281   : > { %v3251_v19 = vmax.f32 %v3065_v56, 0.0  ;;  %v11108_v47 = vpop.f32.mrf.mxu1  ;;  %8499 = vmatmul.mubr.msk.f32.gmra.mxu1 %vm3381_vm2, %v11101_v8  ;;  %8908 = vmatprep.mubr.msk.f32.mxu0 %vm9425_vm1, %v13107_v27 }
 0x282   : > { %13219 = vst [vmem:[#allocation78_spill] sm:$0xff] %v11108_v47  ;;  %v2755_v20 = vpop.f32.mrf.mxu0  ;;  %8501 = vmatprep.mubr.msk.f32.mxu1 %vm9425_vm1, %v13107_v27  ;;  %v11130_v33 = vmax.f32 %v3249_v22, %v3252_v63 }
 0x283   : > { %v11116_v28 = vmax.f32 %v3248_v6, %v3251_v19  ;;  %v8356_v2 = vpop.f32.mrf.mxu1  ;;  %v3067_v56 = vadd.f32 %v10610_v36, %v2755_v20  ;;  %v3068_v20 = vadd.f32 %v10610_v36, %v8235_v11 }
 0x284   : > { %v8238_v43 = vpop.f32.mrf.mxu0  ;;  %8909 = vmatmul.mubr.msk.f32.gmra.mxu0 %vm3381_vm2, %v10604_v0  ;;  %13222 = vst [vmem:[#allocation81_spill] sm:$0xff] %v11130_v33 }
 0x285   : > { %13220 = vst [vmem:[#allocation79_spill] sm:$0xff] %v11116_v28  ;;  %v3070_v44 = vadd.f32 %v10610_v36, %v8238_v43  ;;  %v11122_v47 = vpop.f32.mrf.mxu1  ;;  %8502 = vmatmul.mubr.msk.f32.gmra.mxu1 %vm3381_vm2, %v11116_v28  ;;  %8911 = vmatprep.mubr.msk.f32.mxu0 %vm9425_vm1, %v13107_v27  ;;  %v3253_v43 = vmax.f32 %v3067_v56, 0.0 }
 0x286   : > { %13221 = vst [vmem:[#allocation80_spill] sm:$0xff] %v11122_v47  ;;  %v2765_v19 = vpop.f32.mrf.mxu0  ;;  %8504 = vmatprep.mubr.msk.f32.mxu1 %vm9425_vm1, %v13107_v27 }
 0x287   : > { %v3256_v6 = vmax.f32 %v3070_v44, 0.0  ;;  %v8359_v55 = vpop.f32.mrf.mxu1 }
 0x288   : > { %v8241_v2 = vpop.f32.mrf.mxu0  ;;  %8912 = vmatmul.mubr.msk.f32.gmra.mxu0 %vm3381_vm2, %v10620_v26  ;;  %v3254_v55 = vmax.f32 %v3068_v20, 0.0 }
 0x289   : > { %v11135_v47 = vpop.f32.mrf.mxu1  ;;  %8505 = vmatmul.mubr.msk.f32.gmra.mxu1 %vm3381_vm2, %v11130_v33  ;;  %8914 = vmatprep.mubr.msk.f32.mxu0 %vm9425_vm1, %v13107_v27  ;;  %v11143_v63 = vmax.f32 %v3253_v43, %v3256_v6  ;;  %v3072_v22 = vadd.f32 %v10610_v36, %v8241_v2 }
 0x28a   : > { %13223 = vst [vmem:[#allocation82_spill] sm:$0xff] %v11135_v47  ;;  %v2775_v0 = vpop.f32.mrf.mxu0  ;;  %8507 = vmatprep.mubr.msk.f32.mxu1 %vm9425_vm1, %v13107_v27  ;;  %v3069_v47 = vadd.f32 %v10610_v36, %v2765_v19  ;;  %v11165_v19 = vld [vmem:[%s13063_s2] ss:$0 sm:$0xff] }
 0x28b   : > { %13224 = vst [vmem:[#allocation83_spill] sm:$0xff] %v11143_v63  ;;  %v3071_v44 = vadd.f32 %v10610_v36, %v2775_v0  ;;  %v8362_v11 = vpop.f32.mrf.mxu1  ;;  %v3258_v0 = vmax.f32 %v3072_v22, 0.0 }
 0x28c   : > { %v8244_v56 = vpop.f32.mrf.mxu0  ;;  %8915 = vmatmul.mubr.msk.f32.gmra.mxu0 %vm3381_vm2, %v10633_v53  ;;  %v3255_v36 = vmax.f32 %v3069_v47, 0.0 }
 0x28d   : > { %v3257_v26 = vmax.f32 %v3071_v44, 0.0  ;;  %v11150_v46 = vpop.f32.mrf.mxu1  ;;  %8508 = vmatmul.mubr.msk.f32.gmra.mxu1 %vm3381_vm2, %v11143_v63  ;;  %8917 = vmatprep.mubr.msk.f32.mxu0 %vm9425_vm1, %v13107_v27 }
 0x28e   : > { %13225 = vst [vmem:[#allocation84_spill] sm:$0xff] %v11150_v46  ;;  %v2785_v6 = vpop.f32.mrf.mxu0  ;;  %8510 = vmatprep.mubr.msk.f32.mxu1 %vm9425_vm1, %v13107_v27  ;;  %v11177_v47 = vmax.f32 %v3255_v36, %v3258_v0 }
 0x28f   : > { %v11158_v2 = vmax.f32 %v3254_v55, %v3257_v26  ;;  %v8365_v43 = vpop.f32.mrf.mxu1  ;;  %v3073_v44 = vadd.f32 %v11165_v19, %v2785_v6  ;;  %v3074_v6 = vadd.f32 %v11165_v19, %v8244_v56 }
 0x290   : > { %v8247_v20 = vpop.f32.mrf.mxu0  ;;  %8918 = vmatmul.mubr.msk.f32.gmra.mxu0 %vm3381_vm2, %v10644_v10  ;;  %13228 = vst [vmem:[#allocation87_spill] sm:$0xff] %v11177_v47 }
 0x291   : > { %13226 = vst [vmem:[#allocation85_spill] sm:$0xff] %v11158_v2  ;;  %v3076_v11 = vadd.f32 %v11165_v19, %v8247_v20  ;;  %v11169_v46 = vpop.f32.mrf.mxu1  ;;  %8511 = vmatmul.mubr.msk.f32.gmra.mxu1 %vm3381_vm2, %v11158_v2  ;;  %8920 = vmatprep.mubr.msk.f32.mxu0 %vm9425_vm1, %v13107_v27  ;;  %v3259_v20 = vmax.f32 %v3073_v44, 0.0 }
 0x292   : > { %13227 = vst [vmem:[#allocation86_spill] sm:$0xff] %v11169_v46  ;;  %v2795_v26 = vpop.f32.mrf.mxu0  ;;  %8513 = vmatprep.mubr.msk.f32.mxu1 %vm9425_vm1, %v13107_v27 }
 0x293   : > { %v3262_v22 = vmax.f32 %v3076_v11, 0.0  ;;  %v8368_v55 = vpop.f32.mrf.mxu1 }
 0x294   : > { %v8250_v43 = vpop.f32.mrf.mxu0  ;;  %8921 = vmatmul.mubr.msk.f32.gmra.mxu0 %vm3381_vm2, %v10654_v29  ;;  %v3260_v55 = vmax.f32 %v3074_v6, 0.0 }
 0x295   : > { %v11182_v46 = vpop.f32.mrf.mxu1  ;;  %8514 = vmatmul.mubr.msk.f32.gmra.mxu1 %vm3381_vm2, %v11177_v47  ;;  %8923 = vmatprep.mubr.msk.f32.mxu0 %vm9425_vm1, %v13107_v27  ;;  %v11190_v0 = vmax.f32 %v3259_v20, %v3262_v22  ;;  %v3078_v36 = vadd.f32 %v11165_v19, %v8250_v43 }
 0x296   : > { %13229 = vst [vmem:[#allocation88_spill] sm:$0xff] %v11182_v46  ;;  %v2805_v10 = vpop.f32.mrf.mxu0  ;;  %8516 = vmatprep.mubr.msk.f32.mxu1 %vm9425_vm1, %v13107_v27  ;;  %v3075_v46 = vadd.f32 %v11165_v19, %v2795_v26  ;;  %v11210_v26 = vld [vmem:[%s13066_s5 + $0x38] sm:$0xff] }
 0x297   : > { %13230 = vst [vmem:[#allocation89_spill] sm:$0xff] %v11190_v0  ;;  %v3077_v11 = vadd.f32 %v11165_v19, %v2805_v10  ;;  %v8371_v56 = vpop.f32.mrf.mxu1  ;;  %v3264_v10 = vmax.f32 %v3078_v36, 0.0  ;;  %9073 = vmatprep.subr.mxu1 %v11210_v26 }
 0x298   : > { %v8253_v44 = vpop.f32.mrf.mxu0  ;;  %8924 = vmatmul.mubr.msk.f32.gmra.mxu0 %vm3381_vm2, %v10673_v61 }
 0x299   : > { %v3263_v29 = vmax.f32 %v3077_v11, 0.0  ;;  %v11197_v53 = vpop.f32.mrf.mxu1  ;;  %8517 = vmatmul.mubr.msk.f32.gmra.mxu1 %vm3381_vm2, %v11190_v0  ;;  %8926 = vmatprep.mubr.msk.f32.mxu0 %vm9425_vm1, %v13107_v27  ;;  %v3261_v11 = vmax.f32 %v3075_v46, 0.0 }
 0x29a   : > { %13231 = vst [vmem:[#allocation90_spill] sm:$0xff] %v11197_v53  ;;  %v2815_v22 = vpop.f32.mrf.mxu0  ;;  %8519 = vmatprep.mubr.msk.f32.mxu1 %vm9425_vm1, %v13107_v27 }
 0x29b   : > { %v11205_v43 = vmax.f32 %v3260_v55, %v3263_v29  ;;  %v8374_v20 = vpop.f32.mrf.mxu1  ;;  %v3079_v56 = vadd.f32 %v11165_v19, %v2815_v22  ;;  %v13234_v29 = vmov 0.0   ;;  %v3080_v22 = vadd.f32 %v11165_v19, %v8253_v44 }
 0x29c   : > { %v8256_v6 = vpop.f32.mrf.mxu0  ;;  %8927 = vmatmul.mubr.msk.f32.gmra.mxu0 %vm3381_vm2, %v10686_v17  ;;  %v11225_v20 = vmax.f32 %v3261_v11, %v3264_v10 }
 0x29d   : > { %13232 = vst [vmem:[#allocation91_spill] sm:$0xff] %v11205_v43  ;;  %v3082_v27 = vadd.f32 %v11165_v19, %v8256_v6  ;;  %v11217_v36 = vpop.f32.mrf.mxu1  ;;  %8520 = vmatmul.mubr.msk.f32.gmra.mxu1 %vm3381_vm2, %v11205_v43  ;;  %8929 = vmatprep.mubr.msk.f32.mxu0 %vm9425_vm1, %v13234_v29  ;;  %v3265_v6 = vmax.f32 %v3079_v56, 0.0 }
 0x29e   : > { %13233 = vst [vmem:[#allocation92_spill] sm:$0xff] %v11217_v36  ;;  %v2825_v55 = vpop.f32.mrf.mxu0  ;;  %8522 = vmatprep.mubr.msk.f32.mxu1 %vm9425_vm1, %v13234_v29  ;;  %13235 = vst [vmem:[#allocation93_spill] sm:$0xff] %v11225_v20 }
 0x29f   : > { %v3268_v53 = vmax.f32 %v3082_v27, 0.0  ;;  %v8377_v46 = vpop.f32.mrf.mxu1 }
 0x2a0   : > { %v8259_v17 = vpop.f32.mrf.mxu0  ;;  %8930 = vmatmul.mubr.msk.f32.gmra.mxu0 %vm3381_vm2, %v10697_v41  ;;  %v3266_v46 = vmax.f32 %v3080_v22, 0.0 }
 0x2a1   : > { %v11230_v36 = vpop.f32.mrf.mxu1  ;;  %8523 = vmatmul.mubr.msk.f32.gmra.mxu1 %vm3381_vm2, %v11225_v20  ;;  %8932 = vmatprep.mubr.msk.f32.mxu0 %vm9425_vm1, %v13234_v29  ;;  %v11238_v27 = vmax.f32 %v3265_v6, %v3268_v53  ;;  %v3084_v10 = vadd.f32 %v11165_v19, %v8259_v17 }
 0x2a2   : > { %13236 = vst [vmem:[#allocation94_spill] sm:$0xff] %v11230_v36  ;;  %v2835_v61 = vpop.f32.mrf.mxu0  ;;  %8525 = vmatprep.mubr.msk.f32.mxu1 %vm9425_vm1, %v13234_v29  ;;  %v3081_v36 = vadd.f32 %v11165_v19, %v2825_v55 }
 0x2a3   : > { %13237 = vst [vmem:[#allocation95_spill] sm:$0xff] %v11238_v27  ;;  %v3083_v11 = vadd.f32 %v11165_v19, %v2835_v61  ;;  %v8380_v44 = vpop.f32.mrf.mxu1  ;;  %v3270_v61 = vmax.f32 %v3084_v10, 0.0 }
 0x2a4   : > { %v8262_v56 = vpop.f32.mrf.mxu0  ;;  %8933 = vmatmul.mubr.msk.f32.gmra.mxu0 %vm3381_vm2, %v10710_v9  ;;  %v3267_v55 = vmax.f32 %v3081_v36, 0.0 }
 0x2a5   : > { %v3269_v41 = vmax.f32 %v3083_v11, 0.0  ;;  %v11245_v20 = vpop.f32.mrf.mxu1  ;;  %8526 = vmatmul.mubr.msk.f32.gmra.mxu1 %vm3381_vm2, %v11238_v27  ;;  %8935 = vmatprep.mubr.msk.f32.mxu0 %vm9425_vm1, %v13234_v29 }
 0x2a6   : > { %13238 = vst [vmem:[#allocation96_spill] sm:$0xff] %v11245_v20  ;;  %v2845_v53 = vpop.f32.mrf.mxu0  ;;  %8528 = vmatprep.mubr.msk.f32.mxu1 %vm9425_vm1, %v13234_v29  ;;  %v11267_v10 = vmax.f32 %v3267_v55, %v3270_v61 }
 0x2a7   : > { %v11253_v17 = vmax.f32 %v3266_v46, %v3269_v41  ;;  %v8383_v6 = vpop.f32.mrf.mxu1  ;;  %v3085_v11 = vadd.f32 %v11165_v19, %v2845_v53  ;;  %v3086_v53 = vadd.f32 %v11165_v19, %v8262_v56 }
 0x2a8   : > { %v8265_v22 = vpop.f32.mrf.mxu0  ;;  %8936 = vmatmul.mubr.msk.f32.gmra.mxu0 %vm3381_vm2, %v10722_v38  ;;  %13241 = vst [vmem:[#allocation99_spill] sm:$0xff] %v11267_v10 }
 0x2a9   : > { %13239 = vst [vmem:[#allocation97_spill] sm:$0xff] %v11253_v17  ;;  %v3088_v44 = vadd.f32 %v11165_v19, %v8265_v22  ;;  %v11259_v20 = vpop.f32.mrf.mxu1  ;;  %8529 = vmatmul.mubr.msk.f32.gmra.mxu1 %vm3381_vm2, %v11253_v17  ;;  %8938 = vmatprep.mubr.msk.f32.mxu0 %vm9425_vm1, %v13234_v29  ;;  %v3271_v22 = vmax.f32 %v3085_v11, 0.0 }
 0x2aa   : > { %13240 = vst [vmem:[#allocation98_spill] sm:$0xff] %v11259_v20  ;;  %v2855_v41 = vpop.f32.mrf.mxu0  ;;  %8531 = vmatprep.mubr.msk.f32.mxu1 %vm9425_vm1, %v13234_v29 }
 0x2ab   : > { %v3274_v46 = vmax.f32 %v3088_v44, 0.0  ;;  %v8386_v36 = vpop.f32.mrf.mxu1 }
 0x2ac   : > { %v8268_v6 = vpop.f32.mrf.mxu0  ;;  %8939 = vmatmul.mubr.msk.f32.gmra.mxu0 %vm3381_vm2, %v10733_v59  ;;  %v3272_v36 = vmax.f32 %v3086_v53, 0.0 }
 0x2ad   : > { %v11272_v20 = vpop.f32.mrf.mxu1  ;;  %8532 = vmatmul.mubr.msk.f32.gmra.mxu1 %vm3381_vm2, %v11267_v10  ;;  %8941 = vmatprep.mubr.msk.f32.mxu0 %vm9425_vm1, %v13234_v29  ;;  %v11280_v61 = vmax.f32 %v3271_v22, %v3274_v46  ;;  %v3090_v55 = vadd.f32 %v11165_v19, %v8268_v6 }
 0x2ae   : > { %13242 = vst [vmem:[#allocation100_spill] sm:$0xff] %v11272_v20  ;;  %v2865_v38 = vpop.f32.mrf.mxu0  ;;  %8534 = vmatprep.mubr.msk.f32.mxu1 %vm9425_vm1, %v13234_v29  ;;  %v3087_v20 = vadd.f32 %v11165_v19, %v2855_v41 }
 0x2af   : > { %v3089_v44 = vadd.f32 %v11165_v19, %v2865_v38  ;;  %v8389_v56 = vpop.f32.mrf.mxu1  ;;  %v3276_v38 = vmax.f32 %v3090_v55, 0.0 }
 0x2b0   : > { %v8271_v11 = vpop.f32.mrf.mxu0  ;;  %8942 = vmatmul.mubr.msk.f32.gmra.mxu0 %vm3381_vm2, %v10746_v45 }
 0x2b1   : > { %v3275_v59 = vmax.f32 %v3089_v44, 0.0  ;;  %v11287_v9 = vpop.f32.mrf.mxu1  ;;  %8535 = vmatmul.mubr.msk.f32.gmra.mxu1 %vm3381_vm2, %v11280_v61  ;;  %8944 = vmatprep.mubr.msk.f32.mxu0 %vm9425_vm1, %v13234_v29  ;;  %v3273_v44 = vmax.f32 %v3087_v20, 0.0 }
 0x2b2   : > { %13243 = vst [vmem:[#allocation101_spill] sm:$0xff] %v11287_v9  ;;  %v2875_v46 = vpop.f32.mrf.mxu0  ;;  %8537 = vmatprep.mubr.msk.f32.mxu1 %vm9425_vm1, %v13234_v29 }
 0x2b3   : > { %v11295_v6 = vmax.f32 %v3272_v36, %v3275_v59  ;;  %v3091_v53 = vadd.f32 %v11165_v19, %v2875_v46  ;;  %v8392_v22 = vpop.f32.mrf.mxu1  ;;  %v11309_v55 = vmax.f32 %v3273_v44, %v3276_v38  ;;  %v3092_v36 = vadd.f32 %v11165_v19, %v8271_v11 }
 0x2b4   : > { %v8274_v41 = vpop.f32.mrf.mxu0  ;;  %8945 = vmatmul.mubr.msk.f32.gmra.mxu0 %vm3381_vm2, %v10758_v62 }
 0x2b5   : > { %13244 = vst [vmem:[#allocation102_spill] sm:$0xff] %v11295_v6  ;;  %v3277_v56 = vmax.f32 %v3091_v53, 0.0  ;;  %v3094_v9 = vadd.f32 %v11165_v19, %v8274_v41  ;;  %v11301_v45 = vpop.f32.mrf.mxu1  ;;  %8538 = vmatmul.mubr.msk.f32.gmra.mxu1 %vm3381_vm2, %v11295_v6  ;;  %8947 = vmatprep.mubr.msk.f32.mxu0 %vm9425_vm1, %v13234_v29  ;;  %v3278_v11 = vmax.f32 %v3092_v36, 0.0 }
 0x2b6   : > { %13245 = vst [vmem:[#allocation103_spill] sm:$0xff] %v11301_v45  ;;  %v2885_v59 = vpop.f32.mrf.mxu0  ;;  %8540 = vmatprep.mubr.msk.f32.mxu1 %vm9425_vm1, %v13234_v29 }
 0x2b7   : > { %v3280_v20 = vmax.f32 %v3094_v9, 0.0  ;;  %v3093_v46 = vadd.f32 %v11165_v19, %v2885_v59  ;;  %v8395_v53 = vpop.f32.mrf.mxu1 }
 0x2b8   : > { %v8277_v22 = vpop.f32.mrf.mxu0  ;;  %8948 = vmatmul.mubr.msk.f32.gmra.mxu0 %vm3381_vm2, %v10769_v32 }
 0x2b9   : > { %v11315_v41 = vmax.f32 %v3277_v56, %v3280_v20  ;;  %v3279_v45 = vmax.f32 %v3093_v46, 0.0  ;;  %v3096_v62 = vadd.f32 %v11165_v19, %v8277_v22  ;;  %v11318_v6 = vpop.f32.mrf.mxu1  ;;  %8541 = vmatmul.mubr.msk.f32.gmra.mxu1 %vm3381_vm2, %v11309_v55  ;;  %8950 = vmatprep.mubr.msk.f32.mxu0 %vm9425_vm1, %v13234_v29 }
 0x2ba   : > { %13246 = vst [vmem:[#allocation104_spill] sm:$0xff] %v11318_v6  ;;  %v2895_v9 = vpop.f32.mrf.mxu0  ;;  %8547 = vmatprep.mubr.msk.f32.mxu1 %vm9425_vm1, %v13234_v29 }
 0x2bb   : > { %v3282_v38 = vmax.f32 %v3096_v62, 0.0  ;;  %v3095_v44 = vadd.f32 %v11165_v19, %v2895_v9  ;;  %v8398_v56 = vpop.f32.mrf.mxu1 }
 0x2bc   : > { %v11327_v59 = vpop.f32.mrf.mxu0  ;;  %8951 = vmatmul.mubr.msk.f32.gmra.mxu0 %vm3381_vm2, %v10782_v31 }
 0x2bd   : > { %v11331_v20 = vmax.f32 %v3279_v45, %v3282_v38  ;;  %v3281_v46 = vmax.f32 %v3095_v44, 0.0  ;;  %v11333_v53 = vpop.f32.mrf.mxu1  ;;  %8548 = vmatmul.mubr.msk.f32.vlgmr.msra.gmra.mxu1 %vm3381_vm2, %v10158_v50  ;;  %8953 = vmatprep.mubr.msk.f32.mxu0 %vm9425_vm1, %v13234_v29 }
 0x2be   : > { %13247 = vst [vmem:[#allocation105_spill] sm:$0xff] %v11333_v53  ;;  %v8284_v62 = vpop.f32.mrf.mxu0  ;;  %8550 = vmatprep.mubr.msk.f32.mxu1 %vm9425_vm1, %v13234_v29  ;;  %9074 = vmatpush3.msra.mxu1 %v11210_v26  ;;  %v13271_v53 = vld [vmem:[#allocation13_spill] sm:$0xff] }
 0x2bf   : > { %v11342_v19 = vmax.f32 %v3278_v11, %v3281_v46  ;;  %v8401_v36 = vpop.f32.mrf.mxu1 }
 0x2c0   : > { %v11344_v45 = vpop.f32.mrf.mxu0  ;;  %8954 = vmatmul.mubr.msk.f32.gmra.mxu0 %vm3381_vm2, %v10796_v49 }
 0x2c1   : > { %v11348_v22 = vpop.f32.mrf.mxu1  ;;  %8551 = vmatmul.mubr.msk.f32.gmra.mxu1 %vm3381_vm2, %v10171_v1  ;;  %8956 = vmatprep.mubr.msk.f32.mxu0 %vm9425_vm1, %v13234_v29 }
 0x2c2   : > { %13248 = vst [vmem:[#allocation106_spill] sm:$0xff] %v11348_v22  ;;  %v8287_v50 = vpop.f32.mrf.mxu0  ;;  %8553 = vmatprep.mubr.msk.f32.mxu1 %vm9425_vm1, %v13234_v29 }
 0x2c3   : > { %v8404_v26 = vpop.f32.mrf.mxu1 }
 0x2c4   : > { %v11356_v9 = vpop.f32.mrf.mxu0  ;;  %8957 = vmatmul.mubr.msk.f32.gmra.mxu0 %vm3381_vm2, %v10807_v52 }
 0x2c5   : > { %v11360_v11 = vpop.f32.mrf.mxu1  ;;  %8554 = vmatmul.mubr.msk.f32.gmra.mxu1 %vm3381_vm2, %v10166_v60  ;;  %8959 = vmatprep.mubr.msk.f32.mxu0 %vm9425_vm1, %v13234_v29 }
 0x2c6   : > { %13249 = vst [vmem:[#allocation107_spill] sm:$0xff] %v11360_v11  ;;  %v8814_v1 = vpop.f32.mrf.mxu0  ;;  %8556 = vmatprep.mubr.msk.f32.mxu1 %vm9425_vm1, %v13234_v29  ;;  %v13265_v11 = vld [vmem:[#allocation10_spill] sm:$0xff] }
 0x2c7   : > { %v8407_v38 = vpop.f32.mrf.mxu1 }
 0x2c8   : > { %v11368_v44 = vpop.f32.mrf.mxu0  ;;  %8960 = vmatmul.mubr.msk.f32.gmra.mxu0 %vm3381_vm2, %v10822_v24 }
 0x2c9   : > { %v11372_v56 = vpop.f32.mrf.mxu1  ;;  %8557 = vmatmul.mubr.msk.f32.gmra.mxu1 %vm3381_vm2, %v10182_v13  ;;  %8962 = vmatprep.mubr.msk.f32.mxu0 %vm9425_vm1, %v13234_v29 }
 0x2ca   : > { %13250 = vst [vmem:[#allocation108_spill] sm:$0xff] %v11372_v56  ;;  %v8817_v60 = vpop.f32.mrf.mxu0  ;;  %8559 = vmatprep.mubr.msk.f32.mxu1 %vm9425_vm1, %v13234_v29  ;;  %v13263_v56 = vld [vmem:[#allocation9_spill] sm:$0xff] }
 0x2cb   : > { %v8410_v46 = vpop.f32.mrf.mxu1 }
 0x2cc   : > { %v11380_v62 = vpop.f32.mrf.mxu0  ;;  %8963 = vmatmul.mubr.msk.f32.gmra.mxu0 %vm3381_vm2, %v10836_v4 }
 0x2cd   : > { %v11384_v36 = vpop.f32.mrf.mxu1  ;;  %8560 = vmatmul.mubr.msk.f32.gmra.mxu1 %vm3381_vm2, %v10198_v30  ;;  %8965 = vmatprep.mubr.msk.f32.mxu0 %vm9425_vm1, %v13234_v29 }
 0x2ce   : > { %13251 = vst [vmem:[#allocation109_spill] sm:$0xff] %v11384_v36  ;;  %v8820_v13 = vpop.f32.mrf.mxu0  ;;  %8562 = vmatprep.mubr.msk.f32.mxu1 %vm9425_vm1, %v13234_v29  ;;  %v13261_v36 = vld [vmem:[#allocation8_spill] sm:$0xff] }
 0x2cf   : > { %v8413_v50 = vpop.f32.mrf.mxu1 }
 0x2d0   : > { %v11392_v26 = vpop.f32.mrf.mxu0  ;;  %8966 = vmatmul.mubr.msk.f32.gmra.mxu0 %vm3381_vm2, %v10849_v12 }
 0x2d1   : > { %v11396_v1 = vpop.f32.mrf.mxu1  ;;  %8563 = vmatmul.mubr.msk.f32.gmra.mxu1 %vm3381_vm2, %v10190_v23  ;;  %8968 = vmatprep.mubr.msk.f32.mxu0 %vm9425_vm1, %v13234_v29 }
 0x2d2   : > { %13252 = vst [vmem:[#allocation110_spill] sm:$0xff] %v11396_v1  ;;  %v8823_v30 = vpop.f32.mrf.mxu0  ;;  %8565 = vmatprep.mubr.msk.f32.mxu1 %vm9425_vm1, %v13234_v29  ;;  %v13257_v1 = vld [vmem:[#allocation6_spill] sm:$0xff] }
 0x2d3   : > { %v8416_v38 = vpop.f32.mrf.mxu1 }
 0x2d4   : > { %v11404_v60 = vpop.f32.mrf.mxu0  ;;  %8969 = vmatmul.mubr.msk.f32.gmra.mxu0 %vm3381_vm2, %v10864_v21 }
 0x2d5   : > { %v11408_v46 = vpop.f32.mrf.mxu1  ;;  %8566 = vmatmul.mubr.msk.f32.gmra.mxu1 %vm3381_vm2, %v10213_v42  ;;  %8971 = vmatprep.mubr.msk.f32.mxu0 %vm9425_vm1, %v13234_v29 }
 0x2d6   : > { %13253 = vst [vmem:[#allocation111_spill] sm:$0xff] %v11408_v46  ;;  %v8826_v23 = vpop.f32.mrf.mxu0  ;;  %8568 = vmatprep.mubr.msk.f32.mxu1 %vm9425_vm1, %v13234_v29 }
 0x2d7   : > { %v8419_v13 = vpop.f32.mrf.mxu1 }
 0x2d8   : > { %v11416_v50 = vpop.f32.mrf.mxu0  ;;  %8972 = vmatmul.mubr.msk.f32.gmra.mxu0 %vm3381_vm2, %v10878_v34 }
 0x2d9   : > { %v11420_v30 = vpop.f32.mrf.mxu1  ;;  %8569 = vmatmul.mubr.msk.f32.gmra.mxu1 %vm3381_vm2, %v10229_v57  ;;  %8974 = vmatprep.mubr.msk.f32.mxu0 %vm9425_vm1, %v13234_v29 }
 0x2da   : > { %13254 = vst [vmem:[#allocation112_spill] sm:$0xff] %v11420_v30  ;;  %v8829_v42 = vpop.f32.mrf.mxu0  ;;  %8571 = vmatprep.mubr.msk.f32.mxu1 %vm9425_vm1, %v13234_v29 }
 0x2db   : > { %v8422_v38 = vpop.f32.mrf.mxu1 }
 0x2dc   : > { %v11428_v23 = vpop.f32.mrf.mxu0  ;;  %8975 = vmatmul.mubr.msk.f32.gmra.mxu0 %vm3381_vm2, %v10891_v39 }
 0x2dd   : > { %v11432_v13 = vpop.f32.mrf.mxu1  ;;  %8572 = vmatmul.mubr.msk.f32.gmra.mxu1 %vm3381_vm2, %v10241_v3  ;;  %8977 = vmatprep.mubr.msk.f32.mxu0 %vm9425_vm1, %v13234_v29  ;;  %v5459_v3 = vld [vmem:[%s13066_s5 + $0x18] sm:$0xff] }
 0x2de   : > { %13255 = vst [vmem:[#allocation113_spill] sm:$0xff] %v11432_v13  ;;  %v8832_v57 = vpop.f32.mrf.mxu0  ;;  %8574 = vmatprep.mubr.msk.f32.mxu1 %vm9425_vm1, %v13234_v29  ;;  %9135 = vmatprep.subr.mxu0 %v5459_v3 }
 0x2df   : > { %v8425_v42 = vpop.f32.mrf.mxu1  ;;  %9136 = vmatpush3.msra.mxu0 %v5459_v3 }
 0x2e0   : > { %v11440_v30 = vpop.f32.mrf.mxu0  ;;  %8978 = vmatmul.mubr.msk.f32.gmra.mxu0 %vm3381_vm2, %v10906_v37 }
 0x2e1   : > { %v11444_v38 = vpop.f32.mrf.mxu1  ;;  %8575 = vmatmul.mubr.msk.f32.gmra.mxu1 %vm3381_vm2, %v13257_v1  ;;  %8980 = vmatprep.mubr.msk.f32.mxu0 %vm9425_vm1, %v13234_v29 }
 0x2e2   : > { %13256 = vst [vmem:[#allocation114_spill] sm:$0xff] %v11444_v38  ;;  %v8835_v57 = vpop.f32.mrf.mxu0  ;;  %8577 = vmatprep.mubr.msk.f32.mxu1 %vm9425_vm1, %v13234_v29  ;;  %v13259_v38 = vld [vmem:[#allocation7_spill] sm:$0xff] }
 0x2e3   : > { %v8428_v42 = vpop.f32.mrf.mxu1 }
 0x2e4   : > { %v11455_v13 = vpop.f32.mrf.mxu0  ;;  %8981 = vmatmul.mubr.msk.f32.gmra.mxu0 %vm3381_vm2, %v10920_v16 }
 0x2e5   : > { %v11459_v1 = vpop.f32.mrf.mxu1  ;;  %8578 = vmatmul.mubr.msk.f32.gmra.mxu1 %vm3381_vm2, %v13259_v38  ;;  %8983 = vmatprep.mubr.msk.f32.mxu0 %vm9425_vm1, %v13234_v29 }
 0x2e6   : > { %13258 = vst [vmem:[#allocation6_spill] sm:$0xff] %v11459_v1  ;;  %v8838_v57 = vpop.f32.mrf.mxu0  ;;  %8580 = vmatprep.mubr.msk.f32.mxu1 %vm9425_vm1, %v13234_v29 }
 0x2e7   : > { %v8431_v46 = vpop.f32.mrf.mxu1 }
 0x2e8   : > { %v11467_v42 = vpop.f32.mrf.mxu0  ;;  %8984 = vmatmul.mubr.msk.f32.gmra.mxu0 %vm3381_vm2, %v10933_v15 }
 0x2e9   : > { %v11471_v3 = vpop.f32.mrf.mxu1  ;;  %8581 = vmatmul.mubr.msk.f32.gmra.mxu1 %vm3381_vm2, %v13261_v36  ;;  %8986 = vmatprep.mubr.msk.f32.mxu0 %vm9425_vm1, %v13234_v29 }
 0x2ea   : > { %13260 = vst [vmem:[#allocation7_spill] sm:$0xff] %v11471_v3  ;;  %v8841_v38 = vpop.f32.mrf.mxu0  ;;  %8583 = vmatprep.mubr.msk.f32.mxu1 %vm9425_vm1, %v13234_v29 }
 0x2eb   : > { %v8434_v57 = vpop.f32.mrf.mxu1 }
 0x2ec   : > { %v11479_v1 = vpop.f32.mrf.mxu0  ;;  %8987 = vmatmul.mubr.msk.f32.gmra.mxu0 %vm3381_vm2, %v10948_v40 }
 0x2ed   : > { %v11483_v46 = vpop.f32.mrf.mxu1  ;;  %8584 = vmatmul.mubr.msk.f32.gmra.mxu1 %vm3381_vm2, %v13263_v56  ;;  %8989 = vmatprep.mubr.msk.f32.mxu0 %vm9425_vm1, %v13234_v29 }
 0x2ee   : > { %13262 = vst [vmem:[#allocation8_spill] sm:$0xff] %v11483_v46  ;;  %v8844_v36 = vpop.f32.mrf.mxu0  ;;  %8586 = vmatprep.mubr.msk.f32.mxu1 %vm9425_vm1, %v13234_v29 }
 0x2ef   : > { %v8437_v38 = vpop.f32.mrf.mxu1  ;;  %v7273_v36 = vld [vmem:[%s13066_s5 + $0x30] sm:$0xff] }
 0x2f0   : > { %v11491_v3 = vpop.f32.mrf.mxu0  ;;  %8990 = vmatmul.mubr.msk.f32.gmra.mxu0 %vm3381_vm2, %v10962_v51  ;;  %9075 = vmatprep.subr.mxu1 %v7273_v36 }
 0x2f1   : > { %v11495_v57 = vpop.f32.mrf.mxu1  ;;  %8587 = vmatmul.mubr.msk.f32.gmra.mxu1 %vm3381_vm2, %v13265_v11  ;;  %8992 = vmatprep.mubr.msk.f32.mxu0 %vm9425_vm1, %v13234_v29 }
 0x2f2   : > { %13264 = vst [vmem:[#allocation9_spill] sm:$0xff] %v11495_v57  ;;  %v8847_v56 = vpop.f32.mrf.mxu0  ;;  %8589 = vmatprep.mubr.msk.f32.mxu1 %vm9425_vm1, %v13234_v29  ;;  %9076 = vmatpush3.msra.mxu1 %v7273_v36  ;;  %v13267_v57 = vld [vmem:[#allocation11_spill] sm:$0xff]  ;;  %v13269_v36 = vld [vmem:[#allocation12_spill] sm:$0xff] }
 0x2f3   : > { %v8440_v38 = vpop.f32.mrf.mxu1 }
 0x2f4   : > { %v11506_v46 = vpop.f32.mrf.mxu0  ;;  %8993 = vmatmul.mubr.msk.f32.gmra.mxu0 %vm3381_vm2, %v10975_v54 }
 0x2f5   : > { %v11510_v11 = vpop.f32.mrf.mxu1  ;;  %8590 = vmatmul.mubr.msk.f32.gmra.mxu1 %vm3381_vm2, %v13267_v57  ;;  %8995 = vmatprep.mubr.msk.f32.mxu0 %vm9425_vm1, %v13234_v29 }
 0x2f6   : > { %13266 = vst [vmem:[#allocation10_spill] sm:$0xff] %v11510_v11  ;;  %v8850_v56 = vpop.f32.mrf.mxu0  ;;  %8592 = vmatprep.mubr.msk.f32.mxu1 %vm9425_vm1, %v13234_v29 }
 0x2f7   : > { %v8443_v38 = vpop.f32.mrf.mxu1 }
 0x2f8   : > { %v11518_v22 = vpop.f32.mrf.mxu0  ;;  %8996 = vmatmul.mubr.msk.f32.gmra.mxu0 %vm3381_vm2, %v10990_v58 }
 0x2f9   : > { %v11522_v6 = vpop.f32.mrf.mxu1  ;;  %8593 = vmatmul.mubr.msk.f32.gmra.mxu1 %vm3381_vm2, %v13269_v36  ;;  %8998 = vmatprep.mubr.msk.f32.mxu0 %vm9425_vm1, %v13234_v29 }
 0x2fa   : > { %13268 = vst [vmem:[#allocation11_spill] sm:$0xff] %v11522_v6  ;;  %v8853_v57 = vpop.f32.mrf.mxu0  ;;  %8595 = vmatprep.mubr.msk.f32.mxu1 %vm9425_vm1, %v13234_v29 }
 0x2fb   : > { %v8446_v56 = vpop.f32.mrf.mxu1 }
 0x2fc   : > { %v11530_v11 = vpop.f32.mrf.mxu0  ;;  %8999 = vmatmul.mubr.msk.f32.gmra.mxu0 %vm3381_vm2, %v11004_v25  ;;  %v13273_v25 = vld [vmem:[#allocation14_spill] sm:$0xff] }
 0x2fd   : > { %v11534_v38 = vpop.f32.mrf.mxu1  ;;  %8596 = vmatmul.mubr.msk.f32.gmra.mxu1 %vm3381_vm2, %v13271_v53  ;;  %9001 = vmatprep.mubr.msk.f32.mxu0 %vm9425_vm1, %v13234_v29 }
 0x2fe   : > { %13270 = vst [vmem:[#allocation12_spill] sm:$0xff] %v11534_v38  ;;  %v8856_v36 = vpop.f32.mrf.mxu0  ;;  %8598 = vmatprep.mubr.msk.f32.mxu1 %vm9425_vm1, %v13234_v29 }
 0x2ff   : > { %v8449_v57 = vpop.f32.mrf.mxu1 }
 0x300   : > { %v11542_v6 = vpop.f32.mrf.mxu0  ;;  %9002 = vmatmul.mubr.msk.f32.gmra.mxu0 %vm3381_vm2, %v11017_v35  ;;  %v13275_v35 = vld [vmem:[#allocation15_spill] sm:$0xff] }
 0x301   : > { %v11546_v56 = vpop.f32.mrf.mxu1  ;;  %8599 = vmatmul.mubr.msk.f32.gmra.mxu1 %vm3381_vm2, %v13273_v25  ;;  %9004 = vmatprep.mubr.msk.f32.mxu0 %vm9425_vm1, %v13234_v29 }
 0x302   : > { %13272 = vst [vmem:[#allocation13_spill] sm:$0xff] %v11546_v56  ;;  %v8859_v53 = vpop.f32.mrf.mxu0  ;;  %8601 = vmatprep.mubr.msk.f32.mxu1 %vm9425_vm1, %v13234_v29 }
 0x303   : > { %v8452_v36 = vpop.f32.mrf.mxu1 }
 0x304   : > { %v11554_v38 = vpop.f32.mrf.mxu0  ;;  %9005 = vmatmul.mubr.msk.f32.gmra.mxu0 %vm3381_vm2, %v11032_v14  ;;  %v13277_v14 = vld [vmem:[#allocation16_spill] sm:$0xff] }
 0x305   : > { %v11558_v57 = vpop.f32.mrf.mxu1  ;;  %8602 = vmatmul.mubr.msk.f32.gmra.mxu1 %vm3381_vm2, %v13275_v35  ;;  %9007 = vmatprep.mubr.msk.f32.mxu0 %vm9425_vm1, %v13234_v29 }
 0x306   : > { %13274 = vst [vmem:[#allocation14_spill] sm:$0xff] %v11558_v57  ;;  %v8862_v25 = vpop.f32.mrf.mxu0  ;;  %8604 = vmatprep.mubr.msk.f32.mxu1 %vm9425_vm1, %v13234_v29 }
 0x307   : > { %v8455_v53 = vpop.f32.mrf.mxu1 }
 0x308   : > { %v11566_v56 = vpop.f32.mrf.mxu0  ;;  %9008 = vmatmul.mubr.msk.f32.gmra.mxu0 %vm3381_vm2, %v11046_v5  ;;  %v13279_v5 = vld [vmem:[#allocation17_spill] sm:$0xff] }
 0x309   : > { %v11570_v36 = vpop.f32.mrf.mxu1  ;;  %8605 = vmatmul.mubr.msk.f32.gmra.mxu1 %vm3381_vm2, %v13277_v14  ;;  %9010 = vmatprep.mubr.msk.f32.mxu0 %vm9425_vm1, %v13234_v29 }
 0x30a   : > { %13276 = vst [vmem:[#allocation15_spill] sm:$0xff] %v11570_v36  ;;  %v8865_v35 = vpop.f32.mrf.mxu0  ;;  %8607 = vmatprep.mubr.msk.f32.mxu1 %vm9425_vm1, %v13234_v29 }
 0x30b   : > { %v8458_v25 = vpop.f32.mrf.mxu1 }
 0x30c   : > { %v11578_v57 = vpop.f32.mrf.mxu0  ;;  %9011 = vmatmul.mubr.msk.f32.gmra.mxu0 %vm3381_vm2, %v11059_v18  ;;  %v13281_v18 = vld [vmem:[#allocation18_spill] sm:$0xff] }
 0x30d   : > { %v11582_v53 = vpop.f32.mrf.mxu1  ;;  %8608 = vmatmul.mubr.msk.f32.gmra.mxu1 %vm3381_vm2, %v13279_v5  ;;  %9013 = vmatprep.mubr.msk.f32.mxu0 %vm9425_vm1, %v13234_v29  ;;  %v5458_v5 = vld [vmem:[%s13066_s5 + $0x10] sm:$0xff] }
 0x30e   : > { %13278 = vst [vmem:[#allocation16_spill] sm:$0xff] %v11582_v53  ;;  %v8868_v14 = vpop.f32.mrf.mxu0  ;;  %8610 = vmatprep.mubr.msk.f32.mxu1 %vm9425_vm1, %v13234_v29  ;;  %9137 = vmatprep.subr.mxu0 %v5458_v5 }
 0x30f   : > { %v8461_v35 = vpop.f32.mrf.mxu1  ;;  %9138 = vmatpush3.msra.mxu0 %v5458_v5  ;;  %v5456_v5 = vld [vmem:[%s13066_s5] sm:$0xff] }
 0x310   : > { %v11590_v36 = vpop.f32.mrf.mxu0  ;;  %9014 = vmatmul.mubr.msk.f32.gmra.mxu0 %vm3381_vm2, %v11074_v7  ;;  %v13283_v7 = vld [vmem:[#allocation19_spill] sm:$0xff] }
 0x311   : > { %v11594_v25 = vpop.f32.mrf.mxu1  ;;  %8611 = vmatmul.mubr.msk.f32.gmra.mxu1 %vm3381_vm2, %v13281_v18  ;;  %9016 = vmatprep.mubr.msk.f32.mxu0 %vm9425_vm1, %v13234_v29 }
 0x312   : > { %13280 = vst [vmem:[#allocation17_spill] sm:$0xff] %v11594_v25  ;;  %v8871_v14 = vpop.f32.mrf.mxu0  ;;  %8613 = vmatprep.mubr.msk.f32.mxu1 %vm9425_vm1, %v13234_v29  ;;  %v5457_v25 = vld [vmem:[%s13066_s5 + $0x8] sm:$0xff] }
 0x313   : > { %v8464_v35 = vpop.f32.mrf.mxu1  ;;  %9139 = vmatprep.subr.mxu0 %v5457_v25 }
 0x314   : > { %v11608_v53 = vpop.f32.mrf.mxu0  ;;  %9017 = vmatmul.mubr.msk.f32.gmra.mxu0 %vm3381_vm2, %v11088_v48 }
 0x315   : > { %v11612_v18 = vpop.f32.mrf.mxu1  ;;  %8614 = vmatmul.mubr.msk.f32.gmra.mxu1 %vm3381_vm2, %v13283_v7  ;;  %9019 = vmatprep.mubr.msk.f32.mxu0 %vm9425_vm1, %v13234_v29 }
 0x316   : > { %13282 = vst [vmem:[#allocation18_spill] sm:$0xff] %v11612_v18  ;;  %v8874_v14 = vpop.f32.mrf.mxu0  ;;  %8616 = vmatprep.mubr.msk.f32.mxu1 %vm9425_vm1, %v13234_v29  ;;  %9140 = vmatpush3.msra.mxu0 %v5457_v25  ;;  %v13285_v18 = vld [vmem:[#allocation20_spill] sm:$0xff] }
 0x317   : > { %v8467_v35 = vpop.f32.mrf.mxu1  ;;  %9141 = vmatprep.subr.mxu0 %v5456_v5 }
 0x318   : > { %v11623_v48 = vpop.f32.mrf.mxu0  ;;  %9020 = vmatmul.mubr.msk.f32.gmra.mxu0 %vm3381_vm2, %v11101_v8  ;;  %v13287_v8 = vld [vmem:[#allocation21_spill] sm:$0xff] }
 0x319   : > { %v11627_v7 = vpop.f32.mrf.mxu1  ;;  %8617 = vmatmul.mubr.msk.f32.gmra.mxu1 %vm3381_vm2, %v13285_v18  ;;  %9022 = vmatprep.mubr.msk.f32.mxu0 %vm9425_vm1, %v13234_v29 }
 0x31a   : > { %13284 = vst [vmem:[#allocation19_spill] sm:$0xff] %v11627_v7  ;;  %v8877_v14 = vpop.f32.mrf.mxu0  ;;  %8619 = vmatprep.mubr.msk.f32.mxu1 %vm9425_vm1, %v13234_v29  ;;  %9142 = vmatpush3.msra.mxu0 %v5456_v5 }
 0x31b   : > { %v8470_v25 = vpop.f32.mrf.mxu1  ;;  %9259 = vmatprep.subr.mxu0 %v13234_v29 }
 0x31c   : > { %v11636_v35 = vpop.f32.mrf.mxu0  ;;  %9023 = vmatmul.mubr.msk.f32.gmra.mxu0 %vm3381_vm2, %v11116_v28  ;;  %v13289_v28 = vld [vmem:[#allocation22_spill] sm:$0xff] }
 0x31d   : > { %v11640_v7 = vpop.f32.mrf.mxu1  ;;  %8620 = vmatmul.mubr.msk.f32.gmra.mxu1 %vm3381_vm2, %v13287_v8  ;;  %9025 = vmatprep.mubr.msk.f32.mxu0 %vm9425_vm1, %v13234_v29 }
 0x31e   : > { %13286 = vst [vmem:[#allocation20_spill] sm:$0xff] %v11640_v7  ;;  %v8880_v18 = vpop.f32.mrf.mxu0  ;;  %8622 = vmatprep.mubr.msk.f32.mxu1 %vm9425_vm1, %v13234_v29 }
 0x31f   : > { %v8473_v5 = vpop.f32.mrf.mxu1 }
 0x320   : > { %v11648_v14 = vpop.f32.mrf.mxu0  ;;  %9026 = vmatmul.mubr.msk.f32.gmra.mxu0 %vm3381_vm2, %v11130_v33  ;;  %v13291_v33 = vld [vmem:[#allocation23_spill] sm:$0xff] }
 0x321   : > { %v11652_v25 = vpop.f32.mrf.mxu1  ;;  %8623 = vmatmul.mubr.msk.f32.gmra.mxu1 %vm3381_vm2, %v13289_v28  ;;  %9028 = vmatprep.mubr.msk.f32.mxu0 %vm9425_vm1, %v13234_v29 }
 0x322   : > { %13288 = vst [vmem:[#allocation21_spill] sm:$0xff] %v11652_v25  ;;  %v8883_v8 = vpop.f32.mrf.mxu0  ;;  %8625 = vmatprep.mubr.msk.f32.mxu1 %vm9425_vm1, %v13234_v29 }
 0x323   : > { %v8476_v18 = vpop.f32.mrf.mxu1 }
 0x324   : > { %v11660_v7 = vpop.f32.mrf.mxu0  ;;  %9029 = vmatmul.mubr.msk.f32.gmra.mxu0 %vm3381_vm2, %v11143_v63  ;;  %v13293_v63 = vld [vmem:[#allocation24_spill] sm:$0xff] }
 0x325   : > { %v11664_v5 = vpop.f32.mrf.mxu1  ;;  %8626 = vmatmul.mubr.msk.f32.gmra.mxu1 %vm3381_vm2, %v13291_v33  ;;  %9031 = vmatprep.mubr.msk.f32.mxu0 %vm9425_vm1, %v13234_v29 }
 0x326   : > { %13290 = vst [vmem:[#allocation22_spill] sm:$0xff] %v11664_v5  ;;  %v8886_v28 = vpop.f32.mrf.mxu0  ;;  %8628 = vmatprep.mubr.msk.f32.mxu1 %vm9425_vm1, %v13234_v29 }
 0x327   : > { %v8479_v8 = vpop.f32.mrf.mxu1 }
 0x328   : > { %v11672_v25 = vpop.f32.mrf.mxu0  ;;  %9032 = vmatmul.mubr.msk.f32.gmra.mxu0 %vm3381_vm2, %v11158_v2  ;;  %v13295_v2 = vld [vmem:[#allocation25_spill] sm:$0xff] }
 0x329   : > { %v11676_v18 = vpop.f32.mrf.mxu1  ;;  %8629 = vmatmul.mubr.msk.f32.gmra.mxu1 %vm3381_vm2, %v13293_v63  ;;  %9034 = vmatprep.mubr.msk.f32.mxu0 %vm9425_vm1, %v13234_v29 }
 0x32a   : > { %13292 = vst [vmem:[#allocation23_spill] sm:$0xff] %v11676_v18  ;;  %v8889_v33 = vpop.f32.mrf.mxu0  ;;  %8631 = vmatprep.mubr.msk.f32.mxu1 %vm9425_vm1, %v13234_v29 }
 0x32b   : > { %v8482_v28 = vpop.f32.mrf.mxu1 }
 0x32c   : > { %v11684_v5 = vpop.f32.mrf.mxu0  ;;  %9035 = vmatmul.mubr.msk.f32.gmra.mxu0 %vm3381_vm2, %v11177_v47  ;;  %v13297_v47 = vld [vmem:[#allocation26_spill] sm:$0xff] }
 0x32d   : > { %v11688_v8 = vpop.f32.mrf.mxu1  ;;  %8632 = vmatmul.mubr.msk.f32.gmra.mxu1 %vm3381_vm2, %v13295_v2  ;;  %9037 = vmatprep.mubr.msk.f32.mxu0 %vm9425_vm1, %v13234_v29 }
 0x32e   : > { %13294 = vst [vmem:[#allocation24_spill] sm:$0xff] %v11688_v8  ;;  %v8892_v63 = vpop.f32.mrf.mxu0  ;;  %8634 = vmatprep.mubr.msk.f32.mxu1 %vm9425_vm1, %v13234_v29 }
 0x32f   : > { %v8485_v33 = vpop.f32.mrf.mxu1 }
 0x330   : > { %v11696_v18 = vpop.f32.mrf.mxu0  ;;  %9038 = vmatmul.mubr.msk.f32.gmra.mxu0 %vm3381_vm2, %v11190_v0  ;;  %v13300_v0 = vld [vmem:[#allocation27_spill] sm:$0xff] }
 0x331   : > { %v11700_v28 = vpop.f32.mrf.mxu1  ;;  %8635 = vmatmul.mubr.msk.f32.gmra.mxu1 %vm3381_vm2, %v13297_v47  ;;  %9040 = vmatprep.mubr.msk.f32.mxu0 %vm9425_vm1, %v13234_v29 }
 0x332   : > { %13296 = vst [vmem:[#allocation25_spill] sm:$0xff] %v11700_v28  ;;  %v8895_v2 = vpop.f32.mrf.mxu0  ;;  %8637 = vmatprep.mubr.msk.f32.mxu1 %vm9425_vm1, %v13234_v29 }
 0x333   : > { %v8488_v63 = vpop.f32.mrf.mxu1 }
 0x334   : > { %v11708_v8 = vpop.f32.mrf.mxu0  ;;  %9041 = vmatmul.mubr.msk.f32.gmra.mxu0 %vm3381_vm2, %v11205_v43  ;;  %v13301_v63 = vld [vmem:[#allocation93_spill] sm:$0xff]  ;;  %v13303_v43 = vld [vmem:[#allocation28_spill] sm:$0xff] }
 0x335   : > { %13298 = vst [vmem:[#allocation26_spill] sm:$0xff] %v11708_v8  ;;  %v11712_v33 = vpop.f32.mrf.mxu1  ;;  %8638 = vmatmul.mubr.msk.f32.gmra.mxu1 %vm3381_vm2, %v13300_v0  ;;  %9043 = vmatprep.mubr.msk.f32.mxu0 %vm9425_vm1, %v13234_v29 }
 0x336   : > { %13299 = vst [vmem:[#allocation115_spill] sm:$0xff] %v11712_v33  ;;  %v8898_v47 = vpop.f32.mrf.mxu0  ;;  %8640 = vmatprep.mubr.msk.f32.mxu1 %vm9425_vm1, %v13234_v29 }
 0x337   : > { %v8491_v2 = vpop.f32.mrf.mxu1 }
 0x338   : > { %v11720_v28 = vpop.f32.mrf.mxu0  ;;  %9044 = vmatmul.mubr.msk.f32.gmra.mxu0 %vm3381_vm2, %v13301_v63  ;;  %v13305_v63 = vld [vmem:[#allocation29_spill] sm:$0xff] }
 0x339   : > { %v11724_v8 = vpop.f32.mrf.mxu1  ;;  %8641 = vmatmul.mubr.msk.f32.gmra.mxu1 %vm3381_vm2, %v13303_v43  ;;  %9046 = vmatprep.mubr.msk.f32.mxu0 %vm9425_vm1, %v13234_v29 }
 0x33a   : > { %13302 = vst [vmem:[#allocation27_spill] sm:$0xff] %v11724_v8  ;;  %v8901_v0 = vpop.f32.mrf.mxu0  ;;  %8643 = vmatprep.mubr.msk.f32.mxu1 %vm9425_vm1, %v13234_v29 }
 0x33b   : > { %v8494_v47 = vpop.f32.mrf.mxu1 }
 0x33c   : > { %v11732_v33 = vpop.f32.mrf.mxu0  ;;  %9047 = vmatmul.mubr.msk.f32.gmra.mxu0 %vm3381_vm2, %v11238_v27  ;;  %v13307_v27 = vld [vmem:[#allocation30_spill] sm:$0xff] }
 0x33d   : > { %v11736_v2 = vpop.f32.mrf.mxu1  ;;  %8644 = vmatmul.mubr.msk.f32.gmra.mxu1 %vm3381_vm2, %v13305_v63  ;;  %9049 = vmatprep.mubr.msk.f32.mxu0 %vm9425_vm1, %v13234_v29 }
 0x33e   : > { %13304 = vst [vmem:[#allocation28_spill] sm:$0xff] %v11736_v2  ;;  %v8904_v43 = vpop.f32.mrf.mxu0  ;;  %8646 = vmatprep.mubr.msk.f32.mxu1 %vm9425_vm1, %v13234_v29 }
 0x33f   : > { %v8497_v0 = vpop.f32.mrf.mxu1 }
 0x340   : > { %v11744_v8 = vpop.f32.mrf.mxu0  ;;  %9050 = vmatmul.mubr.msk.f32.gmra.mxu0 %vm3381_vm2, %v11253_v17  ;;  %v13310_v17 = vld [vmem:[#allocation31_spill] sm:$0xff] }
 0x341   : > { %v11748_v47 = vpop.f32.mrf.mxu1  ;;  %8647 = vmatmul.mubr.msk.f32.gmra.mxu1 %vm3381_vm2, %v13307_v27  ;;  %9052 = vmatprep.mubr.msk.f32.mxu0 %vm9425_vm1, %v13234_v29 }
 0x342   : > { %13306 = vst [vmem:[#allocation29_spill] sm:$0xff] %v11748_v47  ;;  %v8907_v63 = vpop.f32.mrf.mxu0  ;;  %8649 = vmatprep.mubr.msk.f32.mxu1 %vm9425_vm1, %v13234_v29 }
 0x343   : > { %v8500_v43 = vpop.f32.mrf.mxu1 }
 0x344   : > { %v11756_v2 = vpop.f32.mrf.mxu0  ;;  %9053 = vmatmul.mubr.msk.f32.gmra.mxu0 %vm3381_vm2, %v11267_v10  ;;  %v13313_v10 = vld [vmem:[#allocation32_spill] sm:$0xff] }
 0x345   : > { %13308 = vst [vmem:[#allocation30_spill] sm:$0xff] %v11756_v2  ;;  %v11760_v0 = vpop.f32.mrf.mxu1  ;;  %8650 = vmatmul.mubr.msk.f32.gmra.mxu1 %vm3381_vm2, %v13310_v17  ;;  %9055 = vmatprep.mubr.msk.f32.mxu0 %vm9425_vm1, %v13234_v29 }
 0x346   : > { %13309 = vst [vmem:[#allocation116_spill] sm:$0xff] %v11760_v0  ;;  %v8910_v27 = vpop.f32.mrf.mxu0  ;;  %8652 = vmatprep.mubr.msk.f32.mxu1 %vm9425_vm1, %v13234_v29 }
 0x347   : > { %v8503_v63 = vpop.f32.mrf.mxu1 }
 0x348   : > { %v11768_v47 = vpop.f32.mrf.mxu0  ;;  %9056 = vmatmul.mubr.msk.f32.gmra.mxu0 %vm3381_vm2, %v11280_v61  ;;  %v13315_v63 = vld [vmem:[#allocation102_spill] sm:$0xff]  ;;  %v13317_v61 = vld [vmem:[#allocation33_spill] sm:$0xff] }
 0x349   : > { %13311 = vst [vmem:[#allocation31_spill] sm:$0xff] %v11768_v47  ;;  %v11772_v43 = vpop.f32.mrf.mxu1  ;;  %8653 = vmatmul.mubr.msk.f32.gmra.mxu1 %vm3381_vm2, %v13313_v10  ;;  %9058 = vmatprep.mubr.msk.f32.mxu0 %vm9425_vm1, %v13234_v29 }
 0x34a   : > { %13312 = vst [vmem:[#allocation117_spill] sm:$0xff] %v11772_v43  ;;  %v8913_v17 = vpop.f32.mrf.mxu0  ;;  %8655 = vmatprep.mubr.msk.f32.mxu1 %vm9425_vm1, %v13234_v29 }
 0x34b   : > { %v8506_v27 = vpop.f32.mrf.mxu1 }
 0x34c   : > { %v11780_v0 = vpop.f32.mrf.mxu0  ;;  %9059 = vmatmul.mubr.msk.f32.gmra.mxu0 %vm3381_vm2, %v13315_v63  ;;  %v7272_v27 = vld [vmem:[%s13066_s5 + $0x28] sm:$0xff] }
 0x34d   : > { %13314 = vst [vmem:[#allocation32_spill] sm:$0xff] %v11780_v0  ;;  %v11784_v2 = vpop.f32.mrf.mxu1  ;;  %8656 = vmatmul.mubr.msk.f32.gmra.mxu1 %vm3381_vm2, %v13317_v61  ;;  %9061 = vmatprep.mubr.msk.f32.mxu0 %vm9425_vm1, %v13234_v29  ;;  %v13320_v61 = vld [vmem:[#allocation34_spill] sm:$0xff]  ;;  %v13356_v0 = vld [vmem:[#allocation48_spill] sm:$0xff] }
 0x34e   : > { %13316 = vst [vmem:[#allocation102_spill] sm:$0xff] %v11784_v2  ;;  %v8916_v10 = vpop.f32.mrf.mxu0  ;;  %8658 = vmatprep.mubr.msk.f32.mxu1 %vm9425_vm1, %v13234_v29  ;;  %9077 = vmatprep.subr.mxu1 %v7272_v27 }
 0x34f   : > { %v8509_v17 = vpop.f32.mrf.mxu1  ;;  %9078 = vmatpush3.msra.mxu1 %v7272_v27 }
 0x350   : > { %v11792_v43 = vpop.f32.mrf.mxu0  ;;  %9062 = vmatmul.mubr.msk.f32.gmra.mxu0 %vm3381_vm2, %v11309_v55 }
 0x351   : > { %13318 = vst [vmem:[#allocation33_spill] sm:$0xff] %v11792_v43  ;;  %v11799_v63 = vpop.f32.mrf.mxu1  ;;  %8659 = vmatmul.mubr.msk.f32.gmra.mxu1 %vm3381_vm2, %v13320_v61  ;;  %9064 = vmatprep.mubr.msk.f32.mxu0 %vm9425_vm1, %v13234_v29 }
 0x352   : > { %13319 = vst [vmem:[#allocation118_spill] sm:$0xff] %v11799_v63  ;;  %v8919_v10 = vpop.f32.mrf.mxu0  ;;  %8661 = vmatprep.mubr.msk.f32.mxu1 %vm9425_vm1, %v13234_v29  ;;  %v13323_v63 = vld [vmem:[#allocation35_spill] sm:$0xff] }
 0x353   : > { %v8512_v17 = vpop.f32.mrf.mxu1 }
 0x354   : > { %v11807_v55 = vpop.f32.mrf.mxu0  ;;  %9065 = vmatmul.mubr.msk.f32.gmra.mxu0 %vm3381_vm2, %v11315_v41  ;;  %v13326_v41 = vld [vmem:[#allocation36_spill] sm:$0xff] }
 0x355   : > { %13321 = vst [vmem:[#allocation34_spill] sm:$0xff] %v11807_v55  ;;  %v11811_v2 = vpop.f32.mrf.mxu1  ;;  %8662 = vmatmul.mubr.msk.f32.gmra.mxu1 %vm3381_vm2, %v13323_v63  ;;  %9067 = vmatprep.mubr.msk.f32.mxu0 %vm9425_vm1, %v13234_v29 }
 0x356   : > { %13322 = vst [vmem:[#allocation119_spill] sm:$0xff] %v11811_v2  ;;  %v8922_v61 = vpop.f32.mrf.mxu0  ;;  %8664 = vmatprep.mubr.msk.f32.mxu1 %vm9425_vm1, %v13234_v29 }
 0x357   : > { %v8515_v10 = vpop.f32.mrf.mxu1 }
 0x358   : > { %v11819_v17 = vpop.f32.mrf.mxu0  ;;  %9068 = vmatmul.mubr.msk.f32.gmra.mxu0 %vm3381_vm2, %v11342_v19  ;;  %v13329_v19 = vld [vmem:[#allocation37_spill] sm:$0xff] }
 0x359   : > { %13324 = vst [vmem:[#allocation35_spill] sm:$0xff] %v11819_v17  ;;  %v11823_v27 = vpop.f32.mrf.mxu1  ;;  %8665 = vmatmul.mubr.msk.f32.gmra.mxu1 %vm3381_vm2, %v13326_v41  ;;  %9070 = vmatprep.mubr.msk.f32.mxu0 %vm9425_vm1, %v13234_v29 }
 0x35a   : > { %13325 = vst [vmem:[#allocation120_spill] sm:$0xff] %v11823_v27  ;;  %v8925_v63 = vpop.f32.mrf.mxu0  ;;  %8667 = vmatprep.mubr.msk.f32.mxu1 %vm9425_vm1, %v13234_v29 }
 0x35b   : > { %v8518_v61 = vpop.f32.mrf.mxu1 }
 0x35c   : > { %v11831_v2 = vpop.f32.mrf.mxu0  ;;  %9071 = vmatmul.mubr.msk.f32.gmra.mxu0 %vm3381_vm2, %v11331_v20  ;;  %v13332_v61 = vld [vmem:[#allocation38_spill] sm:$0xff] }
 0x35d   : > { %13327 = vst [vmem:[#allocation36_spill] sm:$0xff] %v11831_v2  ;;  %v11835_v10 = vpop.f32.mrf.mxu1  ;;  %8668 = vmatmul.mubr.msk.f32.gmra.mxu1 %vm3381_vm2, %v13329_v19 }
 0x35e   : > { %13328 = vst [vmem:[#allocation121_spill] sm:$0xff] %v11835_v10  ;;  %v8928_v27 = vpop.f32.mrf.mxu0  ;;  %8670 = vmatprep.mubr.msk.f32.mxu1 %vm9425_vm1, %v13234_v29 }
 0x35f   : > { %v8521_v41 = vpop.f32.mrf.mxu1  ;;  %v13335_v27 = vld [vmem:[#allocation39_spill] sm:$0xff] }
 0x360   : > { %v11841_v63 = vpop.f32.mrf.mxu0 }
 0x361   : > { %13330 = vst [vmem:[#allocation37_spill] sm:$0xff] %v11841_v63  ;;  %v11843_v17 = vpop.f32.mrf.mxu1  ;;  %8671 = vmatmul.mubr.msk.f32.gmra.mxu1 %vm3381_vm2, %v13332_v61 }
 0x362   : > { %13331 = vst [vmem:[#allocation122_spill] sm:$0xff] %v11843_v17  ;;  %v8931_v2 = vpop.f32.mrf.mxu0  ;;  %8673 = vmatprep.mubr.msk.f32.mxu1 %vm9425_vm1, %v13234_v29 }
 0x363   : > { %v8524_v20 = vpop.f32.mrf.mxu1  ;;  %v13338_v2 = vld [vmem:[#allocation40_spill] sm:$0xff] }
 0x364   : > { %v11849_v10 = vpop.f32.mrf.mxu0 }
 0x365   : > { %13333 = vst [vmem:[#allocation38_spill] sm:$0xff] %v11849_v10  ;;  %v11851_v19 = vpop.f32.mrf.mxu1  ;;  %8674 = vmatmul.mubr.msk.f32.gmra.mxu1 %vm3381_vm2, %v13335_v27 }
 0x366   : > { %13334 = vst [vmem:[#allocation123_spill] sm:$0xff] %v11851_v19  ;;  %v8934_v41 = vpop.f32.mrf.mxu0  ;;  %8676 = vmatprep.mubr.msk.f32.mxu1 %vm9425_vm1, %v13234_v29 }
 0x367   : > { %v8527_v17 = vpop.f32.mrf.mxu1  ;;  %v13341_v41 = vld [vmem:[#allocation41_spill] sm:$0xff] }
 0x368   : > { %v11857_v63 = vpop.f32.mrf.mxu0 }
 0x369   : > { %13336 = vst [vmem:[#allocation39_spill] sm:$0xff] %v11857_v63  ;;  %v11859_v61 = vpop.f32.mrf.mxu1  ;;  %8677 = vmatmul.mubr.msk.f32.gmra.mxu1 %vm3381_vm2, %v13338_v2 }
 0x36a   : > { %13337 = vst [vmem:[#allocation124_spill] sm:$0xff] %v11859_v61  ;;  %v8937_v20 = vpop.f32.mrf.mxu0  ;;  %8679 = vmatprep.mubr.msk.f32.mxu1 %vm9425_vm1, %v13234_v29 }
 0x36b   : > { %v8530_v19 = vpop.f32.mrf.mxu1  ;;  %v13343_v20 = vld [vmem:[#allocation42_spill] sm:$0xff] }
 0x36c   : > { %v11865_v10 = vpop.f32.mrf.mxu0 }
 0x36d   : > { %13339 = vst [vmem:[#allocation40_spill] sm:$0xff] %v11865_v10  ;;  %v11867_v27 = vpop.f32.mrf.mxu1  ;;  %8680 = vmatmul.mubr.msk.f32.gmra.mxu1 %vm3381_vm2, %v13341_v41  ;;  %v13345_v41 = vld [vmem:[#allocation43_spill] sm:$0xff] }
 0x36e   : > { %13340 = vst [vmem:[#allocation125_spill] sm:$0xff] %v11867_v27  ;;  %v8940_v17 = vpop.f32.mrf.mxu0  ;;  %8682 = vmatprep.mubr.msk.f32.mxu1 %vm9425_vm1, %v13234_v29 }
 0x36f   : > { %v8533_v61 = vpop.f32.mrf.mxu1 }
 0x370   : > { %v11873_v63 = vpop.f32.mrf.mxu0 }
 0x371   : > { %13342 = vst [vmem:[#allocation41_spill] sm:$0xff] %v11873_v63  ;;  %v4129_v2 = vpop.f32.mrf.mxu1  ;;  %8683 = vmatmul.mubr.msk.f32.gmra.mxu1 %vm3381_vm2, %v13343_v20  ;;  %v13347_v20 = vld [vmem:[#allocation44_spill] sm:$0xff] }
 0x372   : > { %v8943_v55 = vpop.f32.mrf.mxu0  ;;  %8685 = vmatprep.mubr.msk.f32.mxu1 %vm9425_vm1, %v13234_v29 }
 0x373   : > { %v8536_v19 = vpop.f32.mrf.mxu1 }
 0x374   : > { %v11879_v27 = vpop.f32.mrf.mxu0 }
 0x375   : > { %13344 = vst [vmem:[#allocation42_spill] sm:$0xff] %v11879_v27  ;;  %v4133_v10 = vpop.f32.mrf.mxu1  ;;  %8686 = vmatmul.mubr.msk.f32.gmra.mxu1 %vm3381_vm2, %v13345_v41  ;;  %v13349_v41 = vld [vmem:[#allocation45_spill] sm:$0xff] }
 0x376   : > { %v8946_v17 = vpop.f32.mrf.mxu0  ;;  %8688 = vmatprep.mubr.msk.f32.mxu1 %vm9425_vm1, %v13234_v29 }
 0x377   : > { %v8539_v61 = vpop.f32.mrf.mxu1 }
 0x378   : > { %v11885_v2 = vpop.f32.mrf.mxu0 }
 0x379   : > { %13346 = vst [vmem:[#allocation43_spill] sm:$0xff] %v11885_v2  ;;  %v4137_v63 = vpop.f32.mrf.mxu1  ;;  %8689 = vmatmul.mubr.msk.f32.gmra.mxu1 %vm3381_vm2, %v13347_v20  ;;  %v13351_v20 = vld [vmem:[#allocation46_spill] sm:$0xff] }
 0x37a   : > { %v8949_v55 = vpop.f32.mrf.mxu0  ;;  %8691 = vmatprep.mubr.msk.f32.mxu1 %vm9425_vm1, %v13234_v29 }
 0x37b   : > { %v8542_v19 = vpop.f32.mrf.mxu1 }
 0x37c   : > { %v11891_v10 = vpop.f32.mrf.mxu0 }
 0x37d   : > { %13348 = vst [vmem:[#allocation44_spill] sm:$0xff] %v11891_v10  ;;  %v4215_v27 = vpop.f32.mrf.mxu1  ;;  %8692 = vmatmul.mubr.msk.f32.gmra.mxu1 %vm3381_vm2, %v13349_v41 }
 0x37e   : > { %v8952_v17 = vpop.f32.mrf.mxu0  ;;  %8694 = vmatprep.mubr.msk.f32.mxu1 %vm9425_vm1, %v13234_v29  ;;  %v4216_v19 = vadd.f32 %v4215_v27, %v11327_v59 }
 0x37f   : > { %v8549_v61 = vpop.f32.mrf.mxu1  ;;  %v13353_v17 = vld [vmem:[#allocation47_spill] sm:$0xff] }
 0x380   : > { %v11897_v63 = vpop.f32.mrf.mxu0 }
 0x381   : > { %13350 = vst [vmem:[#allocation45_spill] sm:$0xff] %v11897_v63  ;;  %v4220_v2 = vpop.f32.mrf.mxu1  ;;  %8695 = vmatmul.mubr.msk.f32.gmra.mxu1 %vm3381_vm2, %v13351_v20  ;;  %v5155_v63 = vadd.f32 %v11356_v9, %v4216_v19 }
 0x382   : > { %v8955_v55 = vpop.f32.mrf.mxu0  ;;  %8697 = vmatprep.mubr.msk.f32.mxu1 %vm9425_vm1, %v13234_v29  ;;  %v4221_v59 = vadd.f32 %v4220_v2, %v11344_v45 }
 0x383   : > { %v8552_v10 = vpop.f32.mrf.mxu1  ;;  %v11914_v55 = vld [vmem:[%s13065_s4] ss:$0 sm:$0xff] }
 0x384   : > { %v11904_v43 = vpop.f32.mrf.mxu0  ;;  %v5246_v9 = vadd.f32 %v11914_v55, %v5155_v63 }
 0x385   : > { %13352 = vst [vmem:[#allocation46_spill] sm:$0xff] %v11904_v43  ;;  %v4225_v41 = vpop.f32.mrf.mxu1  ;;  %8698 = vmatmul.mubr.msk.f32.gmra.mxu1 %vm3381_vm2, %v13353_v17  ;;  %v13355_v17 = vld [vmem:[#allocation49_spill] sm:$0xff] }
 0x386   : > { %v8958_v61 = vpop.f32.mrf.mxu0  ;;  %8700 = vmatprep.mubr.msk.f32.mxu1 %vm9425_vm1, %v13234_v29  ;;  %v4226_v47 = vadd.f32 %v4225_v41, %v13356_v0  ;;  %v5330_v63 = vmax.f32 %v5246_v9, 0.0 }
 0x387   : > { %v8555_v20 = vpop.f32.mrf.mxu1 }
 0x388   : > { %v11917_v27 = vpop.f32.mrf.mxu0  ;;  %v5156_v20 = vadd.f32 %v11368_v44, %v4221_v59 }
 0x389   : > { %13354 = vst [vmem:[#allocation47_spill] sm:$0xff] %v11917_v27  ;;  %v4230_v10 = vpop.f32.mrf.mxu1  ;;  %8701 = vmatmul.mubr.msk.f32.gmra.mxu1 %vm3381_vm2, %v10769_v32 }
 0x38a   : > { %v4231_v61 = vadd.f32 %v4230_v10, %v13355_v17  ;;  %v8961_v43 = vpop.f32.mrf.mxu0  ;;  %8703 = vmatprep.mubr.msk.f32.mxu1 %vm9425_vm1, %v13234_v29  ;;  %v5247_v0 = vadd.f32 %v11914_v55, %v5156_v20 }
 0x38b   : > { %v8558_v19 = vpop.f32.mrf.mxu1  ;;  %v13357_v43 = vld [vmem:[#allocation50_spill] sm:$0xff] }
 0x38c   : > { %v5158_v45 = vadd.f32 %v11392_v26, %v4231_v61  ;;  %v11928_v2 = vpop.f32.mrf.mxu0  ;;  %v5157_v26 = vadd.f32 %v11380_v62, %v4226_v47  ;;  %v5331_v47 = vmax.f32 %v5247_v0, 0.0  ;;  %v7271_v0 = vld [vmem:[%s13066_s5 + $0x20] sm:$0xff] }
 0x38d   : > { %v4235_v27 = vpop.f32.mrf.mxu1  ;;  %8704 = vmatmul.mubr.msk.f32.gmra.mxu1 %vm3381_vm2, %v10782_v31  ;;  %9079 = vmatprep.subr.mxu1 %v7271_v0 }
 0x38e   : > { %v5249_v32 = vadd.f32 %v11914_v55, %v5158_v45  ;;  %v4236_v10 = vadd.f32 %v4235_v27, %v13357_v43  ;;  %v8964_v17 = vpop.f32.mrf.mxu0  ;;  %8706 = vmatprep.mubr.msk.f32.mxu1 %vm9425_vm1, %v13234_v29  ;;  %v13358_v45 = vld [vmem:[#allocation51_spill] sm:$0xff]  ;;  %9080 = vmatpush3.msra.mxu1 %v7271_v0 }
 0x38f   : > { %v8561_v44 = vpop.f32.mrf.mxu1 }
 0x390   : > { %v5333_v41 = vmax.f32 %v5249_v32, 0.0  ;;  %v5159_v59 = vadd.f32 %v11404_v60, %v4236_v10  ;;  %v11939_v61 = vpop.f32.mrf.mxu0  ;;  %v5248_v60 = vadd.f32 %v11914_v55, %v5157_v26 }
 0x391   : > { %v4240_v31 = vpop.f32.mrf.mxu1  ;;  %8707 = vmatmul.mubr.msk.f32.gmra.mxu1 %vm3381_vm2, %v10796_v49 }
 0x392   : > { %v5414_v27 = vmax.f32 %v5330_v63, %v5333_v41  ;;  %v5250_v19 = vadd.f32 %v11914_v55, %v5159_v59  ;;  %v4241_v9 = vadd.f32 %v4240_v31, %v13358_v45  ;;  %v8967_v43 = vpop.f32.mrf.mxu0  ;;  %8709 = vmatprep.mubr.msk.f32.mxu1 %vm9425_vm1, %v13234_v29  ;;  %v5332_v26 = vmax.f32 %v5248_v60, 0.0 }
 0x393   : > { %v8564_v62 = vpop.f32.mrf.mxu1 }
 0x394   : > { %v5334_v20 = vmax.f32 %v5250_v19, 0.0  ;;  %v5160_v32 = vadd.f32 %v11416_v50, %v4241_v9  ;;  %v11949_v10 = vpop.f32.mrf.mxu0  ;;  %9143 = vmatprep.mubr.msk.f32.mxu0 %vm5465_vm3, %v5414_v27  ;;  %v13359_v19 = vld [vmem:[#allocation52_spill] sm:$0xff] }
 0x395   : > { %v4245_v49 = vpop.f32.mrf.mxu1  ;;  %8710 = vmatmul.mubr.msk.f32.gmra.mxu1 %vm3381_vm2, %v10807_v52 }
 0x396   : > { %v5415_v17 = vmax.f32 %v5331_v47, %v5334_v20  ;;  %v5251_v63 = vadd.f32 %v11914_v55, %v5160_v32  ;;  %v8970_v44 = vpop.f32.mrf.mxu0  ;;  %8712 = vmatprep.mubr.msk.f32.mxu1 %vm9425_vm1, %v13234_v29  ;;  %v4246_v45 = vadd.f32 %v4245_v49, %v13359_v19  ;;  %v13360_v20 = vld [vmem:[#allocation53_spill] sm:$0xff]  ;;  %v13363_v19 = vld [vmem:[#allocation56_spill] sm:$0xff] }
 0x397   : > { %v8567_v50 = vpop.f32.mrf.mxu1 }
 0x398   : > { %v5335_v41 = vmax.f32 %v5251_v63, 0.0  ;;  %v11960_v59 = vpop.f32.mrf.mxu0  ;;  %9144 = vmatmul.mubr.msk.f32.vlgmr.msra.gmra.mxu0 %vm5465_vm3, %v5415_v17  ;;  %v13361_v63 = vld [vmem:[#allocation55_spill] sm:$0xff] }
 0x399   : > { %v4250_v52 = vpop.f32.mrf.mxu1  ;;  %8713 = vmatmul.mubr.msk.f32.gmra.mxu1 %vm3381_vm2, %v10822_v24  ;;  %v5161_v24 = vadd.f32 %v11428_v23, %v4246_v45 }
 0x39a   : > { %v5416_v31 = vmax.f32 %v5332_v26, %v5335_v41  ;;  %v8973_v27 = vpop.f32.mrf.mxu0  ;;  %8715 = vmatprep.mubr.msk.f32.mxu1 %vm9425_vm1, %v13234_v29  ;;  %v4251_v32 = vadd.f32 %v4250_v52, %v13360_v20  ;;  %v13362_v26 = vld [vmem:[#allocation54_spill] sm:$0xff] }
 0x39b   : > { %v8570_v9 = vpop.f32.mrf.mxu1 }
 0x39c   : > { %v11968_v43 = vpop.f32.mrf.mxu0  ;;  %9146 = vmatprep.mubr.msk.f32.mxu0 %vm5465_vm3, %v5416_v31  ;;  %v5162_v23 = vadd.f32 %v11440_v30, %v4251_v32 }
 0x39d   : > { %v4255_v62 = vpop.f32.mrf.mxu1  ;;  %8716 = vmatmul.mubr.msk.f32.gmra.mxu1 %vm3381_vm2, %v10836_v4  ;;  %v5252_v4 = vadd.f32 %v11914_v55, %v5161_v24 }
 0x39e   : > { %v8976_v47 = vpop.f32.mrf.mxu0  ;;  %8718 = vmatprep.mubr.msk.f32.mxu1 %vm9425_vm1, %v13234_v29  ;;  %v4256_v41 = vadd.f32 %v4255_v62, %v13362_v26  ;;  %v5253_v62 = vadd.f32 %v11914_v55, %v5162_v23 }
 0x39f   : > { %v8573_v60 = vpop.f32.mrf.mxu1  ;;  %v5336_v47 = vmax.f32 %v5252_v4, 0.0 }
 0x3a0   : > { %v11977_v17 = vpop.f32.mrf.mxu0  ;;  %v5337_v4 = vmax.f32 %v5253_v62, 0.0 }
 0x3a1   : > { %v4260_v49 = vpop.f32.mrf.mxu1  ;;  %8719 = vmatmul.mubr.msk.f32.gmra.mxu1 %vm3381_vm2, %v10849_v12 }
 0x3a2   : > { %v4261_v44 = vadd.f32 %v4260_v49, %v13361_v63  ;;  %v8979_v0 = vpop.f32.mrf.mxu0  ;;  %8721 = vmatprep.mubr.msk.f32.mxu1 %vm9425_vm1, %v13234_v29  ;;  %v13364_v63 = vld [vmem:[#allocation57_spill] sm:$0xff] }
 0x3a3   : > { %v8576_v50 = vpop.f32.mrf.mxu1 }
 0x3a4   : > { %v5164_v52 = vadd.f32 %v11467_v42, %v4261_v44  ;;  %v11988_v31 = vpop.f32.mrf.mxu0  ;;  %v5163_v42 = vadd.f32 %v11455_v13, %v4256_v41 }
 0x3a5   : > { %v4265_v27 = vpop.f32.mrf.mxu1  ;;  %8722 = vmatmul.mubr.msk.f32.gmra.mxu1 %vm3381_vm2, %v10864_v21 }
 0x3a6   : > { %v5255_v12 = vadd.f32 %v11914_v55, %v5164_v52  ;;  %v4266_v45 = vadd.f32 %v4265_v27, %v13363_v19  ;;  %v8982_v9 = vpop.f32.mrf.mxu0  ;;  %8724 = vmatprep.mubr.msk.f32.mxu1 %vm9425_vm1, %v13234_v29 }
 0x3a7   : > { %v8579_v30 = vpop.f32.mrf.mxu1 }
 0x3a8   : > { %v5339_v24 = vmax.f32 %v5255_v12, 0.0  ;;  %v5165_v60 = vadd.f32 %v11479_v1, %v4266_v45  ;;  %v11999_v20 = vpop.f32.mrf.mxu0  ;;  %v5254_v1 = vadd.f32 %v11914_v55, %v5163_v42  ;;  %v13365_v30 = vld [vmem:[#allocation58_spill] sm:$0xff] }
 0x3a9   : > { %v4270_v21 = vpop.f32.mrf.mxu1  ;;  %8725 = vmatmul.mubr.msk.f32.gmra.mxu1 %vm3381_vm2, %v10878_v34 }
 0x3aa   : > { %v12003_v32 = vmax.f32 %v5336_v47, %v5339_v24  ;;  %v5256_v49 = vadd.f32 %v11914_v55, %v5165_v60  ;;  %v4271_v44 = vadd.f32 %v4270_v21, %v13364_v63  ;;  %v8985_v0 = vpop.f32.mrf.mxu0  ;;  %8727 = vmatprep.mubr.msk.f32.mxu1 %vm9425_vm1, %v13234_v29  ;;  %v5338_v19 = vmax.f32 %v5254_v1, 0.0  ;;  %v13366_v63 = vld [vmem:[#allocation59_spill] sm:$0xff] }
 0x3ab   : > { %v8582_v13 = vpop.f32.mrf.mxu1 }
 0x3ac   : > { %v5340_v50 = vmax.f32 %v5256_v49, 0.0  ;;  %v5166_v23 = vadd.f32 %v11491_v3, %v4271_v44  ;;  %v12011_v26 = vpop.f32.mrf.mxu0  ;;  %9147 = vmatmul.mubr.msk.f32.gmra.mxu0 %vm5465_vm3, %v12003_v32 }
 0x3ad   : > { %v4275_v34 = vpop.f32.mrf.mxu1  ;;  %8728 = vmatmul.mubr.msk.f32.gmra.mxu1 %vm3381_vm2, %v10891_v39 }
 0x3ae   : > { %v12017_v41 = vmax.f32 %v5337_v4, %v5340_v50  ;;  %v5257_v52 = vadd.f32 %v11914_v55, %v5166_v23  ;;  %v8988_v27 = vpop.f32.mrf.mxu0  ;;  %8730 = vmatprep.mubr.msk.f32.mxu1 %vm9425_vm1, %v13234_v29  ;;  %v4276_v62 = vadd.f32 %v4275_v34, %v13365_v30  ;;  %v13367_v4 = vld [vmem:[#allocation61_spill] sm:$0xff]  ;;  %v13368_v34 = vld [vmem:[#allocation60_spill] sm:$0xff] }
 0x3af   : > { %v8585_v12 = vpop.f32.mrf.mxu1 }
 0x3b0   : > { %v5341_v3 = vmax.f32 %v5257_v52, 0.0  ;;  %v12022_v45 = vpop.f32.mrf.mxu0  ;;  %9149 = vmatprep.mubr.msk.f32.mxu0 %vm5465_vm3, %v12017_v41 }
 0x3b1   : > { %v4280_v9 = vpop.f32.mrf.mxu1  ;;  %8731 = vmatmul.mubr.msk.f32.gmra.mxu1 %vm3381_vm2, %v10906_v37  ;;  %v5167_v37 = vadd.f32 %v11506_v46, %v4276_v62 }
 0x3b2   : > { %v12028_v39 = vmax.f32 %v5338_v19, %v5341_v3  ;;  %v8991_v47 = vpop.f32.mrf.mxu0  ;;  %8733 = vmatprep.mubr.msk.f32.mxu1 %vm9425_vm1, %v13234_v29  ;;  %v4281_v44 = vadd.f32 %v4280_v9, %v13366_v63  ;;  %v13369_v3 = vld [vmem:[#allocation62_spill] sm:$0xff]  ;;  %v13370_v63 = vld [vmem:[#allocation64_spill] sm:$0xff] }
 0x3b3   : > { %v8588_v42 = vpop.f32.mrf.mxu1 }
 0x3b4   : > { %v12033_v24 = vpop.f32.mrf.mxu0  ;;  %9150 = vmatmul.mubr.msk.f32.gmra.mxu0 %vm5465_vm3, %v12028_v39  ;;  %v5168_v46 = vadd.f32 %v11518_v22, %v4281_v44 }
 0x3b5   : > { %v4285_v60 = vpop.f32.mrf.mxu1  ;;  %8734 = vmatmul.mubr.msk.f32.gmra.mxu1 %vm3381_vm2, %v10920_v16  ;;  %v5258_v16 = vadd.f32 %v11914_v55, %v5167_v37 }
 0x3b6   : > { %v8994_v21 = vpop.f32.mrf.mxu0  ;;  %8736 = vmatprep.mubr.msk.f32.mxu1 %vm9425_vm1, %v13234_v29  ;;  %v4286_v52 = vadd.f32 %v4285_v60, %v13368_v34  ;;  %v5259_v62 = vadd.f32 %v11914_v55, %v5168_v46 }
 0x3b7   : > { %v8591_v49 = vpop.f32.mrf.mxu1  ;;  %v5342_v30 = vmax.f32 %v5258_v16, 0.0 }
 0x3b8   : > { %v12043_v0 = vpop.f32.mrf.mxu0 }
 0x3b9   : > { %v4290_v13 = vpop.f32.mrf.mxu1  ;;  %8737 = vmatmul.mubr.msk.f32.gmra.mxu1 %vm3381_vm2, %v10933_v15 }
 0x3ba   : > { %v4291_v1 = vadd.f32 %v4290_v13, %v13367_v4  ;;  %v8997_v50 = vpop.f32.mrf.mxu0  ;;  %8739 = vmatprep.mubr.msk.f32.mxu1 %vm9425_vm1, %v13234_v29  ;;  %v5343_v4 = vmax.f32 %v5259_v62, 0.0 }
 0x3bb   : > { %v8594_v23 = vpop.f32.mrf.mxu1 }
 0x3bc   : > { %v5170_v27 = vadd.f32 %v11542_v6, %v4291_v1  ;;  %v12054_v12 = vpop.f32.mrf.mxu0  ;;  %v5169_v6 = vadd.f32 %v11530_v11, %v4286_v52 }
 0x3bd   : > { %v4295_v19 = vpop.f32.mrf.mxu1  ;;  %8740 = vmatmul.mubr.msk.f32.gmra.mxu1 %vm3381_vm2, %v10948_v40 }
 0x3be   : > { %v5261_v15 = vadd.f32 %v11914_v55, %v5170_v27  ;;  %v4296_v9 = vadd.f32 %v4295_v19, %v13369_v3  ;;  %v9000_v47 = vpop.f32.mrf.mxu0  ;;  %8742 = vmatprep.mubr.msk.f32.mxu1 %vm9425_vm1, %v13234_v29 }
 0x3bf   : > { %v8597_v22 = vpop.f32.mrf.mxu1 }
 0x3c0   : > { %v5345_v42 = vmax.f32 %v5261_v15, 0.0  ;;  %v5171_v60 = vadd.f32 %v11554_v38, %v4296_v9  ;;  %v12065_v21 = vpop.f32.mrf.mxu0  ;;  %v5260_v38 = vadd.f32 %v11914_v55, %v5169_v6  ;;  %v13371_v9 = vld [vmem:[#allocation66_spill] sm:$0xff]  ;;  %v13372_v6 = vld [vmem:[#allocation63_spill] sm:$0xff] }
 0x3c1   : > { %v4300_v40 = vpop.f32.mrf.mxu1  ;;  %8743 = vmatmul.mubr.msk.f32.gmra.mxu1 %vm3381_vm2, %v10962_v51 }
 0x3c2   : > { %v12069_v37 = vmax.f32 %v5342_v30, %v5345_v42  ;;  %v5262_v49 = vadd.f32 %v11914_v55, %v5171_v60  ;;  %v4301_v44 = vadd.f32 %v4300_v40, %v13370_v63  ;;  %v9003_v13 = vpop.f32.mrf.mxu0  ;;  %8745 = vmatprep.mubr.msk.f32.mxu1 %vm9425_vm1, %v13234_v29  ;;  %v5344_v27 = vmax.f32 %v5260_v38, 0.0  ;;  %v13373_v40 = vld [vmem:[#allocation68_spill] sm:$0xff] }
 0x3c3   : > { %v8600_v11 = vpop.f32.mrf.mxu1  ;;  %v13374_v13 = vld [vmem:[#allocation65_spill] sm:$0xff] }
 0x3c4   : > { %v5346_v1 = vmax.f32 %v5262_v49, 0.0  ;;  %v5172_v50 = vadd.f32 %v11566_v56, %v4301_v44  ;;  %v12077_v16 = vpop.f32.mrf.mxu0  ;;  %9152 = vmatprep.mubr.msk.f32.mxu0 %vm5465_vm3, %v12069_v37  ;;  %v13375_v11 = vld [vmem:[#allocation72_spill] sm:$0xff] }
 0x3c5   : > { %v4305_v51 = vpop.f32.mrf.mxu1  ;;  %8746 = vmatmul.mubr.msk.f32.gmra.mxu1 %vm3381_vm2, %v10975_v54 }
 0x3c6   : > { %v12083_v23 = vmax.f32 %v5343_v4, %v5346_v1  ;;  %v5263_v46 = vadd.f32 %v11914_v55, %v5172_v50  ;;  %v9006_v34 = vpop.f32.mrf.mxu0  ;;  %8748 = vmatprep.mubr.msk.f32.mxu1 %vm9425_vm1, %v13234_v29  ;;  %v4306_v47 = vadd.f32 %v4305_v51, %v13371_v9  ;;  %v13376_v51 = vld [vmem:[#allocation70_spill] sm:$0xff] }
 0x3c7   : > { %v8603_v52 = vpop.f32.mrf.mxu1 }
 0x3c8   : > { %v5347_v56 = vmax.f32 %v5263_v46, 0.0  ;;  %v12088_v19 = vpop.f32.mrf.mxu0  ;;  %9153 = vmatmul.mubr.msk.f32.gmra.mxu0 %vm5465_vm3, %v12083_v23 }
 0x3c9   : > { %v4310_v15 = vpop.f32.mrf.mxu1  ;;  %8749 = vmatmul.mubr.msk.f32.gmra.mxu1 %vm3381_vm2, %v10990_v58  ;;  %v5173_v58 = vadd.f32 %v11578_v57, %v4306_v47 }
 0x3ca   : > { %v12094_v54 = vmax.f32 %v5344_v27, %v5347_v56  ;;  %v9009_v3 = vpop.f32.mrf.mxu0  ;;  %8751 = vmatprep.mubr.msk.f32.mxu1 %vm9425_vm1, %v13234_v29  ;;  %v4311_v49 = vadd.f32 %v4310_v15, %v13373_v40  ;;  %v13377_v56 = vld [vmem:[#allocation67_spill] sm:$0xff]  ;;  %v13379_v40 = vld [vmem:[#allocation69_spill] sm:$0xff] }
 0x3cb   : > { %v8606_v30 = vpop.f32.mrf.mxu1  ;;  %v5264_v1 = vadd.f32 %v11914_v55, %v5173_v58  ;;  %v13378_v3 = vld [vmem:[#allocation74_spill] sm:$0xff] }
 0x3cc   : > { %v12099_v22 = vpop.f32.mrf.mxu0  ;;  %9155 = vmatprep.mubr.msk.f32.mxu0 %vm5465_vm3, %v12094_v54  ;;  %v5174_v57 = vadd.f32 %v11590_v36, %v4311_v49 }
 0x3cd   : > { %v4315_v62 = vpop.f32.mrf.mxu1  ;;  %8752 = vmatmul.mubr.msk.f32.gmra.mxu1 %vm3381_vm2, %v13372_v6  ;;  %v5348_v30 = vmax.f32 %v5264_v1, 0.0 }
 0x3ce   : > { %v9012_v42 = vpop.f32.mrf.mxu0  ;;  %8754 = vmatprep.mubr.msk.f32.mxu1 %vm9425_vm1, %v13234_v29  ;;  %v4316_v46 = vadd.f32 %v4315_v62, %v13376_v51  ;;  %v5265_v62 = vadd.f32 %v11914_v55, %v5174_v57 }
 0x3cf   : > { %v8609_v60 = vpop.f32.mrf.mxu1 }
 0x3d0   : > { %v12109_v63 = vpop.f32.mrf.mxu0 }
 0x3d1   : > { %v4320_v44 = vpop.f32.mrf.mxu1  ;;  %8755 = vmatmul.mubr.msk.f32.gmra.mxu1 %vm3381_vm2, %v13374_v13  ;;  %v13380_v13 = vld [vmem:[#allocation76_spill] sm:$0xff] }
 0x3d2   : > { %v4321_v4 = vadd.f32 %v4320_v44, %v13375_v11  ;;  %v9015_v38 = vpop.f32.mrf.mxu0  ;;  %8757 = vmatprep.mubr.msk.f32.mxu1 %vm9425_vm1, %v13234_v29 }
 0x3d3   : > { %v8612_v50 = vpop.f32.mrf.mxu1  ;;  %v5349_v38 = vmax.f32 %v5265_v62, 0.0 }
 0x3d4   : > { %v5176_v34 = vadd.f32 %v11623_v48, %v4321_v4  ;;  %v12120_v52 = vpop.f32.mrf.mxu0  ;;  %v5175_v48 = vadd.f32 %v11608_v53, %v4316_v46  ;;  %v13381_v46 = vld [vmem:[#allocation71_spill] sm:$0xff] }
 0x3d5   : > { %v4325_v27 = vpop.f32.mrf.mxu1  ;;  %8758 = vmatmul.mubr.msk.f32.gmra.mxu1 %vm3381_vm2, %v13377_v56 }
 0x3d6   : > { %v5267_v15 = vadd.f32 %v11914_v55, %v5176_v34  ;;  %v4326_v9 = vadd.f32 %v4325_v27, %v13378_v3  ;;  %v9018_v47 = vpop.f32.mrf.mxu0  ;;  %8760 = vmatprep.mubr.msk.f32.mxu1 %vm9425_vm1, %v13234_v29 }
 0x3d7   : > { %v8615_v36 = vpop.f32.mrf.mxu1 }
 0x3d8   : > { %v5351_v6 = vmax.f32 %v5267_v15, 0.0  ;;  %v5177_v42 = vadd.f32 %v11636_v35, %v4326_v9  ;;  %v12131_v58 = vpop.f32.mrf.mxu0  ;;  %v5266_v35 = vadd.f32 %v11914_v55, %v5175_v48  ;;  %v13383_v48 = vld [vmem:[#allocation78_spill] sm:$0xff] }
 0x3d9   : > { %v4330_v60 = vpop.f32.mrf.mxu1  ;;  %8761 = vmatmul.mubr.msk.f32.gmra.mxu1 %vm3381_vm2, %v13379_v40 }
 0x3da   : > { %v12135_v49 = vmax.f32 %v5348_v30, %v5351_v6  ;;  %v5268_v44 = vadd.f32 %v11914_v55, %v5177_v42  ;;  %v4331_v11 = vadd.f32 %v4330_v60, %v13380_v13  ;;  %v9021_v4 = vpop.f32.mrf.mxu0  ;;  %8763 = vmatprep.mubr.msk.f32.mxu1 %vm9425_vm1, %v13234_v29  ;;  %v5350_v3 = vmax.f32 %v5266_v35, 0.0  ;;  %v13382_v30 = vld [vmem:[#allocation73_spill] sm:$0xff] }
 0x3db   : > { %v8618_v53 = vpop.f32.mrf.mxu1 }
 0x3dc   : > { %v5352_v1 = vmax.f32 %v5268_v44, 0.0  ;;  %v5178_v50 = vadd.f32 %v11648_v14, %v4331_v11  ;;  %v12143_v57 = vpop.f32.mrf.mxu0  ;;  %9156 = vmatmul.mubr.msk.f32.gmra.mxu0 %vm5465_vm3, %v12135_v49  ;;  %v13384_v44 = vld [vmem:[#allocation75_spill] sm:$0xff]  ;;  %v13385_v53 = vld [vmem:[#allocation80_spill] sm:$0xff] }
 0x3dd   : > { %v4335_v51 = vpop.f32.mrf.mxu1  ;;  %8764 = vmatmul.mubr.msk.f32.gmra.mxu1 %vm3381_vm2, %v13381_v46 }
 0x3de   : > { %v12149_v34 = vmax.f32 %v5349_v38, %v5352_v1  ;;  %v5269_v27 = vadd.f32 %v11914_v55, %v5178_v50  ;;  %v9024_v56 = vpop.f32.mrf.mxu0  ;;  %8766 = vmatprep.mubr.msk.f32.mxu1 %vm9425_vm1, %v13234_v29  ;;  %v4336_v6 = vadd.f32 %v4335_v51, %v13383_v48  ;;  %v13386_v50 = vld [vmem:[#allocation77_spill] sm:$0xff]  ;;  %v13387_v51 = vld [vmem:[#allocation84_spill] sm:$0xff]  ;;  %v13389_v48 = vld [vmem:[#allocation79_spill] sm:$0xff] }
 0x3df   : > { %v8621_v15 = vpop.f32.mrf.mxu1 }
 0x3e0   : > { %v5353_v14 = vmax.f32 %v5269_v27, 0.0  ;;  %v12154_v9 = vpop.f32.mrf.mxu0  ;;  %9158 = vmatprep.mubr.msk.f32.mxu0 %vm5465_vm3, %v12149_v34  ;;  %v5179_v11 = vadd.f32 %v11660_v7, %v4336_v6 }
 0x3e1   : > { %v4340_v47 = vpop.f32.mrf.mxu1  ;;  %8767 = vmatmul.mubr.msk.f32.gmra.mxu1 %vm3381_vm2, %v13382_v30 }
 0x3e2   : > { %v12160_v36 = vmax.f32 %v5350_v3, %v5353_v14  ;;  %v9027_v62 = vpop.f32.mrf.mxu0  ;;  %8769 = vmatprep.mubr.msk.f32.mxu1 %vm9425_vm1, %v13234_v29  ;;  %v4341_v38 = vadd.f32 %v4340_v47, %v13385_v53  ;;  %v5270_v56 = vadd.f32 %v11914_v55, %v5179_v11  ;;  %v13388_v3 = vld [vmem:[#allocation82_spill] sm:$0xff] }
 0x3e3   : > { %v8624_v42 = vpop.f32.mrf.mxu1  ;;  %v13391_v53 = vld [vmem:[#allocation26_spill] sm:$0xff] }
 0x3e4   : > { %v12165_v60 = vpop.f32.mrf.mxu0  ;;  %9159 = vmatmul.mubr.msk.f32.gmra.mxu0 %vm5465_vm3, %v12160_v36  ;;  %v5180_v7 = vadd.f32 %v11672_v25, %v4341_v38  ;;  %v13390_v42 = vld [vmem:[#allocation86_spill] sm:$0xff]  ;;  %v5354_v11 = vmax.f32 %v5270_v56, 0.0 }
 0x3e5   : > { %v4345_v40 = vpop.f32.mrf.mxu1  ;;  %8770 = vmatmul.mubr.msk.f32.gmra.mxu1 %vm3381_vm2, %v13384_v44 }
 0x3e6   : > { %v9030_v13 = vpop.f32.mrf.mxu0  ;;  %8772 = vmatprep.mubr.msk.f32.mxu1 %vm9425_vm1, %v13234_v29  ;;  %v4346_v14 = vadd.f32 %v4345_v40, %v13388_v3  ;;  %v5271_v40 = vadd.f32 %v11914_v55, %v5180_v7 }
 0x3e7   : > { %v8627_v4 = vpop.f32.mrf.mxu1 }
 0x3e8   : > { %v12175_v35 = vpop.f32.mrf.mxu0  ;;  %v5355_v7 = vmax.f32 %v5271_v40, 0.0 }
 0x3e9   : > { %v4350_v1 = vpop.f32.mrf.mxu1  ;;  %8773 = vmatmul.mubr.msk.f32.gmra.mxu1 %vm3381_vm2, %v13386_v50 }
 0x3ea   : > { %v4351_v46 = vadd.f32 %v4350_v1, %v13387_v51  ;;  %v9033_v27 = vpop.f32.mrf.mxu0  ;;  %8775 = vmatprep.mubr.msk.f32.mxu1 %vm9425_vm1, %v13234_v29  ;;  %v13392_v51 = vld [vmem:[#allocation81_spill] sm:$0xff] }
 0x3eb   : > { %v8630_v15 = vpop.f32.mrf.mxu1 }
 0x3ec   : > { %v5182_v47 = vadd.f32 %v11696_v18, %v4351_v46  ;;  %v12186_v30 = vpop.f32.mrf.mxu0  ;;  %v5181_v18 = vadd.f32 %v11684_v5, %v4346_v14  ;;  %v13393_v15 = vld [vmem:[#allocation88_spill] sm:$0xff] }
 0x3ed   : > { %v4355_v62 = vpop.f32.mrf.mxu1  ;;  %8776 = vmatmul.mubr.msk.f32.gmra.mxu1 %vm3381_vm2, %v13389_v48 }
 0x3ee   : > { %v5273_v6 = vadd.f32 %v11914_v55, %v5182_v47  ;;  %v4356_v44 = vadd.f32 %v4355_v62, %v13390_v42  ;;  %v9036_v13 = vpop.f32.mrf.mxu0  ;;  %8778 = vmatprep.mubr.msk.f32.mxu1 %vm9425_vm1, %v13234_v29  ;;  %v5272_v14 = vadd.f32 %v11914_v55, %v5181_v18  ;;  %v13394_v42 = vld [vmem:[#allocation83_spill] sm:$0xff] }
 0x3ef   : > { %v8633_v25 = vpop.f32.mrf.mxu1 }
 0x3f0   : > { %v5357_v4 = vmax.f32 %v5273_v6, 0.0  ;;  %v5183_v38 = vadd.f32 %v13391_v53, %v4356_v44  ;;  %v12197_v1 = vpop.f32.mrf.mxu0  ;;  %v5356_v40 = vmax.f32 %v5272_v14, 0.0  ;;  %v13395_v53 = vld [vmem:[#allocation85_spill] sm:$0xff] }
 0x3f1   : > { %v4360_v50 = vpop.f32.mrf.mxu1  ;;  %8779 = vmatmul.mubr.msk.f32.gmra.mxu1 %vm3381_vm2, %v13392_v51  ;;  %v13396_v51 = vld [vmem:[#allocation90_spill] sm:$0xff] }
 0x3f2   : > { %v12201_v46 = vmax.f32 %v5354_v11, %v5357_v4  ;;  %v5274_v27 = vadd.f32 %v11914_v55, %v5183_v38  ;;  %v4361_v56 = vadd.f32 %v4360_v50, %v13393_v15  ;;  %v9039_v3 = vpop.f32.mrf.mxu0  ;;  %8781 = vmatprep.mubr.msk.f32.mxu1 %vm9425_vm1, %v13234_v29 }
 0x3f3   : > { %v8636_v5 = vpop.f32.mrf.mxu1  ;;  %v12238_v3 = vld [vmem:[%s13066_s5 + $0x58] sm:$0xff] }
 0x3f4   : > { %v5358_v47 = vmax.f32 %v5274_v27, 0.0  ;;  %v5184_v62 = vadd.f32 %v11720_v28, %v4361_v56  ;;  %v12209_v48 = vpop.f32.mrf.mxu0  ;;  %9161 = vmatprep.mubr.msk.f32.mxu0 %vm5465_vm3, %v12201_v46  ;;  %9197 = vmatprep.subr.mxu1 %v12238_v3 }
 0x3f5   : > { %v4365_v6 = vpop.f32.mrf.mxu1  ;;  %8782 = vmatmul.mubr.msk.f32.gmra.mxu1 %vm3381_vm2, %v13394_v42 }
 0x3f6   : > { %v12215_v44 = vmax.f32 %v5355_v7, %v5358_v47  ;;  %v5275_v13 = vadd.f32 %v11914_v55, %v5184_v62  ;;  %v9042_v11 = vpop.f32.mrf.mxu0  ;;  %8784 = vmatprep.mubr.msk.f32.mxu1 %vm9425_vm1, %v13234_v29  ;;  %v4366_v27 = vadd.f32 %v4365_v6, %v13396_v51  ;;  %v13398_v7 = vld [vmem:[#allocation87_spill] sm:$0xff]  ;;  %v13399_v6 = vld [vmem:[#allocation92_spill] sm:$0xff] }
 0x3f7   : > { %v8639_v25 = vpop.f32.mrf.mxu1 }
 0x3f8   : > { %v5359_v28 = vmax.f32 %v5275_v13, 0.0  ;;  %v12220_v18 = vpop.f32.mrf.mxu0  ;;  %9162 = vmatmul.mubr.msk.f32.gmra.mxu0 %vm5465_vm3, %v12215_v44  ;;  %v5185_v47 = vadd.f32 %v11732_v33, %v4366_v27  ;;  %v13401_v25 = vld [vmem:[#allocation89_spill] sm:$0xff]  ;;  %v13403_v27 = vld [vmem:[#allocation94_spill] sm:$0xff] }
 0x3f9   : > { %v4370_v4 = vpop.f32.mrf.mxu1  ;;  %8785 = vmatmul.mubr.msk.f32.gmra.mxu1 %vm3381_vm2, %v13395_v53 }
 0x3fa   : > { %v12226_v38 = vmax.f32 %v5356_v40, %v5359_v28  ;;  %v9045_v50 = vpop.f32.mrf.mxu0  ;;  %8787 = vmatprep.mubr.msk.f32.mxu1 %vm9425_vm1, %v13234_v29  ;;  %v4371_v42 = vadd.f32 %v4370_v4, %v13399_v6  ;;  %v13402_v40 = vld [vmem:[#allocation96_spill] sm:$0xff]  ;;  %v13404_v4 = vld [vmem:[#allocation31_spill] sm:$0xff] }
 0x3fb   : > { %v8642_v15 = vpop.f32.mrf.mxu1  ;;  %v5276_v50 = vadd.f32 %v11914_v55, %v5185_v47  ;;  %v13406_v6 = vld [vmem:[#allocation91_spill] sm:$0xff] }
 0x3fc   : > { %v12231_v56 = vpop.f32.mrf.mxu0  ;;  %9164 = vmatprep.mubr.msk.f32.mxu0 %vm5465_vm3, %v12226_v38  ;;  %v5186_v33 = vadd.f32 %v11744_v8, %v4371_v42  ;;  %v13408_v42 = vld [vmem:[#allocation30_spill] sm:$0xff] }
 0x3fd   : > { %13397 = vst [vmem:[#allocation49_spill] sm:$0xff] %v12231_v56  ;;  %v4375_v5 = vpop.f32.mrf.mxu1  ;;  %8788 = vmatmul.mubr.msk.f32.gmra.mxu1 %vm3381_vm2, %v13398_v7  ;;  %v5360_v47 = vmax.f32 %v5276_v50, 0.0 }
 0x3fe   : > { %v9048_v14 = vpop.f32.mrf.mxu0  ;;  %8790 = vmatprep.mubr.msk.f32.mxu1 %vm9425_vm1, %v13234_v29  ;;  %v4376_v15 = vadd.f32 %v4375_v5, %v13403_v27  ;;  %v5277_v5 = vadd.f32 %v11914_v55, %v5186_v33  ;;  %v13409_v27 = vld [vmem:[#allocation32_spill] sm:$0xff] }
 0x3ff   : > { %v8645_v62 = vpop.f32.mrf.mxu1 }
 0x400   : > { %v12247_v13 = vpop.f32.mrf.mxu0 }
 0x401   : > { %13400 = vst [vmem:[#allocation48_spill] sm:$0xff] %v12247_v13  ;;  %v4380_v11 = vpop.f32.mrf.mxu1  ;;  %8791 = vmatmul.mubr.msk.f32.gmra.mxu1 %vm3381_vm2, %v13401_v25  ;;  %v13407_v25 = vld [vmem:[#allocation98_spill] sm:$0xff]  ;;  %v13411_v13 = vld [vmem:[#allocation93_spill] sm:$0xff] }
 0x402   : > { %v4381_v28 = vadd.f32 %v4380_v11, %v13402_v40  ;;  %v9051_v53 = vpop.f32.mrf.mxu0  ;;  %8793 = vmatprep.mubr.msk.f32.mxu1 %vm9425_vm1, %v13234_v29 }
 0x403   : > { %v8648_v51 = vpop.f32.mrf.mxu1 }
 0x404   : > { %v5188_v7 = vadd.f32 %v13404_v4, %v4381_v28  ;;  %v12258_v14 = vpop.f32.mrf.mxu0  ;;  %v5187_v28 = vadd.f32 %v13408_v42, %v4376_v15  ;;  %v5361_v15 = vmax.f32 %v5277_v5, 0.0 }
 0x405   : > { %13405 = vst [vmem:[#allocation50_spill] sm:$0xff] %v12258_v14  ;;  %v4385_v62 = vpop.f32.mrf.mxu1  ;;  %8794 = vmatmul.mubr.msk.f32.gmra.mxu1 %vm3381_vm2, %v13406_v6 }
 0x406   : > { %v5279_v11 = vadd.f32 %v11914_v55, %v5188_v7  ;;  %v4386_v40 = vadd.f32 %v4385_v62, %v13407_v25  ;;  %v9054_v53 = vpop.f32.mrf.mxu0  ;;  %8796 = vmatprep.mubr.msk.f32.mxu1 %vm9425_vm1, %v13234_v29  ;;  %v13412_v25 = vld [vmem:[#allocation100_spill] sm:$0xff] }
 0x407   : > { %v8651_v8 = vpop.f32.mrf.mxu1 }
 0x408   : > { %v5363_v51 = vmax.f32 %v5279_v11, 0.0  ;;  %v5189_v4 = vadd.f32 %v13409_v27, %v4386_v40  ;;  %v12269_v14 = vpop.f32.mrf.mxu0  ;;  %v5278_v11 = vadd.f32 %v11914_v55, %v5187_v28  ;;  %v13413_v8 = vld [vmem:[#allocation33_spill] sm:$0xff] }
 0x409   : > { %13410 = vst [vmem:[#allocation51_spill] sm:$0xff] %v12269_v14  ;;  %v4390_v6 = vpop.f32.mrf.mxu1  ;;  %8797 = vmatmul.mubr.msk.f32.gmra.mxu1 %vm3381_vm2, %v13411_v13 }
 0x40a   : > { %v12273_v7 = vmax.f32 %v5360_v47, %v5363_v51  ;;  %v5280_v62 = vadd.f32 %v11914_v55, %v5189_v4  ;;  %v4391_v50 = vadd.f32 %v4390_v6, %v13412_v25  ;;  %v9057_v53 = vpop.f32.mrf.mxu0  ;;  %8799 = vmatprep.mubr.msk.f32.mxu1 %vm9425_vm1, %v13234_v29  ;;  %v13415_v47 = vld [vmem:[#allocation95_spill] sm:$0xff]  ;;  %v5362_v28 = vmax.f32 %v5278_v11, 0.0 }
 0x40b   : > { %v8654_v33 = vpop.f32.mrf.mxu1  ;;  %v13417_v53 = vld [vmem:[#allocation97_spill] sm:$0xff] }
 0x40c   : > { %v5364_v40 = vmax.f32 %v5280_v62, 0.0  ;;  %v5190_v42 = vadd.f32 %v13413_v8, %v4391_v50  ;;  %v12281_v27 = vpop.f32.mrf.mxu0  ;;  %9165 = vmatmul.mubr.msk.f32.gmra.mxu0 %vm5465_vm3, %v12273_v7 }
 0x40d   : > { %13414 = vst [vmem:[#allocation52_spill] sm:$0xff] %v12281_v27  ;;  %v4395_v13 = vpop.f32.mrf.mxu1  ;;  %8800 = vmatmul.mubr.msk.f32.gmra.mxu1 %vm3381_vm2, %v13415_v47  ;;  %v13443_v27 = vld [vmem:[#allocation113_spill] sm:$0xff] }
 0x40e   : > { %v12287_v51 = vmax.f32 %v5361_v15, %v5364_v40  ;;  %v5281_v4 = vadd.f32 %v11914_v55, %v5190_v42  ;;  %v9060_v6 = vpop.f32.mrf.mxu0  ;;  %8802 = vmatprep.mubr.msk.f32.mxu1 %vm9425_vm1, %v13234_v29  ;;  %v13418_v40 = vld [vmem:[#allocation101_spill] sm:$0xff] }
 0x40f   : > { %v8657_v5 = vpop.f32.mrf.mxu1  ;;  %v4396_v8 = vadd.f32 %v4395_v13, %v13418_v40  ;;  %v7349_v13 = vld [vmem:[%s13066_s5 + $0x50] sm:$0xff] }
 0x410   : > { %v5365_v62 = vmax.f32 %v5281_v4, 0.0  ;;  %v12292_v25 = vpop.f32.mrf.mxu0  ;;  %9167 = vmatprep.mubr.msk.f32.mxu0 %vm5465_vm3, %v12287_v51  ;;  %v13419_v4 = vld [vmem:[#allocation99_spill] sm:$0xff]  ;;  %v13420_v5 = vld [vmem:[#allocation34_spill] sm:$0xff] }
 0x411   : > { %13416 = vst [vmem:[#allocation53_spill] sm:$0xff] %v12292_v25  ;;  %v4400_v50 = vpop.f32.mrf.mxu1  ;;  %8803 = vmatmul.mubr.msk.f32.gmra.mxu1 %vm3381_vm2, %v13417_v53  ;;  %v13421_v53 = vld [vmem:[#allocation103_spill] sm:$0xff] }
 0x412   : > { %v12298_v33 = vmax.f32 %v5362_v28, %v5365_v62  ;;  %v9063_v15 = vpop.f32.mrf.mxu0  ;;  %8805 = vmatprep.mubr.msk.f32.mxu1 %vm9425_vm1, %v13234_v29  ;;  %v5191_v28 = vadd.f32 %v13420_v5, %v4396_v8 }
 0x413   : > { %v8660_v42 = vpop.f32.mrf.mxu1  ;;  %v4401_v15 = vadd.f32 %v4400_v50, %v13421_v53 }
 0x414   : > { %9168 = vmatmul.mubr.msk.f32.gmra.mxu0 %vm5465_vm3, %v12298_v33  ;;  %v5144_v11 = vpop.f32.mrf.mxu0  ;;  %v13422_v42 = vld [vmem:[#allocation105_spill] sm:$0xff]  ;;  %v5282_v8 = vadd.f32 %v11914_v55, %v5191_v28 }
 0x415   : > { %v4405_v47 = vpop.f32.mrf.mxu1  ;;  %8806 = vmatmul.mubr.msk.f32.gmra.mxu1 %vm3381_vm2, %v13419_v4 }
 0x416   : > { %9081 = vmatprep.mubr.msk.f32.mxu1 %vm5465_vm3, %v12003_v32  ;;  %v9066_v6 = vpop.f32.mrf.mxu0 }
 0x417   : > { %v8663_v62 = vpop.f32.mrf.mxu1  ;;  %v13424_v6 = vld [vmem:[#allocation104_spill] sm:$0xff] }
 0x418   : > { %v5148_v25 = vpop.f32.mrf.mxu0  ;;  %v4406_v5 = vadd.f32 %v4405_v47, %v13424_v6  ;;  %v13425_v62 = vld [vmem:[#allocation37_spill] sm:$0xff] }
 0x419   : > { %v4410_v40 = vpop.f32.mrf.mxu1  ;;  %9082 = vmatmul.mubr.msk.f32.vlgmr.msra.gmra.mxu1 %vm5465_vm3, %v12017_v41  ;;  %v13423_v25 = vld [vmem:[#allocation35_spill] sm:$0xff] }
 0x41a   : > { %v4411_v11 = vadd.f32 %v4410_v40, %v13422_v42  ;;  %9084 = vmatprep.mubr.msk.f32.mxu1 %vm5465_vm3, %v12028_v39  ;;  %v9069_v32 = vpop.f32.mrf.mxu0  ;;  %9198 = vmatpush3.msra.mxu1 %v12238_v3  ;;  %v5192_v4 = vadd.f32 %v13423_v25, %v4401_v15  ;;  %v13426_v40 = vld [vmem:[#allocation106_spill] sm:$0xff]  ;;  %v5366_v42 = vmax.f32 %v5282_v8, 0.0  ;;  %v7348_v8 = vld [vmem:[%s13066_s5 + $0x48] sm:$0xff] }
 0x41b   : > { %v8666_v50 = vpop.f32.mrf.mxu1  ;;  %9199 = vmatprep.subr.mxu1 %v7349_v13  ;;  %v13427_v32 = vld [vmem:[#allocation36_spill] sm:$0xff] }
 0x41c   : > { %v5194_v53 = vadd.f32 %v13425_v62, %v4411_v11  ;;  %v5152_v56 = vpop.f32.mrf.mxu0  ;;  %9200 = vmatpush3.msra.mxu1 %v7349_v13  ;;  %v5283_v47 = vadd.f32 %v11914_v55, %v5192_v4  ;;  %v5193_v11 = vadd.f32 %v13427_v32, %v4406_v5  ;;  %v13428_v13 = vld [vmem:[#allocation38_spill] sm:$0xff] }
 0x41d   : > { %v4415_v41 = vpop.f32.mrf.mxu1  ;;  %9085 = vmatmul.mubr.msk.f32.gmra.mxu1 %vm5465_vm3, %v12069_v37  ;;  %9201 = vmatprep.subr.mxu1 %v7348_v8 }
 0x41e   : > { %v5285_v39 = vadd.f32 %v11914_v55, %v5194_v53  ;;  %v4416_v3 = vadd.f32 %v4415_v41, %v13426_v40  ;;  %9087 = vmatprep.mubr.msk.f32.mxu1 %vm5465_vm3, %v12083_v23  ;;  %v9072_v28 = vpop.f32.mrf.mxu0  ;;  %v13429_v53 = vld [vmem:[#allocation107_spill] sm:$0xff]  ;;  %v5367_v5 = vmax.f32 %v5283_v47, 0.0  ;;  %9202 = vmatpush3.msra.mxu1 %v7348_v8  ;;  %v13433_v8 = vld [vmem:[#allocation40_spill] sm:$0xff] }
 0x41f   : > { %v8669_v15 = vpop.f32.mrf.mxu1 }
 0x420   : > { %v5369_v56 = vmax.f32 %v5285_v39, 0.0  ;;  %v5195_v50 = vadd.f32 %v13428_v13, %v4416_v3  ;;  %v5284_v39 = vadd.f32 %v11914_v55, %v5193_v11  ;;  %v13430_v3 = vld [vmem:[#allocation39_spill] sm:$0xff] }
 0x421   : > { %v4420_v25 = vpop.f32.mrf.mxu1  ;;  %9088 = vmatmul.mubr.msk.f32.gmra.mxu1 %vm5465_vm3, %v12094_v54 }
 0x422   : > { %v12335_v6 = vmax.f32 %v5366_v42, %v5369_v56  ;;  %v5286_v62 = vadd.f32 %v11914_v55, %v5195_v50  ;;  %v4421_v41 = vadd.f32 %v4420_v25, %v13429_v53  ;;  %9090 = vmatprep.mubr.msk.f32.mxu1 %vm5465_vm3, %v12135_v49  ;;  %v5368_v11 = vmax.f32 %v5284_v39, 0.0  ;;  %v13432_v25 = vld [vmem:[#allocation108_spill] sm:$0xff]  ;;  %v13434_v39 = vld [vmem:[#allocation109_spill] sm:$0xff] }
 0x423   : > { %v8672_v4 = vpop.f32.mrf.mxu1 }
 0x424   : > { %v5370_v40 = vmax.f32 %v5286_v62, 0.0  ;;  %v5196_v28 = vadd.f32 %v13430_v3, %v4421_v41  ;;  %9170 = vmatprep.mubr.msk.f32.mxu0 %vm5465_vm3, %v12335_v6 }
 0x425   : > { %v4425_v42 = vpop.f32.mrf.mxu1  ;;  %9091 = vmatmul.mubr.msk.f32.gmra.mxu1 %vm5465_vm3, %v12149_v34 }
 0x426   : > { %v12350_v15 = vmax.f32 %v5367_v5, %v5370_v40  ;;  %v5287_v32 = vadd.f32 %v11914_v55, %v5196_v28  ;;  %9093 = vmatprep.mubr.msk.f32.mxu1 %vm5465_vm3, %v12160_v36  ;;  %v4426_v62 = vadd.f32 %v4425_v42, %v13432_v25  ;;  %v13435_v28 = vld [vmem:[#allocation111_spill] sm:$0xff]  ;;  %v13437_v25 = vld [vmem:[#allocation110_spill] sm:$0xff] }
 0x427   : > { %v8675_v47 = vpop.f32.mrf.mxu1 }
 0x428   : > { %13431 = vst [vmem:[#allocation55_spill] sm:$0xff] %v12350_v15  ;;  %v5371_v56 = vmax.f32 %v5287_v32, 0.0  ;;  %9171 = vmatmul.mubr.msk.f32.gmra.mxu0 %vm5465_vm3, %v12350_v15  ;;  %v5197_v4 = vadd.f32 %v13433_v8, %v4426_v62  ;;  %v13438_v62 = vld [vmem:[#allocation43_spill] sm:$0xff] }
 0x429   : > { %v4430_v13 = vpop.f32.mrf.mxu1  ;;  %9094 = vmatmul.mubr.msk.f32.gmra.mxu1 %vm5465_vm3, %v12201_v46 }
 0x42a   : > { %v12359_v50 = vmax.f32 %v5368_v11, %v5371_v56  ;;  %9096 = vmatprep.mubr.msk.f32.mxu1 %vm5465_vm3, %v12215_v44  ;;  %v4431_v40 = vadd.f32 %v4430_v13, %v13434_v39  ;;  %v5288_v32 = vadd.f32 %v11914_v55, %v5197_v4  ;;  %v13436_v11 = vld [vmem:[#allocation41_spill] sm:$0xff]  ;;  %v13439_v39 = vld [vmem:[#allocation112_spill] sm:$0xff] }
 0x42b   : > { %v8678_v53 = vpop.f32.mrf.mxu1  ;;  %v7347_v4 = vld [vmem:[%s13066_s5 + $0x40] sm:$0xff] }
 0x42c   : > { %9173 = vmatprep.mubr.msk.f32.mxu0 %vm5465_vm3, %v12359_v50  ;;  %v5198_v56 = vadd.f32 %v13436_v11, %v4431_v40  ;;  %v5372_v40 = vmax.f32 %v5288_v32, 0.0  ;;  %9203 = vmatprep.subr.mxu1 %v7347_v4 }
 0x42d   : > { %v4435_v41 = vpop.f32.mrf.mxu1  ;;  %9097 = vmatmul.mubr.msk.f32.gmra.mxu1 %vm5465_vm3, %v12226_v38 }
 0x42e   : > { %9099 = vmatprep.mubr.msk.f32.mxu1 %vm5465_vm3, %v12273_v7  ;;  %v4436_v53 = vadd.f32 %v4435_v41, %v13437_v25  ;;  %v5289_v41 = vadd.f32 %v11914_v55, %v5198_v56  ;;  %v13441_v25 = vld [vmem:[#allocation44_spill] sm:$0xff]  ;;  %9204 = vmatpush3.msra.mxu1 %v7347_v4 }
 0x42f   : > { %v8681_v5 = vpop.f32.mrf.mxu1 }
 0x430   : > { %v5373_v14 = vmax.f32 %v5289_v41, 0.0 }
 0x431   : > { %v4440_v3 = vpop.f32.mrf.mxu1  ;;  %9100 = vmatmul.mubr.msk.f32.gmra.mxu1 %vm5465_vm3, %v12287_v51 }
 0x432   : > { %v4441_v42 = vadd.f32 %v4440_v3, %v13435_v28  ;;  %9102 = vmatprep.mubr.msk.f32.mxu1 %vm5465_vm3, %v12298_v33 }
 0x433   : > { %v8684_v47 = vpop.f32.mrf.mxu1 }
 0x434   : > { %v5200_v8 = vadd.f32 %v13438_v62, %v4441_v42  ;;  %v13440_v42 = vld [vmem:[#allocation42_spill] sm:$0xff] }
 0x435   : > { %v4445_v5 = vpop.f32.mrf.mxu1  ;;  %9103 = vmatmul.mubr.msk.f32.gmra.mxu1 %vm5465_vm3, %v12335_v6  ;;  %v5199_v47 = vadd.f32 %v13440_v42, %v4436_v53  ;;  %v13444_v53 = vld [vmem:[#allocation45_spill] sm:$0xff] }
 0x436   : > { %v5291_v13 = vadd.f32 %v11914_v55, %v5200_v8  ;;  %v4446_v3 = vadd.f32 %v4445_v5, %v13439_v39  ;;  %9105 = vmatprep.mubr.msk.f32.mxu1 %vm5465_vm3, %v12350_v15 }
 0x437   : > { %v8687_v28 = vpop.f32.mrf.mxu1  ;;  %v5290_v56 = vadd.f32 %v11914_v55, %v5199_v47 }
 0x438   : > { %v5375_v11 = vmax.f32 %v5291_v13, 0.0  ;;  %v5201_v62 = vadd.f32 %v13441_v25, %v4446_v3  ;;  %v13447_v25 = vld [vmem:[#allocation114_spill] sm:$0xff] }
 0x439   : > { %v4450_v8 = vpop.f32.mrf.mxu1  ;;  %9106 = vmatmul.mubr.msk.f32.gmra.mxu1 %vm5465_vm3, %v12359_v50 }
 0x43a   : > { %v12395_v5 = vmax.f32 %v5372_v40, %v5375_v11  ;;  %v5292_v39 = vadd.f32 %v11914_v55, %v5201_v62  ;;  %v4451_v32 = vadd.f32 %v4450_v8, %v13443_v27  ;;  %v5374_v27 = vmax.f32 %v5290_v56, 0.0 }
 0x43b   : > { %v8690_v28 = vpop.f32.mrf.mxu1 }
 0x43c   : > { %13442 = vst [vmem:[#allocation54_spill] sm:$0xff] %v12395_v5  ;;  %v5376_v15 = vmax.f32 %v5292_v39, 0.0  ;;  %v5202_v13 = vadd.f32 %v13444_v53, %v4451_v32  ;;  %9108 = vmatprep.mubr.msk.f32.mxu1 %vm5465_vm3, %v12395_v5  ;;  %9174 = vmatmul.mubr.msk.f32.gmra.mxu0 %vm5465_vm3, %v12395_v5  ;;  %v13449_v32 = vld [vmem:[#allocation6_spill] sm:$0xff]  ;;  %v13450_v53 = vld [vmem:[#allocation8_spill] sm:$0xff] }
 0x43d   : > { %v4455_v3 = vpop.f32.mrf.mxu1 }
 0x43e   : > { %v12405_v4 = vmax.f32 %v5373_v14, %v5376_v15  ;;  %v5293_v40 = vadd.f32 %v11914_v55, %v5202_v13  ;;  %v4456_v62 = vadd.f32 %v4455_v3, %v13447_v25  ;;  %v13448_v14 = vld [vmem:[#allocation46_spill] sm:$0xff]  ;;  %v12425_v3 = vld [vmem:[%s13065_s4] ss:$0 sm:$0xff]  ;;  %v13452_v25 = vld [vmem:[#allocation7_spill] sm:$0xff] }
 0x43f   : > { %v8693_v42 = vpop.f32.mrf.mxu1 }
 0x440   : > { %13445 = vst [vmem:[#allocation56_spill] sm:$0xff] %v12405_v4  ;;  %v5377_v11 = vmax.f32 %v5293_v40, 0.0  ;;  %9109 = vmatmul.mubr.msk.f32.gmra.mxu1 %vm5465_vm3, %v12405_v4  ;;  %9176 = vmatprep.mubr.msk.f32.mxu0 %vm5465_vm3, %v12405_v4  ;;  %v5203_v15 = vadd.f32 %v13448_v14, %v4456_v62 }
 0x441   : > { %v4460_v41 = vpop.f32.mrf.mxu1 }
 0x442   : > { %v12412_v47 = vmax.f32 %v5374_v27, %v5377_v11  ;;  %v4461_v28 = vadd.f32 %v4460_v41, %v13449_v32  ;;  %v5294_v40 = vadd.f32 %v12425_v3, %v5203_v15  ;;  %v13451_v27 = vld [vmem:[#allocation47_spill] sm:$0xff] }
 0x443   : > { %v8696_v8 = vpop.f32.mrf.mxu1 }
 0x444   : > { %13446 = vst [vmem:[#allocation57_spill] sm:$0xff] %v12412_v47  ;;  %9111 = vmatprep.mubr.msk.f32.mxu1 %vm5465_vm3, %v12412_v47  ;;  %9177 = vmatmul.mubr.msk.f32.gmra.mxu0 %vm5465_vm3, %v12412_v47  ;;  %v5204_v11 = vadd.f32 %v13451_v27, %v4461_v28 }
 0x445   : > { %v4465_v55 = vpop.f32.mrf.mxu1 }
 0x446   : > { %v4466_v8 = vadd.f32 %v4465_v55, %v13452_v25  ;;  %v5295_v47 = vadd.f32 %v12425_v3, %v5204_v11 }
 0x447   : > { %v8699_v39 = vpop.f32.mrf.mxu1 }
 0x448   : > { %v13453_v39 = vld [vmem:[#allocation9_spill] sm:$0xff]  ;;  %v5205_v4 = vadd.f32 %v11928_v2, %v4466_v8  ;;  %v5379_v25 = vmax.f32 %v5295_v47, 0.0  ;;  %v13455_v47 = vld [vmem:[#allocation11_spill] sm:$0xff] }
 0x449   : > { %v4470_v56 = vpop.f32.mrf.mxu1 }
 0x44a   : > { %v4471_v13 = vadd.f32 %v4470_v56, %v13450_v53  ;;  %v5378_v56 = vmax.f32 %v5294_v40, 0.0 }
 0x44b   : > { %v8702_v42 = vpop.f32.mrf.mxu1 }
 0x44c   : > { %v5206_v62 = vadd.f32 %v11939_v61, %v4471_v13  ;;  %v13454_v61 = vld [vmem:[#allocation10_spill] sm:$0xff] }
 0x44d   : > { %v4475_v14 = vpop.f32.mrf.mxu1 }
 0x44e   : > { %v5297_v41 = vadd.f32 %v12425_v3, %v5206_v62  ;;  %v4476_v32 = vadd.f32 %v4475_v14, %v13453_v39  ;;  %v5296_v62 = vadd.f32 %v12425_v3, %v5205_v4 }
 0x44f   : > { %v8705_v53 = vpop.f32.mrf.mxu1 }
 0x450   : > { %v5381_v5 = vmax.f32 %v5297_v41, 0.0  ;;  %v5207_v15 = vadd.f32 %v11949_v10, %v4476_v32  ;;  %v5380_v8 = vmax.f32 %v5296_v62, 0.0 }
 0x451   : > { %v4480_v42 = vpop.f32.mrf.mxu1 }
 0x452   : > { %v12436_v28 = vmax.f32 %v5378_v56, %v5381_v5  ;;  %v5298_v55 = vadd.f32 %v12425_v3, %v5207_v15  ;;  %v4481_v13 = vadd.f32 %v4480_v42, %v13454_v61  ;;  %v13456_v42 = vld [vmem:[#allocation12_spill] sm:$0xff] }
 0x453   : > { %v8708_v27 = vpop.f32.mrf.mxu1 }
 0x454   : > { %v5382_v40 = vmax.f32 %v5298_v55, 0.0  ;;  %v5208_v14 = vadd.f32 %v11960_v59, %v4481_v13  ;;  %9112 = vmatmul.mubr.msk.f32.gmra.mxu1 %vm5465_vm3, %v12436_v28  ;;  %9179 = vmatprep.mubr.msk.f32.mxu0 %vm5465_vm3, %v12436_v28  ;;  %v13457_v13 = vld [vmem:[#allocation14_spill] sm:$0xff] }
 0x455   : > { %v4485_v2 = vpop.f32.mrf.mxu1 }
 0x456   : > { %v12446_v10 = vmax.f32 %v5379_v25, %v5382_v40  ;;  %v5299_v5 = vadd.f32 %v12425_v3, %v5208_v14  ;;  %v4486_v39 = vadd.f32 %v4485_v2, %v13455_v47  ;;  %v13458_v14 = vld [vmem:[#allocation13_spill] sm:$0xff] }
 0x457   : > { %v8711_v11 = vpop.f32.mrf.mxu1 }
 0x458   : > { %v5383_v41 = vmax.f32 %v5299_v5, 0.0  ;;  %9114 = vmatprep.mubr.msk.f32.mxu1 %vm5465_vm3, %v12446_v10  ;;  %9180 = vmatmul.mubr.msk.f32.gmra.mxu0 %vm5465_vm3, %v12446_v10  ;;  %v5209_v53 = vadd.f32 %v11968_v43, %v4486_v39 }
 0x459   : > { %v4490_v59 = vpop.f32.mrf.mxu1 }
 0x45a   : > { %v12453_v4 = vmax.f32 %v5380_v8, %v5383_v41  ;;  %v4491_v55 = vadd.f32 %v4490_v59, %v13456_v42  ;;  %v5300_v25 = vadd.f32 %v12425_v3, %v5209_v53  ;;  %v13459_v41 = vld [vmem:[#allocation15_spill] sm:$0xff] }
 0x45b   : > { %v8714_v32 = vpop.f32.mrf.mxu1 }
 0x45c   : > { %9115 = vmatmul.mubr.msk.f32.gmra.mxu1 %vm5465_vm3, %v12453_v4  ;;  %9182 = vmatprep.mubr.msk.f32.mxu0 %vm5465_vm3, %v12453_v4  ;;  %v5210_v40 = vadd.f32 %v11977_v17, %v4491_v55  ;;  %v5384_v47 = vmax.f32 %v5300_v25, 0.0 }
 0x45d   : > { %v4495_v56 = vpop.f32.mrf.mxu1 }
 0x45e   : > { %v4496_v2 = vadd.f32 %v4495_v56, %v13458_v14  ;;  %v5301_v59 = vadd.f32 %v12425_v3, %v5210_v40 }
 0x45f   : > { %v8717_v15 = vpop.f32.mrf.mxu1 }
 0x460   : > { %v5211_v32 = vadd.f32 %v11988_v31, %v4496_v2 }
 0x461   : > { %v4500_v61 = vpop.f32.mrf.mxu1 }
 0x462   : > { %v4501_v27 = vadd.f32 %v4500_v61, %v13457_v13  ;;  %v5385_v13 = vmax.f32 %v5301_v59, 0.0 }
 0x463   : > { %v8720_v62 = vpop.f32.mrf.mxu1 }
 0x464   : > { %v5212_v5 = vadd.f32 %v11999_v20, %v4501_v27  ;;  %v13460_v20 = vld [vmem:[#allocation16_spill] sm:$0xff]  ;;  %v5302_v27 = vadd.f32 %v12425_v3, %v5211_v32  ;;  %v13462_v32 = vld [vmem:[#allocation18_spill] sm:$0xff] }
 0x465   : > { %v4505_v11 = vpop.f32.mrf.mxu1 }
 0x466   : > { %v5303_v8 = vadd.f32 %v12425_v3, %v5212_v5  ;;  %v4506_v43 = vadd.f32 %v4505_v11, %v13459_v41  ;;  %v5386_v2 = vmax.f32 %v5302_v27, 0.0 }
 0x467   : > { %v8723_v39 = vpop.f32.mrf.mxu1 }
 0x468   : > { %v5387_v15 = vmax.f32 %v5303_v8, 0.0  ;;  %v5213_v53 = vadd.f32 %v12011_v26, %v4506_v43  ;;  %v13461_v8 = vld [vmem:[#allocation17_spill] sm:$0xff] }
 0x469   : > { %v4510_v42 = vpop.f32.mrf.mxu1 }
 0x46a   : > { %v12472_v17 = vmax.f32 %v5384_v47, %v5387_v15  ;;  %v5304_v56 = vadd.f32 %v12425_v3, %v5213_v53  ;;  %v4511_v55 = vadd.f32 %v4510_v42, %v13460_v20  ;;  %v13463_v42 = vld [vmem:[#allocation20_spill] sm:$0xff] }
 0x46b   : > { %v8726_v61 = vpop.f32.mrf.mxu1 }
 0x46c   : > { %v5388_v25 = vmax.f32 %v5304_v56, 0.0  ;;  %v5214_v62 = vadd.f32 %v12022_v45, %v4511_v55  ;;  %9117 = vmatprep.mubr.msk.f32.mxu1 %vm5465_vm3, %v12472_v17  ;;  %9183 = vmatmul.mubr.msk.f32.gmra.mxu0 %vm5465_vm3, %v12472_v17 }
 0x46d   : > { %v4515_v31 = vpop.f32.mrf.mxu1 }
 0x46e   : > { %v12482_v26 = vmax.f32 %v5385_v13, %v5388_v25  ;;  %v5305_v40 = vadd.f32 %v12425_v3, %v5214_v62  ;;  %v4516_v41 = vadd.f32 %v4515_v31, %v13461_v8  ;;  %v13464_v13 = vld [vmem:[#allocation19_spill] sm:$0xff] }
 0x46f   : > { %v8729_v14 = vpop.f32.mrf.mxu1 }
 0x470   : > { %v5389_v5 = vmax.f32 %v5305_v40, 0.0  ;;  %9118 = vmatmul.mubr.msk.f32.gmra.mxu1 %vm5465_vm3, %v12482_v26  ;;  %9185 = vmatprep.mubr.msk.f32.mxu0 %vm5465_vm3, %v12482_v26  ;;  %v5215_v39 = vadd.f32 %v12033_v24, %v4516_v41  ;;  %v13465_v40 = vld [vmem:[#allocation21_spill] sm:$0xff] }
 0x471   : > { %v4520_v45 = vpop.f32.mrf.mxu1 }
 0x472   : > { %v12489_v11 = vmax.f32 %v5386_v2, %v5389_v5  ;;  %v4521_v15 = vadd.f32 %v4520_v45, %v13462_v32  ;;  %v5306_v20 = vadd.f32 %v12425_v3, %v5215_v39 }
 0x473   : > { %v8732_v43 = vpop.f32.mrf.mxu1 }
 0x474   : > { %9120 = vmatprep.mubr.msk.f32.mxu1 %vm5465_vm3, %v12489_v11  ;;  %9186 = vmatmul.mubr.msk.f32.gmra.mxu0 %vm5465_vm3, %v12489_v11  ;;  %v5216_v61 = vadd.f32 %v12043_v0, %v4521_v15  ;;  %v5390_v14 = vmax.f32 %v5306_v20, 0.0 }
 0x475   : > { %v4525_v47 = vpop.f32.mrf.mxu1 }
 0x476   : > { %v4526_v27 = vadd.f32 %v4525_v47, %v13464_v13  ;;  %v5307_v5 = vadd.f32 %v12425_v3, %v5216_v61 }
 0x477   : > { %v8735_v59 = vpop.f32.mrf.mxu1 }
 0x478   : > { %v5217_v45 = vadd.f32 %v12054_v12, %v4526_v27  ;;  %v5391_v32 = vmax.f32 %v5307_v5, 0.0  ;;  %v13467_v27 = vld [vmem:[#allocation23_spill] sm:$0xff] }
 0x479   : > { %v4530_v53 = vpop.f32.mrf.mxu1 }
 0x47a   : > { %v4531_v56 = vadd.f32 %v4530_v53, %v13463_v42  ;;  %v5308_v15 = vadd.f32 %v12425_v3, %v5217_v45  ;;  %v13469_v45 = vld [vmem:[#allocation115_spill] sm:$0xff] }
 0x47b   : > { %v8738_v55 = vpop.f32.mrf.mxu1 }
 0x47c   : > { %v5218_v25 = vadd.f32 %v12065_v21, %v4531_v56  ;;  %v13466_v21 = vld [vmem:[#allocation22_spill] sm:$0xff]  ;;  %v5392_v55 = vmax.f32 %v5308_v15, 0.0 }
 0x47d   : > { %v4535_v62 = vpop.f32.mrf.mxu1 }
 0x47e   : > { %v5309_v31 = vadd.f32 %v12425_v3, %v5218_v25  ;;  %v4536_v24 = vadd.f32 %v4535_v62, %v13465_v40 }
 0x47f   : > { %v8741_v2 = vpop.f32.mrf.mxu1 }
 0x480   : > { %v5393_v8 = vmax.f32 %v5309_v31, 0.0  ;;  %v5219_v41 = vadd.f32 %v12077_v16, %v4536_v24 }
 0x481   : > { %v4540_v43 = vpop.f32.mrf.mxu1 }
 0x482   : > { %v12508_v0 = vmax.f32 %v5390_v14, %v5393_v8  ;;  %v5310_v47 = vadd.f32 %v12425_v3, %v5219_v41  ;;  %v4541_v39 = vadd.f32 %v4540_v43, %v13466_v21  ;;  %v13468_v14 = vld [vmem:[#allocation24_spill] sm:$0xff]  ;;  %v13470_v21 = vld [vmem:[#allocation25_spill] sm:$0xff] }
 0x483   : > { %v8744_v59 = vpop.f32.mrf.mxu1 }
 0x484   : > { %v5394_v53 = vmax.f32 %v5310_v47, 0.0  ;;  %v5220_v42 = vadd.f32 %v12088_v19, %v4541_v39  ;;  %9121 = vmatmul.mubr.msk.f32.gmra.mxu1 %vm5465_vm3, %v12508_v0  ;;  %9188 = vmatprep.mubr.msk.f32.mxu0 %vm5465_vm3, %v12508_v0 }
 0x485   : > { %v4545_v12 = vpop.f32.mrf.mxu1 }
 0x486   : > { %v12518_v16 = vmax.f32 %v5391_v32, %v5394_v53  ;;  %v5311_v56 = vadd.f32 %v12425_v3, %v5220_v42  ;;  %v4546_v25 = vadd.f32 %v4545_v12, %v13467_v27  ;;  %v13471_v53 = vld [vmem:[#allocation27_spill] sm:$0xff] }
 0x487   : > { %v8747_v20 = vpop.f32.mrf.mxu1 }
 0x488   : > { %v5395_v61 = vmax.f32 %v5311_v56, 0.0  ;;  %9123 = vmatprep.mubr.msk.f32.mxu1 %vm5465_vm3, %v12518_v16  ;;  %9189 = vmatmul.mubr.msk.f32.gmra.mxu0 %vm5465_vm3, %v12518_v16  ;;  %v5221_v40 = vadd.f32 %v12099_v22, %v4546_v25 }
 0x489   : > { %v4550_v19 = vpop.f32.mrf.mxu1 }
 0x48a   : > { %v12525_v13 = vmax.f32 %v5392_v55, %v5395_v61  ;;  %v4551_v2 = vadd.f32 %v4550_v19, %v13468_v14  ;;  %v5312_v41 = vadd.f32 %v12425_v3, %v5221_v40 }
 0x48b   : > { %v8750_v62 = vpop.f32.mrf.mxu1 }
 0x48c   : > { %9124 = vmatmul.mubr.msk.f32.gmra.mxu1 %vm5465_vm3, %v12525_v13  ;;  %9191 = vmatprep.mubr.msk.f32.mxu0 %vm5465_vm3, %v12525_v13  ;;  %v5222_v47 = vadd.f32 %v12109_v63, %v4551_v2  ;;  %v5396_v42 = vmax.f32 %v5312_v41, 0.0 }
 0x48d   : > { %v4555_v31 = vpop.f32.mrf.mxu1 }
 0x48e   : > { %v4556_v39 = vadd.f32 %v4555_v31, %v13470_v21  ;;  %v5313_v56 = vadd.f32 %v12425_v3, %v5222_v47 }
 0x48f   : > { %v8753_v24 = vpop.f32.mrf.mxu1 }
 0x490   : > { %v5223_v20 = vadd.f32 %v12120_v52, %v4556_v39  ;;  %v5397_v31 = vmax.f32 %v5313_v56, 0.0 }
 0x491   : > { %v4560_v5 = vpop.f32.mrf.mxu1 }
 0x492   : > { %v4561_v8 = vadd.f32 %v4560_v5, %v13469_v45  ;;  %v5314_v40 = vadd.f32 %v12425_v3, %v5223_v20 }
 0x493   : > { %v8756_v43 = vpop.f32.mrf.mxu1 }
 0x494   : > { %v5224_v59 = vadd.f32 %v12131_v58, %v4561_v8  ;;  %v13472_v58 = vld [vmem:[#allocation28_spill] sm:$0xff]  ;;  %v5398_v45 = vmax.f32 %v5314_v40, 0.0  ;;  %v13473_v43 = vld [vmem:[#allocation29_spill] sm:$0xff] }
 0x495   : > { %v4565_v32 = vpop.f32.mrf.mxu1 }
 0x496   : > { %v5315_v15 = vadd.f32 %v12425_v3, %v5224_v59  ;;  %v4566_v22 = vadd.f32 %v4565_v32, %v13471_v53 }
 0x497   : > { %v8759_v12 = vpop.f32.mrf.mxu1 }
 0x498   : > { %v5399_v55 = vmax.f32 %v5315_v15, 0.0  ;;  %v5225_v61 = vadd.f32 %v12143_v57, %v4566_v22  ;;  %v13474_v15 = vld [vmem:[#allocation116_spill] sm:$0xff] }
 0x499   : > { %v4570_v19 = vpop.f32.mrf.mxu1 }
 0x49a   : > { %v12544_v63 = vmax.f32 %v5396_v42, %v5399_v55  ;;  %v5316_v27 = vadd.f32 %v12425_v3, %v5225_v61  ;;  %v4571_v25 = vadd.f32 %v4570_v19, %v13472_v58  ;;  %v13475_v42 = vld [vmem:[#allocation102_spill] sm:$0xff]  ;;  %v13476_v61 = vld [vmem:[#allocation117_spill] sm:$0xff] }
 0x49b   : > { %v8762_v62 = vpop.f32.mrf.mxu1 }
 0x49c   : > { %v5400_v24 = vmax.f32 %v5316_v27, 0.0  ;;  %v5226_v14 = vadd.f32 %v12154_v9, %v4571_v25  ;;  %9126 = vmatprep.mubr.msk.f32.mxu1 %vm5465_vm3, %v12544_v63  ;;  %9192 = vmatmul.mubr.msk.f32.gmra.mxu0 %vm5465_vm3, %v12544_v63  ;;  %v13477_v62 = vld [vmem:[#allocation118_spill] sm:$0xff] }
 0x49d   : > { %v4575_v52 = vpop.f32.mrf.mxu1 }
 0x49e   : > { %v12554_v57 = vmax.f32 %v5397_v31, %v5400_v24  ;;  %v5317_v2 = vadd.f32 %v12425_v3, %v5226_v14  ;;  %v4576_v47 = vadd.f32 %v4575_v52, %v13473_v43 }
 0x49f   : > { %v8765_v5 = vpop.f32.mrf.mxu1 }
 0x4a0   : > { %v5401_v8 = vmax.f32 %v5317_v2, 0.0  ;;  %9127 = vmatmul.mubr.msk.f32.gmra.mxu1 %vm5465_vm3, %v12554_v57  ;;  %9194 = vmatprep.mubr.msk.f32.mxu0 %vm5465_vm3, %v12554_v57  ;;  %v5227_v59 = vadd.f32 %v12165_v60, %v4576_v47 }
 0x4a1   : > { %v4580_v9 = vpop.f32.mrf.mxu1 }
 0x4a2   : > { %v12561_v41 = vmax.f32 %v5398_v45, %v5401_v8  ;;  %v4581_v53 = vadd.f32 %v4580_v9, %v13474_v15  ;;  %v5318_v56 = vadd.f32 %v12425_v3, %v5227_v59 }
 0x4a3   : > { %v8768_v21 = vpop.f32.mrf.mxu1 }
 0x4a4   : > { %9129 = vmatprep.mubr.msk.f32.mxu1 %vm5465_vm3, %v12561_v41  ;;  %9195 = vmatmul.mubr.msk.f32.gmra.mxu0 %vm5465_vm3, %v12561_v41  ;;  %v5228_v55 = vadd.f32 %v12175_v35, %v4581_v53  ;;  %v5402_v31 = vmax.f32 %v5318_v56, 0.0 }
 0x4a5   : > { %v4585_v39 = vpop.f32.mrf.mxu1  ;;  %9275 = vmatprep.mubr.msk.f32.mxu0 %vm9425_vm1, %v13234_v29 }
 0x4a6   : > { %v4586_v19 = vadd.f32 %v4585_v39, %v13476_v61  ;;  %v5319_v24 = vadd.f32 %v12425_v3, %v5228_v55 }
 0x4a7   : > { %v8771_v32 = vpop.f32.mrf.mxu1 }
 0x4a8   : > { %v5229_v14 = vadd.f32 %v12186_v30, %v4586_v19  ;;  %v5403_v43 = vmax.f32 %v5319_v24, 0.0  ;;  %v13491_v24 = vld [vmem:[#allocation122_spill] sm:$0xff] }
 0x4a9   : > { %v4590_v22 = vpop.f32.mrf.mxu1 }
 0x4aa   : > { %v4591_v12 = vadd.f32 %v4590_v22, %v13475_v42  ;;  %v5320_v47 = vadd.f32 %v12425_v3, %v5229_v14 }
 0x4ab   : > { %v8774_v20 = vpop.f32.mrf.mxu1 }
 0x4ac   : > { %v5230_v27 = vadd.f32 %v12197_v1, %v4591_v12  ;;  %v13478_v1 = vld [vmem:[#allocation119_spill] sm:$0xff]  ;;  %v5404_v15 = vmax.f32 %v5320_v47, 0.0 }
 0x4ad   : > { %v4595_v58 = vpop.f32.mrf.mxu1 }
 0x4ae   : > { %v5321_v25 = vadd.f32 %v12425_v3, %v5230_v27  ;;  %v4596_v60 = vadd.f32 %v4595_v58, %v13477_v62  ;;  %v13479_v27 = vld [vmem:[#allocation55_spill] sm:$0xff] }
 0x4af   : > { %v8777_v40 = vpop.f32.mrf.mxu1 }
 0x4b0   : > { %v5405_v52 = vmax.f32 %v5321_v25, 0.0  ;;  %v5231_v2 = vadd.f32 %v12209_v48, %v4596_v60  ;;  %v13489_v60 = vld [vmem:[#allocation52_spill] sm:$0xff] }
 0x4b1   : > { %v4600_v5 = vpop.f32.mrf.mxu1 }
 0x4b2   : > { %v12582_v35 = vmax.f32 %v5402_v31, %v5405_v52  ;;  %v5322_v45 = vadd.f32 %v12425_v3, %v5231_v2  ;;  %v4601_v8 = vadd.f32 %v4600_v5, %v13478_v1  ;;  %v13490_v31 = vld [vmem:[#allocation49_spill] sm:$0xff]  ;;  %v13492_v52 = vld [vmem:[#allocation48_spill] sm:$0xff] }
 0x4b3   : > { %v8780_v9 = vpop.f32.mrf.mxu1  ;;  %v13493_v2 = vld [vmem:[#allocation53_spill] sm:$0xff] }
 0x4b4   : > { %v5406_v21 = vmax.f32 %v5322_v45, 0.0  ;;  %v5232_v39 = vadd.f32 %v12220_v18, %v4601_v8  ;;  %9130 = vmatmul.mubr.msk.f32.gmra.mxu1 %vm5465_vm3, %v12582_v35  ;;  %v13494_v8 = vld [vmem:[#allocation50_spill] sm:$0xff] }
 0x4b5   : > { %v4605_v30 = vpop.f32.mrf.mxu1 }
 0x4b6   : > { %v12590_v59 = vmax.f32 %v5403_v43, %v5406_v21  ;;  %v5323_v48 = vadd.f32 %v12425_v3, %v5232_v39 }
 0x4b7   : > { %v8783_v32 = vpop.f32.mrf.mxu1 }
 0x4b8   : > { %v5407_v53 = vmax.f32 %v5323_v48, 0.0  ;;  %9132 = vmatprep.mubr.msk.f32.mxu1 %vm5465_vm3, %v12590_v59 }
 0x4b9   : > { %v4610_v22 = vpop.f32.mrf.mxu1 }
 0x4ba   : > { %v12595_v42 = vmax.f32 %v5404_v15, %v5407_v53 }
 0x4bb   : > { %v8786_v12 = vpop.f32.mrf.mxu1 }
 0x4bc   : > { %9133 = vmatmul.mubr.msk.f32.gmra.mxu1 %vm5465_vm3, %v12595_v42 }
 0x4bd   : > { %v4615_v18 = vpop.f32.mrf.mxu1  ;;  %9205 = vmatprep.mubr.msk.f32.mxu1 %vm5465_vm3, %v12069_v37 }
 0x4be   : > { %v4616_v14 = vadd.f32 %v4615_v18, %v13491_v24  ;;  %v6523_v18 = vld [vmem:[%s13068_s7 + $0x30] sm:$0xff] }
 0x4bf   : > { %v8789_v56 = vpop.f32.mrf.mxu1 }
 0x4c0   : > { %9206 = vmatmul.mubr.msk.f32.vlgmr.msra.gmra.mxu1 %vm5465_vm3, %v12083_v23  ;;  %v5235_v9 = vadd.f32 %v13494_v8, %v4616_v14 }
 0x4c1   : > { %v4620_v20 = vpop.f32.mrf.mxu1  ;;  %9208 = vmatprep.mubr.msk.f32.mxu1 %vm5465_vm3, %v12094_v54 }
 0x4c2   : > { %v5326_v39 = vadd.f32 %v12425_v3, %v5235_v9 }
 0x4c3   : > { %v8792_v55 = vpop.f32.mrf.mxu1 }
 0x4c4   : > { %9209 = vmatmul.mubr.msk.f32.gmra.mxu1 %vm5465_vm3, %v12135_v49  ;;  %v5410_v15 = vmax.f32 %v5326_v39, 0.0  ;;  %v6522_v55 = vld [vmem:[%s13068_s7 + $0x28] sm:$0xff] }
 0x4c5   : > { %v4625_v61 = vpop.f32.mrf.mxu1  ;;  %9211 = vmatprep.mubr.msk.f32.mxu1 %vm5465_vm3, %v12149_v34 }
 0x4c7   : > { %v8795_v19 = vpop.f32.mrf.mxu1 }
 0x4c8   : > { %9212 = vmatmul.mubr.msk.f32.gmra.mxu1 %vm5465_vm3, %v12160_v36 }
 0x4c9   : > { %v4630_v37 = vpop.f32.mrf.mxu1  ;;  %9214 = vmatprep.mubr.msk.f32.mxu1 %vm5465_vm3, %v12201_v46 }
 0x4cb   : > { %v8798_v23 = vpop.f32.mrf.mxu1 }
 0x4cc   : > { %9215 = vmatmul.mubr.msk.f32.gmra.mxu1 %vm5465_vm3, %v12215_v44 }
 0x4cd   : > { %v4635_v54 = vpop.f32.mrf.mxu1  ;;  %9217 = vmatprep.mubr.msk.f32.mxu1 %vm5465_vm3, %v12226_v38  ;;  %v13480_v38 = vld [vmem:[#allocation54_spill] sm:$0xff] }
 0x4cf   : > { %v8801_v49 = vpop.f32.mrf.mxu1 }
 0x4d0   : > { %9218 = vmatmul.mubr.msk.f32.gmra.mxu1 %vm5465_vm3, %v12273_v7  ;;  %v13481_v7 = vld [vmem:[#allocation56_spill] sm:$0xff] }
 0x4d1   : > { %v4639_v34 = vpop.f32.mrf.mxu1  ;;  %9220 = vmatprep.mubr.msk.f32.mxu1 %vm5465_vm3, %v12287_v51  ;;  %v13482_v51 = vld [vmem:[#allocation57_spill] sm:$0xff] }
 0x4d2   : > { %v6520_v34 = vld [vmem:[%s13068_s7 + $0x18] sm:$0xff] }
 0x4d3   : > { %v8804_v36 = vpop.f32.mrf.mxu1 }
 0x4d4   : > { %9221 = vmatmul.mubr.msk.f32.gmra.mxu1 %vm5465_vm3, %v12298_v33  ;;  %v13483_v33 = vld [vmem:[#allocation123_spill] sm:$0xff] }
 0x4d5   : > { %v4643_v46 = vpop.f32.mrf.mxu1  ;;  %9223 = vmatprep.mubr.msk.f32.mxu1 %vm5465_vm3, %v12335_v6  ;;  %v4621_v6 = vadd.f32 %v4620_v20, %v13483_v33 }
 0x4d7   : > { %v8807_v44 = vpop.f32.mrf.mxu1 }
 0x4d8   : > { %9224 = vmatmul.mubr.msk.f32.gmra.mxu1 %vm5465_vm3, %v13479_v27  ;;  %v6519_v44 = vld [vmem:[%s13068_s7 + $0x10] sm:$0xff] }
 0x4d9   : > { %9226 = vmatprep.mubr.msk.f32.mxu1 %vm5465_vm3, %v12359_v50  ;;  %v13484_v50 = vld [vmem:[#allocation124_spill] sm:$0xff]  ;;  %v12686_v53 = vpop.f32.mrf.mxu1 }
 0x4dc   : > { %9227 = vmatmul.mubr.msk.f32.gmra.mxu1 %vm5465_vm3, %v13480_v38 }
 0x4dd   : > { %9229 = vmatprep.mubr.msk.f32.mxu1 %vm5465_vm3, %v13481_v7  ;;  %v6518_v7 = vld [vmem:[%s13068_s7 + $0x8] sm:$0xff] }
 0x4e0   : > { %9230 = vmatmul.mubr.msk.f32.gmra.mxu1 %vm5465_vm3, %v13482_v51 }
 0x4e1   : > { %9232 = vmatprep.mubr.msk.f32.mxu1 %vm5465_vm3, %v12436_v28  ;;  %v4626_v28 = vadd.f32 %v4625_v61, %v13484_v50 }
 0x4e4   : > { %9233 = vmatmul.mubr.msk.f32.gmra.mxu1 %vm5465_vm3, %v12446_v10  ;;  %v13485_v10 = vld [vmem:[#allocation120_spill] sm:$0xff] }
 0x4e5   : > { %9235 = vmatprep.mubr.msk.f32.mxu1 %vm5465_vm3, %v12453_v4  ;;  %v4606_v58 = vadd.f32 %v4605_v30, %v13485_v10  ;;  %v13486_v4 = vld [vmem:[#allocation121_spill] sm:$0xff] }
 0x4e7   : > { %v5233_v40 = vadd.f32 %v13490_v31, %v4606_v58 }
 0x4e8   : > { %9236 = vmatmul.mubr.msk.f32.gmra.mxu1 %vm5465_vm3, %v12472_v17  ;;  %v4611_v17 = vadd.f32 %v4610_v22, %v13486_v4 }
 0x4e9   : > { %9238 = vmatprep.mubr.msk.f32.mxu1 %vm5465_vm3, %v12482_v26  ;;  %v13487_v26 = vld [vmem:[#allocation51_spill] sm:$0xff]  ;;  %v5324_v1 = vadd.f32 %v12425_v3, %v5233_v40 }
 0x4ea   : > { %v5236_v25 = vadd.f32 %v13487_v26, %v4621_v6  ;;  %v6517_v6 = vld [vmem:[%s13068_s7] sm:$0xff] }
 0x4eb   : > { %v5408_v21 = vmax.f32 %v5324_v1, 0.0 }
 0x4ec   : > { %9239 = vmatmul.mubr.msk.f32.gmra.mxu1 %vm5465_vm3, %v12489_v11  ;;  %v13488_v11 = vld [vmem:[#allocation125_spill] sm:$0xff] }
 0x4ed   : > { %9241 = vmatprep.mubr.msk.f32.mxu1 %vm5465_vm3, %v12508_v0  ;;  %v4631_v62 = vadd.f32 %v4630_v37, %v13488_v11  ;;  %v5237_v0 = vadd.f32 %v13489_v60, %v4626_v28  ;;  %v6521_v37 = vld [vmem:[%s13068_s7 + $0x20] sm:$0xff] }
 0x4ef   : > { %v5238_v5 = vadd.f32 %v13493_v2, %v4631_v62  ;;  %v5328_v45 = vadd.f32 %v12425_v3, %v5237_v0 }
 0x4f0   : > { %9242 = vmatmul.mubr.msk.f32.gmra.mxu1 %vm5465_vm3, %v12518_v16  ;;  %v5234_v16 = vadd.f32 %v13492_v52, %v4611_v17  ;;  %v9145_v17 = vpop.f32.mrf.mxu0 }
 0x4f1   : > { %9244 = vmatprep.mubr.msk.f32.mxu1 %vm5465_vm3, %v12525_v13  ;;  %v5327_v13 = vadd.f32 %v12425_v3, %v5236_v25  ;;  %v5412_v47 = vmax.f32 %v5328_v45, 0.0 }
 0x4f2   : > { %v5894_v25 = vpop.f32.mrf.mxu0 }
 0x4f3   : > { %v5411_v43 = vmax.f32 %v5327_v13, 0.0 }
 0x4f4   : > { %9245 = vmatmul.mubr.msk.f32.gmra.mxu1 %vm5465_vm3, %v12544_v63  ;;  %v5325_v63 = vadd.f32 %v12425_v3, %v5234_v16  ;;  %v9148_v62 = vpop.f32.mrf.mxu0 }
 0x4f5   : > { %9247 = vmatprep.mubr.msk.f32.mxu1 %vm5465_vm3, %v12554_v57  ;;  %v5329_v57 = vadd.f32 %v12425_v3, %v5238_v5  ;;  %v12688_v3 = vpop.f32.mrf.mxu1 }
 0x4f6   : > { %v5409_v30 = vmax.f32 %v5325_v63, 0.0  ;;  %v5904_v0 = vpop.f32.mrf.mxu0 }
 0x4f7   : > { %v5413_v48 = vmax.f32 %v5329_v57, 0.0  ;;  %v12693_v22 = vpop.f32.mrf.mxu1 }
 0x4f8   : > { %9248 = vmatmul.mubr.msk.f32.gmra.mxu1 %vm5465_vm3, %v12561_v41  ;;  %v5453_v41 = vmax.f32 %v5408_v21, %v5411_v43  ;;  %v5454_v32 = vmax.f32 %v5409_v30, %v5412_v47  ;;  %v9151_v40 = vpop.f32.mrf.mxu0 }
 0x4f9   : > { %9250 = vmatprep.mubr.msk.f32.mxu1 %vm5465_vm3, %v12582_v35  ;;  %v5455_v35 = vmax.f32 %v5410_v15, %v5413_v48  ;;  %v5900_v15 = vadd.f32 %v9145_v17, %v12686_v53 }
 0x4fa   : > { %v5914_v14 = vpop.f32.mrf.mxu0 }
 0x4fc   : > { %9251 = vmatmul.mubr.msk.f32.gmra.mxu1 %vm5465_vm3, %v12590_v59  ;;  %v6524_v59 = vld [vmem:[%s13068_s7 + $0x38] sm:$0xff]  ;;  %v9154_v16 = vpop.f32.mrf.mxu0 }
 0x4fd   : > { %9253 = vmatprep.mubr.msk.f32.mxu1 %vm5465_vm3, %v12595_v42  ;;  %9260 = vmatpush3.msra.mxu0 %v6524_v59  ;;  %v12696_v42 = vpop.f32.mrf.mxu1  ;;  %v5895_v59 = vadd.f32 %v5894_v25, %v12688_v3 }
 0x4fe   : > { %9261 = vmatprep.subr.mxu0 %v13234_v29  ;;  %v5924_v2 = vpop.f32.mrf.mxu0  ;;  %v5905_v53 = vadd.f32 %v5904_v0, %v12696_v42 }
 0x4ff   : > { %v12698_v12 = vpop.f32.mrf.mxu1  ;;  %9262 = vmatpush3.msra.mxu0 %v6523_v18 }
 0x500   : > { %9254 = vmatmul.mubr.msk.f32.gmra.mxu1 %vm5465_vm3, %v5453_v41  ;;  %9263 = vmatprep.subr.mxu0 %v13234_v29  ;;  %v9157_v45 = vpop.f32.mrf.mxu0 }
 0x501   : > { %9256 = vmatprep.mubr.msk.f32.mxu1 %vm5465_vm3, %v5454_v32  ;;  %v12704_v56 = vpop.f32.mrf.mxu1  ;;  %9264 = vmatpush3.msra.mxu0 %v6522_v55 }
 0x502   : > { %9265 = vmatprep.subr.mxu0 %v13234_v29  ;;  %v5934_v8 = vpop.f32.mrf.mxu0 }
 0x503   : > { %v12706_v20 = vpop.f32.mrf.mxu1  ;;  %9266 = vmatpush3.msra.mxu0 %v6521_v37 }
 0x504   : > { %9257 = vmatmul.mubr.msk.f32.gmra.mxu1 %vm5465_vm3, %v5455_v35  ;;  %9267 = vmatprep.subr.mxu0 %v13234_v29  ;;  %v9160_v63 = vpop.f32.mrf.mxu0 }
 0x505   : > { %v12711_v61 = vpop.f32.mrf.mxu1  ;;  %9268 = vmatpush3.msra.mxu0 %v6520_v34  ;;  %v12803_v34 = vld [vmem:[%s13067_s6] ss:$0 sm:$0xff] }
 0x506   : > { %9269 = vmatprep.subr.mxu0 %v13234_v29  ;;  %v5944_v57 = vpop.f32.mrf.mxu0 }
 0x507   : > { %v12714_v19 = vpop.f32.mrf.mxu1  ;;  %9270 = vmatpush3.msra.mxu0 %v6519_v44  ;;  %v5910_v44 = vadd.f32 %v9148_v62, %v12693_v22  ;;  %v5925_v22 = vadd.f32 %v5924_v2, %v12711_v61 }
 0x508   : > { %9271 = vmatprep.subr.mxu0 %v13234_v29  ;;  %v12788_v21 = vpop.f32.mrf.mxu0 }
 0x509   : > { %v12719_v23 = vpop.f32.mrf.mxu1  ;;  %9272 = vmatpush3.msra.mxu0 %v6518_v7 }
 0x50a   : > { %9273 = vmatprep.subr.mxu0 %v13234_v29  ;;  %v12792_v41 = vpop.f32.mrf.mxu0 }
 0x50b   : > { %v12722_v54 = vpop.f32.mrf.mxu1  ;;  %9274 = vmatpush3.msra.mxu0 %v6517_v6 }
 0x50c   : > { %9284 = vmatprep.subr.mxu0 %v13234_v29  ;;  %v12794_v32 = vpop.f32.mrf.mxu0 }
 0x50d   : > { %v12724_v49 = vpop.f32.mrf.mxu1 }
 0x50e   : > { %v12798_v37 = vpop.f32.mrf.mxu0 }
 0x50f   : > { %v12730_v36 = vpop.f32.mrf.mxu1 }
 0x510   : > { %v12806_v29 = vpop.f32.mrf.mxu0 }
 0x511   : > { %v12732_v46 = vpop.f32.mrf.mxu1 }
 0x513   : > { %v12738_v27 = vpop.f32.mrf.mxu1 }
 0x515   : > { %v12740_v38 = vpop.f32.mrf.mxu1 }
 0x517   : > { %v12745_v51 = vpop.f32.mrf.mxu1 }
 0x519   : > { %v12748_v33 = vpop.f32.mrf.mxu1 }
 0x51b   : > { %v12753_v50 = vpop.f32.mrf.mxu1 }
 0x51d   : > { %v12756_v28 = vpop.f32.mrf.mxu1 }
 0x51f   : > { %v12758_v10 = vpop.f32.mrf.mxu1 }
 0x521   : > { %v12760_v58 = vpop.f32.mrf.mxu1 }
 0x523   : > { %v12762_v4 = vpop.f32.mrf.mxu1 }
 0x525   : > { %v12764_v26 = vpop.f32.mrf.mxu1 }
 0x530   : > { %v12766_v11 = vpop.f32.mrf.mxu1 }
 0x532   : > { %v12768_v60 = vpop.f32.mrf.mxu1 }
 0x544   : > { %v12770_v31 = vpop.f32.mrf.mxu1 }
 0x546   : > { %v12772_v24 = vpop.f32.mrf.mxu1 }
 0x54c   : > { %v12774_v52 = vpop.f32.mrf.mxu1 }
 0x54e   : > { %v12776_v13 = vpop.f32.mrf.mxu1 }
 0x560   : > { %v12778_v5 = vpop.f32.mrf.mxu1 }
 0x562   : > { %v12780_v1 = vpop.f32.mrf.mxu1 }
 0x574   : > { %v12782_v9 = vpop.f32.mrf.mxu1 }
 0x575   : > { %13495 = vst [vmem:[#allocation58_spill] sm:$0xff] %v12782_v9  ;;  %v12813_v9 = vpop.f32.mrf.mxu0 }
 0x576   : > { %v12784_v43 = vpop.f32.mrf.mxu1 }
 0x577   : > { %13496 = vst [vmem:[#allocation59_spill] sm:$0xff] %v12784_v43 }
 0x57c   : > { %v12786_v47 = vpop.f32.mrf.mxu1 }
 0x57d   : > { %13497 = vst [vmem:[#allocation61_spill] sm:$0xff] %v12786_v47 }
 0x57e   : > { %v12790_v39 = vpop.f32.mrf.mxu1 }
 0x57f   : > { %13498 = vst [vmem:[#allocation60_spill] sm:$0xff] %v12790_v39 }
 0x580   : > { %v9207_v30 = vpop.f32.mrf.mxu1 }
 0x581   : > { %v6333_v18 = vadd.f32 %v9207_v30, %v5900_v15  ;;  %v5930_v30 = vadd.f32 %v9154_v16, %v12706_v20  ;;  %v5920_v15 = vadd.f32 %v9151_v40, %v12698_v12  ;;  %v5940_v12 = vadd.f32 %v9157_v45, %v12714_v19 }
 0x582   : > { %v6153_v48 = vpop.f32.mrf.mxu1  ;;  %v5935_v16 = vadd.f32 %v5934_v8, %v12719_v23 }
 0x583   : > { %v6332_v7 = vadd.f32 %v6153_v48, %v5895_v59  ;;  %v6376_v17 = vadd.f32 %v12803_v34, %v6333_v18  ;;  %v5915_v48 = vadd.f32 %v5914_v14, %v12704_v56  ;;  %v12818_v18 = vpop.f32.mrf.mxu0  ;;  %v5950_v14 = vadd.f32 %v9160_v63, %v12722_v54 }
 0x584   : > { %v9210_v35 = vpop.f32.mrf.mxu1 }
 0x585   : > { %v6335_v3 = vadd.f32 %v9210_v35, %v5910_v44  ;;  %v6375_v39 = vadd.f32 %v12803_v34, %v6332_v7  ;;  %v6412_v42 = vmax.f32 %v6376_v17, 0.0  ;;  %v12831_v8 = vpop.f32.mrf.mxu0 }
 0x586   : > { %v6163_v55 = vpop.f32.mrf.mxu1 }
 0x587   : > { %v6334_v47 = vadd.f32 %v6163_v55, %v5905_v53  ;;  %v6378_v0 = vadd.f32 %v12803_v34, %v6335_v3  ;;  %v6411_v55 = vmax.f32 %v6375_v39, 0.0  ;;  %v12828_v19 = vsel %vm6447_vm4, %v6412_v42, -inf }
 0x588   : > { %v9213_v6 = vpop.f32.mrf.mxu1  ;;  %v5960_v42 = vadd.f32 %v12788_v21, %v12730_v36 }
 0x589   : > { %v6337_v35 = vadd.f32 %v9213_v6, %v5920_v15  ;;  %v6377_v61 = vadd.f32 %v12803_v34, %v6334_v47  ;;  %v5945_v6 = vadd.f32 %v5944_v57, %v12724_v49  ;;  %v6414_v45 = vmax.f32 %v6378_v0, 0.0 }
 0x58a   : > { %v6173_v25 = vpop.f32.mrf.mxu1  ;;  %v12836_v17 = vsel %vm6447_vm4, %v6411_v55, -inf }
 0x58b   : > { %v6336_v2 = vadd.f32 %v6173_v25, %v5915_v48  ;;  %v6380_v53 = vadd.f32 %v12803_v34, %v6337_v35  ;;  %v6413_v3 = vmax.f32 %v6377_v61, 0.0  ;;  %v6449_v0 = vsel %vm6447_vm4, %v6414_v45, -inf }
 0x58c   : > { %v9216_v43 = vpop.f32.mrf.mxu1  ;;  %v5955_v61 = vadd.f32 %v12792_v41, %v12732_v46  ;;  %v5970_v45 = vadd.f32 %v12794_v32, %v12738_v27 }
 0x58d   : > { %v6339_v62 = vadd.f32 %v9216_v43, %v5930_v30  ;;  %v6379_v49 = vadd.f32 %v12803_v34, %v6336_v2  ;;  %v12840_v30 = vpop.f32.mrf.mxu0  ;;  %v6416_v35 = vmax.f32 %v6380_v53, 0.0  ;;  %v6494_v2 = vsel %vm6447_vm4, %v6413_v3, -inf }
 0x58e   : > { %v6183_v59 = vpop.f32.mrf.mxu1 }
 0x58f   : > { %v6382_v20 = vadd.f32 %v12803_v34, %v6339_v62  ;;  %v6338_v40 = vadd.f32 %v6183_v59, %v5925_v22  ;;  %v5994_v21 = vpop.f32.mrf.mxu0 }
 0x590   : > { %v9219_v56 = vpop.f32.mrf.mxu1 }
 0x591   : > { %v6418_v43 = vmax.f32 %v6382_v20, 0.0  ;;  %v6381_v44 = vadd.f32 %v12803_v34, %v6338_v40  ;;  %v6341_v7 = vadd.f32 %v9219_v56, %v5940_v12  ;;  %v6415_v56 = vmax.f32 %v6379_v49, 0.0  ;;  %v9178_v46 = vpop.f32.mrf.mxu0 }
 0x592   : > { %v6193_v23 = vpop.f32.mrf.mxu1 }
 0x593   : > { %v6473_v47 = vsel %vm6447_vm4, %v6418_v43, -inf  ;;  %v6417_v39 = vmax.f32 %v6381_v44, 0.0  ;;  %v6384_v54 = vadd.f32 %v12803_v34, %v6341_v7  ;;  %v6340_v63 = vadd.f32 %v6193_v23, %v5935_v16 }
 0x594   : > { %v6474_v57 = vmax.f32 %v12828_v19, %v6473_v47  ;;  %v9222_v25 = vpop.f32.mrf.mxu1 }
 0x595   : > { %v6450_v15 = vsel %vm6447_vm4, %v6417_v39, -inf  ;;  %v6420_v22 = vmax.f32 %v6384_v54, 0.0  ;;  %v6383_v62 = vadd.f32 %v12803_v34, %v6340_v63  ;;  %v6343_v48 = vadd.f32 %v9222_v25, %v5950_v14 }
 0x596   : > { %v6451_v59 = vmax.f32 %v12836_v17, %v6450_v15  ;;  %v6203_v12 = vpop.f32.mrf.mxu1  ;;  %v5965_v63 = vadd.f32 %v12798_v37, %v12740_v38  ;;  %v6472_v17 = vsel %vm6447_vm4, %v6415_v56, -inf }
 0x597   : > { %v6452_v20 = vsel %vm6447_vm4, %v6420_v22, -inf  ;;  %v6419_v40 = vmax.f32 %v6383_v62, 0.0  ;;  %v6386_v16 = vadd.f32 %v12803_v34, %v6343_v48  ;;  %v6342_v55 = vadd.f32 %v6203_v12, %v5945_v6 }
 0x598   : > { %v6453_v14 = vmax.f32 %v6449_v0, %v6452_v20  ;;  %v9225_v36 = vpop.f32.mrf.mxu1  ;;  %v6495_v6 = vsel %vm6447_vm4, %v6416_v35, -inf  ;;  %v5980_v22 = vadd.f32 %v12806_v29, %v12745_v51  ;;  %v5975_v12 = vadd.f32 %v12813_v9, %v12748_v33 }
 0x599   : > { %v6496_v43 = vsel %vm6447_vm4, %v6419_v40, -inf  ;;  %v6422_v44 = vmax.f32 %v6386_v16, 0.0  ;;  %v6385_v7 = vadd.f32 %v12803_v34, %v6342_v55  ;;  %v6345_v19 = vadd.f32 %v9225_v36, %v5960_v42  ;;  %v6004_v42 = vpop.f32.mrf.mxu0 }
 0x59a   : > { %v6497_v53 = vmax.f32 %v6494_v2, %v6496_v43  ;;  %v6213_v23 = vpop.f32.mrf.mxu1  ;;  %v5990_v2 = vadd.f32 %v12818_v18, %v12753_v50 }
 0x59b   : > { %v6498_v41 = vsel %vm6447_vm4, %v6422_v44, -inf  ;;  %v6421_v47 = vmax.f32 %v6385_v7, 0.0  ;;  %v6388_v39 = vadd.f32 %v12803_v34, %v6345_v19  ;;  %v6344_v54 = vadd.f32 %v6213_v23, %v5955_v61  ;;  %v9181_v16 = vpop.f32.mrf.mxu0 }
 0x59c   : > { %v6499_v3 = vmax.f32 %v6495_v6, %v6498_v41  ;;  %v9228_v49 = vpop.f32.mrf.mxu1 }
 0x59d   : > { %v6475_v27 = vsel %vm6447_vm4, %v6421_v47, -inf  ;;  %v6424_v32 = vmax.f32 %v6388_v39, 0.0  ;;  %v6387_v25 = vadd.f32 %v12803_v34, %v6344_v54  ;;  %v6347_v15 = vadd.f32 %v9228_v49, %v5970_v45  ;;  %v6014_v45 = vpop.f32.mrf.mxu0 }
 0x59e   : > { %v6476_v62 = vmax.f32 %v6472_v17, %v6475_v27  ;;  %v6223_v48 = vpop.f32.mrf.mxu1 }
 0x59f   : > { %v6477_v0 = vsel %vm6447_vm4, %v6424_v32, -inf  ;;  %v6423_v35 = vmax.f32 %v6387_v25, 0.0  ;;  %v6390_v38 = vadd.f32 %v12803_v34, %v6347_v15  ;;  %v6346_v37 = vadd.f32 %v6223_v48, %v5965_v63  ;;  %v9184_v39 = vpop.f32.mrf.mxu0 }
 0x5a0   : > { %v12871_v20 = vmax.f32 %v6474_v57, %v6477_v0  ;;  %v9231_v40 = vpop.f32.mrf.mxu1  ;;  %v5985_v57 = vadd.f32 %v12831_v8, %v12756_v28  ;;  %v5995_v63 = vadd.f32 %v5994_v21, %v12760_v58 }
 0x5a1   : > { %v6454_v55 = vsel %vm6447_vm4, %v6423_v35, -inf  ;;  %v6426_v61 = vmax.f32 %v6390_v38, 0.0  ;;  %v6389_v29 = vadd.f32 %v12803_v34, %v6346_v37  ;;  %v6349_v51 = vadd.f32 %v9231_v40, %v5980_v22  ;;  %v6024_v22 = vpop.f32.mrf.mxu0 }
 0x5a2   : > { %v12877_v56 = vmax.f32 %v6451_v59, %v6454_v55  ;;  %v6233_v36 = vpop.f32.mrf.mxu1  ;;  %v6000_v59 = vadd.f32 %v12840_v30, %v12758_v10 }
 0x5a3   : > { %v6456_v43 = vsel %vm6447_vm4, %v6426_v61, -inf  ;;  %v6425_v44 = vmax.f32 %v6389_v29, 0.0  ;;  %v6392_v33 = vadd.f32 %v12803_v34, %v6349_v51  ;;  %v6348_v9 = vadd.f32 %v6233_v36, %v5975_v12  ;;  %v9187_v37 = vpop.f32.mrf.mxu0 }
 0x5a4   : > { %v12883_v7 = vmax.f32 %v6453_v14, %v6456_v43  ;;  %v9234_v19 = vpop.f32.mrf.mxu1 }
 0x5a5   : > { %v6500_v6 = vsel %vm6447_vm4, %v6425_v44, -inf  ;;  %v6428_v23 = vmax.f32 %v6392_v33, 0.0  ;;  %v6391_v50 = vadd.f32 %v12803_v34, %v6348_v9  ;;  %v6351_v18 = vadd.f32 %v9234_v19, %v5990_v2  ;;  %v6034_v43 = vpop.f32.mrf.mxu0 }
 0x5a6   : > { %v12889_v41 = vmax.f32 %v6497_v53, %v6500_v6  ;;  %v6243_v47 = vpop.f32.mrf.mxu1  ;;  %v6010_v53 = vadd.f32 %v9178_v46, %v12762_v4 }
 0x5a7   : > { %v6502_v54 = vsel %vm6447_vm4, %v6428_v23, -inf  ;;  %v6427_v28 = vmax.f32 %v6391_v50, 0.0  ;;  %v6394_v8 = vadd.f32 %v12803_v34, %v6351_v18  ;;  %v6350_v14 = vadd.f32 %v6243_v47, %v5985_v57  ;;  %v9190_v19 = vpop.f32.mrf.mxu0 }
 0x5a8   : > { %v12894_v17 = vmax.f32 %v6499_v3, %v6502_v54  ;;  %v9237_v49 = vpop.f32.mrf.mxu1  ;;  %v6005_v3 = vadd.f32 %v6004_v42, %v12764_v26 }
 0x5a9   : > { %v6479_v27 = vsel %vm6447_vm4, %v6427_v28, -inf  ;;  %v6430_v32 = vmax.f32 %v6394_v8, 0.0  ;;  %v6393_v10 = vadd.f32 %v12803_v34, %v6350_v14  ;;  %v6353_v30 = vadd.f32 %v9237_v49, %v6000_v59  ;;  %v6044_v8 = vpop.f32.mrf.mxu0 }
 0x5aa   : > { %v12899_v25 = vmax.f32 %v6476_v62, %v6479_v27  ;;  %v6253_v15 = vpop.f32.mrf.mxu1  ;;  %v6020_v62 = vadd.f32 %v9181_v16, %v12766_v11 }
 0x5ab   : > { %v6481_v48 = vsel %vm6447_vm4, %v6430_v32, -inf  ;;  %v6429_v0 = vmax.f32 %v6393_v10, 0.0  ;;  %v6396_v58 = vadd.f32 %v12803_v34, %v6353_v30  ;;  %v6352_v21 = vadd.f32 %v6253_v15, %v5995_v63  ;;  %v9193_v10 = vpop.f32.mrf.mxu0 }
 0x5ac   : > { %v6482_v35 = vmax.f32 %v12871_v20, %v6481_v48  ;;  %v9240_v38 = vpop.f32.mrf.mxu1  ;;  %v6015_v20 = vadd.f32 %v6014_v45, %v12768_v60  ;;  %v6025_v45 = vadd.f32 %v6024_v22, %v12772_v24  ;;  %v6050_v15 = vadd.f32 %v9190_v19, %v12778_v5  ;;  %v13499_v5 = vld [vmem:[#allocation58_spill] sm:$0xff] }
 0x5ad   : > { %v6458_v12 = vsel %vm6447_vm4, %v6429_v0, -inf  ;;  %v6432_v40 = vmax.f32 %v6396_v58, 0.0  ;;  %v6395_v4 = vadd.f32 %v12803_v34, %v6352_v21  ;;  %v6355_v46 = vadd.f32 %v9240_v38, %v6010_v53 }
 0x5ae   : > { %v6459_v55 = vmax.f32 %v12877_v56, %v6458_v12  ;;  %v6263_v61 = vpop.f32.mrf.mxu1  ;;  %v6030_v56 = vadd.f32 %v9184_v39, %v12770_v31 }
 0x5af   : > { %v6460_v29 = vsel %vm6447_vm4, %v6432_v40, -inf  ;;  %v6431_v51 = vmax.f32 %v6395_v4, 0.0  ;;  %v6398_v26 = vadd.f32 %v12803_v34, %v6355_v46  ;;  %v6354_v42 = vadd.f32 %v6263_v61, %v6005_v3 }
 0x5b0   : > { %v6461_v2 = vmax.f32 %v12883_v7, %v6460_v29  ;;  %v9243_v36 = vpop.f32.mrf.mxu1  ;;  %v6045_v3 = vadd.f32 %v6044_v8, %v12780_v1 }
 0x5b1   : > { %v6504_v44 = vsel %vm6447_vm4, %v6431_v51, -inf  ;;  %v6434_v33 = vmax.f32 %v6398_v26, 0.0  ;;  %v6397_v11 = vadd.f32 %v12803_v34, %v6354_v42  ;;  %v6357_v16 = vadd.f32 %v9243_v36, %v6020_v62 }
 0x5b2   : > { %v6505_v9 = vmax.f32 %v12889_v41, %v6504_v44  ;;  %v6273_v57 = vpop.f32.mrf.mxu1  ;;  %v6040_v41 = vadd.f32 %v9187_v37, %v12774_v52  ;;  %v6054_v37 = vpop.f32.mrf.mxu0  ;;  %v6060_v62 = vadd.f32 %v9193_v10, %v13499_v5 }
 0x5b3   : > { %v6506_v6 = vsel %vm6447_vm4, %v6434_v33, -inf  ;;  %v6433_v23 = vmax.f32 %v6397_v11, 0.0  ;;  %v6400_v60 = vadd.f32 %v12803_v34, %v6357_v16  ;;  %v6356_v7 = vadd.f32 %v6273_v57, %v6015_v20  ;;  %v13500_v20 = vld [vmem:[#allocation59_spill] sm:$0xff] }
 0x5b4   : > { %v6507_v50 = vmax.f32 %v12894_v17, %v6506_v6  ;;  %v9246_v18 = vpop.f32.mrf.mxu1  ;;  %v6035_v17 = vadd.f32 %v6034_v43, %v12776_v13  ;;  %v9196_v29 = vpop.f32.mrf.mxu0 }
 0x5b5   : > { %v6483_v59 = vsel %vm6447_vm4, %v6433_v23, -inf  ;;  %v6436_v47 = vmax.f32 %v6400_v60, 0.0  ;;  %v6399_v31 = vadd.f32 %v12803_v34, %v6356_v7  ;;  %v6359_v39 = vadd.f32 %v9246_v18, %v6030_v56  ;;  %v13501_v56 = vld [vmem:[#allocation61_spill] sm:$0xff]  ;;  %v13502_v18 = vld [vmem:[#allocation60_spill] sm:$0xff] }
 0x5b6   : > { %v6484_v54 = vmax.f32 %v12899_v25, %v6483_v59  ;;  %v6283_v28 = vpop.f32.mrf.mxu1  ;;  %v6064_v6 = vpop.f32.mrf.mxu0 }
 0x5b7   : > { %v6485_v14 = vsel %vm6447_vm4, %v6436_v47, -inf  ;;  %v6435_v63 = vmax.f32 %v6399_v31, 0.0  ;;  %v6402_v24 = vadd.f32 %v12803_v34, %v6359_v39  ;;  %v6358_v49 = vadd.f32 %v6283_v28, %v6025_v45 }
 0x5b8   : > { %v12928_v27 = vmax.f32 %v6482_v35, %v6485_v14  ;;  %v9249_v32 = vpop.f32.mrf.mxu1 }
 0x5b9   : > { %v6462_v30 = vsel %vm6447_vm4, %v6435_v63, -inf  ;;  %v6438_v53 = vmax.f32 %v6402_v24, 0.0  ;;  %v6401_v52 = vadd.f32 %v12803_v34, %v6358_v49  ;;  %v6361_v25 = vadd.f32 %v9249_v32, %v6040_v41 }
 0x5ba   : > { %v6463_v22 = vmax.f32 %v6459_v55, %v6462_v30  ;;  %v6293_v48 = vpop.f32.mrf.mxu1 }
 0x5bb   : > { %v6464_v0 = vsel %vm6447_vm4, %v6438_v53, -inf  ;;  %v6437_v58 = vmax.f32 %v6401_v52, 0.0  ;;  %v6404_v21 = vadd.f32 %v12803_v34, %v6361_v25  ;;  %v6360_v13 = vadd.f32 %v6293_v48, %v6035_v17  ;;  %v6631_v52 = vld [vmem:[%s13070_s9 + $0x38] sm:$0xff]  ;;  %v6630_v48 = vld [vmem:[%s13070_s9 + $0x30] sm:$0xff] }
 0x5bc   : > { %v6465_v35 = vmax.f32 %v6461_v2, %v6464_v0  ;;  %v9252_v38 = vpop.f32.mrf.mxu1  ;;  %v6055_v2 = vadd.f32 %v6054_v37, %v13500_v20  ;;  %v6626_v37 = vld [vmem:[%s13070_s9 + $0x10] sm:$0xff] }
 0x5bd   : > { %v6508_v12 = vsel %vm6447_vm4, %v6437_v58, -inf  ;;  %v6440_v40 = vmax.f32 %v6404_v21, 0.0  ;;  %v6403_v4 = vadd.f32 %v12803_v34, %v6360_v13  ;;  %v6363_v46 = vadd.f32 %v9252_v38, %v6050_v15  ;;  %v6629_v13 = vld [vmem:[%s13070_s9 + $0x28] sm:$0xff]  ;;  %v6627_v38 = vld [vmem:[%s13070_s9 + $0x18] sm:$0xff] }
 0x5be   : > { %v6509_v55 = vmax.f32 %v6505_v9, %v6508_v12  ;;  %v6303_v61 = vpop.f32.mrf.mxu1  ;;  %v6070_v9 = vadd.f32 %v9196_v29, %v13501_v56  ;;  %v13503_v58 = vmov 0.0   ;;  %v6625_v12 = vld [vmem:[%s13070_s9 + $0x8] sm:$0xff] }
 0x5bf   : > { %v6510_v51 = vsel %vm6447_vm4, %v6440_v40, -inf  ;;  %v6439_v26 = vmax.f32 %v6403_v4, 0.0  ;;  %v6406_v42 = vadd.f32 %v12803_v34, %v6363_v46  ;;  %v6362_v1 = vadd.f32 %v6303_v61, %v6045_v3  ;;  %v6624_v40 = vld [vmem:[%s13070_s9] sm:$0xff] }
 0x5c0   : > { %v6511_v36 = vmax.f32 %v6507_v50, %v6510_v51  ;;  %v9255_v43 = vpop.f32.mrf.mxu1  ;;  %v6065_v50 = vadd.f32 %v6064_v6, %v13502_v18  ;;  %v7388_v4 = vld [vmem:[%s13069_s8] ss:$0 sm:$0xff] }
 0x5c1   : > { %v6487_v44 = vsel %vm6447_vm4, %v6439_v26, -inf  ;;  %v6442_v33 = vmax.f32 %v6406_v42, 0.0  ;;  %v6405_v11 = vadd.f32 %v12803_v34, %v6362_v1  ;;  %v6365_v16 = vadd.f32 %v9255_v43, %v6060_v62 }
 0x5c2   : > { %v6488_v57 = vmax.f32 %v6484_v54, %v6487_v44  ;;  %v6313_v19 = vpop.f32.mrf.mxu1 }
 0x5c3   : > { %v6489_v23 = vsel %vm6447_vm4, %v6442_v33, -inf  ;;  %v6441_v60 = vmax.f32 %v6405_v11, 0.0  ;;  %v6408_v7 = vadd.f32 %v12803_v34, %v6365_v16  ;;  %v6364_v45 = vadd.f32 %v6313_v19, %v6055_v2 }
 0x5c4   : > { %v6490_v59 = vmax.f32 %v12928_v27, %v6489_v23  ;;  %v9258_v47 = vpop.f32.mrf.mxu1 }
 0x5c5   : > { %v6466_v31 = vsel %vm6447_vm4, %v6441_v60, -inf  ;;  %v6444_v39 = vmax.f32 %v6408_v7, 0.0  ;;  %v6407_v41 = vadd.f32 %v12803_v34, %v6364_v45  ;;  %v6367_v28 = vadd.f32 %v9258_v47, %v6070_v9 }
 0x5c6   : > { %v6467_v54 = vmax.f32 %v6463_v22, %v6466_v31  ;;  %v6323_v8 = vpop.f32.mrf.mxu1 }
 0x5c7   : > { %v6468_v14 = vsel %vm6447_vm4, %v6444_v39, -inf  ;;  %v6443_v63 = vmax.f32 %v6407_v41, 0.0  ;;  %v6410_v24 = vadd.f32 %v12803_v34, %v6367_v28  ;;  %v6366_v49 = vadd.f32 %v6323_v8, %v6065_v50 }
 0x5c8   : > { %v6469_v17 = vmax.f32 %v6465_v35, %v6468_v14  ;;  %v6628_v35 = vld [vmem:[%s13070_s9 + $0x20] sm:$0xff] }
 0x5c9   : > { %v6512_v32 = vsel %vm6447_vm4, %v6443_v63, -inf  ;;  %v6446_v10 = vmax.f32 %v6410_v24, 0.0  ;;  %v6409_v27 = vadd.f32 %v12803_v34, %v6366_v49 }
 0x5ca   : > { %v6470_v30 = vmax.f32 %v6467_v54, %v6469_v17  ;;  %v6513_v53 = vmax.f32 %v6509_v55, %v6512_v32 }
 0x5cb   : > { %v6514_v25 = vsel %vm6447_vm4, %v6446_v10, -inf  ;;  %v6445_v15 = vmax.f32 %v6409_v27, 0.0 }
 0x5cc   : > { %v6515_v22 = vmax.f32 %v6511_v36, %v6514_v25  ;;  %9276 = vmatmul.mubr.msk.f32.vlgmr.msra.gmra.mxu0 %vm6447_vm4, %v6470_v30  ;;  %v7392_v36 = vld [vmem:[%s13071_s10] ss:$0 sm:$0xff] }
 0x5cd   : > { %v6491_v0 = vsel %vm6447_vm4, %v6445_v15, -inf  ;;  %9278 = vmatprep.mubr.msk.f32.mxu0 %vm9425_vm1, %v13503_v58  ;;  %9285 = vmatpush3.msra.mxu0 %v6631_v52 }
 0x5ce   : > { %v6516_v34 = vmax.f32 %v6513_v53, %v6515_v22  ;;  %v6492_v21 = vmax.f32 %v6488_v57, %v6491_v0  ;;  %9286 = vmatprep.subr.mxu0 %v13503_v58 }
 0x5cf   : > { %9287 = vmatpush3.msra.mxu0 %v6630_v48 }
 0x5d0   : > { %v6493_v3 = vmax.f32 %v6490_v59, %v6492_v21  ;;  %9288 = vmatprep.subr.mxu0 %v13503_v58 }
 0x5d1   : > { %9289 = vmatpush3.msra.mxu0 %v6629_v13 }
 0x5d2   : > { %9279 = vmatmul.mubr.msk.f32.gmra.mxu0 %vm6447_vm4, %v6493_v3  ;;  %9290 = vmatprep.subr.mxu0 %v13503_v58 }
 0x5d3   : > { %9281 = vmatprep.mubr.msk.f32.mxu0 %vm9425_vm1, %v13503_v58  ;;  %9291 = vmatpush3.msra.mxu0 %v6628_v35 }
 0x5d4   : > { %9292 = vmatprep.subr.mxu0 %v13503_v58 }
 0x5d5   : > { %9293 = vmatpush3.msra.mxu0 %v6627_v38 }
 0x5d6   : > { %9282 = vmatmul.mubr.msk.f32.gmra.mxu0 %vm6447_vm4, %v6516_v34  ;;  %9294 = vmatprep.subr.mxu0 %v13503_v58 }
 0x5d7   : > { %9300 = vmatprep.mubr.msk.f32.mxu0 %vm9425_vm1, %v13503_v58  ;;  %9295 = vmatpush3.msra.mxu0 %v6626_v37 }
 0x5d8   : > { %9296 = vmatprep.subr.mxu0 %v13503_v58 }
 0x5d9   : > { %9297 = vmatpush3.msra.mxu0 %v6625_v12 }
 0x5da   : > { %9298 = vmatprep.subr.mxu0 %v13503_v58 }
 0x5db   : > { %9299 = vmatpush3.msra.mxu0 %v6624_v40 }
 0x68c   : > { %v6607_v46 = vpop.f32.mrf.mxu0 }
 0x68d   : > { %v6608_v5 = vadd.f32 %v7388_v4, %v6607_v46 }
 0x68e   : > { %v9277_v62 = vpop.f32.mrf.mxu0 }
 0x68f   : > { %v6621_v55 = vmax.f32 %v6608_v5, 0.0 }
 0x691   : > { %9301 = vmatmul.mubr.msk.f32.vlgmr.msra.gmra.mxu0 %vm6447_vm4, %v6621_v55 }
 0x692   : > { %v6612_v61 = vpop.f32.mrf.mxu0  ;;  %9303 = vmatprep.mubr.msk.f32.mxu0 %vm9425_vm1, %v13503_v58 }
 0x693   : > { %v6613_v29 = vadd.f32 %v7388_v4, %v6612_v61 }
 0x694   : > { %v9280_v51 = vpop.f32.mrf.mxu0 }
 0x695   : > { %v6622_v26 = vmax.f32 %v6613_v29, 0.0 }
 0x696   : > { %v6617_v42 = vpop.f32.mrf.mxu0 }
 0x697   : > { %v6618_v1 = vadd.f32 %v7388_v4, %v6617_v42  ;;  %9304 = vmatmul.mubr.msk.f32.gmra.mxu0 %vm6447_vm4, %v6622_v26 }
 0x698   : > { %v9283_v20 = vpop.f32.mrf.mxu0  ;;  %9306 = vmatprep.mubr.msk.f32.mxu0 %vm9425_vm1, %v13503_v58 }
 0x699   : > { %v6623_v2 = vmax.f32 %v6618_v1, 0.0 }
 0x69b   : > { %9307 = vmatmul.mubr.msk.f32.gmra.mxu0 %vm6447_vm4, %v6623_v2 }
 0x751   : > { %v6714_v43 = vpop.f32.mrf.mxu0 }
 0x752   : > { %v6715_v44 = vadd.f32 %v7392_v36, %v6714_v43 }
 0x753   : > { %v9302_v33 = vpop.f32.mrf.mxu0 }
 0x754   : > { %6728 = vst [vmem:[%s1160_s16] sm:$0xff] %v6715_v44 }
 0x757   : > { %v6719_v11 = vpop.f32.mrf.mxu0 }
 0x758   : > { %v6720_v16 = vadd.f32 %v7392_v36, %v6719_v11 }
 0x759   : > { %v9305_v56 = vpop.f32.mrf.mxu0 }
 0x75a   : > { %6729 = vst [vmem:[%s1160_s16 + $0x8] sm:$0xff] %v6720_v16 }
 0x75b   : > { %v6724_v9 = vpop.f32.mrf.mxu0 }
 0x75c   : > { %v6725_v57 = vadd.f32 %v7392_v36, %v6724_v9 }
 0x75d   : > { %v9308_v19 = vpop.f32.mrf.mxu0 }
 0x75e   : > { %6730 = vst [vmem:[%s1160_s16 + $0x10] sm:$0xff] %v6725_v57 }
 0x75f   : > { %9375 = shalt.err (!%p9372_p5)
}
 0x760   : > { %s9376_s16 = scalar_lea.hbm %s13018_s13, 384  ;;  %s9380_s12 = scalar_lea.hbm %s13072_s11, 768 }
 0x761   : > { %p9377_p7 = scmp.ne.s32.totalorder %s13018_s13, %s9376_s16  ;;  %p9381_p12 = scmp.lt.s32.totalorder %s13018_s13, %s13072_s11 }
 0x762   : > { %p9382_p13 = scmp.lt.s32.totalorder %s9380_s12, %s9376_s16 }
 0x763   : > { %p9378_p10 = pnand %p9377_p7, %p9527_p6 }
 0x764   : > { %p9383_p0 = por %p9382_p13, %p9381_p12 }
 0x765   : > { %p9379_p11 = pneg %p9378_p10 }
 0x767   : > { %p9384_p1 = pnand %p9383_p0, %p9379_p11 }
 0x769   : > { %9387 = shalt.err (!%p9384_p1)
}
 0x76a   : > { %s9427_s0 = smov 128   ;;  %s9428_s15 = smov 8  }
 0x76b   : > { %s13504_s30 = scalar_lea.sflag [#allocation4], %s9925_s25 }
 0x76c   : > { %9316 = dma.vmem_to_hbm [thread:$0]  (%p9527_p6), %s13013_s22, 384, %s13018_s13, %s13504_s30, %s9427_s0, %s9427_s0, %s9428_s15  }
 0x76d PF: > { %s6760_s24 = sand.u32 1, %s9410_s17   ;;  %p9319_p2 = pnand %p6815_p9, %p9531_p8 }
 0x76e   : > { %s6761_s14 = scalar_lea.sflag [#allocation4], %s6760_s24 }
 0x76f   : > { %p9320_p3 = pneg %p9319_p2 }
 0x771   : > { %9405 = dma.done.wait (%p9320_p3), %s6761_s14, 384  }
 0x772   : > { %9407 = vsyncadd (%p9320_p3), %s6761_s14, 4294966912  ;;  %p21_p4 = scmp.ge.s32.totalorder %s9512_s23, 4   ;;  %s13505_s17 = smov %s9414_s18 }
 0x773   : > { %s13506_s18 = smov %s9418_s19  ;;  %s13507_s19 = smov %s9525_s26 }
 0x774   : > { %s13508_s20 = smov %s9512_s23  ;;  %23 = sbr.rel (!%p21_p4) target bundleno = 5 (0x5), region = 146 }
 0x779   :  { %6766 = vsyncpa [#allocation4], 1 }
 0x77a   :  { %6768 = vsyncpa [#allocation4 + $0x1], 1 }

</bundles_post_ra>
